<compile_context>
chip_gen: v7x
topology: tpu7x:2x2x1
jax: 0.10.0
libtpu: 0.0.40
codegen_flags: <defaults>
</compile_context>

<pallas_src>
import functools
import math

import jax
import jax.numpy as jnp
from jax.experimental import pallas as pl
from jax.experimental.pallas import tpu as pltpu


# -----------------------------------------------------------------------------
# Helpers
# -----------------------------------------------------------------------------

def _round_up(x, m):
    return (x + m - 1) // m * m


def _pick_tile(dim, unit, cap):
    """Return (tile, padded_dim): full extent when it fits under `cap`,
    otherwise the multiple of `unit` <= cap minimising padding (prefer the
    larger tile on ties)."""
    d = _round_up(dim, unit)
    if d <= cap:
        return d, d
    best_t, best_p = unit, _round_up(d, unit)
    t = 2 * unit
    while t <= cap:
        p = _round_up(d, t)
        if p <= best_p:
            best_t, best_p = t, p
        t += unit
    return best_t, best_p


# -----------------------------------------------------------------------------
# Pallas kernels
# -----------------------------------------------------------------------------

def _matmul_kernel(a_ref, b_ref, shift_ref, o_ref, acc_ref, *, act):
    """Tiled bf16 matmul with f32 accumulator and fused (+shift, activation)."""
    @pl.when(pl.program_id(2) == 0)
    def _():
        acc_ref[...] = jnp.zeros_like(acc_ref)

    acc_ref[...] += jnp.dot(a_ref[...], b_ref[...],
                            preferred_element_type=jnp.float32)

    @pl.when(pl.program_id(2) == pl.num_programs(2) - 1)
    def _():
        y = acc_ref[...] + shift_ref[...]
        if act == "relu":
            y = jnp.maximum(y, 0.0)
        elif act == "sigmoid":
            y = jax.nn.sigmoid(y)
        o_ref[...] = y.astype(o_ref.dtype)


def _cbam_pair_kernel(x_ref, w1_ref, w2_ref, t_avg_ref, t_max_ref, o_ref):
    """Fully fused CBAM (channel attention + spatial attention with the 7x7
    conv expressed as a precomputed (HW,HW) matrix per stats channel).
    One grid step per siamese branch; weights selected by the BlockSpec."""
    x = x_ref[...].astype(jnp.float32)                 # (N, HW, C)
    w1 = w1_ref[0]                                     # (C, C//r)
    w2 = w2_ref[0]                                     # (C//r, C)
    # ---- channel attention ----
    avg_c = jnp.mean(x, axis=1)                        # (N, C)
    max_c = jnp.max(x, axis=1)                         # (N, C)

    def mlp(v):
        h = jnp.maximum(jnp.dot(v, w1, preferred_element_type=jnp.float32), 0.0)
        return jnp.dot(h, w2, preferred_element_type=jnp.float32)

    ca = jax.nn.sigmoid(mlp(avg_c) + mlp(max_c))       # (N, C)
    xc = x * ca[:, None, :]                            # (N, HW, C)
    # ---- spatial attention ----
    avg_s = jnp.mean(xc, axis=-1)                      # (N, HW)
    max_s = jnp.max(xc, axis=-1)                       # (N, HW)
    logit = (jnp.dot(avg_s, t_avg_ref[0], preferred_element_type=jnp.float32)
             + jnp.dot(max_s, t_max_ref[0], preferred_element_type=jnp.float32))
    sa = jax.nn.sigmoid(logit)                         # (N, HW)
    o_ref[...] = (xc * sa[:, :, None]).astype(o_ref.dtype)


def _pdist_resize_kernel(a_ref, b_ref, mt_ref, o_ref):
    """F.pairwise_distance(p=2, eps=1e-6) over channels, fused with the
    bilinear (align_corners=True) upsample expressed as a matmul.
    Output is lane-dense: (N, out_h*out_w)."""
    d = a_ref[...].astype(jnp.float32) - b_ref[...].astype(jnp.float32) + 1e-6
    dist = jnp.sqrt(jnp.sum(d * d, axis=-1))           # (N, HW)
    o_ref[...] = jnp.dot(dist, mt_ref[...], preferred_element_type=jnp.float32)


def _reduce_resize_kernel(x_ref, w_ref, shift_ref, m_ref, o_ref):
    """Fused 1x1 conv (BN folded) + ReLU + bilinear align_corners upsample
    (as a single (OH*OW, H*W) matrix applied per batch element)."""
    w = w_ref[...]
    shift = shift_ref[...]
    m = m_ref[...]
    for n in range(x_ref.shape[0]):                    # static, tiny batch
        h = jnp.dot(x_ref[n], w, preferred_element_type=jnp.float32)
        h = jnp.maximum(h + shift, 0.0)                # (HWin, Cout)
        o_ref[n] = jnp.dot(m, h,
                           preferred_element_type=jnp.float32).astype(o_ref.dtype)


# -----------------------------------------------------------------------------
# Matmul / conv wrappers
# -----------------------------------------------------------------------------

def pallas_matmul(a, w2d, shift=None, act=None):
    """act((A @ W) + shift).  A:(M,K) cast to bf16; W:(K,N) bf16 (BN already
    folded into the columns); shift:(N,) f32."""
    M, K = a.shape
    K2, N = w2d.shape
    assert K == K2
    tm, Mp = _pick_tile(M, 8, 256)
    tk, Kp = _pick_tile(K, 128, 2048)
    tn, Np = _pick_tile(N, 128, 256)

    a = a.astype(jnp.bfloat16)
    if (Mp, Kp) != (M, K):
        a = jnp.pad(a, ((0, Mp - M), (0, Kp - K)))
    b = w2d.astype(jnp.bfloat16)
    if (Kp, Np) != (K, N):
        b = jnp.pad(b, ((0, Kp - K), (0, Np - N)))
    if shift is None:
        shift_p = jnp.zeros((1, Np), jnp.float32)
    else:
        shift_p = shift.astype(jnp.float32).reshape(1, N)
        if Np != N:
            shift_p = jnp.pad(shift_p, ((0, 0), (0, Np - N)))

    out = pl.pallas_call(
        functools.partial(_matmul_kernel, act=act),
        out_shape=jax.ShapeDtypeStruct((Mp, Np), jnp.float32),
        grid_spec=pltpu.PrefetchScalarGridSpec(
            num_scalar_prefetch=0,
            grid=(Mp // tm, Np // tn, Kp // tk),
            in_specs=[
                pl.BlockSpec((tm, tk), lambda i, j, k: (i, k)),
                pl.BlockSpec((tk, tn), lambda i, j, k: (k, j)),
                pl.BlockSpec((1, tn), lambda i, j, k: (0, j)),
            ],
            out_specs=pl.BlockSpec((tm, tn), lambda i, j, k: (i, j)),
            scratch_shapes=[pltpu.VMEM((tm, tn), jnp.float32)],
        ),
        compiler_params=pltpu.CompilerParams(
            dimension_semantics=("parallel", "parallel", "arbitrary")),
    )(a, b, shift_p)
    if (Mp, Np) != (M, N):
        out = out[:M, :N]
    return out


def conv2d(x, w2d, shift=None, *, ksize, stride=1, padding=0, act=None):
    """x: (N,H,W,Cin); w2d: (KH*KW*Cin, Cout) with BN scale folded in."""
    N, H, W, Cin = x.shape
    KH = KW = ksize
    Cout = w2d.shape[1]
    Ho = (H + 2 * padding - KH) // stride + 1
    Wo = (W + 2 * padding - KW) // stride + 1
    x = x.astype(jnp.bfloat16)
    if KH == 1 and KW == 1 and padding == 0:
        A = x[:, ::stride, ::stride, :].reshape(N * Ho * Wo, Cin)
    else:
        # TODO(synk): move the tap gather/accumulation inside the kernel for
        # large resolutions; at 16x16 the im2col tensor is tiny (<=1 MiB bf16).
        xp = x if padding == 0 else jnp.pad(
            x, ((0, 0), (padding, padding), (padding, padding), (0, 0)))
        taps = [xp[:, kh:kh + stride * Ho:stride, kw:kw + stride * Wo:stride, :]
                for kh in range(KH) for kw in range(KW)]
        A = jnp.concatenate(taps, axis=-1).reshape(N * Ho * Wo, KH * KW * Cin)
    out = pallas_matmul(A, w2d, shift, act=act)
    return out.reshape(N, Ho, Wo, Cout)


def conv_transpose2d(x, w2d, shift=None, *, ksize, stride=1, padding=0,
                     output_padding=0, act=None):
    """ConvTranspose2d.  w2d is stored in the equivalent (already spatially
    flipped) forward-conv layout (KH*KW*Cin, Cout)."""
    # TODO(synk): decompose into stride^2 phase sub-convolutions to skip the
    # zero-inserted taps (4x / 16x MAC + traffic cut for ds2 / ds3).
    N, H, W, C = x.shape
    x = x.astype(jnp.bfloat16)
    if stride > 1:
        xd = jnp.zeros((N, (H - 1) * stride + 1, (W - 1) * stride + 1, C), x.dtype)
        xd = xd.at[:, ::stride, ::stride, :].set(x)
    else:
        xd = x
    p = ksize - 1 - padding
    xd = jnp.pad(xd, ((0, 0),
                      (p, p + output_padding),
                      (p, p + output_padding),
                      (0, 0)))
    return conv2d(xd, w2d, shift, ksize=ksize, stride=1, padding=0, act=act)


# -----------------------------------------------------------------------------
# Interpolation / attention glue (built at trace time, tiny)
# -----------------------------------------------------------------------------

def _bilinear_matrix(out_size, in_size):
    """1-D interpolation matrix, bilinear, align_corners=True (matches the
    original F.interpolate call)."""
    i = jnp.arange(out_size, dtype=jnp.float32)
    if out_size == 1:
        src = jnp.zeros_like(i)
    else:
        src = i * (in_size - 1) / (out_size - 1)
    i0 = jnp.clip(jnp.floor(src).astype(jnp.int32), 0, in_size - 1)
    i1 = jnp.clip(i0 + 1, 0, in_size - 1)
    w = src - i0.astype(jnp.float32)
    return ((1.0 - w)[:, None] * jax.nn.one_hot(i0, in_size, dtype=jnp.float32)
            + w[:, None] * jax.nn.one_hot(i1, in_size, dtype=jnp.float32))


def _spatial_conv_matrices(sa_w, H, W):
    """Express the 7x7 (2->1, pad=3) spatial-attention conv as two (HW, HW)
    matrices (one per stats channel): logit = avg @ T0 + max @ T1."""
    KH, KW = sa_w.shape[0], sa_w.shape[1]
    ph, pw = KH // 2, KW // 2
    oy = jnp.arange(H)[:, None, None, None]
    ox = jnp.arange(W)[None, :, None, None]
    iy = jnp.arange(H)[None, None, :, None]
    ix = jnp.arange(W)[None, None, None, :]
    ky = iy - oy + ph
    kx = ix - ox + pw
    valid = ((ky >= 0) & (ky < KH) & (kx >= 0) & (kx < KW)).astype(jnp.float32)
    kyc = jnp.clip(ky, 0, KH - 1)
    kxc = jnp.clip(kx, 0, KW - 1)
    wgt = sa_w[kyc, kxc, :, 0] * valid[..., None]        # (H, W, H, W, 2)
    T = jnp.transpose(wgt, (2, 3, 0, 1, 4)).reshape(H * W, H * W, 2)
    return T[..., 0], T[..., 1]


# -----------------------------------------------------------------------------
# Model blocks
# -----------------------------------------------------------------------------

def conv_bn_act(x, p, ksize, stride=1, padding=0, act="relu"):
    return conv2d(x, p["w"], p["shift"], ksize=ksize, stride=stride,
                  padding=padding, act=act)


def reduce_resize(x, p, out_h, out_w):
    """Decoder head: fused 1x1 conv (512->64, BN folded) + ReLU + bilinear
    (align_corners=True) upsample in ONE pallas_call."""
    N, H, W, Cin = x.shape
    Cout = p["w"].shape[1]
    Ah = _bilinear_matrix(out_h, H)
    Aw = _bilinear_matrix(out_w, W)
    M = jnp.einsum('ph,qw->pqhw', Ah, Aw).reshape(out_h * out_w, H * W)
    x_flat = x.reshape(N, H * W, Cin).astype(jnp.bfloat16)
    shift = p["shift"].astype(jnp.float32).reshape(1, Cout)
    y = pl.pallas_call(
        _reduce_resize_kernel,
        out_shape=jax.ShapeDtypeStruct((N, out_h * out_w, Cout), jnp.float32),
    )(x_flat, p["w"], shift, M)
    return y.reshape(N, out_h, out_w, Cout)


def cbam_pair(x_flat, p0, p1, H, W):
    """CBAM(f_c=64, ratio=8, kernel=7) for BOTH branches in one pallas_call.
    x_flat: (2N, H*W, C) stacked [branch0; branch1] -> (2N, H*W, C)."""
    # TODO(synk): tile over HW rows for large resolutions (whole map is VMEM
    # resident here, which is fine at 8x8x64).
    N2, HW, C = x_flat.shape
    assert N2 % 2 == 0
    Nh = N2 // 2
    t0a, t0m = _spatial_conv_matrices(p0["sa_w"], H, W)
    t1a, t1m = _spatial_conv_matrices(p1["sa_w"], H, W)
    w1 = jnp.stack([p0["ca_w1"], p1["ca_w1"]])           # (2, C, C//r)
    w2 = jnp.stack([p0["ca_w2"], p1["ca_w2"]])           # (2, C//r, C)
    ta = jnp.stack([t0a, t1a])                            # (2, HW, HW)
    tm = jnp.stack([t0m, t1m])                            # (2, HW, HW)
    Cr = w1.shape[2]
    return pl.pallas_call(
        _cbam_pair_kernel,
        out_shape=jax.ShapeDtypeStruct((N2, HW, C), jnp.float32),
        grid_spec=pltpu.PrefetchScalarGridSpec(
            num_scalar_prefetch=0,
            grid=(2,),
            in_specs=[
                pl.BlockSpec((Nh, HW, C), lambda i: (i, 0, 0)),
                pl.BlockSpec((1, C, Cr), lambda i: (i, 0, 0)),
                pl.BlockSpec((1, Cr, C), lambda i: (i, 0, 0)),
                pl.BlockSpec((1, HW, HW), lambda i: (i, 0, 0)),
                pl.BlockSpec((1, HW, HW), lambda i: (i, 0, 0)),
            ],
            out_specs=pl.BlockSpec((Nh, HW, C), lambda i: (i, 0, 0)),
        ),
        compiler_params=pltpu.CompilerParams(
            dimension_semantics=("parallel",)),
    )(x_flat, w1, w2, ta, tm)


def pdist_resize(a1, a2, Hd, Wd, out_h, out_w):
    """Per-pixel L2 distance over channels fused with the bilinear upsample.
    Output is lane-dense (N, out_h*out_w)."""
    Ah = _bilinear_matrix(out_h, Hd)
    Aw = _bilinear_matrix(out_w, Wd)
    Mt = jnp.einsum('ph,qw->hwpq', Ah, Aw).reshape(Hd * Wd, out_h * out_w)
    return pl.pallas_call(
        _pdist_resize_kernel,
        out_shape=jax.ShapeDtypeStruct((a1.shape[0], out_h * out_w), jnp.float32),
    )(a1, a2, Mt)


def ds_layer(x, p, stride, output_padding):
    """DS_layer: ConvT(k3,p1,stride,op)+BN+ReLU -> (Dropout=id) -> ConvT(k3,p1)."""
    x = conv_transpose2d(x, p["w1"], p["shift1"], ksize=3, stride=stride,
                         padding=1, output_padding=output_padding, act="relu")
    x = conv_transpose2d(x, p["w2"], p["shift2"], ksize=3, stride=1, padding=1)
    return x


def dsamnet_forward(params, x_nchw):
    """x_nchw: (N, 6, H, W); returns (dist (N,1,H,W), ds2 (N,2,H,W), ds3 (N,2,H,W))."""
    x = jnp.transpose(x_nchw, (0, 2, 3, 1)).astype(jnp.float32)   # NHWC
    N, H, W, _ = x.shape
    # x2=None path: split the 6 channels; stack the two siamese streams along
    # batch so the shared-weight backbone / decoder run once.
    both = jnp.concatenate([x[..., :3], x[..., 3:]], axis=0)      # (2N, H, W, 3)

    # ---- backbone (stand-in, see header TODO) ----
    f2 = conv_bn_act(both, params["bb1"], 3, stride=2, padding=1)   # 64  @ /2
    f3 = conv_bn_act(f2, params["bb2"], 3, stride=2, padding=1)     # 128 @ /4
    f4 = conv_bn_act(f3, params["bb3"], 3, stride=2, padding=1)     # 256 @ /8
    deep = conv_bn_act(f4, params["bb4"], 3, stride=1, padding=1)   # 512 @ /8

    # ---- decoder (stand-in, see header TODO) ----
    d = reduce_resize(deep, params["dec_reduce"],
                      f2.shape[1], f2.shape[2])                     # 1x1 + upsample
    low = conv_bn_act(f2, params["dec_low"], 1)                     # 1x1 64->64
    d = conv_bn_act(jnp.concatenate([d, low], axis=-1),
                    params["dec_fuse"], 3, stride=1, padding=1)     # 3x3 128->64

    Hd, Wd, C = d.shape[1], d.shape[2], d.shape[3]
    d_flat = d.reshape(2 * N, Hd * Wd, C)

    att = cbam_pair(d_flat, params["cbam0"], params["cbam1"], Hd, Wd)
    a1, a2 = att[:N], att[N:]

    # transpose(1,3) + F.pairwise_distance(keepdim) + transpose(1,3) followed
    # by bilinear upsample (align_corners=True), fused into one kernel.
    dist = pdist_resize(a1, a2, Hd, Wd, H, W).reshape(N, H, W, 1)

    ds2 = ds_layer(jnp.abs(f2[:N] - f2[N:]), params["ds2"],
                   stride=2, output_padding=1)
    ds3 = ds_layer(jnp.abs(f3[:N] - f3[N:]), params["ds3"],
                   stride=4, output_padding=3)

    to_nchw = lambda t: jnp.transpose(t, (0, 3, 1, 2))
    return to_nchw(dist), to_nchw(ds2), to_nchw(ds3)


# -----------------------------------------------------------------------------
# Deterministic parameter initialization (BN folded into weights at init)
# -----------------------------------------------------------------------------

def init_params(key):
    keys = iter(jax.random.split(key, 64))

    def bn(cout):
        gamma = jnp.ones((cout,), jnp.float32)
        beta = jnp.zeros((cout,), jnp.float32)
        mean = jnp.zeros((cout,), jnp.float32)
        var = jnp.ones((cout,), jnp.float32)
        s = gamma / jnp.sqrt(var + 1e-5)
        return s, beta - mean * s

    def conv_p(k, cin, cout, with_bn=True):
        w = jax.random.normal(next(keys), (k * k * cin, cout), jnp.float32)
        w = w * (0.1 / math.sqrt(k * k * cin))
        bias = jnp.zeros((cout,), jnp.float32)
        if with_bn:
            s, t = bn(cout)
        else:
            s = jnp.ones((cout,), jnp.float32)
            t = jnp.zeros((cout,), jnp.float32)
        return {"w": (w * s[None, :]).astype(jnp.bfloat16),
                "shift": (t + bias * s).astype(jnp.float32)}

    def cbam_p(c=64, ratio=8, k=7):
        return {
            "ca_w1": jax.random.normal(next(keys), (c, c // ratio), jnp.float32)
                     * (0.1 / math.sqrt(c)),
            "ca_w2": jax.random.normal(next(keys), (c // ratio, c), jnp.float32)
                     * (0.1 / math.sqrt(c // ratio)),
            "sa_w": jax.random.normal(next(keys), (k, k, 2, 1), jnp.float32)
                    * (0.1 / math.sqrt(k * k * 2)),
        }

    def ds_p(cin, cmid=32, n_class=2):
        c1 = conv_p(3, cin, cmid, with_bn=True)       # ConvT + BN (+ReLU fused)
        c2 = conv_p(3, cmid, n_class, with_bn=False)  # ConvT, bias only
        return {"w1": c1["w"], "shift1": c1["shift"],
                "w2": c2["w"], "shift2": c2["shift"]}

    return {
        "bb1": conv_p(3, 3, 64),
        "bb2": conv_p(3, 64, 128),
        "bb3": conv_p(3, 128, 256),
        "bb4": conv_p(3, 256, 512),
        "dec_reduce": conv_p(1, 512, 64),
        "dec_low": conv_p(1, 64, 64),
        "dec_fuse": conv_p(3, 128, 64),
        "cbam0": cbam_p(),
        "cbam1": cbam_p(),
        "ds2": ds_p(64),
        "ds3": ds_p(128),
    }


# -----------------------------------------------------------------------------

if __name__ == "__main__":
    key = jax.random.PRNGKey(0)
    pkey, xkey = jax.random.split(key)
    params = init_params(pkey)

    # x2=None path: single 6-channel input split into two 3-channel images.
    x = jax.random.normal(xkey, (2, 6, 16, 16), jnp.float32)

    fwd = jax.jit(dsamnet_forward)
    dist, ds2, ds3 = fwd(params, x)
    jax.block_until_ready((dist, ds2, ds3))

    assert dist.shape == (2, 1, 16, 16)
    assert ds2.shape == (2, 2, 16, 16)
    assert ds3.shape == (2, 2, 16, 16)
    print("KERNEL_OK")
</pallas_src>

<mosaic_0001>
module attributes {stable_mosaic.version = 11 : i64} {
  func.func @_matmul_kernel(%arg0: i32, %arg1: i32, %arg2: i32, %arg3: memref<256x128xbf16, #tpu.memory_space<vmem>>, %arg4: memref<128x128xbf16, #tpu.memory_space<vmem>>, %arg5: memref<1x128xf32, #tpu.memory_space<vmem>>, %arg6: memref<256x128xf32, #tpu.memory_space<vmem>>, %arg7: memref<256x128xf32, #tpu.memory_space<vmem>>) attributes {dimension_semantics = [#tpu.dimension_semantics<parallel>, #tpu.dimension_semantics<parallel>, #tpu.dimension_semantics<arbitrary>], iteration_bounds = array<i64: 1, 1, 1>, scalar_prefetch = 0 : i64, scratch_operands = 1 : i64, tpu.core_type = #tpu.core_type<tc>, window_params = [{transform_indices = @transform_0, window_bounds = array<i64: 256, 128>}, {transform_indices = @transform_1, window_bounds = array<i64: 128, 128>}, {transform_indices = @transform_2, window_bounds = array<i64: 1, 128>}, {transform_indices = @transform_3, window_bounds = array<i64: 256, 128>}]} {
    %c0_i32 = arith.constant 0 : i32
    %0 = arith.cmpi eq, %arg2, %c0_i32 : i32
    %1 = arith.extui %0 : i1 to i32
    %c0_i32_0 = arith.constant 0 : i32
    %2 = arith.cmpi ne, %1, %c0_i32_0 : i32
    scf.if %2 {
      %cst_10 = arith.constant 0.000000e+00 : f32
      %12 = vector.broadcast %cst_10 : f32 to vector<256x128xf32>
      %c0_11 = arith.constant 0 : index
      %c0_12 = arith.constant 0 : index
      %13 = vector.load %arg7[%c0_11, %c0_12] : memref<256x128xf32, #tpu.memory_space<vmem>>, vector<256x128xf32>
      tpu.vector_store %arg7[%c0_11, %c0_12], %12 {strides = array<i32>} : memref<256x128xf32, #tpu.memory_space<vmem>>, vector<256x128xf32>,
    } else {
    }
    %c0 = arith.constant 0 : index
    %c0_1 = arith.constant 0 : index
    %3 = vector.load %arg7[%c0, %c0_1] : memref<256x128xf32, #tpu.memory_space<vmem>>, vector<256x128xf32>
    %c0_2 = arith.constant 0 : index
    %c0_3 = arith.constant 0 : index
    %4 = vector.load %arg3[%c0_2, %c0_3] : memref<256x128xbf16, #tpu.memory_space<vmem>>, vector<256x128xbf16>
    %c0_4 = arith.constant 0 : index
    %c0_5 = arith.constant 0 : index
    %5 = vector.load %arg4[%c0_4, %c0_5] : memref<128x128xbf16, #tpu.memory_space<vmem>>, vector<128x128xbf16>
    %cst = arith.constant dense<0.000000e+00> : vector<256x128xf32>
    %6 = tpu.matmul %4, %5, %cst {dimension_numbers = #tpu.dot_dimension_numbers<[1], [0], [0], [1], [0, 0, 1, 1], [], []>} : vector<256x128xbf16>, vector<128x128xbf16>, vector<256x128xf32> -> vector<256x128xf32>
    %7 = arith.addf %3, %6 : vector<256x128xf32>
    %c0_6 = arith.constant 0 : index
    %c0_7 = arith.constant 0 : index
    %8 = vector.load %arg7[%c0_6, %c0_7] : memref<256x128xf32, #tpu.memory_space<vmem>>, vector<256x128xf32>
    tpu.vector_store %arg7[%c0_6, %c0_7], %7 {strides = array<i32>} : memref<256x128xf32, #tpu.memory_space<vmem>>, vector<256x128xf32>,
    %c0_i32_8 = arith.constant 0 : i32
    %9 = arith.cmpi eq, %arg2, %c0_i32_8 : i32
    %10 = arith.extui %9 : i1 to i32
    %c0_i32_9 = arith.constant 0 : i32
    %11 = arith.cmpi ne, %10, %c0_i32_9 : i32
    scf.if %11 {
      %c0_10 = arith.constant 0 : index
      %c0_11 = arith.constant 0 : index
      %12 = vector.load %arg7[%c0_10, %c0_11] : memref<256x128xf32, #tpu.memory_space<vmem>>, vector<256x128xf32>
      %c0_12 = arith.constant 0 : index
      %c0_13 = arith.constant 0 : index
      %13 = vector.load %arg5[%c0_12, %c0_13] : memref<1x128xf32, #tpu.memory_space<vmem>>, vector<1x128xf32>
      %14 = vector.broadcast %13 : vector<1x128xf32> to vector<256x128xf32>
      %15 = arith.addf %12, %14 : vector<256x128xf32>
      %cst_14 = arith.constant 0.000000e+00 : f32
      %16 = vector.broadcast %cst_14 : f32 to vector<256x128xf32>
      %17 = arith.maximumf %15, %16 : vector<256x128xf32>
      %c0_15 = arith.constant 0 : index
      %c0_16 = arith.constant 0 : index
      %18 = vector.load %arg6[%c0_15, %c0_16] : memref<256x128xf32, #tpu.memory_space<vmem>>, vector<256x128xf32>
      tpu.vector_store %arg6[%c0_15, %c0_16], %17 {strides = array<i32>} : memref<256x128xf32, #tpu.memory_space<vmem>>, vector<256x128xf32>,
    } else {
    }
    return
  }
  func.func @transform_0(%arg0: i32, %arg1: i32, %arg2: i32) -> (i32, i32) {
    %c0_i32 = arith.constant 0 : i32
    return %arg0, %arg2 : i32, i32
  }
  func.func @transform_1(%arg0: i32, %arg1: i32, %arg2: i32) -> (i32, i32) {
    %c0_i32 = arith.constant 0 : i32
    return %arg2, %arg1 : i32, i32
  }
  func.func @transform_2(%arg0: i32, %arg1: i32, %arg2: i32) -> (i32, i32) {
    %c0_i32 = arith.constant 0 : i32
    %c0_i32_0 = arith.constant 0 : i32
    return %c0_i32, %arg1 : i32, i32
  }
  func.func @transform_3(%arg0: i32, %arg1: i32, %arg2: i32) -> (i32, i32) {
    %c0_i32 = arith.constant 0 : i32
    return %arg0, %arg1 : i32, i32
  }
}

module attributes {stable_mosaic.version = 11 : i64} {
  func.func @_matmul_kernel(%arg0: i32, %arg1: i32, %arg2: i32, %arg3: memref<64x640xbf16, #tpu.memory_space<vmem>>, %arg4: memref<640x128xbf16, #tpu.memory_space<vmem>>, %arg5: memref<1x128xf32, #tpu.memory_space<vmem>>, %arg6: memref<64x128xf32, #tpu.memory_space<vmem>>, %arg7: memref<64x128xf32, #tpu.memory_space<vmem>>) attributes {dimension_semantics = [#tpu.dimension_semantics<parallel>, #tpu.dimension_semantics<parallel>, #tpu.dimension_semantics<arbitrary>], iteration_bounds = array<i64: 1, 1, 1>, scalar_prefetch = 0 : i64, scratch_operands = 1 : i64, tpu.core_type = #tpu.core_type<tc>, window_params = [{transform_indices = @transform_0, window_bounds = array<i64: 64, 640>}, {transform_indices = @transform_1, window_bounds = array<i64: 640, 128>}, {transform_indices = @transform_2, window_bounds = array<i64: 1, 128>}, {transform_indices = @transform_3, window_bounds = array<i64: 64, 128>}]} {
    %c0_i32 = arith.constant 0 : i32
    %0 = arith.cmpi eq, %arg2, %c0_i32 : i32
    %1 = arith.extui %0 : i1 to i32
    %c0_i32_0 = arith.constant 0 : i32
    %2 = arith.cmpi ne, %1, %c0_i32_0 : i32
    scf.if %2 {
      %cst_10 = arith.constant 0.000000e+00 : f32
      %12 = vector.broadcast %cst_10 : f32 to vector<64x128xf32>
      %c0_11 = arith.constant 0 : index
      %c0_12 = arith.constant 0 : index
      %13 = vector.load %arg7[%c0_11, %c0_12] : memref<64x128xf32, #tpu.memory_space<vmem>>, vector<64x128xf32>
      tpu.vector_store %arg7[%c0_11, %c0_12], %12 {strides = array<i32>} : memref<64x128xf32, #tpu.memory_space<vmem>>, vector<64x128xf32>,
    } else {
    }
    %c0 = arith.constant 0 : index
    %c0_1 = arith.constant 0 : index
    %3 = vector.load %arg7[%c0, %c0_1] : memref<64x128xf32, #tpu.memory_space<vmem>>, vector<64x128xf32>
    %c0_2 = arith.constant 0 : index
    %c0_3 = arith.constant 0 : index
    %4 = vector.load %arg3[%c0_2, %c0_3] : memref<64x640xbf16, #tpu.memory_space<vmem>>, vector<64x640xbf16>
    %c0_4 = arith.constant 0 : index
    %c0_5 = arith.constant 0 : index
    %5 = vector.load %arg4[%c0_4, %c0_5] : memref<640x128xbf16, #tpu.memory_space<vmem>>, vector<640x128xbf16>
    %cst = arith.constant dense<0.000000e+00> : vector<64x128xf32>
    %6 = tpu.matmul %4, %5, %cst {dimension_numbers = #tpu.dot_dimension_numbers<[1], [0], [0], [1], [0, 0, 1, 1], [], []>} : vector<64x640xbf16>, vector<640x128xbf16>, vector<64x128xf32> -> vector<64x128xf32>
    %7 = arith.addf %3, %6 : vector<64x128xf32>
    %c0_6 = arith.constant 0 : index
    %c0_7 = arith.constant 0 : index
    %8 = vector.load %arg7[%c0_6, %c0_7] : memref<64x128xf32, #tpu.memory_space<vmem>>, vector<64x128xf32>
    tpu.vector_store %arg7[%c0_6, %c0_7], %7 {strides = array<i32>} : memref<64x128xf32, #tpu.memory_space<vmem>>, vector<64x128xf32>,
    %c0_i32_8 = arith.constant 0 : i32
    %9 = arith.cmpi eq, %arg2, %c0_i32_8 : i32
    %10 = arith.extui %9 : i1 to i32
    %c0_i32_9 = arith.constant 0 : i32
    %11 = arith.cmpi ne, %10, %c0_i32_9 : i32
    scf.if %11 {
      %c0_10 = arith.constant 0 : index
      %c0_11 = arith.constant 0 : index
      %12 = vector.load %arg7[%c0_10, %c0_11] : memref<64x128xf32, #tpu.memory_space<vmem>>, vector<64x128xf32>
      %c0_12 = arith.constant 0 : index
      %c0_13 = arith.constant 0 : index
      %13 = vector.load %arg5[%c0_12, %c0_13] : memref<1x128xf32, #tpu.memory_space<vmem>>, vector<1x128xf32>
      %14 = vector.broadcast %13 : vector<1x128xf32> to vector<64x128xf32>
      %15 = arith.addf %12, %14 : vector<64x128xf32>
      %cst_14 = arith.constant 0.000000e+00 : f32
      %16 = vector.broadcast %cst_14 : f32 to vector<64x128xf32>
      %17 = arith.maximumf %15, %16 : vector<64x128xf32>
      %c0_15 = arith.constant 0 : index
      %c0_16 = arith.constant 0 : index
      %18 = vector.load %arg6[%c0_15, %c0_16] : memref<64x128xf32, #tpu.memory_space<vmem>>, vector<64x128xf32>
      tpu.vector_store %arg6[%c0_15, %c0_16], %17 {strides = array<i32>} : memref<64x128xf32, #tpu.memory_space<vmem>>, vector<64x128xf32>,
    } else {
    }
    return
  }
  func.func @transform_0(%arg0: i32, %arg1: i32, %arg2: i32) -> (i32, i32) {
    %c0_i32 = arith.constant 0 : i32
    return %arg0, %arg2 : i32, i32
  }
  func.func @transform_1(%arg0: i32, %arg1: i32, %arg2: i32) -> (i32, i32) {
    %c0_i32 = arith.constant 0 : i32
    return %arg2, %arg1 : i32, i32
  }
  func.func @transform_2(%arg0: i32, %arg1: i32, %arg2: i32) -> (i32, i32) {
    %c0_i32 = arith.constant 0 : i32
    %c0_i32_0 = arith.constant 0 : i32
    return %c0_i32, %arg1 : i32, i32
  }
  func.func @transform_3(%arg0: i32, %arg1: i32, %arg2: i32) -> (i32, i32) {
    %c0_i32 = arith.constant 0 : i32
    return %arg0, %arg1 : i32, i32
  }
}

module attributes {stable_mosaic.version = 11 : i64} {
  func.func @_matmul_kernel(%arg0: i32, %arg1: i32, %arg2: i32, %arg3: memref<256x1152xbf16, #tpu.memory_space<vmem>>, %arg4: memref<1152x128xbf16, #tpu.memory_space<vmem>>, %arg5: memref<1x128xf32, #tpu.memory_space<vmem>>, %arg6: memref<256x128xf32, #tpu.memory_space<vmem>>, %arg7: memref<256x128xf32, #tpu.memory_space<vmem>>) attributes {dimension_semantics = [#tpu.dimension_semantics<parallel>, #tpu.dimension_semantics<parallel>, #tpu.dimension_semantics<arbitrary>], iteration_bounds = array<i64: 2, 1, 1>, scalar_prefetch = 0 : i64, scratch_operands = 1 : i64, tpu.core_type = #tpu.core_type<tc>, window_params = [{transform_indices = @transform_0, window_bounds = array<i64: 256, 1152>}, {transform_indices = @transform_1, window_bounds = array<i64: 1152, 128>}, {transform_indices = @transform_2, window_bounds = array<i64: 1, 128>}, {transform_indices = @transform_3, window_bounds = array<i64: 256, 128>}]} {
    %c0_i32 = arith.constant 0 : i32
    %0 = arith.cmpi eq, %arg2, %c0_i32 : i32
    %1 = arith.extui %0 : i1 to i32
    %c0_i32_0 = arith.constant 0 : i32
    %2 = arith.cmpi ne, %1, %c0_i32_0 : i32
    scf.if %2 {
      %cst_10 = arith.constant 0.000000e+00 : f32
      %12 = vector.broadcast %cst_10 : f32 to vector<256x128xf32>
      %c0_11 = arith.constant 0 : index
      %c0_12 = arith.constant 0 : index
      %13 = vector.load %arg7[%c0_11, %c0_12] : memref<256x128xf32, #tpu.memory_space<vmem>>, vector<256x128xf32>
      tpu.vector_store %arg7[%c0_11, %c0_12], %12 {strides = array<i32>} : memref<256x128xf32, #tpu.memory_space<vmem>>, vector<256x128xf32>,
    } else {
    }
    %c0 = arith.constant 0 : index
    %c0_1 = arith.constant 0 : index
    %3 = vector.load %arg7[%c0, %c0_1] : memref<256x128xf32, #tpu.memory_space<vmem>>, vector<256x128xf32>
    %c0_2 = arith.constant 0 : index
    %c0_3 = arith.constant 0 : index
    %4 = vector.load %arg3[%c0_2, %c0_3] : memref<256x1152xbf16, #tpu.memory_space<vmem>>, vector<256x1152xbf16>
    %c0_4 = arith.constant 0 : index
    %c0_5 = arith.constant 0 : index
    %5 = vector.load %arg4[%c0_4, %c0_5] : memref<1152x128xbf16, #tpu.memory_space<vmem>>, vector<1152x128xbf16>
    %cst = arith.constant dense<0.000000e+00> : vector<256x128xf32>
    %6 = tpu.matmul %4, %5, %cst {dimension_numbers = #tpu.dot_dimension_numbers<[1], [0], [0], [1], [0, 0, 1, 1], [], []>} : vector<256x1152xbf16>, vector<1152x128xbf16>, vector<256x128xf32> -> vector<256x128xf32>
    %7 = arith.addf %3, %6 : vector<256x128xf32>
    %c0_6 = arith.constant 0 : index
    %c0_7 = arith.constant 0 : index
    %8 = vector.load %arg7[%c0_6, %c0_7] : memref<256x128xf32, #tpu.memory_space<vmem>>, vector<256x128xf32>
    tpu.vector_store %arg7[%c0_6, %c0_7], %7 {strides = array<i32>} : memref<256x128xf32, #tpu.memory_space<vmem>>, vector<256x128xf32>,
    %c0_i32_8 = arith.constant 0 : i32
    %9 = arith.cmpi eq, %arg2, %c0_i32_8 : i32
    %10 = arith.extui %9 : i1 to i32
    %c0_i32_9 = arith.constant 0 : i32
    %11 = arith.cmpi ne, %10, %c0_i32_9 : i32
    scf.if %11 {
      %c0_10 = arith.constant 0 : index
      %c0_11 = arith.constant 0 : index
      %12 = vector.load %arg7[%c0_10, %c0_11] : memref<256x128xf32, #tpu.memory_space<vmem>>, vector<256x128xf32>
      %c0_12 = arith.constant 0 : index
      %c0_13 = arith.constant 0 : index
      %13 = vector.load %arg5[%c0_12, %c0_13] : memref<1x128xf32, #tpu.memory_space<vmem>>, vector<1x128xf32>
      %14 = vector.broadcast %13 : vector<1x128xf32> to vector<256x128xf32>
      %15 = arith.addf %12, %14 : vector<256x128xf32>
      %cst_14 = arith.constant 0.000000e+00 : f32
      %16 = vector.broadcast %cst_14 : f32 to vector<256x128xf32>
      %17 = arith.maximumf %15, %16 : vector<256x128xf32>
      %c0_15 = arith.constant 0 : index
      %c0_16 = arith.constant 0 : index
      %18 = vector.load %arg6[%c0_15, %c0_16] : memref<256x128xf32, #tpu.memory_space<vmem>>, vector<256x128xf32>
      tpu.vector_store %arg6[%c0_15, %c0_16], %17 {strides = array<i32>} : memref<256x128xf32, #tpu.memory_space<vmem>>, vector<256x128xf32>,
    } else {
    }
    return
  }
  func.func @transform_0(%arg0: i32, %arg1: i32, %arg2: i32) -> (i32, i32) {
    %c0_i32 = arith.constant 0 : i32
    return %arg0, %arg2 : i32, i32
  }
  func.func @transform_1(%arg0: i32, %arg1: i32, %arg2: i32) -> (i32, i32) {
    %c0_i32 = arith.constant 0 : i32
    return %arg2, %arg1 : i32, i32
  }
  func.func @transform_2(%arg0: i32, %arg1: i32, %arg2: i32) -> (i32, i32) {
    %c0_i32 = arith.constant 0 : i32
    %c0_i32_0 = arith.constant 0 : i32
    return %c0_i32, %arg1 : i32, i32
  }
  func.func @transform_3(%arg0: i32, %arg1: i32, %arg2: i32) -> (i32, i32) {
    %c0_i32 = arith.constant 0 : i32
    return %arg0, %arg1 : i32, i32
  }
}

module attributes {stable_mosaic.version = 11 : i64} {
  func.func @_matmul_kernel(%arg0: i32, %arg1: i32, %arg2: i32, %arg3: memref<256x384xbf16, #tpu.memory_space<vmem>>, %arg4: memref<384x128xbf16, #tpu.memory_space<vmem>>, %arg5: memref<1x128xf32, #tpu.memory_space<vmem>>, %arg6: memref<256x128xf32, #tpu.memory_space<vmem>>, %arg7: memref<256x128xf32, #tpu.memory_space<vmem>>) attributes {dimension_semantics = [#tpu.dimension_semantics<parallel>, #tpu.dimension_semantics<parallel>, #tpu.dimension_semantics<arbitrary>], iteration_bounds = array<i64: 2, 1, 1>, scalar_prefetch = 0 : i64, scratch_operands = 1 : i64, tpu.core_type = #tpu.core_type<tc>, window_params = [{transform_indices = @transform_0, window_bounds = array<i64: 256, 384>}, {transform_indices = @transform_1, window_bounds = array<i64: 384, 128>}, {transform_indices = @transform_2, window_bounds = array<i64: 1, 128>}, {transform_indices = @transform_3, window_bounds = array<i64: 256, 128>}]} {
    %c0_i32 = arith.constant 0 : i32
    %0 = arith.cmpi eq, %arg2, %c0_i32 : i32
    %1 = arith.extui %0 : i1 to i32
    %c0_i32_0 = arith.constant 0 : i32
    %2 = arith.cmpi ne, %1, %c0_i32_0 : i32
    scf.if %2 {
      %cst_10 = arith.constant 0.000000e+00 : f32
      %12 = vector.broadcast %cst_10 : f32 to vector<256x128xf32>
      %c0_11 = arith.constant 0 : index
      %c0_12 = arith.constant 0 : index
      %13 = vector.load %arg7[%c0_11, %c0_12] : memref<256x128xf32, #tpu.memory_space<vmem>>, vector<256x128xf32>
      tpu.vector_store %arg7[%c0_11, %c0_12], %12 {strides = array<i32>} : memref<256x128xf32, #tpu.memory_space<vmem>>, vector<256x128xf32>,
    } else {
    }
    %c0 = arith.constant 0 : index
    %c0_1 = arith.constant 0 : index
    %3 = vector.load %arg7[%c0, %c0_1] : memref<256x128xf32, #tpu.memory_space<vmem>>, vector<256x128xf32>
    %c0_2 = arith.constant 0 : index
    %c0_3 = arith.constant 0 : index
    %4 = vector.load %arg3[%c0_2, %c0_3] : memref<256x384xbf16, #tpu.memory_space<vmem>>, vector<256x384xbf16>
    %c0_4 = arith.constant 0 : index
    %c0_5 = arith.constant 0 : index
    %5 = vector.load %arg4[%c0_4, %c0_5] : memref<384x128xbf16, #tpu.memory_space<vmem>>, vector<384x128xbf16>
    %cst = arith.constant dense<0.000000e+00> : vector<256x128xf32>
    %6 = tpu.matmul %4, %5, %cst {dimension_numbers = #tpu.dot_dimension_numbers<[1], [0], [0], [1], [0, 0, 1, 1], [], []>} : vector<256x384xbf16>, vector<384x128xbf16>, vector<256x128xf32> -> vector<256x128xf32>
    %7 = arith.addf %3, %6 : vector<256x128xf32>
    %c0_6 = arith.constant 0 : index
    %c0_7 = arith.constant 0 : index
    %8 = vector.load %arg7[%c0_6, %c0_7] : memref<256x128xf32, #tpu.memory_space<vmem>>, vector<256x128xf32>
    tpu.vector_store %arg7[%c0_6, %c0_7], %7 {strides = array<i32>} : memref<256x128xf32, #tpu.memory_space<vmem>>, vector<256x128xf32>,
    %c0_i32_8 = arith.constant 0 : i32
    %9 = arith.cmpi eq, %arg2, %c0_i32_8 : i32
    %10 = arith.extui %9 : i1 to i32
    %c0_i32_9 = arith.constant 0 : i32
    %11 = arith.cmpi ne, %10, %c0_i32_9 : i32
    scf.if %11 {
      %c0_10 = arith.constant 0 : index
      %c0_11 = arith.constant 0 : index
      %12 = vector.load %arg7[%c0_10, %c0_11] : memref<256x128xf32, #tpu.memory_space<vmem>>, vector<256x128xf32>
      %c0_12 = arith.constant 0 : index
      %c0_13 = arith.constant 0 : index
      %13 = vector.load %arg5[%c0_12, %c0_13] : memref<1x128xf32, #tpu.memory_space<vmem>>, vector<1x128xf32>
      %14 = vector.broadcast %13 : vector<1x128xf32> to vector<256x128xf32>
      %15 = arith.addf %12, %14 : vector<256x128xf32>
      %c0_14 = arith.constant 0 : index
      %c0_15 = arith.constant 0 : index
      %16 = vector.load %arg6[%c0_14, %c0_15] : memref<256x128xf32, #tpu.memory_space<vmem>>, vector<256x128xf32>
      tpu.vector_store %arg6[%c0_14, %c0_15], %15 {strides = array<i32>} : memref<256x128xf32, #tpu.memory_space<vmem>>, vector<256x128xf32>,
    } else {
    }
    return
  }
  func.func @transform_0(%arg0: i32, %arg1: i32, %arg2: i32) -> (i32, i32) {
    %c0_i32 = arith.constant 0 : i32
    return %arg0, %arg2 : i32, i32
  }
  func.func @transform_1(%arg0: i32, %arg1: i32, %arg2: i32) -> (i32, i32) {
    %c0_i32 = arith.constant 0 : i32
    return %arg2, %arg1 : i32, i32
  }
  func.func @transform_2(%arg0: i32, %arg1: i32, %arg2: i32) -> (i32, i32) {
    %c0_i32 = arith.constant 0 : i32
    %c0_i32_0 = arith.constant 0 : i32
    return %c0_i32, %arg1 : i32, i32
  }
  func.func @transform_3(%arg0: i32, %arg1: i32, %arg2: i32) -> (i32, i32) {
    %c0_i32 = arith.constant 0 : i32
    return %arg0, %arg1 : i32, i32
  }
}

module attributes {stable_mosaic.version = 11 : i64} {
  func.func @_matmul_kernel(%arg0: i32, %arg1: i32, %arg2: i32, %arg3: memref<256x640xbf16, #tpu.memory_space<vmem>>, %arg4: memref<640x128xbf16, #tpu.memory_space<vmem>>, %arg5: memref<1x128xf32, #tpu.memory_space<vmem>>, %arg6: memref<256x128xf32, #tpu.memory_space<vmem>>, %arg7: memref<256x128xf32, #tpu.memory_space<vmem>>) attributes {dimension_semantics = [#tpu.dimension_semantics<parallel>, #tpu.dimension_semantics<parallel>, #tpu.dimension_semantics<arbitrary>], iteration_bounds = array<i64: 2, 1, 1>, scalar_prefetch = 0 : i64, scratch_operands = 1 : i64, tpu.core_type = #tpu.core_type<tc>, window_params = [{transform_indices = @transform_0, window_bounds = array<i64: 256, 640>}, {transform_indices = @transform_1, window_bounds = array<i64: 640, 128>}, {transform_indices = @transform_2, window_bounds = array<i64: 1, 128>}, {transform_indices = @transform_3, window_bounds = array<i64: 256, 128>}]} {
    %c0_i32 = arith.constant 0 : i32
    %0 = arith.cmpi eq, %arg2, %c0_i32 : i32
    %1 = arith.extui %0 : i1 to i32
    %c0_i32_0 = arith.constant 0 : i32
    %2 = arith.cmpi ne, %1, %c0_i32_0 : i32
    scf.if %2 {
      %cst_10 = arith.constant 0.000000e+00 : f32
      %12 = vector.broadcast %cst_10 : f32 to vector<256x128xf32>
      %c0_11 = arith.constant 0 : index
      %c0_12 = arith.constant 0 : index
      %13 = vector.load %arg7[%c0_11, %c0_12] : memref<256x128xf32, #tpu.memory_space<vmem>>, vector<256x128xf32>
      tpu.vector_store %arg7[%c0_11, %c0_12], %12 {strides = array<i32>} : memref<256x128xf32, #tpu.memory_space<vmem>>, vector<256x128xf32>,
    } else {
    }
    %c0 = arith.constant 0 : index
    %c0_1 = arith.constant 0 : index
    %3 = vector.load %arg7[%c0, %c0_1] : memref<256x128xf32, #tpu.memory_space<vmem>>, vector<256x128xf32>
    %c0_2 = arith.constant 0 : index
    %c0_3 = arith.constant 0 : index
    %4 = vector.load %arg3[%c0_2, %c0_3] : memref<256x640xbf16, #tpu.memory_space<vmem>>, vector<256x640xbf16>
    %c0_4 = arith.constant 0 : index
    %c0_5 = arith.constant 0 : index
    %5 = vector.load %arg4[%c0_4, %c0_5] : memref<640x128xbf16, #tpu.memory_space<vmem>>, vector<640x128xbf16>
    %cst = arith.constant dense<0.000000e+00> : vector<256x128xf32>
    %6 = tpu.matmul %4, %5, %cst {dimension_numbers = #tpu.dot_dimension_numbers<[1], [0], [0], [1], [0, 0, 1, 1], [], []>} : vector<256x640xbf16>, vector<640x128xbf16>, vector<256x128xf32> -> vector<256x128xf32>
    %7 = arith.addf %3, %6 : vector<256x128xf32>
    %c0_6 = arith.constant 0 : index
    %c0_7 = arith.constant 0 : index
    %8 = vector.load %arg7[%c0_6, %c0_7] : memref<256x128xf32, #tpu.memory_space<vmem>>, vector<256x128xf32>
    tpu.vector_store %arg7[%c0_6, %c0_7], %7 {strides = array<i32>} : memref<256x128xf32, #tpu.memory_space<vmem>>, vector<256x128xf32>,
    %c0_i32_8 = arith.constant 0 : i32
    %9 = arith.cmpi eq, %arg2, %c0_i32_8 : i32
    %10 = arith.extui %9 : i1 to i32
    %c0_i32_9 = arith.constant 0 : i32
    %11 = arith.cmpi ne, %10, %c0_i32_9 : i32
    scf.if %11 {
      %c0_10 = arith.constant 0 : index
      %c0_11 = arith.constant 0 : index
      %12 = vector.load %arg7[%c0_10, %c0_11] : memref<256x128xf32, #tpu.memory_space<vmem>>, vector<256x128xf32>
      %c0_12 = arith.constant 0 : index
      %c0_13 = arith.constant 0 : index
      %13 = vector.load %arg5[%c0_12, %c0_13] : memref<1x128xf32, #tpu.memory_space<vmem>>, vector<1x128xf32>
      %14 = vector.broadcast %13 : vector<1x128xf32> to vector<256x128xf32>
      %15 = arith.addf %12, %14 : vector<256x128xf32>
      %cst_14 = arith.constant 0.000000e+00 : f32
      %16 = vector.broadcast %cst_14 : f32 to vector<256x128xf32>
      %17 = arith.maximumf %15, %16 : vector<256x128xf32>
      %c0_15 = arith.constant 0 : index
      %c0_16 = arith.constant 0 : index
      %18 = vector.load %arg6[%c0_15, %c0_16] : memref<256x128xf32, #tpu.memory_space<vmem>>, vector<256x128xf32>
      tpu.vector_store %arg6[%c0_15, %c0_16], %17 {strides = array<i32>} : memref<256x128xf32, #tpu.memory_space<vmem>>, vector<256x128xf32>,
    } else {
    }
    return
  }
  func.func @transform_0(%arg0: i32, %arg1: i32, %arg2: i32) -> (i32, i32) {
    %c0_i32 = arith.constant 0 : i32
    return %arg0, %arg2 : i32, i32
  }
  func.func @transform_1(%arg0: i32, %arg1: i32, %arg2: i32) -> (i32, i32) {
    %c0_i32 = arith.constant 0 : i32
    return %arg2, %arg1 : i32, i32
  }
  func.func @transform_2(%arg0: i32, %arg1: i32, %arg2: i32) -> (i32, i32) {
    %c0_i32 = arith.constant 0 : i32
    %c0_i32_0 = arith.constant 0 : i32
    return %c0_i32, %arg1 : i32, i32
  }
  func.func @transform_3(%arg0: i32, %arg1: i32, %arg2: i32) -> (i32, i32) {
    %c0_i32 = arith.constant 0 : i32
    return %arg0, %arg1 : i32, i32
  }
}

module attributes {stable_mosaic.version = 11 : i64} {
  func.func @_matmul_kernel(%arg0: i32, %arg1: i32, %arg2: i32, %arg3: memref<16x1152xbf16, #tpu.memory_space<vmem>>, %arg4: memref<1152x256xbf16, #tpu.memory_space<vmem>>, %arg5: memref<1x256xf32, #tpu.memory_space<vmem>>, %arg6: memref<16x256xf32, #tpu.memory_space<vmem>>, %arg7: memref<16x256xf32, #tpu.memory_space<vmem>>) attributes {dimension_semantics = [#tpu.dimension_semantics<parallel>, #tpu.dimension_semantics<parallel>, #tpu.dimension_semantics<arbitrary>], iteration_bounds = array<i64: 1, 1, 1>, scalar_prefetch = 0 : i64, scratch_operands = 1 : i64, tpu.core_type = #tpu.core_type<tc>, window_params = [{transform_indices = @transform_0, window_bounds = array<i64: 16, 1152>}, {transform_indices = @transform_1, window_bounds = array<i64: 1152, 256>}, {transform_indices = @transform_2, window_bounds = array<i64: 1, 256>}, {transform_indices = @transform_3, window_bounds = array<i64: 16, 256>}]} {
    %c0_i32 = arith.constant 0 : i32
    %0 = arith.cmpi eq, %arg2, %c0_i32 : i32
    %1 = arith.extui %0 : i1 to i32
    %c0_i32_0 = arith.constant 0 : i32
    %2 = arith.cmpi ne, %1, %c0_i32_0 : i32
    scf.if %2 {
      %cst_10 = arith.constant 0.000000e+00 : f32
      %12 = vector.broadcast %cst_10 : f32 to vector<16x256xf32>
      %c0_11 = arith.constant 0 : index
      %c0_12 = arith.constant 0 : index
      %13 = vector.load %arg7[%c0_11, %c0_12] : memref<16x256xf32, #tpu.memory_space<vmem>>, vector<16x256xf32>
      tpu.vector_store %arg7[%c0_11, %c0_12], %12 {strides = array<i32>} : memref<16x256xf32, #tpu.memory_space<vmem>>, vector<16x256xf32>,
    } else {
    }
    %c0 = arith.constant 0 : index
    %c0_1 = arith.constant 0 : index
    %3 = vector.load %arg7[%c0, %c0_1] : memref<16x256xf32, #tpu.memory_space<vmem>>, vector<16x256xf32>
    %c0_2 = arith.constant 0 : index
    %c0_3 = arith.constant 0 : index
    %4 = vector.load %arg3[%c0_2, %c0_3] : memref<16x1152xbf16, #tpu.memory_space<vmem>>, vector<16x1152xbf16>
    %c0_4 = arith.constant 0 : index
    %c0_5 = arith.constant 0 : index
    %5 = vector.load %arg4[%c0_4, %c0_5] : memref<1152x256xbf16, #tpu.memory_space<vmem>>, vector<1152x256xbf16>
    %cst = arith.constant dense<0.000000e+00> : vector<16x256xf32>
    %6 = tpu.matmul %4, %5, %cst {dimension_numbers = #tpu.dot_dimension_numbers<[1], [0], [0], [1], [0, 0, 1, 1], [], []>} : vector<16x1152xbf16>, vector<1152x256xbf16>, vector<16x256xf32> -> vector<16x256xf32>
    %7 = arith.addf %3, %6 : vector<16x256xf32>
    %c0_6 = arith.constant 0 : index
    %c0_7 = arith.constant 0 : index
    %8 = vector.load %arg7[%c0_6, %c0_7] : memref<16x256xf32, #tpu.memory_space<vmem>>, vector<16x256xf32>
    tpu.vector_store %arg7[%c0_6, %c0_7], %7 {strides = array<i32>} : memref<16x256xf32, #tpu.memory_space<vmem>>, vector<16x256xf32>,
    %c0_i32_8 = arith.constant 0 : i32
    %9 = arith.cmpi eq, %arg2, %c0_i32_8 : i32
    %10 = arith.extui %9 : i1 to i32
    %c0_i32_9 = arith.constant 0 : i32
    %11 = arith.cmpi ne, %10, %c0_i32_9 : i32
    scf.if %11 {
      %c0_10 = arith.constant 0 : index
      %c0_11 = arith.constant 0 : index
      %12 = vector.load %arg7[%c0_10, %c0_11] : memref<16x256xf32, #tpu.memory_space<vmem>>, vector<16x256xf32>
      %c0_12 = arith.constant 0 : index
      %c0_13 = arith.constant 0 : index
      %13 = vector.load %arg5[%c0_12, %c0_13] : memref<1x256xf32, #tpu.memory_space<vmem>>, vector<1x256xf32>
      %14 = vector.broadcast %13 : vector<1x256xf32> to vector<16x256xf32>
      %15 = arith.addf %12, %14 : vector<16x256xf32>
      %cst_14 = arith.constant 0.000000e+00 : f32
      %16 = vector.broadcast %cst_14 : f32 to vector<16x256xf32>
      %17 = arith.maximumf %15, %16 : vector<16x256xf32>
      %c0_15 = arith.constant 0 : index
      %c0_16 = arith.constant 0 : index
      %18 = vector.load %arg6[%c0_15, %c0_16] : memref<16x256xf32, #tpu.memory_space<vmem>>, vector<16x256xf32>
      tpu.vector_store %arg6[%c0_15, %c0_16], %17 {strides = array<i32>} : memref<16x256xf32, #tpu.memory_space<vmem>>, vector<16x256xf32>,
    } else {
    }
    return
  }
  func.func @transform_0(%arg0: i32, %arg1: i32, %arg2: i32) -> (i32, i32) {
    %c0_i32 = arith.constant 0 : i32
    return %arg0, %arg2 : i32, i32
  }
  func.func @transform_1(%arg0: i32, %arg1: i32, %arg2: i32) -> (i32, i32) {
    %c0_i32 = arith.constant 0 : i32
    return %arg2, %arg1 : i32, i32
  }
  func.func @transform_2(%arg0: i32, %arg1: i32, %arg2: i32) -> (i32, i32) {
    %c0_i32 = arith.constant 0 : i32
    %c0_i32_0 = arith.constant 0 : i32
    return %c0_i32, %arg1 : i32, i32
  }
  func.func @transform_3(%arg0: i32, %arg1: i32, %arg2: i32) -> (i32, i32) {
    %c0_i32 = arith.constant 0 : i32
    return %arg0, %arg1 : i32, i32
  }
}

module attributes {stable_mosaic.version = 11 : i64} {
  func.func @_matmul_kernel(%arg0: i32, %arg1: i32, %arg2: i32, %arg3: memref<16x1152xbf16, #tpu.memory_space<vmem>>, %arg4: memref<1152x256xbf16, #tpu.memory_space<vmem>>, %arg5: memref<1x256xf32, #tpu.memory_space<vmem>>, %arg6: memref<16x256xf32, #tpu.memory_space<vmem>>, %arg7: memref<16x256xf32, #tpu.memory_space<vmem>>) attributes {dimension_semantics = [#tpu.dimension_semantics<parallel>, #tpu.dimension_semantics<parallel>, #tpu.dimension_semantics<arbitrary>], iteration_bounds = array<i64: 1, 2, 2>, scalar_prefetch = 0 : i64, scratch_operands = 1 : i64, tpu.core_type = #tpu.core_type<tc>, window_params = [{transform_indices = @transform_0, window_bounds = array<i64: 16, 1152>}, {transform_indices = @transform_1, window_bounds = array<i64: 1152, 256>}, {transform_indices = @transform_2, window_bounds = array<i64: 1, 256>}, {transform_indices = @transform_3, window_bounds = array<i64: 16, 256>}]} {
    %c0_i32 = arith.constant 0 : i32
    %0 = arith.cmpi eq, %arg2, %c0_i32 : i32
    %1 = arith.extui %0 : i1 to i32
    %c0_i32_0 = arith.constant 0 : i32
    %2 = arith.cmpi ne, %1, %c0_i32_0 : i32
    scf.if %2 {
      %cst_9 = arith.constant 0.000000e+00 : f32
      %12 = vector.broadcast %cst_9 : f32 to vector<16x256xf32>
      %c0_10 = arith.constant 0 : index
      %c0_11 = arith.constant 0 : index
      %13 = vector.load %arg7[%c0_10, %c0_11] : memref<16x256xf32, #tpu.memory_space<vmem>>, vector<16x256xf32>
      tpu.vector_store %arg7[%c0_10, %c0_11], %12 {strides = array<i32>} : memref<16x256xf32, #tpu.memory_space<vmem>>, vector<16x256xf32>,
    } else {
    }
    %c0 = arith.constant 0 : index
    %c0_1 = arith.constant 0 : index
    %3 = vector.load %arg7[%c0, %c0_1] : memref<16x256xf32, #tpu.memory_space<vmem>>, vector<16x256xf32>
    %c0_2 = arith.constant 0 : index
    %c0_3 = arith.constant 0 : index
    %4 = vector.load %arg3[%c0_2, %c0_3] : memref<16x1152xbf16, #tpu.memory_space<vmem>>, vector<16x1152xbf16>
    %c0_4 = arith.constant 0 : index
    %c0_5 = arith.constant 0 : index
    %5 = vector.load %arg4[%c0_4, %c0_5] : memref<1152x256xbf16, #tpu.memory_space<vmem>>, vector<1152x256xbf16>
    %cst = arith.constant dense<0.000000e+00> : vector<16x256xf32>
    %6 = tpu.matmul %4, %5, %cst {dimension_numbers = #tpu.dot_dimension_numbers<[1], [0], [0], [1], [0, 0, 1, 1], [], []>} : vector<16x1152xbf16>, vector<1152x256xbf16>, vector<16x256xf32> -> vector<16x256xf32>
    %7 = arith.addf %3, %6 : vector<16x256xf32>
    %c0_6 = arith.constant 0 : index
    %c0_7 = arith.constant 0 : index
    %8 = vector.load %arg7[%c0_6, %c0_7] : memref<16x256xf32, #tpu.memory_space<vmem>>, vector<16x256xf32>
    tpu.vector_store %arg7[%c0_6, %c0_7], %7 {strides = array<i32>} : memref<16x256xf32, #tpu.memory_space<vmem>>, vector<16x256xf32>,
    %c1_i32 = arith.constant 1 : i32
    %9 = arith.cmpi eq, %arg2, %c1_i32 : i32
    %10 = arith.extui %9 : i1 to i32
    %c0_i32_8 = arith.constant 0 : i32
    %11 = arith.cmpi ne, %10, %c0_i32_8 : i32
    scf.if %11 {
      %c0_9 = arith.constant 0 : index
      %c0_10 = arith.constant 0 : index
      %12 = vector.load %arg7[%c0_9, %c0_10] : memref<16x256xf32, #tpu.memory_space<vmem>>, vector<16x256xf32>
      %c0_11 = arith.constant 0 : index
      %c0_12 = arith.constant 0 : index
      %13 = vector.load %arg5[%c0_11, %c0_12] : memref<1x256xf32, #tpu.memory_space<vmem>>, vector<1x256xf32>
      %14 = vector.broadcast %13 : vector<1x256xf32> to vector<16x256xf32>
      %15 = arith.addf %12, %14 : vector<16x256xf32>
      %cst_13 = arith.constant 0.000000e+00 : f32
      %16 = vector.broadcast %cst_13 : f32 to vector<16x256xf32>
      %17 = arith.maximumf %15, %16 : vector<16x256xf32>
      %c0_14 = arith.constant 0 : index
      %c0_15 = arith.constant 0 : index
      %18 = vector.load %arg6[%c0_14, %c0_15] : memref<16x256xf32, #tpu.memory_space<vmem>>, vector<16x256xf32>
      tpu.vector_store %arg6[%c0_14, %c0_15], %17 {strides = array<i32>} : memref<16x256xf32, #tpu.memory_space<vmem>>, vector<16x256xf32>,
    } else {
    }
    return
  }
  func.func @transform_0(%arg0: i32, %arg1: i32, %arg2: i32) -> (i32, i32) {
    %c0_i32 = arith.constant 0 : i32
    return %arg0, %arg2 : i32, i32
  }
  func.func @transform_1(%arg0: i32, %arg1: i32, %arg2: i32) -> (i32, i32) {
    %c0_i32 = arith.constant 0 : i32
    return %arg2, %arg1 : i32, i32
  }
  func.func @transform_2(%arg0: i32, %arg1: i32, %arg2: i32) -> (i32, i32) {
    %c0_i32 = arith.constant 0 : i32
    %c0_i32_0 = arith.constant 0 : i32
    return %c0_i32, %arg1 : i32, i32
  }
  func.func @transform_3(%arg0: i32, %arg1: i32, %arg2: i32) -> (i32, i32) {
    %c0_i32 = arith.constant 0 : i32
    return %arg0, %arg1 : i32, i32
  }
}

module attributes {stable_mosaic.version = 11 : i64} {
  func.func @_reduce_resize_kernel(%arg0: memref<4x4x512xbf16, #tpu.memory_space<vmem>>, %arg1: memref<512x64xbf16, #tpu.memory_space<vmem>>, %arg2: memref<1x64xf32, #tpu.memory_space<vmem>>, %arg3: memref<64x4xf32, #tpu.memory_space<vmem>>, %arg4: memref<4x64x64xf32, #tpu.memory_space<vmem>>) attributes {dimension_semantics = [], scalar_prefetch = 0 : i64, scratch_operands = 0 : i64, tpu.core_type = #tpu.core_type<tc>} {
    %c0 = arith.constant 0 : index
    %c0_0 = arith.constant 0 : index
    %0 = vector.load %arg1[%c0, %c0_0] : memref<512x64xbf16, #tpu.memory_space<vmem>>, vector<512x64xbf16>
    %c0_1 = arith.constant 0 : index
    %c0_2 = arith.constant 0 : index
    %1 = vector.load %arg2[%c0_1, %c0_2] : memref<1x64xf32, #tpu.memory_space<vmem>>, vector<1x64xf32>
    %c0_3 = arith.constant 0 : index
    %c0_4 = arith.constant 0 : index
    %2 = vector.load %arg3[%c0_3, %c0_4] : memref<64x4xf32, #tpu.memory_space<vmem>>, vector<64x4xf32>
    %c0_5 = arith.constant 0 : index
    %c0_6 = arith.constant 0 : index
    %c0_7 = arith.constant 0 : index
    %3 = vector.load %arg0[%c0_5, %c0_6, %c0_7] : memref<4x4x512xbf16, #tpu.memory_space<vmem>>, vector<1x4x512xbf16>
    %4 = vector.shape_cast %3 : vector<1x4x512xbf16> to vector<4x512xbf16>
    %cst = arith.constant dense<0.000000e+00> : vector<4x64xf32>
    %5 = tpu.matmul %4, %0, %cst {dimension_numbers = #tpu.dot_dimension_numbers<[1], [0], [0], [1], [0, 0, 1, 1], [], []>} : vector<4x512xbf16>, vector<512x64xbf16>, vector<4x64xf32> -> vector<4x64xf32>
    %6 = vector.broadcast %1 : vector<1x64xf32> to vector<4x64xf32>
    %7 = arith.addf %5, %6 : vector<4x64xf32>
    %cst_8 = arith.constant 0.000000e+00 : f32
    %8 = vector.broadcast %cst_8 : f32 to vector<4x64xf32>
    %9 = arith.maximumf %7, %8 : vector<4x64xf32>
    %cst_9 = arith.constant dense<0.000000e+00> : vector<64x64xf32>
    %10 = tpu.matmul %2, %9, %cst_9 {dimension_numbers = #tpu.dot_dimension_numbers<[1], [0], [0], [1], [0, 0, 1, 1], [], []>} : vector<64x4xf32>, vector<4x64xf32>, vector<64x64xf32> -> vector<64x64xf32>
    %c0_10 = arith.constant 0 : index
    %c0_11 = arith.constant 0 : index
    %c0_12 = arith.constant 0 : index
    %11 = vector.load %arg4[%c0_10, %c0_11, %c0_12] : memref<4x64x64xf32, #tpu.memory_space<vmem>>, vector<1x64x64xf32>
    %12 = vector.shape_cast %11 : vector<1x64x64xf32> to vector<64x64xf32>
    %13 = vector.shape_cast %10 : vector<64x64xf32> to vector<1x64x64xf32>
    tpu.vector_store %arg4[%c0_10, %c0_11, %c0_12], %13 {strides = array<i32>} : memref<4x64x64xf32, #tpu.memory_space<vmem>>, vector<1x64x64xf32>,
    %c1 = arith.constant 1 : index
    %c0_13 = arith.constant 0 : index
    %c0_14 = arith.constant 0 : index
    %14 = vector.load %arg0[%c1, %c0_13, %c0_14] : memref<4x4x512xbf16, #tpu.memory_space<vmem>>, vector<1x4x512xbf16>
    %15 = vector.shape_cast %14 : vector<1x4x512xbf16> to vector<4x512xbf16>
    %cst_15 = arith.constant dense<0.000000e+00> : vector<4x64xf32>
    %16 = tpu.matmul %15, %0, %cst_15 {dimension_numbers = #tpu.dot_dimension_numbers<[1], [0], [0], [1], [0, 0, 1, 1], [], []>} : vector<4x512xbf16>, vector<512x64xbf16>, vector<4x64xf32> -> vector<4x64xf32>
    %17 = vector.broadcast %1 : vector<1x64xf32> to vector<4x64xf32>
    %18 = arith.addf %16, %17 : vector<4x64xf32>
    %cst_16 = arith.constant 0.000000e+00 : f32
    %19 = vector.broadcast %cst_16 : f32 to vector<4x64xf32>
    %20 = arith.maximumf %18, %19 : vector<4x64xf32>
    %cst_17 = arith.constant dense<0.000000e+00> : vector<64x64xf32>
    %21 = tpu.matmul %2, %20, %cst_17 {dimension_numbers = #tpu.dot_dimension_numbers<[1], [0], [0], [1], [0, 0, 1, 1], [], []>} : vector<64x4xf32>, vector<4x64xf32>, vector<64x64xf32> -> vector<64x64xf32>
    %c1_18 = arith.constant 1 : index
    %c0_19 = arith.constant 0 : index
    %c0_20 = arith.constant 0 : index
    %22 = vector.load %arg4[%c1_18, %c0_19, %c0_20] : memref<4x64x64xf32, #tpu.memory_space<vmem>>, vector<1x64x64xf32>
    %23 = vector.shape_cast %22 : vector<1x64x64xf32> to vector<64x64xf32>
    %24 = vector.shape_cast %21 : vector<64x64xf32> to vector<1x64x64xf32>
    tpu.vector_store %arg4[%c1_18, %c0_19, %c0_20], %24 {strides = array<i32>} : memref<4x64x64xf32, #tpu.memory_space<vmem>>, vector<1x64x64xf32>,
    %c2 = arith.constant 2 : index
    %c0_21 = arith.constant 0 : index
    %c0_22 = arith.constant 0 : index
    %25 = vector.load %arg0[%c2, %c0_21, %c0_22] : memref<4x4x512xbf16, #tpu.memory_space<vmem>>, vector<1x4x512xbf16>
    %26 = vector.shape_cast %25 : vector<1x4x512xbf16> to vector<4x512xbf16>
    %cst_23 = arith.constant dense<0.000000e+00> : vector<4x64xf32>
    %27 = tpu.matmul %26, %0, %cst_23 {dimension_numbers = #tpu.dot_dimension_numbers<[1], [0], [0], [1], [0, 0, 1, 1], [], []>} : vector<4x512xbf16>, vector<512x64xbf16>, vector<4x64xf32> -> vector<4x64xf32>
    %28 = vector.broadcast %1 : vector<1x64xf32> to vector<4x64xf32>
    %29 = arith.addf %27, %28 : vector<4x64xf32>
    %cst_24 = arith.constant 0.000000e+00 : f32
    %30 = vector.broadcast %cst_24 : f32 to vector<4x64xf32>
    %31 = arith.maximumf %29, %30 : vector<4x64xf32>
    %cst_25 = arith.constant dense<0.000000e+00> : vector<64x64xf32>
    %32 = tpu.matmul %2, %31, %cst_25 {dimension_numbers = #tpu.dot_dimension_numbers<[1], [0], [0], [1], [0, 0, 1, 1], [], []>} : vector<64x4xf32>, vector<4x64xf32>, vector<64x64xf32> -> vector<64x64xf32>
    %c2_26 = arith.constant 2 : index
    %c0_27 = arith.constant 0 : index
    %c0_28 = arith.constant 0 : index
    %33 = vector.load %arg4[%c2_26, %c0_27, %c0_28] : memref<4x64x64xf32, #tpu.memory_space<vmem>>, vector<1x64x64xf32>
    %34 = vector.shape_cast %33 : vector<1x64x64xf32> to vector<64x64xf32>
    %35 = vector.shape_cast %32 : vector<64x64xf32> to vector<1x64x64xf32>
    tpu.vector_store %arg4[%c2_26, %c0_27, %c0_28], %35 {strides = array<i32>} : memref<4x64x64xf32, #tpu.memory_space<vmem>>, vector<1x64x64xf32>,
    %c3 = arith.constant 3 : index
    %c0_29 = arith.constant 0 : index
    %c0_30 = arith.constant 0 : index
    %36 = vector.load %arg0[%c3, %c0_29, %c0_30] : memref<4x4x512xbf16, #tpu.memory_space<vmem>>, vector<1x4x512xbf16>
    %37 = vector.shape_cast %36 : vector<1x4x512xbf16> to vector<4x512xbf16>
    %cst_31 = arith.constant dense<0.000000e+00> : vector<4x64xf32>
    %38 = tpu.matmul %37, %0, %cst_31 {dimension_numbers = #tpu.dot_dimension_numbers<[1], [0], [0], [1], [0, 0, 1, 1], [], []>} : vector<4x512xbf16>, vector<512x64xbf16>, vector<4x64xf32> -> vector<4x64xf32>
    %39 = vector.broadcast %1 : vector<1x64xf32> to vector<4x64xf32>
    %40 = arith.addf %38, %39 : vector<4x64xf32>
    %cst_32 = arith.constant 0.000000e+00 : f32
    %41 = vector.broadcast %cst_32 : f32 to vector<4x64xf32>
    %42 = arith.maximumf %40, %41 : vector<4x64xf32>
    %cst_33 = arith.constant dense<0.000000e+00> : vector<64x64xf32>
    %43 = tpu.matmul %2, %42, %cst_33 {dimension_numbers = #tpu.dot_dimension_numbers<[1], [0], [0], [1], [0, 0, 1, 1], [], []>} : vector<64x4xf32>, vector<4x64xf32>, vector<64x64xf32> -> vector<64x64xf32>
    %c3_34 = arith.constant 3 : index
    %c0_35 = arith.constant 0 : index
    %c0_36 = arith.constant 0 : index
    %44 = vector.load %arg4[%c3_34, %c0_35, %c0_36] : memref<4x64x64xf32, #tpu.memory_space<vmem>>, vector<1x64x64xf32>
    %45 = vector.shape_cast %44 : vector<1x64x64xf32> to vector<64x64xf32>
    %46 = vector.shape_cast %43 : vector<64x64xf32> to vector<1x64x64xf32>
    tpu.vector_store %arg4[%c3_34, %c0_35, %c0_36], %46 {strides = array<i32>} : memref<4x64x64xf32, #tpu.memory_space<vmem>>, vector<1x64x64xf32>,
    return
  }
}

module attributes {stable_mosaic.version = 11 : i64} {
  func.func @_matmul_kernel(%arg0: i32, %arg1: i32, %arg2: i32, %arg3: memref<256x1152xbf16, #tpu.memory_space<vmem>>, %arg4: memref<1152x128xbf16, #tpu.memory_space<vmem>>, %arg5: memref<1x128xf32, #tpu.memory_space<vmem>>, %arg6: memref<256x128xf32, #tpu.memory_space<vmem>>, %arg7: memref<256x128xf32, #tpu.memory_space<vmem>>) attributes {dimension_semantics = [#tpu.dimension_semantics<parallel>, #tpu.dimension_semantics<parallel>, #tpu.dimension_semantics<arbitrary>], iteration_bounds = array<i64: 1, 1, 1>, scalar_prefetch = 0 : i64, scratch_operands = 1 : i64, tpu.core_type = #tpu.core_type<tc>, window_params = [{transform_indices = @transform_0, window_bounds = array<i64: 256, 1152>}, {transform_indices = @transform_1, window_bounds = array<i64: 1152, 128>}, {transform_indices = @transform_2, window_bounds = array<i64: 1, 128>}, {transform_indices = @transform_3, window_bounds = array<i64: 256, 128>}]} {
    %c0_i32 = arith.constant 0 : i32
    %0 = arith.cmpi eq, %arg2, %c0_i32 : i32
    %1 = arith.extui %0 : i1 to i32
    %c0_i32_0 = arith.constant 0 : i32
    %2 = arith.cmpi ne, %1, %c0_i32_0 : i32
    scf.if %2 {
      %cst_10 = arith.constant 0.000000e+00 : f32
      %12 = vector.broadcast %cst_10 : f32 to vector<256x128xf32>
      %c0_11 = arith.constant 0 : index
      %c0_12 = arith.constant 0 : index
      %13 = vector.load %arg7[%c0_11, %c0_12] : memref<256x128xf32, #tpu.memory_space<vmem>>, vector<256x128xf32>
      tpu.vector_store %arg7[%c0_11, %c0_12], %12 {strides = array<i32>} : memref<256x128xf32, #tpu.memory_space<vmem>>, vector<256x128xf32>,
    } else {
    }
    %c0 = arith.constant 0 : index
    %c0_1 = arith.constant 0 : index
    %3 = vector.load %arg7[%c0, %c0_1] : memref<256x128xf32, #tpu.memory_space<vmem>>, vector<256x128xf32>
    %c0_2 = arith.constant 0 : index
    %c0_3 = arith.constant 0 : index
    %4 = vector.load %arg3[%c0_2, %c0_3] : memref<256x1152xbf16, #tpu.memory_space<vmem>>, vector<256x1152xbf16>
    %c0_4 = arith.constant 0 : index
    %c0_5 = arith.constant 0 : index
    %5 = vector.load %arg4[%c0_4, %c0_5] : memref<1152x128xbf16, #tpu.memory_space<vmem>>, vector<1152x128xbf16>
    %cst = arith.constant dense<0.000000e+00> : vector<256x128xf32>
    %6 = tpu.matmul %4, %5, %cst {dimension_numbers = #tpu.dot_dimension_numbers<[1], [0], [0], [1], [0, 0, 1, 1], [], []>} : vector<256x1152xbf16>, vector<1152x128xbf16>, vector<256x128xf32> -> vector<256x128xf32>
    %7 = arith.addf %3, %6 : vector<256x128xf32>
    %c0_6 = arith.constant 0 : index
    %c0_7 = arith.constant 0 : index
    %8 = vector.load %arg7[%c0_6, %c0_7] : memref<256x128xf32, #tpu.memory_space<vmem>>, vector<256x128xf32>
    tpu.vector_store %arg7[%c0_6, %c0_7], %7 {strides = array<i32>} : memref<256x128xf32, #tpu.memory_space<vmem>>, vector<256x128xf32>,
    %c0_i32_8 = arith.constant 0 : i32
    %9 = arith.cmpi eq, %arg2, %c0_i32_8 : i32
    %10 = arith.extui %9 : i1 to i32
    %c0_i32_9 = arith.constant 0 : i32
    %11 = arith.cmpi ne, %10, %c0_i32_9 : i32
    scf.if %11 {
      %c0_10 = arith.constant 0 : index
      %c0_11 = arith.constant 0 : index
      %12 = vector.load %arg7[%c0_10, %c0_11] : memref<256x128xf32, #tpu.memory_space<vmem>>, vector<256x128xf32>
      %c0_12 = arith.constant 0 : index
      %c0_13 = arith.constant 0 : index
      %13 = vector.load %arg5[%c0_12, %c0_13] : memref<1x128xf32, #tpu.memory_space<vmem>>, vector<1x128xf32>
      %14 = vector.broadcast %13 : vector<1x128xf32> to vector<256x128xf32>
      %15 = arith.addf %12, %14 : vector<256x128xf32>
      %cst_14 = arith.constant 0.000000e+00 : f32
      %16 = vector.broadcast %cst_14 : f32 to vector<256x128xf32>
      %17 = arith.maximumf %15, %16 : vector<256x128xf32>
      %c0_15 = arith.constant 0 : index
      %c0_16 = arith.constant 0 : index
      %18 = vector.load %arg6[%c0_15, %c0_16] : memref<256x128xf32, #tpu.memory_space<vmem>>, vector<256x128xf32>
      tpu.vector_store %arg6[%c0_15, %c0_16], %17 {strides = array<i32>} : memref<256x128xf32, #tpu.memory_space<vmem>>, vector<256x128xf32>,
    } else {
    }
    return
  }
  func.func @transform_0(%arg0: i32, %arg1: i32, %arg2: i32) -> (i32, i32) {
    %c0_i32 = arith.constant 0 : i32
    return %arg0, %arg2 : i32, i32
  }
  func.func @transform_1(%arg0: i32, %arg1: i32, %arg2: i32) -> (i32, i32) {
    %c0_i32 = arith.constant 0 : i32
    return %arg2, %arg1 : i32, i32
  }
  func.func @transform_2(%arg0: i32, %arg1: i32, %arg2: i32) -> (i32, i32) {
    %c0_i32 = arith.constant 0 : i32
    %c0_i32_0 = arith.constant 0 : i32
    return %c0_i32, %arg1 : i32, i32
  }
  func.func @transform_3(%arg0: i32, %arg1: i32, %arg2: i32) -> (i32, i32) {
    %c0_i32 = arith.constant 0 : i32
    return %arg0, %arg1 : i32, i32
  }
}

module attributes {stable_mosaic.version = 11 : i64} {
  func.func @_cbam_pair_kernel(%arg0: i32, %arg1: memref<2x64x64xf32, #tpu.memory_space<vmem>>, %arg2: memref<1x64x8xf32, #tpu.memory_space<vmem>>, %arg3: memref<1x8x64xf32, #tpu.memory_space<vmem>>, %arg4: memref<1x64x64xf32, #tpu.memory_space<vmem>>, %arg5: memref<1x64x64xf32, #tpu.memory_space<vmem>>, %arg6: memref<2x64x64xf32, #tpu.memory_space<vmem>>) attributes {dimension_semantics = [#tpu.dimension_semantics<parallel>], iteration_bounds = array<i64: 2>, scalar_prefetch = 0 : i64, scratch_operands = 0 : i64, tpu.core_type = #tpu.core_type<tc>, window_params = [{transform_indices = @transform_0, window_bounds = array<i64: 2, 64, 64>}, {transform_indices = @transform_1, window_bounds = array<i64: 1, 64, 8>}, {transform_indices = @transform_2, window_bounds = array<i64: 1, 8, 64>}, {transform_indices = @transform_3, window_bounds = array<i64: 1, 64, 64>}, {transform_indices = @transform_4, window_bounds = array<i64: 1, 64, 64>}, {transform_indices = @transform_5, window_bounds = array<i64: 2, 64, 64>}]} {
    %c0 = arith.constant 0 : index
    %c0_0 = arith.constant 0 : index
    %c0_1 = arith.constant 0 : index
    %0 = vector.load %arg1[%c0, %c0_0, %c0_1] : memref<2x64x64xf32, #tpu.memory_space<vmem>>, vector<2x64x64xf32>
    %c0_2 = arith.constant 0 : index
    %c0_3 = arith.constant 0 : index
    %c0_4 = arith.constant 0 : index
    %1 = vector.load %arg2[%c0_2, %c0_3, %c0_4] : memref<1x64x8xf32, #tpu.memory_space<vmem>>, vector<1x64x8xf32>
    %2 = vector.shape_cast %1 : vector<1x64x8xf32> to vector<64x8xf32>
    %c0_5 = arith.constant 0 : index
    %c0_6 = arith.constant 0 : index
    %c0_7 = arith.constant 0 : index
    %3 = vector.load %arg3[%c0_5, %c0_6, %c0_7] : memref<1x8x64xf32, #tpu.memory_space<vmem>>, vector<1x8x64xf32>
    %4 = vector.shape_cast %3 : vector<1x8x64xf32> to vector<8x64xf32>
    %cst = arith.constant dense<0.000000e+00> : vector<2x64xf32>
    %5 = vector.multi_reduction <add>, %0, %cst [1] : vector<2x64x64xf32> to vector<2x64xf32>
    %cst_8 = arith.constant 6.400000e+01 : f32
    %6 = vector.broadcast %cst_8 : f32 to vector<2x64xf32>
    %7 = arith.divf %5, %6 : vector<2x64xf32>
    %cst_9 = arith.constant dense<0xFF800000> : vector<2x64xf32>
    %8 = vector.multi_reduction <maximumf>, %0, %cst_9 [1] : vector<2x64x64xf32> to vector<2x64xf32>
    %cst_10 = arith.constant dense<0.000000e+00> : vector<2x8xf32>
    %9 = tpu.matmul %7, %2, %cst_10 {dimension_numbers = #tpu.dot_dimension_numbers<[1], [0], [0], [1], [0, 0, 1, 1], [], []>} : vector<2x64xf32>, vector<64x8xf32>, vector<2x8xf32> -> vector<2x8xf32>
    %cst_11 = arith.constant 0.000000e+00 : f32
    %10 = vector.broadcast %cst_11 : f32 to vector<2x8xf32>
    %11 = arith.maximumf %9, %10 : vector<2x8xf32>
    %cst_12 = arith.constant dense<0.000000e+00> : vector<2x64xf32>
    %12 = tpu.matmul %11, %4, %cst_12 {dimension_numbers = #tpu.dot_dimension_numbers<[1], [0], [0], [1], [0, 0, 1, 1], [], []>} : vector<2x8xf32>, vector<8x64xf32>, vector<2x64xf32> -> vector<2x64xf32>
    %cst_13 = arith.constant dense<0.000000e+00> : vector<2x8xf32>
    %13 = tpu.matmul %8, %2, %cst_13 {dimension_numbers = #tpu.dot_dimension_numbers<[1], [0], [0], [1], [0, 0, 1, 1], [], []>} : vector<2x64xf32>, vector<64x8xf32>, vector<2x8xf32> -> vector<2x8xf32>
    %cst_14 = arith.constant 0.000000e+00 : f32
    %14 = vector.broadcast %cst_14 : f32 to vector<2x8xf32>
    %15 = arith.maximumf %13, %14 : vector<2x8xf32>
    %cst_15 = arith.constant dense<0.000000e+00> : vector<2x64xf32>
    %16 = tpu.matmul %15, %4, %cst_15 {dimension_numbers = #tpu.dot_dimension_numbers<[1], [0], [0], [1], [0, 0, 1, 1], [], []>} : vector<2x8xf32>, vector<8x64xf32>, vector<2x64xf32> -> vector<2x64xf32>
    %17 = arith.addf %12, %16 : vector<2x64xf32>
    %18 = arith.negf %17 : vector<2x64xf32>
    %19 = math.exp %18 : vector<2x64xf32>
    %cst_16 = arith.constant 1.000000e+00 : f32
    %20 = vector.broadcast %cst_16 : f32 to vector<2x64xf32>
    %21 = arith.addf %20, %19 : vector<2x64xf32>
    %22 = arith.divf %20, %21 : vector<2x64xf32>
    %23 = vector.shape_cast %22 : vector<2x64xf32> to vector<2x1x64xf32>
    %24 = vector.broadcast %23 : vector<2x1x64xf32> to vector<2x64x64xf32>
    %25 = arith.mulf %0, %24 : vector<2x64x64xf32>
    %cst_17 = arith.constant dense<0.000000e+00> : vector<2x64xf32>
    %26 = vector.multi_reduction <add>, %25, %cst_17 [2] : vector<2x64x64xf32> to vector<2x64xf32>
    %cst_18 = arith.constant 6.400000e+01 : f32
    %27 = vector.broadcast %cst_18 : f32 to vector<2x64xf32>
    %28 = arith.divf %26, %27 : vector<2x64xf32>
    %cst_19 = arith.constant dense<0xFF800000> : vector<2x64xf32>
    %29 = vector.multi_reduction <maximumf>, %25, %cst_19 [2] : vector<2x64x64xf32> to vector<2x64xf32>
    %c0_20 = arith.constant 0 : index
    %c0_21 = arith.constant 0 : index
    %c0_22 = arith.constant 0 : index
    %30 = vector.load %arg4[%c0_20, %c0_21, %c0_22] : memref<1x64x64xf32, #tpu.memory_space<vmem>>, vector<1x64x64xf32>
    %31 = vector.shape_cast %30 : vector<1x64x64xf32> to vector<64x64xf32>
    %cst_23 = arith.constant dense<0.000000e+00> : vector<2x64xf32>
    %32 = tpu.matmul %28, %31, %cst_23 {dimension_numbers = #tpu.dot_dimension_numbers<[1], [0], [0], [1], [0, 0, 1, 1], [], []>} : vector<2x64xf32>, vector<64x64xf32>, vector<2x64xf32> -> vector<2x64xf32>
    %c0_24 = arith.constant 0 : index
    %c0_25 = arith.constant 0 : index
    %c0_26 = arith.constant 0 : index
    %33 = vector.load %arg5[%c0_24, %c0_25, %c0_26] : memref<1x64x64xf32, #tpu.memory_space<vmem>>, vector<1x64x64xf32>
    %34 = vector.shape_cast %33 : vector<1x64x64xf32> to vector<64x64xf32>
    %cst_27 = arith.constant dense<0.000000e+00> : vector<2x64xf32>
    %35 = tpu.matmul %29, %34, %cst_27 {dimension_numbers = #tpu.dot_dimension_numbers<[1], [0], [0], [1], [0, 0, 1, 1], [], []>} : vector<2x64xf32>, vector<64x64xf32>, vector<2x64xf32> -> vector<2x64xf32>
    %36 = arith.addf %32, %35 : vector<2x64xf32>
    %37 = arith.negf %36 : vector<2x64xf32>
    %38 = math.exp %37 : vector<2x64xf32>
    %cst_28 = arith.constant 1.000000e+00 : f32
    %39 = vector.broadcast %cst_28 : f32 to vector<2x64xf32>
    %40 = arith.addf %39, %38 : vector<2x64xf32>
    %41 = arith.divf %39, %40 : vector<2x64xf32>
    %42 = vector.shape_cast %41 : vector<2x64xf32> to vector<2x64x1xf32>
    %43 = vector.broadcast %42 : vector<2x64x1xf32> to vector<2x64x64xf32>
    %44 = arith.mulf %25, %43 : vector<2x64x64xf32>
    %c0_29 = arith.constant 0 : index
    %c0_30 = arith.constant 0 : index
    %c0_31 = arith.constant 0 : index
    %45 = vector.load %arg6[%c0_29, %c0_30, %c0_31] : memref<2x64x64xf32, #tpu.memory_space<vmem>>, vector<2x64x64xf32>
    tpu.vector_store %arg6[%c0_29, %c0_30, %c0_31], %44 {strides = array<i32>} : memref<2x64x64xf32, #tpu.memory_space<vmem>>, vector<2x64x64xf32>,
    return
  }
  func.func @transform_0(%arg0: i32) -> (i32, i32, i32) {
    %c0_i32 = arith.constant 0 : i32
    %c0_i32_0 = arith.constant 0 : i32
    %c0_i32_1 = arith.constant 0 : i32
    return %arg0, %c0_i32, %c0_i32_0 : i32, i32, i32
  }
  func.func @transform_1(%arg0: i32) -> (i32, i32, i32) {
    %c0_i32 = arith.constant 0 : i32
    %c0_i32_0 = arith.constant 0 : i32
    %c0_i32_1 = arith.constant 0 : i32
    return %arg0, %c0_i32, %c0_i32_0 : i32, i32, i32
  }
  func.func @transform_2(%arg0: i32) -> (i32, i32, i32) {
    %c0_i32 = arith.constant 0 : i32
    %c0_i32_0 = arith.constant 0 : i32
    %c0_i32_1 = arith.constant 0 : i32
    return %arg0, %c0_i32, %c0_i32_0 : i32, i32, i32
  }
  func.func @transform_3(%arg0: i32) -> (i32, i32, i32) {
    %c0_i32 = arith.constant 0 : i32
    %c0_i32_0 = arith.constant 0 : i32
    %c0_i32_1 = arith.constant 0 : i32
    return %arg0, %c0_i32, %c0_i32_0 : i32, i32, i32
  }
  func.func @transform_4(%arg0: i32) -> (i32, i32, i32) {
    %c0_i32 = arith.constant 0 : i32
    %c0_i32_0 = arith.constant 0 : i32
    %c0_i32_1 = arith.constant 0 : i32
    return %arg0, %c0_i32, %c0_i32_0 : i32, i32, i32
  }
  func.func @transform_5(%arg0: i32) -> (i32, i32, i32) {
    %c0_i32 = arith.constant 0 : i32
    %c0_i32_0 = arith.constant 0 : i32
    %c0_i32_1 = arith.constant 0 : i32
    return %arg0, %c0_i32, %c0_i32_0 : i32, i32, i32
  }
}

module attributes {stable_mosaic.version = 11 : i64} {
  func.func @_pdist_resize_kernel(%arg0: memref<2x64x64xf32, #tpu.memory_space<vmem>>, %arg1: memref<2x64x64xf32, #tpu.memory_space<vmem>>, %arg2: memref<64x256xf32, #tpu.memory_space<vmem>>, %arg3: memref<2x256xf32, #tpu.memory_space<vmem>>) attributes {dimension_semantics = [], scalar_prefetch = 0 : i64, scratch_operands = 0 : i64, tpu.core_type = #tpu.core_type<tc>} {
    %c0 = arith.constant 0 : index
    %c0_0 = arith.constant 0 : index
    %c0_1 = arith.constant 0 : index
    %0 = vector.load %arg0[%c0, %c0_0, %c0_1] : memref<2x64x64xf32, #tpu.memory_space<vmem>>, vector<2x64x64xf32>
    %c0_2 = arith.constant 0 : index
    %c0_3 = arith.constant 0 : index
    %c0_4 = arith.constant 0 : index
    %1 = vector.load %arg1[%c0_2, %c0_3, %c0_4] : memref<2x64x64xf32, #tpu.memory_space<vmem>>, vector<2x64x64xf32>
    %2 = arith.subf %0, %1 : vector<2x64x64xf32>
    %cst = arith.constant 9.99999997E-7 : f32
    %3 = vector.broadcast %cst : f32 to vector<2x64x64xf32>
    %4 = arith.addf %2, %3 : vector<2x64x64xf32>
    %5 = arith.mulf %4, %4 : vector<2x64x64xf32>
    %cst_5 = arith.constant dense<0.000000e+00> : vector<2x64xf32>
    %6 = vector.multi_reduction <add>, %5, %cst_5 [2] : vector<2x64x64xf32> to vector<2x64xf32>
    %7 = math.sqrt %6 : vector<2x64xf32>
    %c0_6 = arith.constant 0 : index
    %c0_7 = arith.constant 0 : index
    %8 = vector.load %arg2[%c0_6, %c0_7] : memref<64x256xf32, #tpu.memory_space<vmem>>, vector<64x256xf32>
    %cst_8 = arith.constant dense<0.000000e+00> : vector<2x256xf32>
    %9 = tpu.matmul %7, %8, %cst_8 {dimension_numbers = #tpu.dot_dimension_numbers<[1], [0], [0], [1], [0, 0, 1, 1], [], []>} : vector<2x64xf32>, vector<64x256xf32>, vector<2x256xf32> -> vector<2x256xf32>
    %c0_9 = arith.constant 0 : index
    %c0_10 = arith.constant 0 : index
    %10 = vector.load %arg3[%c0_9, %c0_10] : memref<2x256xf32, #tpu.memory_space<vmem>>, vector<2x256xf32>
    tpu.vector_store %arg3[%c0_9, %c0_10], %9 {strides = array<i32>} : memref<2x256xf32, #tpu.memory_space<vmem>>, vector<2x256xf32>,
    return
  }
}

</mosaic_0001>

<bundles_post_ra>
// kernel: dsamnet_forward.13
= control target key start
LH: loop header
LB: loop body
LE: loop exit
PB: predicated region body
PF: predicated region fallthrough
CT: control target
= control target key end

     0   :  { %s1004_s1 = inlined_call_operand.vmem [shape: bf16[128,128], index: 1, kind: input, shape index: {}]   ;;  %s1005_s0 = inlined_call_operand.vmem [shape: bf16[256,128], index: 0, kind: input, shape index: {}]   ;;  %s1006_s2 = inlined_call_operand.vmem [shape: f32[1,128], index: 2, kind: input, shape index: {}]   ;;  %s1007_s3 = inlined_call_operand.vmem [shape: f32[256,128], index: 3, kind: output, shape index: {}]  }
   0x1   :  { %v755_v0 = vld [vmem:[%s1004_s1] sm:$0xff]   ;;  %v756_v1 = vld [vmem:[%s1004_s1 + $0x8] sm:$0xff]   ;;  %v757_v2 = vld [vmem:[%s1004_s1 + $0x10] sm:$0xff]  }
   0x2   :  { %691 = vmatprep.subr.bf16.mxu0 %v755_v0  ;;  %739 = vmatprep.subr.bf16.mxu1 %v755_v0  ;;  %v758_v3 = vld [vmem:[%s1004_s1 + $0x18] sm:$0xff]   ;;  %v763_v4 = vld [vmem:[%s1005_s0] sm:$0xff]   ;;  %v760_v7 = vld [vmem:[%s1004_s1 + $0x28] sm:$0xff]  }
   0x3   :  { %692 = vmatpush3.bf16.msra.mxu0 %v755_v0  ;;  %747 = vmatpush3.bf16.msra.mxu1 %v755_v0  ;;  %v764_v5 = vld [vmem:[%s1005_s0 + $0x40] sm:$0xff]   ;;  %v761_v8 = vld [vmem:[%s1004_s1 + $0x30] sm:$0xff]   ;;  %v762_v9 = vld [vmem:[%s1004_s1 + $0x38] sm:$0xff]  }
   0x4   :  { %693 = vmatprep.subr.bf16.mxu0 %v756_v1  ;;  %740 = vmatprep.subr.bf16.mxu1 %v756_v1  ;;  %v759_v6 = vld [vmem:[%s1004_s1 + $0x20] sm:$0xff]   ;;  %v765_v10 = vld [vmem:[%s1005_s0 + $0x8] sm:$0xff]   ;;  %v767_v12 = vld [vmem:[%s1005_s0 + $0x10] sm:$0xff]  }
   0x5   :  { %707 = vmatprep.mubr.bf16.mxu0 %v763_v4  ;;  %723 = vmatprep.mubr.bf16.mxu1 %v764_v5  ;;  %v766_v11 = vld [vmem:[%s1005_s0 + $0x48] sm:$0xff]   ;;  %v768_v13 = vld [vmem:[%s1005_s0 + $0x50] sm:$0xff]   ;;  %v769_v14 = vld [vmem:[%s1005_s0 + $0x18] sm:$0xff]  }
   0x6   :  { %v770_v15 = vld [vmem:[%s1005_s0 + $0x58] sm:$0xff]   ;;  %v771_v16 = vld [vmem:[%s1005_s0 + $0x20] sm:$0xff]   ;;  %v773_v18 = vld [vmem:[%s1005_s0 + $0x28] sm:$0xff]  }
   0x7   :  { %694 = vmatpush3.bf16.msra.mxu0 %v756_v1  ;;  %748 = vmatpush3.bf16.msra.mxu1 %v756_v1  ;;  %v772_v17 = vld [vmem:[%s1005_s0 + $0x60] sm:$0xff]   ;;  %v774_v19 = vld [vmem:[%s1005_s0 + $0x68] sm:$0xff]   ;;  %v775_v20 = vld [vmem:[%s1005_s0 + $0x30] sm:$0xff]  }
   0x8   :  { %695 = vmatprep.subr.bf16.mxu0 %v757_v2  ;;  %741 = vmatprep.subr.bf16.mxu1 %v757_v2  ;;  %v776_v21 = vld [vmem:[%s1005_s0 + $0x70] sm:$0xff]   ;;  %v777_v22 = vld [vmem:[%s1005_s0 + $0x38] sm:$0xff]   ;;  %v874_v24 = vld [vmem:[%s1006_s2] ss:$0 sm:$0xff] }
   0x9   :  { %v778_v23 = vld [vmem:[%s1005_s0 + $0x78] sm:$0xff]  }
   0xb   :  { %696 = vmatpush3.bf16.msra.mxu0 %v757_v2  ;;  %749 = vmatpush3.bf16.msra.mxu1 %v757_v2 }
   0xc   :  { %697 = vmatprep.subr.bf16.mxu0 %v758_v3  ;;  %742 = vmatprep.subr.bf16.mxu1 %v758_v3 }
   0xf   :  { %698 = vmatpush3.bf16.msra.mxu0 %v758_v3  ;;  %750 = vmatpush3.bf16.msra.mxu1 %v758_v3 }
  0x10   :  { %699 = vmatprep.subr.bf16.mxu0 %v759_v6  ;;  %743 = vmatprep.subr.bf16.mxu1 %v759_v6 }
  0x13   :  { %700 = vmatpush3.bf16.msra.mxu0 %v759_v6  ;;  %751 = vmatpush3.bf16.msra.mxu1 %v759_v6 }
  0x14   :  { %701 = vmatprep.subr.bf16.mxu0 %v760_v7  ;;  %744 = vmatprep.subr.bf16.mxu1 %v760_v7 }
  0x17   :  { %702 = vmatpush3.bf16.msra.mxu0 %v760_v7  ;;  %752 = vmatpush3.bf16.msra.mxu1 %v760_v7 }
  0x18   :  { %703 = vmatprep.subr.bf16.mxu0 %v761_v8  ;;  %745 = vmatprep.subr.bf16.mxu1 %v761_v8 }
  0x1b   :  { %704 = vmatpush3.bf16.msra.mxu0 %v761_v8  ;;  %753 = vmatpush3.bf16.msra.mxu1 %v761_v8 }
  0x1c   :  { %705 = vmatprep.subr.bf16.mxu0 %v762_v9  ;;  %746 = vmatprep.subr.bf16.mxu1 %v762_v9 }
  0x1f   :  { %706 = vmatpush3.bf16.msra.mxu0 %v762_v9  ;;  %754 = vmatpush3.bf16.msra.mxu1 %v762_v9 }
  0x22   :  { %708 = vmatmul.mubr.bf16.vlgmr.msra.gmra.mrb[0].mxu0 %v765_v10  ;;  %724 = vmatmul.mubr.bf16.vlgmr.msra.gmra.mrb[0].mxu1 %v766_v11 }
  0x23   :  { %711 = vmatprep.mubr.bf16.mxu0 %v767_v12  ;;  %727 = vmatprep.mubr.bf16.mxu1 %v768_v13 }
  0x2a   :  { %712 = vmatmul.mubr.bf16.gmra.mrb[4].mxu0 %v769_v14  ;;  %728 = vmatmul.mubr.bf16.gmra.mrb[4].mxu1 %v770_v15 }
  0x2b   :  { %715 = vmatprep.mubr.bf16.mxu0 %v771_v16  ;;  %731 = vmatprep.mubr.bf16.mxu1 %v772_v17 }
  0x32   :  { %716 = vmatmul.mubr.bf16.gmra.mrb[8].mxu0 %v773_v18  ;;  %732 = vmatmul.mubr.bf16.gmra.mrb[8].mxu1 %v774_v19 }
  0x33   :  { %719 = vmatprep.mubr.bf16.mxu0 %v775_v20  ;;  %735 = vmatprep.mubr.bf16.mxu1 %v776_v21 }
  0x3a   :  { %720 = vmatmul.mubr.bf16.gmra.mrb[12].mxu0 %v777_v22  ;;  %736 = vmatmul.mubr.bf16.gmra.mrb[12].mxu1 %v778_v23 }
  0xf5   :  { %v709_v25 = vpop.f32.mrb[0].mxu0  ;;  %v725_v26 = vpop.f32.mrb[0].mxu1 }
  0xf6   :  { %v544_v27 = vadd.f32 %v709_v25, %v874_v24  ;;  %v560_v28 = vadd.f32 %v725_v26, %v874_v24  ;;  %v309_v29 = vpop.f32.mrb[1].mxu0  ;;  %v373_v30 = vpop.f32.mrb[1].mxu1 }
  0xf7   :  { %v542_v31 = vadd.f32 %v874_v24, %v309_v29  ;;  %v558_v32 = vadd.f32 %v874_v24, %v373_v30  ;;  %v710_v33 = vpop.f32.mrb[2].mxu0  ;;  %v726_v34 = vpop.f32.mrb[2].mxu1 }
  0xf8   :  { %v576_v35 = vmax.f32 %v544_v27, 0.0  ;;  %v592_v36 = vmax.f32 %v560_v28, 0.0  ;;  %v545_v37 = vadd.f32 %v710_v33, %v874_v24  ;;  %v561_v38 = vadd.f32 %v726_v34, %v874_v24  ;;  %v312_v39 = vpop.f32.mrb[3].mxu0  ;;  %v376_v40 = vpop.f32.mrb[3].mxu1 }
  0xf9   :  { %v574_v41 = vmax.f32 %v542_v31, 0.0  ;;  %v590_v42 = vmax.f32 %v558_v32, 0.0  ;;  %v543_v43 = vadd.f32 %v874_v24, %v312_v39  ;;  %v559_v44 = vadd.f32 %v874_v24, %v376_v40 }
  0xfa   :  { %608 = vst [vmem:[%s1007_s3 + $0x10] sm:$0xff] %v576_v35  ;;  %624 = vst [vmem:[%s1007_s3 + $0x90] sm:$0xff] %v592_v36  ;;  %v577_v45 = vmax.f32 %v545_v37, 0.0  ;;  %v593_v46 = vmax.f32 %v561_v38, 0.0 }
  0xfb   :  { %606 = vst [vmem:[%s1007_s3] sm:$0xff] %v574_v41  ;;  %622 = vst [vmem:[%s1007_s3 + $0x80] sm:$0xff] %v590_v42  ;;  %v575_v47 = vmax.f32 %v543_v43, 0.0  ;;  %v591_v48 = vmax.f32 %v559_v44, 0.0 }
  0xfc   :  { %609 = vst [vmem:[%s1007_s3 + $0x18] sm:$0xff] %v577_v45  ;;  %625 = vst [vmem:[%s1007_s3 + $0x98] sm:$0xff] %v593_v46 }
  0xfd   :  { %607 = vst [vmem:[%s1007_s3 + $0x8] sm:$0xff] %v575_v47  ;;  %623 = vst [vmem:[%s1007_s3 + $0x88] sm:$0xff] %v591_v48  ;;  %v713_v49 = vpop.f32.mrb[4].mxu0  ;;  %v729_v50 = vpop.f32.mrb[4].mxu1 }
  0xfe   :  { %v548_v51 = vadd.f32 %v713_v49, %v874_v24  ;;  %v564_v52 = vadd.f32 %v729_v50, %v874_v24  ;;  %v325_v53 = vpop.f32.mrb[5].mxu0  ;;  %v389_v54 = vpop.f32.mrb[5].mxu1 }
  0xff   :  { %v546_v55 = vadd.f32 %v874_v24, %v325_v53  ;;  %v562_v56 = vadd.f32 %v874_v24, %v389_v54  ;;  %v714_v57 = vpop.f32.mrb[6].mxu0  ;;  %v730_v58 = vpop.f32.mrb[6].mxu1 }
 0x100   :  { %v580_v59 = vmax.f32 %v548_v51, 0.0  ;;  %v596_v60 = vmax.f32 %v564_v52, 0.0  ;;  %v549_v61 = vadd.f32 %v714_v57, %v874_v24  ;;  %v565_v62 = vadd.f32 %v730_v58, %v874_v24  ;;  %v328_v63 = vpop.f32.mrb[7].mxu0  ;;  %v392_v0 = vpop.f32.mrb[7].mxu1 }
 0x101   :  { %v578_v1 = vmax.f32 %v546_v55, 0.0  ;;  %v594_v2 = vmax.f32 %v562_v56, 0.0  ;;  %v547_v3 = vadd.f32 %v874_v24, %v328_v63  ;;  %v563_v4 = vadd.f32 %v874_v24, %v392_v0 }
 0x102   :  { %612 = vst [vmem:[%s1007_s3 + $0x30] sm:$0xff] %v580_v59  ;;  %628 = vst [vmem:[%s1007_s3 + $0xb0] sm:$0xff] %v596_v60  ;;  %v581_v5 = vmax.f32 %v549_v61, 0.0  ;;  %v597_v6 = vmax.f32 %v565_v62, 0.0 }
 0x103   :  { %610 = vst [vmem:[%s1007_s3 + $0x20] sm:$0xff] %v578_v1  ;;  %626 = vst [vmem:[%s1007_s3 + $0xa0] sm:$0xff] %v594_v2  ;;  %v579_v7 = vmax.f32 %v547_v3, 0.0  ;;  %v595_v8 = vmax.f32 %v563_v4, 0.0 }
 0x104   :  { %613 = vst [vmem:[%s1007_s3 + $0x38] sm:$0xff] %v581_v5  ;;  %629 = vst [vmem:[%s1007_s3 + $0xb8] sm:$0xff] %v597_v6 }
 0x105   :  { %611 = vst [vmem:[%s1007_s3 + $0x28] sm:$0xff] %v579_v7  ;;  %627 = vst [vmem:[%s1007_s3 + $0xa8] sm:$0xff] %v595_v8  ;;  %v717_v9 = vpop.f32.mrb[8].mxu0  ;;  %v733_v10 = vpop.f32.mrb[8].mxu1 }
 0x106   :  { %v552_v11 = vadd.f32 %v717_v9, %v874_v24  ;;  %v568_v12 = vadd.f32 %v733_v10, %v874_v24  ;;  %v341_v13 = vpop.f32.mrb[9].mxu0  ;;  %v405_v14 = vpop.f32.mrb[9].mxu1 }
 0x107   :  { %v550_v15 = vadd.f32 %v874_v24, %v341_v13  ;;  %v566_v16 = vadd.f32 %v874_v24, %v405_v14  ;;  %v718_v17 = vpop.f32.mrb[10].mxu0  ;;  %v734_v18 = vpop.f32.mrb[10].mxu1 }
 0x108   :  { %v584_v19 = vmax.f32 %v552_v11, 0.0  ;;  %v600_v20 = vmax.f32 %v568_v12, 0.0  ;;  %v553_v21 = vadd.f32 %v718_v17, %v874_v24  ;;  %v569_v22 = vadd.f32 %v734_v18, %v874_v24  ;;  %v344_v23 = vpop.f32.mrb[11].mxu0  ;;  %v408_v25 = vpop.f32.mrb[11].mxu1 }
 0x109   :  { %v582_v26 = vmax.f32 %v550_v15, 0.0  ;;  %v598_v27 = vmax.f32 %v566_v16, 0.0  ;;  %v551_v28 = vadd.f32 %v874_v24, %v344_v23  ;;  %v567_v29 = vadd.f32 %v874_v24, %v408_v25 }
 0x10a   :  { %616 = vst [vmem:[%s1007_s3 + $0x50] sm:$0xff] %v584_v19  ;;  %632 = vst [vmem:[%s1007_s3 + $0xd0] sm:$0xff] %v600_v20  ;;  %v585_v30 = vmax.f32 %v553_v21, 0.0  ;;  %v601_v31 = vmax.f32 %v569_v22, 0.0 }
 0x10b   :  { %614 = vst [vmem:[%s1007_s3 + $0x40] sm:$0xff] %v582_v26  ;;  %630 = vst [vmem:[%s1007_s3 + $0xc0] sm:$0xff] %v598_v27  ;;  %v583_v32 = vmax.f32 %v551_v28, 0.0  ;;  %v599_v33 = vmax.f32 %v567_v29, 0.0 }
 0x10c   :  { %617 = vst [vmem:[%s1007_s3 + $0x58] sm:$0xff] %v585_v30  ;;  %633 = vst [vmem:[%s1007_s3 + $0xd8] sm:$0xff] %v601_v31 }
 0x10d   :  { %615 = vst [vmem:[%s1007_s3 + $0x48] sm:$0xff] %v583_v32  ;;  %631 = vst [vmem:[%s1007_s3 + $0xc8] sm:$0xff] %v599_v33  ;;  %v721_v34 = vpop.f32.mrb[12].mxu0  ;;  %v737_v35 = vpop.f32.mrb[12].mxu1 }
 0x10e   :  { %v556_v36 = vadd.f32 %v721_v34, %v874_v24  ;;  %v572_v37 = vadd.f32 %v737_v35, %v874_v24  ;;  %v357_v38 = vpop.f32.mrb[13].mxu0  ;;  %v421_v39 = vpop.f32.mrb[13].mxu1 }
 0x10f   :  { %v554_v40 = vadd.f32 %v874_v24, %v357_v38  ;;  %v570_v41 = vadd.f32 %v874_v24, %v421_v39  ;;  %v722_v42 = vpop.f32.mrb[14].mxu0  ;;  %v738_v43 = vpop.f32.mrb[14].mxu1 }
 0x110   :  { %v588_v44 = vmax.f32 %v556_v36, 0.0  ;;  %v604_v45 = vmax.f32 %v572_v37, 0.0  ;;  %v557_v46 = vadd.f32 %v722_v42, %v874_v24  ;;  %v573_v47 = vadd.f32 %v738_v43, %v874_v24  ;;  %v360_v48 = vpop.f32.mrb[15].mxu0  ;;  %v424_v49 = vpop.f32.mrb[15].mxu1 }
 0x111   :  { %v586_v50 = vmax.f32 %v554_v40, 0.0  ;;  %v602_v51 = vmax.f32 %v570_v41, 0.0  ;;  %v555_v52 = vadd.f32 %v874_v24, %v360_v48  ;;  %v571_v53 = vadd.f32 %v874_v24, %v424_v49 }
 0x112   :  { %620 = vst [vmem:[%s1007_s3 + $0x70] sm:$0xff] %v588_v44  ;;  %636 = vst [vmem:[%s1007_s3 + $0xf0] sm:$0xff] %v604_v45  ;;  %v589_v54 = vmax.f32 %v557_v46, 0.0  ;;  %v605_v55 = vmax.f32 %v573_v47, 0.0 }
 0x113   :  { %618 = vst [vmem:[%s1007_s3 + $0x60] sm:$0xff] %v586_v50  ;;  %634 = vst [vmem:[%s1007_s3 + $0xe0] sm:$0xff] %v602_v51  ;;  %v587_v56 = vmax.f32 %v555_v52, 0.0  ;;  %v603_v24 = vmax.f32 %v571_v53, 0.0 }
 0x114   :  { %621 = vst [vmem:[%s1007_s3 + $0x78] sm:$0xff] %v589_v54  ;;  %637 = vst [vmem:[%s1007_s3 + $0xf8] sm:$0xff] %v605_v55 }
 0x115   :  { %619 = vst [vmem:[%s1007_s3 + $0x68] sm:$0xff] %v587_v56  ;;  %635 = vst [vmem:[%s1007_s3 + $0xe8] sm:$0xff] %v603_v24 }

// kernel: dsamnet_forward.14
= control target key start
LH: loop header
LB: loop body
LE: loop exit
PB: predicated region body
PF: predicated region fallthrough
CT: control target
= control target key end

     0   :  { %s1228_s1 = inlined_call_operand.vmem [shape: bf16[640,128], index: 1, kind: input, shape index: {}]   ;;  %s1229_s0 = inlined_call_operand.vmem [shape: bf16[64,640], index: 0, kind: input, shape index: {}]   ;;  %s1230_s2 = inlined_call_operand.vmem [shape: f32[1,128], index: 2, kind: input, shape index: {}]   ;;  %s1231_s3 = inlined_call_operand.vmem [shape: f32[64,128], index: 3, kind: output, shape index: {}]  }
   0x1   :  { %v933_v0 = vld [vmem:[%s1228_s1 + $0x40] sm:$0xff]   ;;  %v937_v4 = vld [vmem:[%s1228_s1 + $0x48] sm:$0xff]   ;;  %v941_v8 = vld [vmem:[%s1228_s1 + $0x50] sm:$0xff]  }
   0x2   :  { %v934_v1 = vld [vmem:[%s1228_s1 + $0xc0] sm:$0xff]   ;;  %801 = vmatprep.subr.bf16.mxu0 %v933_v0  ;;  %v938_v5 = vld [vmem:[%s1228_s1 + $0xc8] sm:$0xff]   ;;  %v942_v9 = vld [vmem:[%s1228_s1 + $0xd0] sm:$0xff]  }
   0x3   :  { %v935_v2 = vld [vmem:[%s1228_s1] sm:$0xff]   ;;  %841 = vmatprep.subr.bf16.mxu1 %v934_v1  ;;  %v939_v6 = vld [vmem:[%s1228_s1 + $0x8] sm:$0xff]   ;;  %v943_v10 = vld [vmem:[%s1228_s1 + $0x10] sm:$0xff]  }
   0x4   :  { %v936_v3 = vld [vmem:[%s1228_s1 + $0x80] sm:$0xff]   ;;  %802 = vmatpush3.bf16.msra.mxu0 %v935_v2  ;;  %v940_v7 = vld [vmem:[%s1228_s1 + $0x88] sm:$0xff]   ;;  %v944_v11 = vld [vmem:[%s1228_s1 + $0x90] sm:$0xff]  }
   0x5   :  { %842 = vmatpush3.bf16.msra.mxu1 %v936_v3  ;;  %803 = vmatprep.subr.bf16.mxu0 %v937_v4  ;;  %v945_v12 = vld [vmem:[%s1228_s1 + $0x58] sm:$0xff]   ;;  %v949_v16 = vld [vmem:[%s1228_s1 + $0x60] sm:$0xff]   ;;  %v953_v20 = vld [vmem:[%s1228_s1 + $0x68] sm:$0xff]  }
   0x6   :  { %843 = vmatprep.subr.bf16.mxu1 %v938_v5  ;;  %v946_v13 = vld [vmem:[%s1228_s1 + $0xd8] sm:$0xff]   ;;  %v950_v17 = vld [vmem:[%s1228_s1 + $0xe0] sm:$0xff]   ;;  %v954_v21 = vld [vmem:[%s1228_s1 + $0xe8] sm:$0xff]  }
   0x7   :  { %v947_v14 = vld [vmem:[%s1228_s1 + $0x18] sm:$0xff]   ;;  %v951_v18 = vld [vmem:[%s1228_s1 + $0x20] sm:$0xff]   ;;  %v955_v22 = vld [vmem:[%s1228_s1 + $0x28] sm:$0xff]  }
   0x8   :  { %804 = vmatpush3.bf16.msra.mxu0 %v939_v6  ;;  %v948_v15 = vld [vmem:[%s1228_s1 + $0x98] sm:$0xff]   ;;  %v952_v19 = vld [vmem:[%s1228_s1 + $0xa0] sm:$0xff]   ;;  %v956_v23 = vld [vmem:[%s1228_s1 + $0xa8] sm:$0xff]  }
   0x9   :  { %844 = vmatpush3.bf16.msra.mxu1 %v940_v7  ;;  %805 = vmatprep.subr.bf16.mxu0 %v941_v8  ;;  %v957_v24 = vld [vmem:[%s1228_s1 + $0x70] sm:$0xff]   ;;  %v961_v28 = vld [vmem:[%s1228_s1 + $0x78] sm:$0xff]   ;;  %v970_v35 = vld [vmem:[%s1229_s0 + $0xc] ss:$20 sps:$4 sm:$0xff]  }
   0xa   :  { %845 = vmatprep.subr.bf16.mxu1 %v942_v9  ;;  %v958_v25 = vld [vmem:[%s1228_s1 + $0xf0] sm:$0xff]   ;;  %v962_v29 = vld [vmem:[%s1228_s1 + $0xf8] sm:$0xff]   ;;  %v971_v36 = vld [vmem:[%s1228_s1 + $0x100] sm:$0xff]   ;;  %580 = vmatprep.mubr.bf16.mxu1 %v970_v35 }
   0xb   :  { %v959_v26 = vld [vmem:[%s1228_s1 + $0x30] sm:$0xff]   ;;  %v963_v30 = vld [vmem:[%s1228_s1 + $0x38] sm:$0xff]   ;;  %v972_v37 = vld [vmem:[%s1228_s1 + $0x108] sm:$0xff]  }
   0xc   :  { %806 = vmatpush3.bf16.msra.mxu0 %v943_v10  ;;  %v960_v27 = vld [vmem:[%s1228_s1 + $0xb0] sm:$0xff]   ;;  %v964_v31 = vld [vmem:[%s1228_s1 + $0xb8] sm:$0xff]   ;;  %v973_v38 = vld [vmem:[%s1229_s0 + $0x2c] ss:$20 sps:$4 sm:$0xff]  }
   0xd   :  { %846 = vmatpush3.bf16.msra.mxu1 %v944_v11  ;;  %807 = vmatprep.subr.bf16.mxu0 %v945_v12  ;;  %v965_v32 = vld [vmem:[%s1229_s0] ss:$20 sps:$4 sm:$0xff]   ;;  %v967_v33 = vld [vmem:[%s1229_s0 + $0x4] ss:$20 sps:$4 sm:$0xff]   ;;  %v968_v34 = vld [vmem:[%s1229_s0 + $0x8] ss:$20 sps:$4 sm:$0xff]  }
   0xe   :  { %847 = vmatprep.subr.bf16.mxu1 %v946_v13  ;;  %515 = vmatprep.mubr.bf16.mxu0 %v967_v33  ;;  %v975_v39 = vld [vmem:[%s1229_s0 + $0x34] ss:$20 sps:$4 sm:$0xff]   ;;  %v978_v42 = vld [vmem:[%s1229_s0 + $0x30] ss:$20 sps:$4 sm:$0xff]   ;;  %v980_v44 = vld [vmem:[%s1228_s1 + $0x118] sm:$0xff]  }
   0xf   :  { %v977_v40 = vld [vmem:[%s1229_s0 + $0x28] ss:$20 sps:$4 sm:$0xff]   ;;  %v979_v41 = vld [vmem:[%s1228_s1 + $0x110] sm:$0xff]   ;;  %v987_v46 = vld [vmem:[%s1228_s1 + $0x120] sm:$0xff]  }
  0x10   :  { %808 = vmatpush3.bf16.msra.mxu0 %v947_v14  ;;  %v981_v43 = vld [vmem:[%s1229_s0 + $0x54] ss:$20 sps:$4 sm:$0xff]   ;;  %v983_v45 = vld [vmem:[%s1229_s0 + $0x5c] ss:$20 sps:$4 sm:$0xff]   ;;  %v986_v48 = vld [vmem:[%s1229_s0 + $0x58] ss:$20 sps:$4 sm:$0xff]  }
  0x11   :  { %848 = vmatpush3.bf16.msra.mxu1 %v948_v15  ;;  %809 = vmatprep.subr.bf16.mxu0 %v949_v16  ;;  %v985_v47 = vld [vmem:[%s1229_s0 + $0x50] ss:$20 sps:$4 sm:$0xff]   ;;  %v988_v51 = vld [vmem:[%s1228_s1 + $0x128] sm:$0xff]   ;;  %v994_v54 = vld [vmem:[%s1229_s0 + $0x80] ss:$20 sps:$4 sm:$0xff]  }
  0x12   :  { %849 = vmatprep.subr.bf16.mxu1 %v950_v17  ;;  %v989_v49 = vld [vmem:[%s1229_s0 + $0x7c] ss:$20 sps:$4 sm:$0xff]   ;;  %v991_v50 = vld [vmem:[%s1229_s0 + $0x84] ss:$20 sps:$4 sm:$0xff]   ;;  %v998_v56 = vld [vmem:[%s1229_s0 + $0x60] ss:$20 sps:$4 sm:$0xff]  }
  0x13   :  { %v995_v52 = vld [vmem:[%s1228_s1 + $0x130] sm:$0xff]   ;;  %v993_v53 = vld [vmem:[%s1229_s0 + $0x78] ss:$20 sps:$4 sm:$0xff]   ;;  %v1000_v59 = vld [vmem:[%s1229_s0 + $0x88] ss:$20 sps:$4 sm:$0xff]  }
  0x14   :  { %810 = vmatpush3.bf16.msra.mxu0 %v951_v18  ;;  %v997_v55 = vld [vmem:[%s1229_s0 + $0x10] ss:$20 sps:$4 sm:$0xff]   ;;  %v996_v57 = vld [vmem:[%s1228_s1 + $0x138] sm:$0xff]  }
  0x15   :  { %850 = vmatpush3.bf16.msra.mxu1 %v952_v19  ;;  %811 = vmatprep.subr.bf16.mxu0 %v953_v20  ;;  %v999_v58 = vld [vmem:[%s1229_s0 + $0x38] ss:$20 sps:$4 sm:$0xff]  }
  0x16   :  { %851 = vmatprep.subr.bf16.mxu1 %v954_v21 }
  0x18   :  { %812 = vmatpush3.bf16.msra.mxu0 %v955_v22 }
  0x19   :  { %852 = vmatpush3.bf16.msra.mxu1 %v956_v23  ;;  %813 = vmatprep.subr.bf16.mxu0 %v957_v24 }
  0x1a   :  { %853 = vmatprep.subr.bf16.mxu1 %v958_v25 }
  0x1c   :  { %814 = vmatpush3.bf16.msra.mxu0 %v959_v26 }
  0x1d   :  { %854 = vmatpush3.bf16.msra.mxu1 %v960_v27  ;;  %815 = vmatprep.subr.bf16.mxu0 %v961_v28 }
  0x1e   :  { %855 = vmatprep.subr.bf16.mxu1 %v962_v29 }
  0x20   :  { %816 = vmatpush3.bf16.msra.mxu0 %v963_v30 }
  0x21   :  { %856 = vmatpush3.bf16.msra.mxu1 %v964_v31  ;;  %893 = vmatprep.subr.bf16.mxu0 %v971_v36 }
  0x22   :  { %917 = vmatprep.subr.bf16.mxu1 %v971_v36 }
  0x23   :  { %516 = vmatmul.mubr.bf16.vlgmr.msra.gmra.mrb[0].mxu0 %v965_v32 }
  0x24   :  { %581 = vmatmul.mubr.bf16.vlgmr.msra.gmra.mrb[0].mxu1 %v968_v34  ;;  %894 = vmatpush3.bf16.msra.mxu0 %v971_v36 }
  0x25   :  { %925 = vmatpush3.bf16.msra.mxu1 %v971_v36  ;;  %895 = vmatprep.subr.bf16.mxu0 %v972_v37 }
  0x26   :  { %918 = vmatprep.subr.bf16.mxu1 %v972_v37  ;;  %523 = vmatprep.mubr.bf16.mxu0 %v973_v38 }
  0x27   :  { %588 = vmatprep.mubr.bf16.mxu1 %v975_v39 }
  0x28   :  { %896 = vmatpush3.bf16.msra.mxu0 %v972_v37 }
  0x29   :  { %926 = vmatpush3.bf16.msra.mxu1 %v972_v37  ;;  %897 = vmatprep.subr.bf16.mxu0 %v979_v41 }
  0x2a   :  { %919 = vmatprep.subr.bf16.mxu1 %v979_v41 }
  0x2b   :  { %524 = vmatmul.mubr.bf16.gmra.mrb[4].mxu0 %v977_v40 }
  0x2c   :  { %589 = vmatmul.mubr.bf16.gmra.mrb[4].mxu1 %v978_v42  ;;  %531 = vmatprep.mubr.bf16.mxu0 %v981_v43 }
  0x2d   :  { %898 = vmatpush3.bf16.msra.mxu0 %v979_v41  ;;  %596 = vmatprep.mubr.bf16.mxu1 %v983_v45 }
  0x2e   :  { %927 = vmatpush3.bf16.msra.mxu1 %v979_v41  ;;  %899 = vmatprep.subr.bf16.mxu0 %v980_v44 }
  0x2f   :  { %920 = vmatprep.subr.bf16.mxu1 %v980_v44 }
  0x31   :  { %900 = vmatpush3.bf16.msra.mxu0 %v980_v44 }
  0x32   :  { %928 = vmatpush3.bf16.msra.mxu1 %v980_v44  ;;  %901 = vmatprep.subr.bf16.mxu0 %v987_v46 }
  0x33   :  { %532 = vmatmul.mubr.bf16.gmra.mrb[8].mxu0 %v985_v47  ;;  %921 = vmatprep.subr.bf16.mxu1 %v987_v46 }
  0x34   :  { %597 = vmatmul.mubr.bf16.gmra.mrb[8].mxu1 %v986_v48  ;;  %539 = vmatprep.mubr.bf16.mxu0 %v989_v49 }
  0x35   :  { %902 = vmatpush3.bf16.msra.mxu0 %v987_v46  ;;  %604 = vmatprep.mubr.bf16.mxu1 %v991_v50 }
  0x36   :  { %929 = vmatpush3.bf16.msra.mxu1 %v987_v46  ;;  %903 = vmatprep.subr.bf16.mxu0 %v988_v51 }
  0x37   :  { %922 = vmatprep.subr.bf16.mxu1 %v988_v51 }
  0x39   :  { %904 = vmatpush3.bf16.msra.mxu0 %v988_v51 }
  0x3a   :  { %930 = vmatpush3.bf16.msra.mxu1 %v988_v51  ;;  %905 = vmatprep.subr.bf16.mxu0 %v995_v52 }
  0x3b   :  { %540 = vmatmul.mubr.bf16.gmra.mrb[12].mxu0 %v993_v53  ;;  %923 = vmatprep.subr.bf16.mxu1 %v995_v52  ;;  %v800_v53 = vld [vmem:[%s1230_s2] ss:$0 sm:$0xff] }
  0x3c   :  { %605 = vmatmul.mubr.bf16.gmra.mrb[12].mxu1 %v994_v54  ;;  %909 = vmatprep.mubr.bf16.mxu0 %v997_v55 }
  0x3d   :  { %906 = vmatpush3.bf16.msra.mxu0 %v995_v52  ;;  %913 = vmatprep.mubr.bf16.mxu1 %v998_v56 }
  0x3e   :  { %931 = vmatpush3.bf16.msra.mxu1 %v995_v52  ;;  %907 = vmatprep.subr.bf16.mxu0 %v996_v57 }
  0x3f   :  { %924 = vmatprep.subr.bf16.mxu1 %v996_v57 }
  0x41   :  { %908 = vmatpush3.bf16.msra.mxu0 %v996_v57 }
  0x42   :  { %932 = vmatpush3.bf16.msra.mxu1 %v996_v57 }
  0x44   :  { %910 = vmatmul.mubr.bf16.vlgmr.msra.gmra.mrb[16].mxu0 %v999_v58 }
  0x45   :  { %914 = vmatmul.mubr.bf16.vlgmr.msra.gmra.mrb[16].mxu1 %v1000_v59 }
  0xf6   :  { %v817_v60 = vpop.f32.mrb[0].mxu0 }
  0xf7   :  { %v857_v61 = vpop.f32.mrb[0].mxu1  ;;  %v818_v62 = vpop.f32.mrb[1].mxu0 }
  0xf8   :  { %v819_v63 = vadd.f32 %v818_v62, %v817_v60  ;;  %v858_v0 = vpop.f32.mrb[1].mxu1  ;;  %v820_v1 = vpop.f32.mrb[2].mxu0 }
  0xf9   :  { %v859_v2 = vadd.f32 %v858_v0, %v857_v61  ;;  %v860_v3 = vpop.f32.mrb[2].mxu1  ;;  %v821_v4 = vpop.f32.mrb[3].mxu0 }
  0xfa   :  { %v822_v5 = vadd.f32 %v821_v4, %v820_v1  ;;  %v861_v6 = vpop.f32.mrb[3].mxu1 }
  0xfb   :  { %v862_v7 = vadd.f32 %v861_v6, %v860_v3  ;;  %v583_v8 = vadd.f32 %v859_v2, %v819_v63 }
  0xfd   :  { %v586_v9 = vadd.f32 %v862_v7, %v822_v5 }
  0xfe   :  { %v823_v10 = vpop.f32.mrb[4].mxu0 }
  0xff   :  { %v863_v11 = vpop.f32.mrb[4].mxu1  ;;  %v824_v12 = vpop.f32.mrb[5].mxu0 }
 0x100   :  { %v825_v13 = vadd.f32 %v824_v12, %v823_v10  ;;  %v864_v14 = vpop.f32.mrb[5].mxu1  ;;  %v826_v15 = vpop.f32.mrb[6].mxu0 }
 0x101   :  { %v865_v16 = vadd.f32 %v864_v14, %v863_v11  ;;  %v866_v17 = vpop.f32.mrb[6].mxu1  ;;  %v827_v18 = vpop.f32.mrb[7].mxu0 }
 0x102   :  { %v828_v19 = vadd.f32 %v827_v18, %v826_v15  ;;  %v867_v20 = vpop.f32.mrb[7].mxu1 }
 0x103   :  { %v868_v21 = vadd.f32 %v867_v20, %v866_v17  ;;  %v591_v22 = vadd.f32 %v865_v16, %v825_v13 }
 0x105   :  { %v594_v23 = vadd.f32 %v868_v21, %v828_v19 }
 0x106   :  { %v829_v24 = vpop.f32.mrb[8].mxu0 }
 0x107   :  { %v869_v25 = vpop.f32.mrb[8].mxu1  ;;  %v830_v26 = vpop.f32.mrb[9].mxu0 }
 0x108   :  { %v831_v27 = vadd.f32 %v830_v26, %v829_v24  ;;  %v870_v28 = vpop.f32.mrb[9].mxu1  ;;  %v832_v29 = vpop.f32.mrb[10].mxu0 }
 0x109   :  { %v871_v30 = vadd.f32 %v870_v28, %v869_v25  ;;  %v872_v31 = vpop.f32.mrb[10].mxu1  ;;  %v833_v32 = vpop.f32.mrb[11].mxu0 }
 0x10a   :  { %v834_v33 = vadd.f32 %v833_v32, %v832_v29  ;;  %v873_v34 = vpop.f32.mrb[11].mxu1 }
 0x10b   :  { %v874_v35 = vadd.f32 %v873_v34, %v872_v31  ;;  %v599_v36 = vadd.f32 %v871_v30, %v831_v27 }
 0x10d   :  { %v602_v37 = vadd.f32 %v874_v35, %v834_v33 }
 0x10e   :  { %v835_v38 = vpop.f32.mrb[12].mxu0 }
 0x10f   :  { %v875_v39 = vpop.f32.mrb[12].mxu1  ;;  %v836_v40 = vpop.f32.mrb[13].mxu0 }
 0x110   :  { %v837_v41 = vadd.f32 %v836_v40, %v835_v38  ;;  %v876_v42 = vpop.f32.mrb[13].mxu1  ;;  %v838_v43 = vpop.f32.mrb[14].mxu0 }
 0x111   :  { %v877_v44 = vadd.f32 %v876_v42, %v875_v39  ;;  %v878_v45 = vpop.f32.mrb[14].mxu1  ;;  %v839_v46 = vpop.f32.mrb[15].mxu0 }
 0x112   :  { %v840_v47 = vadd.f32 %v839_v46, %v838_v43  ;;  %v879_v48 = vpop.f32.mrb[15].mxu1 }
 0x113   :  { %v880_v49 = vadd.f32 %v879_v48, %v878_v45  ;;  %v607_v50 = vadd.f32 %v877_v44, %v837_v41 }
 0x115   :  { %v610_v51 = vadd.f32 %v880_v49, %v840_v47 }
 0x117   :  { %v911_v52 = vpop.f32.mrb[16].mxu0 }
 0x118   :  { %v656_v54 = vadd.f32 %v911_v52, %v591_v22  ;;  %v915_v55 = vpop.f32.mrb[16].mxu1  ;;  %v647_v56 = vpop.f32.mrb[17].mxu0 }
 0x119   :  { %v672_v57 = vadd.f32 %v915_v55, %v607_v50  ;;  %v648_v58 = vadd.f32 %v647_v56, %v583_v8  ;;  %v663_v59 = vpop.f32.mrb[17].mxu1  ;;  %v912_v60 = vpop.f32.mrb[18].mxu0 }
 0x11a   :  { %v714_v61 = vadd.f32 %v800_v53, %v656_v54  ;;  %v664_v62 = vadd.f32 %v663_v59, %v599_v36  ;;  %v659_v63 = vadd.f32 %v912_v60, %v594_v23  ;;  %v916_v0 = vpop.f32.mrb[18].mxu1  ;;  %v650_v1 = vpop.f32.mrb[19].mxu0 }
 0x11b   :  { %v718_v2 = vadd.f32 %v800_v53, %v672_v57  ;;  %v712_v3 = vadd.f32 %v800_v53, %v648_v58  ;;  %v675_v4 = vadd.f32 %v916_v0, %v610_v51  ;;  %v651_v5 = vadd.f32 %v650_v1, %v586_v9  ;;  %v666_v6 = vpop.f32.mrb[19].mxu1 }
 0x11c   :  { %v722_v7 = vmax.f32 %v714_v61, 0.0  ;;  %v716_v10 = vadd.f32 %v800_v53, %v664_v62  ;;  %v715_v11 = vadd.f32 %v800_v53, %v659_v63  ;;  %v667_v12 = vadd.f32 %v666_v6, %v602_v37 }
 0x11d   :  { %v726_v13 = vmax.f32 %v718_v2, 0.0  ;;  %v720_v14 = vmax.f32 %v712_v3, 0.0  ;;  %v719_v15 = vadd.f32 %v800_v53, %v675_v4  ;;  %v713_v8 = vadd.f32 %v800_v53, %v651_v5 }
 0x11e   :  { %730 = vst [vmem:[%s1231_s3 + $0x10] sm:$0xff] %v722_v7  ;;  %v724_v16 = vmax.f32 %v716_v10, 0.0  ;;  %v723_v17 = vmax.f32 %v715_v11, 0.0  ;;  %v717_v18 = vadd.f32 %v800_v53, %v667_v12 }
 0x11f   :  { %734 = vst [vmem:[%s1231_s3 + $0x30] sm:$0xff] %v726_v13  ;;  %728 = vst [vmem:[%s1231_s3] sm:$0xff] %v720_v14  ;;  %v727_v9 = vmax.f32 %v719_v15, 0.0  ;;  %v721_v19 = vmax.f32 %v713_v8, 0.0 }
 0x120   :  { %732 = vst [vmem:[%s1231_s3 + $0x20] sm:$0xff] %v724_v16  ;;  %731 = vst [vmem:[%s1231_s3 + $0x18] sm:$0xff] %v723_v17  ;;  %v725_v20 = vmax.f32 %v717_v18, 0.0 }
 0x121   :  { %735 = vst [vmem:[%s1231_s3 + $0x38] sm:$0xff] %v727_v9  ;;  %729 = vst [vmem:[%s1231_s3 + $0x8] sm:$0xff] %v721_v19 }
 0x122   :  { %733 = vst [vmem:[%s1231_s3 + $0x28] sm:$0xff] %v725_v20 }

// kernel: dsamnet_forward.24
= control target key start
LH: loop header
LB: loop body
LE: loop exit
PB: predicated region body
PF: predicated region fallthrough
CT: control target
= control target key end

     0   :  { %s4044_s12 = smov 0   ;;  %s4046_s13 = smov 0   ;;  %s4853_s0 = inlined_call_operand.vmem [shape: bf16[512,1152], index: 0, kind: input, shape index: {}]   ;;  %s4854_s1 = inlined_call_operand.vmem [shape: bf16[1152,128], index: 1, kind: input, shape index: {}]   ;;  %s4855_s2 = inlined_call_operand.vmem [shape: f32[1,128], index: 2, kind: input, shape index: {}]   ;;  %s4856_s3 = inlined_call_operand.vmem [shape: f32[512,128], index: 3, kind: output, shape index: {}]  }
   0x1   :  { %s4048_s14 = smov 0  }
   0x2 LB: > { %s32_s15 = sadd.s32 1, %s4018_s13  ;;  %p2935_p0 = scmp.ge.s32.totalorder %s4022_s14, 1  ;;  %s4022_s14 = sphi %s4048_s14, %s13_s14   ;;  %s4018_s13 = sphi %s4046_s13, %s4858_s13   ;;  %s4014_s12 = sphi %s4044_s12, %s4857_s12  }
   0x3   : > { %p34_p1 = scmp.ge.s32.totalorder %s32_s15, 2  ;;  %p191_p2 = scmp.lt.s32.totalorder %s4022_s14, 3 }
   0x5   : > { %s4860_s15 = smov (%p34_p1, %s32_s15), 0  ;;  %p192_p3 = pnand %p2935_p0, %p191_p2 }
   0x6   : > { %v3720_v0 = vld [vmem:[%s4854_s1 + $0x40] sm:$0xff] (!%p192_p3)   ;;  %s2936_s18 = sshll.u32 (!%p192_p3), %s4014_s12, 5  ;;  %v3722_v2 = vld [vmem:[%s4854_s1 + $0x48] sm:$0xff] (!%p192_p3)   ;;  %v3724_v4 = vld [vmem:[%s4854_s1 + $0x50] sm:$0xff] (!%p192_p3)  }
   0x7   : > { %195 = sbr.rel (%p192_p3) target bundleno = 545 (0x221), region = 32  ;;  %v3721_v1 = vld [vmem:[%s4854_s1] sm:$0xff] (!%p192_p3)   ;;  %3159 = vmatprep.subr.bf16.mxu0 (!%p192_p3), %v3720_v0  ;;  %3679 = vmatprep.subr.bf16.mxu1 (!%p192_p3), %v3720_v0  ;;  %p236_p4 = scmp.lt.s32.totalorder (!%p192_p3), %s2936_s18, 63  ;;  %v3723_v3 = vld [vmem:[%s4854_s1 + $0x8] sm:$0xff] (!%p192_p3)   ;;  %v3725_v5 = vld [vmem:[%s4854_s1 + $0x10] sm:$0xff] (!%p192_p3)  }
   0x8   : > { %3160 = vmatpush3.bf16.msra.mxu0 (!%p192_p3), %v3721_v1  ;;  %3687 = vmatpush3.bf16.msra.mxu1 (!%p192_p3), %v3721_v1  ;;  %v3726_v6 = vld [vmem:[%s4854_s1 + $0x58] sm:$0xff] (!%p192_p3)   ;;  %v3728_v8 = vld [vmem:[%s4854_s1 + $0x60] sm:$0xff] (!%p192_p3)   ;;  %v3730_v10 = vld [vmem:[%s4854_s1 + $0x68] sm:$0xff] (!%p192_p3)  }
   0x9   : > { %3161 = vmatprep.subr.bf16.mxu0 (!%p192_p3), %v3722_v2  ;;  %3680 = vmatprep.subr.bf16.mxu1 (!%p192_p3), %v3722_v2  ;;  %v3727_v7 = vld [vmem:[%s4854_s1 + $0x18] sm:$0xff] (!%p192_p3)   ;;  %v3729_v9 = vld [vmem:[%s4854_s1 + $0x20] sm:$0xff] (!%p192_p3)   ;;  %v3731_v13 = vld [vmem:[%s4854_s1 + $0x28] sm:$0xff] (!%p192_p3)  }
   0xa   : > { %v3732_v14 = vld [vmem:[%s4854_s1 + $0x70] sm:$0xff] (!%p192_p3)   ;;  %v3734_v16 = vld [vmem:[%s4854_s1 + $0x78] sm:$0xff] (!%p192_p3)   ;;  %v3742_v18 = vld [vmem:[%s4854_s1 + $0xc0] sm:$0xff] (!%p192_p3)  }
   0xb   : > { %v3733_v15 = vld [vmem:[%s4854_s1 + $0x30] sm:$0xff] (!%p192_p3)   ;;  %v3735_v17 = vld [vmem:[%s4854_s1 + $0x38] sm:$0xff] (!%p192_p3)   ;;  %v3745_v21 = vld [vmem:[%s4854_s1 + $0x140] sm:$0xff] (!%p192_p3)  }
   0xc   : > { %3162 = vmatpush3.bf16.msra.mxu0 (!%p192_p3), %v3723_v3  ;;  %3688 = vmatpush3.bf16.msra.mxu1 (!%p192_p3), %v3723_v3  ;;  %v3743_v22 = vld [vmem:[%s4854_s1 + $0x80] sm:$0xff] (!%p192_p3)   ;;  %v3744_v23 = vld [vmem:[%s4854_s1 + $0xc8] sm:$0xff] (!%p192_p3)   ;;  %v3754_v31 = vld [vmem:[%s4854_s1 + $0xd0] sm:$0xff] (!%p192_p3)  }
   0xd   : > { %3163 = vmatprep.subr.bf16.mxu0 (!%p192_p3), %v3724_v4  ;;  %3681 = vmatprep.subr.bf16.mxu1 (!%p192_p3), %v3724_v4  ;;  %v3747_v24 = vld [vmem:[%s4854_s1 + $0x100] sm:$0xff] (!%p192_p3)   ;;  %v3746_v27 = vld [vmem:[%s4854_s1 + $0x88] sm:$0xff] (!%p192_p3)   ;;  %v3755_v32 = vld [vmem:[%s4854_s1 + $0x90] sm:$0xff] (!%p192_p3)  }
   0xe   : > { %s4862_s18 = smov (!%p236_p4, %s2936_s18), 63  ;;  %v3765_v28 = vld [vmem:[%s4854_s1 + $0x148] sm:$0xff]   ;;  %v3756_v34 = vld [vmem:[%s4854_s1 + $0xd8] sm:$0xff]   ;;  %v3764_v40 = vld [vmem:[%s4854_s1 + $0xe0] sm:$0xff]  }
   0xf   : > { %s3695_s4 = smul.u32 36, %s4862_s18  ;;  %v3767_v33 = vld [vmem:[%s4854_s1 + $0x108] sm:$0xff]   ;;  %v3757_v37 = vld [vmem:[%s4854_s1 + $0x98] sm:$0xff]   ;;  %v3766_v41 = vld [vmem:[%s4854_s1 + $0xa0] sm:$0xff]   ;;  %s2939_s6 = sshll.u32 %s4862_s18, 3 }
  0x10   : > { %3164 = vmatpush3.bf16.msra.mxu0 %v3725_v5  ;;  %3689 = vmatpush3.bf16.msra.mxu1 %v3725_v5  ;;  %v3768_v42 = vld [vmem:[%s4854_s1 + $0xe8] sm:$0xff]   ;;  %v3779_v43 = vld [vmem:[%s4854_s1 + $0x150] sm:$0xff]   ;;  %v3778_v52 = vld [vmem:[%s4854_s1 + $0xf8] sm:$0xff]   ;;  %s4732_s9 = scalar_lea.vmem %s4856_s3, %s2939_s6 }
  0x11   : > { %3165 = vmatprep.subr.bf16.mxu0 %v3726_v6  ;;  %3682 = vmatprep.subr.bf16.mxu1 %v3726_v6  ;;  %s4095_s11 = scalar_lea.vmem %s4853_s0, %s3695_s4  ;;  %v3781_v46 = vld [vmem:[%s4854_s1 + $0x110] sm:$0xff]   ;;  %v3769_v47 = vld [vmem:[%s4854_s1 + $0xa8] sm:$0xff]   ;;  %v3796_v55 = vld [vmem:[%s4854_s1 + $0x158] sm:$0xff]  }
  0x12   : > { %v3738_v11 = vld [vmem:[%s4095_s11 + $0x4] ss:$36 sps:$4 sm:$0xff]   ;;  %v3748_v25 = vld [vmem:[%s4095_s11 + $0x4c] ss:$36 sps:$4 sm:$0xff]   ;;  %v3758_v35 = vld [vmem:[%s4095_s11 + $0x94] ss:$36 sps:$4 sm:$0xff]  }
  0x13   : > { %v3741_v12 = vld [vmem:[%s4095_s11 + $0x364] ss:$36 sps:$4 sm:$0xff]   ;;  %1840 = vmatprep.mubr.bf16.mxu0 %v3738_v11  ;;  %v3750_v26 = vld [vmem:[%s4095_s11 + $0x3ac] ss:$36 sps:$4 sm:$0xff]   ;;  %v3760_v36 = vld [vmem:[%s4095_s11 + $0x3f4] ss:$36 sps:$4 sm:$0xff]  }
  0x14   : > { %3166 = vmatpush3.bf16.msra.mxu0 %v3727_v7  ;;  %3690 = vmatpush3.bf16.msra.mxu1 %v3727_v7  ;;  %v3736_v19 = vld [vmem:[%s4095_s11] ss:$36 sps:$4 sm:$0xff]   ;;  %v3752_v29 = vld [vmem:[%s4095_s11 + $0x48] ss:$36 sps:$4 sm:$0xff]   ;;  %v3762_v38 = vld [vmem:[%s4095_s11 + $0x90] ss:$36 sps:$4 sm:$0xff]  }
  0x15   : > { %3167 = vmatprep.subr.bf16.mxu0 %v3728_v8  ;;  %3683 = vmatprep.subr.bf16.mxu1 %v3728_v8  ;;  %v3739_v20 = vld [vmem:[%s4095_s11 + $0x360] ss:$36 sps:$4 sm:$0xff]   ;;  %v3753_v30 = vld [vmem:[%s4095_s11 + $0x3a8] ss:$36 sps:$4 sm:$0xff]   ;;  %v3763_v39 = vld [vmem:[%s4095_s11 + $0x3f0] ss:$36 sps:$4 sm:$0xff]  }
  0x16   : > { %1936 = vmatprep.mubr.bf16.mxu1 %v3741_v12  ;;  %v3770_v44 = vld [vmem:[%s4095_s11 + $0xdc] ss:$36 sps:$4 sm:$0xff]   ;;  %v3776_v48 = vld [vmem:[%s4854_s1 + $0xf0] sm:$0xff]   ;;  %v3782_v53 = vld [vmem:[%s4095_s11 + $0x124] ss:$36 sps:$4 sm:$0xff]  }
  0x17   : > { %v3772_v45 = vld [vmem:[%s4095_s11 + $0x43c] ss:$36 sps:$4 sm:$0xff]   ;;  %v3777_v51 = vld [vmem:[%s4854_s1 + $0xb0] sm:$0xff]   ;;  %v3784_v58 = vld [vmem:[%s4095_s11 + $0x8] ss:$36 sps:$4 sm:$0xff]  }
  0x18   : > { %3168 = vmatpush3.bf16.msra.mxu0 %v3729_v9  ;;  %3691 = vmatpush3.bf16.msra.mxu1 %v3729_v9  ;;  %v3774_v49 = vld [vmem:[%s4095_s11 + $0xd8] ss:$36 sps:$4 sm:$0xff]   ;;  %v3786_v54 = vld [vmem:[%s4095_s11 + $0xc] ss:$36 sps:$4 sm:$0xff]   ;;  %v3787_v59 = vld [vmem:[%s4095_s11 + $0x120] ss:$36 sps:$4 sm:$0xff]  }
  0x19   : > { %3169 = vmatprep.subr.bf16.mxu0 %v3730_v10  ;;  %3684 = vmatprep.subr.bf16.mxu1 %v3730_v10  ;;  %v3775_v50 = vld [vmem:[%s4095_s11 + $0x438] ss:$36 sps:$4 sm:$0xff]   ;;  %v3788_v60 = vld [vmem:[%s4854_s1 + $0x1c0] sm:$0xff]   ;;  %v3790_v62 = vld [vmem:[%s4095_s11 + $0x16c] ss:$36 sps:$4 sm:$0xff]  }
  0x1a   : > { %v3797_v56 = vld [vmem:[%s4854_s1 + $0x118] sm:$0xff]   ;;  %v3789_v61 = vld [vmem:[%s4854_s1 + $0x180] sm:$0xff]   ;;  %v3804_v1 = vld [vmem:[%s4854_s1 + $0x1c8] sm:$0xff]  }
  0x1b   : > { %v3780_v57 = vld [vmem:[%s4854_s1 + $0xb8] sm:$0xff]   ;;  %v3806_v0 = vld [vmem:[%s4854_s1 + $0x160] sm:$0xff]   ;;  %v3805_v3 = vld [vmem:[%s4854_s1 + $0x188] sm:$0xff]  }
  0x1c   : > { %3170 = vmatpush3.bf16.msra.mxu0 %v3731_v13  ;;  %3692 = vmatpush3.bf16.msra.mxu1 %v3731_v13  ;;  %v3792_v63 = vld [vmem:[%s4095_s11 + $0x54] ss:$36 sps:$4 sm:$0xff]   ;;  %v3807_v2 = vld [vmem:[%s4854_s1 + $0x120] sm:$0xff]   ;;  %v3794_v4 = vld [vmem:[%s4095_s11 + $0x168] ss:$36 sps:$4 sm:$0xff]  }
  0x1d   : > { %3171 = vmatprep.subr.bf16.mxu0 %v3732_v14  ;;  %3685 = vmatprep.subr.bf16.mxu1 %v3732_v14  ;;  %v3795_v5 = vld [vmem:[%s4095_s11 + $0x50] ss:$36 sps:$4 sm:$0xff]   ;;  %v3800_v7 = vld [vmem:[%s4095_s11 + $0x9c] ss:$36 sps:$4 sm:$0xff]   ;;  %v3820_v8 = vld [vmem:[%s4854_s1 + $0x168] sm:$0xff]  }
  0x1e   : > { %v3798_v6 = vld [vmem:[%s4095_s11 + $0x1b4] ss:$36 sps:$4 sm:$0xff]   ;;  %v3822_v10 = vld [vmem:[%s4854_s1 + $0x128] sm:$0xff]   ;;  %v3808_v14 = vld [vmem:[%s4095_s11 + $0x1fc] ss:$36 sps:$4 sm:$0xff]  }
  0x1f   : > { %v3821_v9 = vld [vmem:[%s4854_s1 + $0x1d0] sm:$0xff]   ;;  %v3803_v13 = vld [vmem:[%s4095_s11 + $0x98] ss:$36 sps:$4 sm:$0xff]  }
  0x20   : > { %3172 = vmatpush3.bf16.msra.mxu0 %v3733_v15  ;;  %3693 = vmatpush3.bf16.msra.mxu1 %v3733_v15  ;;  %v3823_v11 = vld [vmem:[%s4854_s1 + $0x190] sm:$0xff]  }
  0x21   : > { %3173 = vmatprep.subr.bf16.mxu0 %v3734_v16  ;;  %3686 = vmatprep.subr.bf16.mxu1 %v3734_v16  ;;  %v3802_v12 = vld [vmem:[%s4095_s11 + $0x1b0] ss:$36 sps:$4 sm:$0xff]  }
  0x22   : > { %v3830_v15 = vld [vmem:[%s4854_s1 + $0x170] sm:$0xff]  }
  0x23   : > { %v3831_v16 = vld [vmem:[%s4854_s1 + $0x130] sm:$0xff]  }
  0x24   : > { %3174 = vmatpush3.bf16.msra.mxu0 %v3735_v17  ;;  %3694 = vmatpush3.bf16.msra.mxu1 %v3735_v17  ;;  %v3810_v17 = vld [vmem:[%s4095_s11 + $0xe4] ss:$36 sps:$4 sm:$0xff]  }
  0x25   : > { %3271 = vmatprep.subr.bf16.mxu1 %v3742_v18  ;;  %3383 = vmatprep.subr.bf16.mxu0 %v3745_v21  ;;  %v3838_v18 = vld [vmem:[%s4854_s1 + $0x1d8] sm:$0xff]   ;;  %v3813_v21 = vld [vmem:[%s4095_s11 + $0xe0] ss:$36 sps:$4 sm:$0xff]  }
  0x27   : > { %1841 = vmatmul.mubr.bf16.vlgmr.msra.gmra.mrb[0].mxu0 %v3736_v19  ;;  %1937 = vmatmul.mubr.bf16.vlgmr.msra.gmra.mrb[0].mxu1 %v3739_v20  ;;  %v3839_v19 = vld [vmem:[%s4854_s1 + $0x198] sm:$0xff]  }
  0x28   : > { %3272 = vmatpush3.bf16.msra.mxu1 %v3743_v22  ;;  %3384 = vmatpush3.bf16.msra.mxu0 %v3747_v24  ;;  %v3812_v20 = vld [vmem:[%s4095_s11 + $0x1f8] ss:$36 sps:$4 sm:$0xff]   ;;  %v3814_v22 = vld [vmem:[%s4095_s11 + $0x244] ss:$36 sps:$4 sm:$0xff]  }
  0x29   : > { %3273 = vmatprep.subr.bf16.mxu1 %v3744_v23  ;;  %1848 = vmatprep.mubr.bf16.mxu0 %v3748_v25  ;;  %v3816_v23 = vld [vmem:[%s4095_s11 + $0x12c] ss:$36 sps:$4 sm:$0xff]   ;;  %v3846_v24 = vld [vmem:[%s4854_s1 + $0x178] sm:$0xff]  }
  0x2a   : > { %1944 = vmatprep.mubr.bf16.mxu1 %v3750_v26  ;;  %3385 = vmatprep.subr.bf16.mxu0 %v3765_v28  ;;  %v3847_v25 = vld [vmem:[%s4854_s1 + $0x138] sm:$0xff]   ;;  %v3854_v26 = vld [vmem:[%s4854_s1 + $0x1e0] sm:$0xff]  }
  0x2b   : > { %v3855_v28 = vld [vmem:[%s4854_s1 + $0x1a0] sm:$0xff]  }
  0x2c   : > { %3274 = vmatpush3.bf16.msra.mxu1 %v3746_v27  ;;  %3386 = vmatpush3.bf16.msra.mxu0 %v3767_v33  ;;  %v3818_v27 = vld [vmem:[%s4095_s11 + $0x240] ss:$36 sps:$4 sm:$0xff]   ;;  %v3869_v33 = vld [vmem:[%s4854_s1 + $0x1e8] sm:$0xff]  }
  0x2d   : > { %3275 = vmatprep.subr.bf16.mxu1 %v3754_v31  ;;  %3387 = vmatprep.subr.bf16.mxu0 %v3779_v43  ;;  %v3824_v31 = vld [vmem:[%s4095_s11 + $0x28c] ss:$36 sps:$4 sm:$0xff]   ;;  %v3840_v43 = vld [vmem:[%s4095_s11 + $0x31c] ss:$36 sps:$4 sm:$0xff]  }
  0x2f   : > { %1849 = vmatmul.mubr.bf16.gmra.mrb[4].mxu0 %v3752_v29  ;;  %1945 = vmatmul.mubr.bf16.gmra.mrb[4].mxu1 %v3753_v30  ;;  %v3856_v29 = vld [vmem:[%s4854_s1 + $0x200] sm:$0xff]   ;;  %v3819_v30 = vld [vmem:[%s4095_s11 + $0x128] ss:$36 sps:$4 sm:$0xff]  }
  0x30   : > { %3276 = vmatpush3.bf16.msra.mxu1 %v3755_v32  ;;  %1856 = vmatprep.mubr.bf16.mxu0 %v3758_v35  ;;  %v3826_v32 = vld [vmem:[%s4095_s11 + $0x174] ss:$36 sps:$4 sm:$0xff]   ;;  %v3870_v35 = vld [vmem:[%s4854_s1 + $0x1a8] sm:$0xff]  }
  0x31   : > { %3277 = vmatprep.subr.bf16.mxu1 %v3756_v34  ;;  %1952 = vmatprep.mubr.bf16.mxu1 %v3760_v36  ;;  %v3828_v34 = vld [vmem:[%s4095_s11 + $0x288] ss:$36 sps:$4 sm:$0xff]   ;;  %v3829_v36 = vld [vmem:[%s4095_s11 + $0x170] ss:$36 sps:$4 sm:$0xff]  }
  0x32   : > { %3388 = vmatpush3.bf16.msra.mxu0 %v3781_v46  ;;  %v3845_v46 = vld [vmem:[%s4095_s11 + $0x200] ss:$36 sps:$4 sm:$0xff]  }
  0x33   : > { %3389 = vmatprep.subr.bf16.mxu0 %v3796_v55  ;;  %v3871_v55 = vld [vmem:[%s4854_s1 + $0x208] sm:$0xff]  }
  0x34   : > { %3278 = vmatpush3.bf16.msra.mxu1 %v3757_v37  ;;  %v3832_v37 = vld [vmem:[%s4095_s11 + $0x2d4] ss:$36 sps:$4 sm:$0xff]  }
  0x35   : > { %3279 = vmatprep.subr.bf16.mxu1 %v3764_v40  ;;  %v3837_v40 = vld [vmem:[%s4095_s11 + $0x1b8] ss:$36 sps:$4 sm:$0xff]  }
  0x36   : > { %3390 = vmatpush3.bf16.msra.mxu0 %v3797_v56  ;;  %v3886_v56 = vld [vmem:[%s4854_s1 + $0x210] sm:$0xff]  }
  0x37   : > { %1857 = vmatmul.mubr.bf16.gmra.mrb[8].mxu0 %v3762_v38  ;;  %1953 = vmatmul.mubr.bf16.gmra.mrb[8].mxu1 %v3763_v39  ;;  %v3834_v38 = vld [vmem:[%s4095_s11 + $0x1bc] ss:$36 sps:$4 sm:$0xff]   ;;  %v3836_v39 = vld [vmem:[%s4095_s11 + $0x2d0] ss:$36 sps:$4 sm:$0xff]  }
  0x38   : > { %3280 = vmatpush3.bf16.msra.mxu1 %v3766_v41  ;;  %1864 = vmatprep.mubr.bf16.mxu0 %v3770_v44  ;;  %v3884_v41 = vld [vmem:[%s4854_s1 + $0x1f0] sm:$0xff]   ;;  %v3842_v44 = vld [vmem:[%s4095_s11 + $0x204] ss:$36 sps:$4 sm:$0xff]  }
  0x39   : > { %3281 = vmatprep.subr.bf16.mxu1 %v3768_v42  ;;  %1960 = vmatprep.mubr.bf16.mxu1 %v3772_v45  ;;  %v3885_v42 = vld [vmem:[%s4854_s1 + $0x1b0] sm:$0xff]   ;;  %v3844_v45 = vld [vmem:[%s4095_s11 + $0x318] ss:$36 sps:$4 sm:$0xff]  }
  0x3a   : > { %3391 = vmatprep.subr.bf16.mxu0 %v3806_v0  ;;  %v3868_v0 = vld [vmem:[%s4095_s11 + $0xa0] ss:$36 sps:$4 sm:$0xff]  }
  0x3b   : > { %3392 = vmatpush3.bf16.msra.mxu0 %v3807_v2  ;;  %v3874_v2 = vld [vmem:[%s4095_s11 + $0xec] ss:$36 sps:$4 sm:$0xff]  }
  0x3c   : > { %3282 = vmatpush3.bf16.msra.mxu1 %v3769_v47  ;;  %3393 = vmatprep.subr.bf16.mxu0 %v3820_v8  ;;  %v3899_v47 = vld [vmem:[%s4854_s1 + $0x1f8] sm:$0xff]  }
  0x3d   : > { %3283 = vmatprep.subr.bf16.mxu1 %v3776_v48  ;;  %v3900_v48 = vld [vmem:[%s4854_s1 + $0x1b8] sm:$0xff]  }
  0x3e   : > { %v3880_v8 = vld [vmem:[%s4095_s11 + $0x134] ss:$36 sps:$4 sm:$0xff]  }
  0x3f   : > { %1865 = vmatmul.mubr.bf16.gmra.mrb[12].mxu0 %v3774_v49  ;;  %1961 = vmatmul.mubr.bf16.gmra.mrb[12].mxu1 %v3775_v50  ;;  %v3848_v49 = vld [vmem:[%s4095_s11 + $0x24c] ss:$36 sps:$4 sm:$0xff]   ;;  %v3852_v50 = vld [vmem:[%s4095_s11 + $0x14] ss:$36 sps:$4 sm:$0xff]  }
  0x40   : > { %3284 = vmatpush3.bf16.msra.mxu1 %v3777_v51  ;;  %1872 = vmatprep.mubr.bf16.mxu0 %v3782_v53  ;;  %v3850_v51 = vld [vmem:[%s4095_s11 + $0x10] ss:$36 sps:$4 sm:$0xff]  }
  0x41   : > { %3285 = vmatprep.subr.bf16.mxu1 %v3778_v52  ;;  %2001 = vmatprep.mubr.bf16.mxu1 %v3786_v54  ;;  %v3853_v52 = vld [vmem:[%s4095_s11 + $0x248] ss:$36 sps:$4 sm:$0xff]   ;;  %v3857_v53 = vld [vmem:[%s4095_s11 + $0x294] ss:$36 sps:$4 sm:$0xff]   ;;  %v3859_v54 = vld [vmem:[%s4095_s11 + $0x5c] ss:$36 sps:$4 sm:$0xff]  }
  0x42   : > { %3394 = vmatpush3.bf16.msra.mxu0 %v3822_v10  ;;  %v3882_v10 = vld [vmem:[%s4095_s11 + $0x368] ss:$36 sps:$4 sm:$0xff]  }
  0x43   : > { %3395 = vmatprep.subr.bf16.mxu0 %v3830_v15  ;;  %v3892_v15 = vld [vmem:[%s4095_s11 + $0x178] ss:$36 sps:$4 sm:$0xff]  }
  0x44   : > { %3286 = vmatpush3.bf16.msra.mxu1 %v3780_v57  ;;  %v3861_v57 = vld [vmem:[%s4095_s11 + $0x290] ss:$36 sps:$4 sm:$0xff]  }
  0x45   : > { %3495 = vmatprep.subr.bf16.mxu1 %v3788_v60  ;;  %v3865_v60 = vld [vmem:[%s4095_s11 + $0xa4] ss:$36 sps:$4 sm:$0xff]  }
  0x46   : > { %3396 = vmatpush3.bf16.msra.mxu0 %v3831_v16  ;;  %v3893_v16 = vld [vmem:[%s4095_s11 + $0x3fc] ss:$36 sps:$4 sm:$0xff]  }
  0x47   : > { %1873 = vmatmul.mubr.bf16.gmra.mrb[16].mxu0 %v3787_v59  ;;  %2002 = vmatmul.mubr.bf16.vlgmr.msra.gmra.mrb[16].mxu1 %v3784_v58  ;;  %v3862_v58 = vld [vmem:[%s4095_s11 + $0x58] ss:$36 sps:$4 sm:$0xff]  }
  0x48   : > { %3496 = vmatpush3.bf16.msra.mxu1 %v3789_v61  ;;  %1880 = vmatprep.mubr.bf16.mxu0 %v3790_v62  ;;  %v3863_v59 = vld [vmem:[%s4095_s11 + $0x2dc] ss:$36 sps:$4 sm:$0xff]  }
  0x49   : > { %2009 = vmatprep.mubr.bf16.mxu1 %v3792_v63  ;;  %3497 = vmatprep.subr.bf16.mxu1 %v3804_v1  ;;  %v3901_v61 = vld [vmem:[%s4854_s1 + $0x218] sm:$0xff]   ;;  %v3914_v62 = vld [vmem:[%s4854_s1 + $0x220] sm:$0xff]  }
  0x4a   : > { %3397 = vmatprep.subr.bf16.mxu0 %v3846_v24  ;;  %v3867_v63 = vld [vmem:[%s4095_s11 + $0x2d8] ss:$36 sps:$4 sm:$0xff]   ;;  %v3872_v1 = vld [vmem:[%s4095_s11 + $0x324] ss:$36 sps:$4 sm:$0xff]  }
  0x4b   : > { %3398 = vmatpush3.bf16.msra.mxu0 %v3847_v25  ;;  %v3908_v24 = vld [vmem:[%s4095_s11 + $0x254] ss:$36 sps:$4 sm:$0xff]   ;;  %v3912_v25 = vld [vmem:[%s4095_s11 + $0x1c] ss:$36 sps:$4 sm:$0xff]  }
  0x4c   : > { %3498 = vmatpush3.bf16.msra.mxu1 %v3805_v3  ;;  %3631 = vmatprep.subr.bf16.mxu0 %v3856_v29  ;;  %v3927_v3 = vld [vmem:[%s4854_s1 + $0x228] sm:$0xff]  }
  0x4d   : > { %3499 = vmatprep.subr.bf16.mxu1 %v3821_v9  ;;  %v3953_v9 = vld [vmem:[%s4854_s1 + $0x238] sm:$0xff]  }
  0x4f   : > { %1881 = vmatmul.mubr.bf16.gmra.mrb[20].mxu0 %v3794_v4  ;;  %2010 = vmatmul.mubr.bf16.gmra.mrb[20].mxu1 %v3795_v5  ;;  %v3876_v4 = vld [vmem:[%s4095_s11 + $0x320] ss:$36 sps:$4 sm:$0xff]   ;;  %v3877_v5 = vld [vmem:[%s4095_s11 + $0xe8] ss:$36 sps:$4 sm:$0xff]  }
  0x50   : > { %1888 = vmatprep.mubr.bf16.mxu0 %v3798_v6  ;;  %2017 = vmatprep.mubr.bf16.mxu1 %v3800_v7  ;;  %v3940_v6 = vld [vmem:[%s4854_s1 + $0x230] sm:$0xff]  }
  0x51   : > { %3500 = vmatpush3.bf16.msra.mxu1 %v3823_v11  ;;  %v3878_v7 = vld [vmem:[%s4095_s11 + $0x36c] ss:$36 sps:$4 sm:$0xff]  }
  0x52   : > { %3501 = vmatprep.subr.bf16.mxu1 %v3838_v18  ;;  %v3883_v11 = vld [vmem:[%s4095_s11 + $0x130] ss:$36 sps:$4 sm:$0xff]   ;;  %v3897_v18 = vld [vmem:[%s4095_s11 + $0x3f8] ss:$36 sps:$4 sm:$0xff]  }
  0x55   : > { %3502 = vmatpush3.bf16.msra.mxu1 %v3839_v19  ;;  %v3898_v19 = vld [vmem:[%s4095_s11 + $0x1c0] ss:$36 sps:$4 sm:$0xff]  }
  0x56   : > { %3503 = vmatprep.subr.bf16.mxu1 %v3854_v26  ;;  %v3910_v26 = vld [vmem:[%s4095_s11 + $0x18] ss:$36 sps:$4 sm:$0xff]  }
  0x57   : > { %1889 = vmatmul.mubr.bf16.gmra.mrb[24].mxu0 %v3802_v12  ;;  %2018 = vmatmul.mubr.bf16.gmra.mrb[24].mxu1 %v3803_v13  ;;  %v3887_v12 = vld [vmem:[%s4095_s11 + $0x3b4] ss:$36 sps:$4 sm:$0xff]   ;;  %v3889_v13 = vld [vmem:[%s4095_s11 + $0x17c] ss:$36 sps:$4 sm:$0xff]  }
  0x58   : > { %1896 = vmatprep.mubr.bf16.mxu0 %v3808_v14  ;;  %2025 = vmatprep.mubr.bf16.mxu1 %v3810_v17  ;;  %v3891_v14 = vld [vmem:[%s4095_s11 + $0x3b0] ss:$36 sps:$4 sm:$0xff]   ;;  %v3895_v17 = vld [vmem:[%s4095_s11 + $0x1c4] ss:$36 sps:$4 sm:$0xff]  }
  0x59   : > { %3504 = vmatpush3.bf16.msra.mxu1 %v3855_v28  ;;  %v3915_v28 = vld [vmem:[%s4095_s11 + $0x29c] ss:$36 sps:$4 sm:$0xff]  }
  0x5a   : > { %3505 = vmatprep.subr.bf16.mxu1 %v3869_v33  ;;  %v3923_v33 = vld [vmem:[%s4095_s11 + $0xac] ss:$36 sps:$4 sm:$0xff]  }
  0x5d   : > { %3506 = vmatpush3.bf16.msra.mxu1 %v3870_v35  ;;  %v3926_v35 = vld [vmem:[%s4095_s11 + $0xa8] ss:$36 sps:$4 sm:$0xff]  }
  0x5e   : > { %3507 = vmatprep.subr.bf16.mxu1 %v3884_v41  ;;  %v3936_v41 = vld [vmem:[%s4095_s11 + $0x13c] ss:$36 sps:$4 sm:$0xff]  }
  0x5f   : > { %1897 = vmatmul.mubr.bf16.gmra.mrb[28].mxu0 %v3812_v20  ;;  %2026 = vmatmul.mubr.bf16.gmra.mrb[28].mxu1 %v3813_v21  ;;  %v3902_v20 = vld [vmem:[%s4095_s11 + $0x444] ss:$36 sps:$4 sm:$0xff]   ;;  %v3904_v21 = vld [vmem:[%s4095_s11 + $0x20c] ss:$36 sps:$4 sm:$0xff]  }
  0x60   : > { %1904 = vmatprep.mubr.bf16.mxu0 %v3814_v22  ;;  %2033 = vmatprep.mubr.bf16.mxu1 %v3816_v23  ;;  %v3906_v22 = vld [vmem:[%s4095_s11 + $0x440] ss:$36 sps:$4 sm:$0xff]   ;;  %v3907_v23 = vld [vmem:[%s4095_s11 + $0x208] ss:$36 sps:$4 sm:$0xff]  }
  0x61   : > { %3508 = vmatpush3.bf16.msra.mxu1 %v3885_v42  ;;  %v3938_v42 = vld [vmem:[%s4095_s11 + $0x370] ss:$36 sps:$4 sm:$0xff]  }
  0x62   : > { %3509 = vmatprep.subr.bf16.mxu1 %v3899_v47  ;;  %v3946_v47 = vld [vmem:[%s4095_s11 + $0x180] ss:$36 sps:$4 sm:$0xff]  }
  0x65   : > { %3510 = vmatpush3.bf16.msra.mxu1 %v3900_v48  ;;  %v3947_v48 = vld [vmem:[%s4095_s11 + $0x404] ss:$36 sps:$4 sm:$0xff]  }
  0x67   : > { %1905 = vmatmul.mubr.bf16.gmra.mrb[32].mxu0 %v3818_v27  ;;  %2034 = vmatmul.mubr.bf16.gmra.mrb[32].mxu1 %v3819_v30  ;;  %v3913_v27 = vld [vmem:[%s4095_s11 + $0x250] ss:$36 sps:$4 sm:$0xff]   ;;  %v3919_v30 = vld [vmem:[%s4095_s11 + $0x298] ss:$36 sps:$4 sm:$0xff]  }
  0x68   : > { %1912 = vmatprep.mubr.bf16.mxu0 %v3824_v31  ;;  %2041 = vmatprep.mubr.bf16.mxu1 %v3826_v32  ;;  %v3920_v31 = vld [vmem:[%s4095_s11 + $0x60] ss:$36 sps:$4 sm:$0xff]  }
  0x69   : > { %v3921_v32 = vld [vmem:[%s4095_s11 + $0x2e4] ss:$36 sps:$4 sm:$0xff]  }
  0x6f   : > { %1913 = vmatmul.mubr.bf16.gmra.mrb[36].mxu0 %v3828_v34  ;;  %2042 = vmatmul.mubr.bf16.gmra.mrb[36].mxu1 %v3829_v36  ;;  %v3925_v34 = vld [vmem:[%s4095_s11 + $0x2e0] ss:$36 sps:$4 sm:$0xff]   ;;  %v3928_v36 = vld [vmem:[%s4095_s11 + $0x32c] ss:$36 sps:$4 sm:$0xff]  }
  0x70   : > { %1920 = vmatprep.mubr.bf16.mxu0 %v3832_v37  ;;  %2049 = vmatprep.mubr.bf16.mxu1 %v3834_v38  ;;  %v3930_v37 = vld [vmem:[%s4095_s11 + $0xf4] ss:$36 sps:$4 sm:$0xff]   ;;  %v3932_v38 = vld [vmem:[%s4095_s11 + $0x328] ss:$36 sps:$4 sm:$0xff]  }
  0x77   : > { %1921 = vmatmul.mubr.bf16.gmra.mrb[40].mxu0 %v3836_v39  ;;  %2050 = vmatmul.mubr.bf16.gmra.mrb[40].mxu1 %v3837_v40  ;;  %v3933_v39 = vld [vmem:[%s4095_s11 + $0xf0] ss:$36 sps:$4 sm:$0xff]  }
  0x78   : > { %1928 = vmatprep.mubr.bf16.mxu0 %v3840_v43  ;;  %2057 = vmatprep.mubr.bf16.mxu1 %v3842_v44  ;;  %v3934_v40 = vld [vmem:[%s4095_s11 + $0x374] ss:$36 sps:$4 sm:$0xff]   ;;  %v3941_v44 = vld [vmem:[%s4095_s11 + $0x3bc] ss:$36 sps:$4 sm:$0xff]  }
  0x79   : > { %v3939_v43 = vld [vmem:[%s4095_s11 + $0x138] ss:$36 sps:$4 sm:$0xff]  }
  0x7f   : > { %1929 = vmatmul.mubr.bf16.gmra.mrb[44].mxu0 %v3844_v45  ;;  %2058 = vmatmul.mubr.bf16.gmra.mrb[44].mxu1 %v3845_v46  ;;  %v3943_v45 = vld [vmem:[%s4095_s11 + $0x184] ss:$36 sps:$4 sm:$0xff]   ;;  %v3945_v46 = vld [vmem:[%s4095_s11 + $0x3b8] ss:$36 sps:$4 sm:$0xff]  }
  0x80   : > { %2065 = vmatprep.mubr.bf16.mxu1 %v3848_v49  ;;  %2162 = vmatprep.mubr.bf16.mxu0 %v3852_v50  ;;  %v3949_v49 = vld [vmem:[%s4095_s11 + $0x1cc] ss:$36 sps:$4 sm:$0xff]   ;;  %v3951_v50 = vld [vmem:[%s4095_s11 + $0x400] ss:$36 sps:$4 sm:$0xff]  }
  0x87   : > { %2066 = vmatmul.mubr.bf16.gmra.mrb[48].mxu1 %v3853_v52  ;;  %2163 = vmatmul.mubr.bf16.vlgmr.msra.gmra.mrb[48].mxu0 %v3850_v51  ;;  %v3952_v51 = vld [vmem:[%s4095_s11 + $0x1c8] ss:$36 sps:$4 sm:$0xff]  }
  0x88   : > { %3632 = vmatpush3.bf16.msra.mxu0 %v3856_v29  ;;  %2073 = vmatprep.mubr.bf16.mxu1 %v3857_v53  ;;  %v3917_v29 = vld [vmem:[%s4095_s11 + $0x64] ss:$36 sps:$4 sm:$0xff]   ;;  %v3954_v52 = vld [vmem:[%s4095_s11 + $0x44c] ss:$36 sps:$4 sm:$0xff]   ;;  %v3956_v53 = vld [vmem:[%s4095_s11 + $0x214] ss:$36 sps:$4 sm:$0xff]  }
  0x89   : > { %2170 = vmatprep.mubr.bf16.mxu0 %v3859_v54  ;;  %3633 = vmatprep.subr.bf16.mxu0 %v3871_v55 }
  0x8c   : > { %3634 = vmatpush3.bf16.msra.mxu0 %v3871_v55 }
  0x8d   : > { %3635 = vmatprep.subr.bf16.mxu0 %v3886_v56 }
  0x8f   : > { %2074 = vmatmul.mubr.bf16.gmra.mrb[52].mxu1 %v3861_v57  ;;  %2171 = vmatmul.mubr.bf16.gmra.mrb[52].mxu0 %v3862_v58  ;;  %v3958_v58 = vld [vmem:[%s4095_s11 + $0x448] ss:$36 sps:$4 sm:$0xff]  }
  0x90   : > { %2081 = vmatprep.mubr.bf16.mxu1 %v3863_v59  ;;  %2178 = vmatprep.mubr.bf16.mxu0 %v3865_v60  ;;  %v3959_v59 = vld [vmem:[%s4095_s11 + $0x210] ss:$36 sps:$4 sm:$0xff]  }
  0x91   : > { %3636 = vmatpush3.bf16.msra.mxu0 %v3886_v56 }
  0x92   : > { %3637 = vmatprep.subr.bf16.mxu0 %v3901_v61 }
  0x95   : > { %3638 = vmatpush3.bf16.msra.mxu0 %v3901_v61 }
  0x96   : > { %3639 = vmatprep.subr.bf16.mxu0 %v3914_v62 }
  0x97   : > { %2082 = vmatmul.mubr.bf16.gmra.mrb[56].mxu1 %v3867_v63  ;;  %2179 = vmatmul.mubr.bf16.gmra.mrb[56].mxu0 %v3868_v0  ;;  %v3960_v0 = vld [vmem:[%s4095_s11 + $0x25c] ss:$36 sps:$4 sm:$0xff]  }
  0x98   : > { %2089 = vmatprep.mubr.bf16.mxu1 %v3872_v1  ;;  %2186 = vmatprep.mubr.bf16.mxu0 %v3874_v2  ;;  %v3962_v1 = vld [vmem:[%s4095_s11 + $0x20] ss:$36 sps:$4 sm:$0xff]  }
  0x99   : > { %3640 = vmatpush3.bf16.msra.mxu0 %v3914_v62 }
  0x9a   : > { %3641 = vmatprep.subr.bf16.mxu0 %v3927_v3 }
  0x9d   : > { %3642 = vmatpush3.bf16.msra.mxu0 %v3927_v3 }
  0x9e   : > { %3643 = vmatprep.subr.bf16.mxu0 %v3940_v6 }
  0x9f   : > { %2090 = vmatmul.mubr.bf16.gmra.mrb[60].mxu1 %v3876_v4  ;;  %2187 = vmatmul.mubr.bf16.gmra.mrb[60].mxu0 %v3877_v5 }
  0xa0   : > { %2097 = vmatprep.mubr.bf16.mxu1 %v3878_v7  ;;  %2194 = vmatprep.mubr.bf16.mxu0 %v3880_v8 }
  0xa1   : > { %3644 = vmatpush3.bf16.msra.mxu0 %v3940_v6 }
  0xa2   : > { %3645 = vmatprep.subr.bf16.mxu0 %v3953_v9 }
  0xa5   : > { %3646 = vmatpush3.bf16.msra.mxu0 %v3953_v9 }
  0xa7   : > { %2098 = vmatmul.mubr.bf16.gmra.mrb[64].mxu1 %v3882_v10  ;;  %2195 = vmatmul.mubr.bf16.gmra.mrb[64].mxu0 %v3883_v11  ;;  %v3963_v10 = vld [vmem:[%s4095_s11 + $0x258] ss:$36 sps:$4 sm:$0xff]   ;;  %v3964_v11 = vld [vmem:[%s4095_s11 + $0x68] ss:$36 sps:$4 sm:$0xff]  }
  0xa8   : > { %2105 = vmatprep.mubr.bf16.mxu1 %v3887_v12  ;;  %2202 = vmatprep.mubr.bf16.mxu0 %v3889_v13 }
  0xaf   : > { %2106 = vmatmul.mubr.bf16.gmra.mrb[68].mxu1 %v3891_v14  ;;  %2203 = vmatmul.mubr.bf16.gmra.mrb[68].mxu0 %v3892_v15 }
  0xb0   : > { %2113 = vmatprep.mubr.bf16.mxu1 %v3893_v16  ;;  %2210 = vmatprep.mubr.bf16.mxu0 %v3895_v17  ;;  %v3965_v16 = vld [vmem:[%s4095_s11 + $0x2a4] ss:$36 sps:$4 sm:$0xff]   ;;  %v3967_v17 = vld [vmem:[%s4095_s11 + $0xb0] ss:$36 sps:$4 sm:$0xff]  }
  0xb7   : > { %2114 = vmatmul.mubr.bf16.gmra.mrb[72].mxu1 %v3897_v18  ;;  %2211 = vmatmul.mubr.bf16.gmra.mrb[72].mxu0 %v3898_v19 }
  0xb8   : > { %2121 = vmatprep.mubr.bf16.mxu1 %v3902_v20  ;;  %2218 = vmatprep.mubr.bf16.mxu0 %v3904_v21 }
  0xbf   : > { %2122 = vmatmul.mubr.bf16.gmra.mrb[76].mxu1 %v3906_v22  ;;  %2219 = vmatmul.mubr.bf16.gmra.mrb[76].mxu0 %v3907_v23 }
  0xc0   : > { %2226 = vmatprep.mubr.bf16.mxu0 %v3908_v24  ;;  %2323 = vmatprep.mubr.bf16.mxu1 %v3912_v25 }
  0xc7   : > { %2227 = vmatmul.mubr.bf16.gmra.mrb[80].mxu0 %v3913_v27  ;;  %2324 = vmatmul.mubr.bf16.vlgmr.msra.gmra.mrb[80].mxu1 %v3910_v26  ;;  %v3968_v26 = vld [vmem:[%s4095_s11 + $0x2a0] ss:$36 sps:$4 sm:$0xff]   ;;  %v3969_v27 = vld [vmem:[%s4095_s11 + $0xf8] ss:$36 sps:$4 sm:$0xff]  }
  0xc8   : > { %2234 = vmatprep.mubr.bf16.mxu0 %v3915_v28  ;;  %2331 = vmatprep.mubr.bf16.mxu1 %v3917_v29 }
  0xcf   : > { %2235 = vmatmul.mubr.bf16.gmra.mrb[84].mxu0 %v3919_v30  ;;  %2332 = vmatmul.mubr.bf16.gmra.mrb[84].mxu1 %v3920_v31 }
  0xd0   : > { %2242 = vmatprep.mubr.bf16.mxu0 %v3921_v32  ;;  %2339 = vmatprep.mubr.bf16.mxu1 %v3923_v33  ;;  %v3970_v32 = vld [vmem:[%s4095_s11 + $0x2ec] ss:$36 sps:$4 sm:$0xff]   ;;  %v3972_v33 = vld [vmem:[%s4095_s11 + $0x140] ss:$36 sps:$4 sm:$0xff]  }
  0xd7   : > { %2243 = vmatmul.mubr.bf16.gmra.mrb[88].mxu0 %v3925_v34  ;;  %2340 = vmatmul.mubr.bf16.gmra.mrb[88].mxu1 %v3926_v35 }
  0xd8   : > { %2250 = vmatprep.mubr.bf16.mxu0 %v3928_v36  ;;  %2347 = vmatprep.mubr.bf16.mxu1 %v3930_v37 }
  0xdf   : > { %2251 = vmatmul.mubr.bf16.gmra.mrb[92].mxu0 %v3932_v38  ;;  %2348 = vmatmul.mubr.bf16.gmra.mrb[92].mxu1 %v3933_v39 }
  0xe0   : > { %2258 = vmatprep.mubr.bf16.mxu0 %v3934_v40  ;;  %2355 = vmatprep.mubr.bf16.mxu1 %v3936_v41 }
  0xe7   : > { %2259 = vmatmul.mubr.bf16.gmra.mrb[96].mxu0 %v3938_v42  ;;  %2356 = vmatmul.mubr.bf16.gmra.mrb[96].mxu1 %v3939_v43  ;;  %v3973_v42 = vld [vmem:[%s4095_s11 + $0x2e8] ss:$36 sps:$4 sm:$0xff]  }
  0xe8   : > { %2266 = vmatprep.mubr.bf16.mxu0 %v3941_v44  ;;  %2363 = vmatprep.mubr.bf16.mxu1 %v3943_v45  ;;  %v3974_v43 = vld [vmem:[%s4095_s11 + $0x188] ss:$36 sps:$4 sm:$0xff]  }
  0xef   : > { %2267 = vmatmul.mubr.bf16.gmra.mrb[100].mxu0 %v3945_v46  ;;  %2364 = vmatmul.mubr.bf16.gmra.mrb[100].mxu1 %v3946_v47 }
  0xf0   : > { %2274 = vmatprep.mubr.bf16.mxu0 %v3947_v48  ;;  %2371 = vmatprep.mubr.bf16.mxu1 %v3949_v49  ;;  %v3975_v48 = vld [vmem:[%s4095_s11 + $0x334] ss:$36 sps:$4 sm:$0xff]  }
  0xf1   : > { %v3977_v49 = vld [vmem:[%s4095_s11 + $0x1d0] ss:$36 sps:$4 sm:$0xff]  }
  0xf7   : > { %2275 = vmatmul.mubr.bf16.gmra.mrb[104].mxu0 %v3951_v50  ;;  %2372 = vmatmul.mubr.bf16.gmra.mrb[104].mxu1 %v3952_v51 }
  0xf8   : > { %2282 = vmatprep.mubr.bf16.mxu0 %v3954_v52  ;;  %2379 = vmatprep.mubr.bf16.mxu1 %v3956_v53 }
  0xfa   : > { %v3247_v54 = vpop.f32.mrb[0].mxu1  ;;  %v3175_v55 = vpop.f32.mrb[0].mxu0 }
  0xfb   : > { %v3248_v56 = vpop.f32.mrb[1].mxu1  ;;  %v3176_v57 = vpop.f32.mrb[1].mxu0 }
  0xfc   : > { %v4398_v60 = vadd.f32 %v3248_v56, %v3247_v54  ;;  %v3250_v61 = vpop.f32.mrb[2].mxu1  ;;  %v4400_v62 = vadd.f32 %v3176_v57, %v3175_v55  ;;  %v3178_v63 = vpop.f32.mrb[2].mxu0 }
  0xfd   : > { %v3251_v2 = vpop.f32.mrb[3].mxu1  ;;  %v3179_v3 = vpop.f32.mrb[3].mxu0 }
  0xfe   : > { %v4404_v4 = vadd.f32 %v3251_v2, %v3250_v61  ;;  %v4406_v5 = vadd.f32 %v3179_v3, %v3178_v63  ;;  %v3980_v2 = vld [vmem:[%s4095_s11 + $0x37c] ss:$36 sps:$4 sm:$0xff]  }
  0xff   : > { %2283 = vmatmul.mubr.bf16.gmra.mrb[108].mxu0 %v3958_v58  ;;  %2380 = vmatmul.mubr.bf16.gmra.mrb[108].mxu1 %v3959_v59  ;;  %v3978_v58 = vld [vmem:[%s4095_s11 + $0x330] ss:$36 sps:$4 sm:$0xff]   ;;  %v3979_v59 = vld [vmem:[%s4095_s11 + $0x218] ss:$36 sps:$4 sm:$0xff]   ;;  %v3982_v3 = vld [vmem:[%s4095_s11 + $0x260] ss:$36 sps:$4 sm:$0xff]  }
 0x100   : > { %2387 = vmatprep.mubr.bf16.mxu1 %v3960_v0  ;;  %3647 = vmatprep.mubr.bf16.mxu0 %v3962_v1 }
 0x102   : > { %v3253_v6 = vpop.f32.mrb[4].mxu1  ;;  %v3181_v7 = vpop.f32.mrb[4].mxu0 }
 0x103   : > { %v3254_v8 = vpop.f32.mrb[5].mxu1  ;;  %v3182_v9 = vpop.f32.mrb[5].mxu0 }
 0x104   : > { %v4410_v12 = vadd.f32 %v3254_v8, %v3253_v6  ;;  %v3256_v13 = vpop.f32.mrb[6].mxu1  ;;  %v4412_v14 = vadd.f32 %v3182_v9, %v3181_v7  ;;  %v3184_v15 = vpop.f32.mrb[6].mxu0 }
 0x105   : > { %v3257_v18 = vpop.f32.mrb[7].mxu1  ;;  %v3185_v19 = vpop.f32.mrb[7].mxu0 }
 0x106   : > { %v4416_v20 = vadd.f32 %v3257_v18, %v3256_v13  ;;  %v4418_v21 = vadd.f32 %v3185_v19, %v3184_v15  ;;  %v3983_v18 = vld [vmem:[%s4095_s11 + $0x378] ss:$36 sps:$4 sm:$0xff]   ;;  %v3984_v19 = vld [vmem:[%s4095_s11 + $0x2a8] ss:$36 sps:$4 sm:$0xff]  }
 0x107   : > { %2388 = vmatmul.mubr.bf16.gmra.mrb[112].mxu1 %v3963_v10  ;;  %3648 = vmatmul.mubr.bf16.vlgmr.msra.gmra.mrb[112].mxu0 %v3964_v11 }
 0x108   : > { %2395 = vmatprep.mubr.bf16.mxu1 %v3965_v16  ;;  %3651 = vmatprep.mubr.bf16.mxu0 %v3967_v17 }
 0x10a   : > { %v3259_v22 = vpop.f32.mrb[8].mxu1  ;;  %v3187_v23 = vpop.f32.mrb[8].mxu0 }
 0x10b   : > { %v3260_v24 = vpop.f32.mrb[9].mxu1  ;;  %v3188_v25 = vpop.f32.mrb[9].mxu0 }
 0x10c   : > { %v4422_v28 = vadd.f32 %v3260_v24, %v3259_v22  ;;  %v3262_v29 = vpop.f32.mrb[10].mxu1  ;;  %v4424_v30 = vadd.f32 %v3188_v25, %v3187_v23  ;;  %v3190_v31 = vpop.f32.mrb[10].mxu0  ;;  %v3985_v25 = vld [vmem:[%s4095_s11 + $0x3c4] ss:$36 sps:$4 sm:$0xff]  }
 0x10d   : > { %v3263_v34 = vpop.f32.mrb[11].mxu1  ;;  %v3191_v35 = vpop.f32.mrb[11].mxu0 }
 0x10e   : > { %v4428_v36 = vadd.f32 %v3263_v34, %v3262_v29  ;;  %v4430_v37 = vadd.f32 %v3191_v35, %v3190_v31 }
 0x10f   : > { %2396 = vmatmul.mubr.bf16.gmra.mrb[116].mxu1 %v3968_v26  ;;  %3652 = vmatmul.mubr.bf16.gmra.mrb[116].mxu0 %v3969_v27  ;;  %v3987_v26 = vld [vmem:[%s4095_s11 + $0x2f0] ss:$36 sps:$4 sm:$0xff]  }
 0x110   : > { %2403 = vmatprep.mubr.bf16.mxu1 %v3970_v32  ;;  %3655 = vmatprep.mubr.bf16.mxu0 %v3972_v33 }
 0x112   : > { %v3265_v38 = vpop.f32.mrb[12].mxu1  ;;  %v3193_v39 = vpop.f32.mrb[12].mxu0 }
 0x113   : > { %v3266_v40 = vpop.f32.mrb[13].mxu1  ;;  %v3194_v41 = vpop.f32.mrb[13].mxu0 }
 0x114   : > { %v4434_v44 = vadd.f32 %v3266_v40, %v3265_v38  ;;  %v3268_v45 = vpop.f32.mrb[14].mxu1  ;;  %v4436_v46 = vadd.f32 %v3194_v41, %v3193_v39  ;;  %v3196_v47 = vpop.f32.mrb[14].mxu0  ;;  %v3988_v40 = vld [vmem:[%s4095_s11 + $0x3c0] ss:$36 sps:$4 sm:$0xff]   ;;  %v3989_v41 = vld [vmem:[%s4095_s11 + $0x338] ss:$36 sps:$4 sm:$0xff]  }
 0x115   : > { %v3269_v50 = vpop.f32.mrb[15].mxu1  ;;  %v3197_v51 = vpop.f32.mrb[15].mxu0 }
 0x116   : > { %v4440_v52 = vadd.f32 %v3269_v50, %v3268_v45  ;;  %v4442_v53 = vadd.f32 %v3197_v51, %v3196_v47  ;;  %v3990_v47 = vld [vmem:[%s4095_s11 + $0x40c] ss:$36 sps:$4 sm:$0xff]  }
 0x117   : > { %2404 = vmatmul.mubr.bf16.gmra.mrb[120].mxu1 %v3973_v42  ;;  %3656 = vmatmul.mubr.bf16.gmra.mrb[120].mxu0 %v3974_v43 }
 0x118   : > { %2411 = vmatprep.mubr.bf16.mxu1 %v3975_v48  ;;  %3659 = vmatprep.mubr.bf16.mxu0 %v3977_v49  ;;  %v3992_v48 = vld [vmem:[%s4095_s11 + $0x380] ss:$36 sps:$4 sm:$0xff]  }
 0x11a   : > { %v3287_v54 = vpop.f32.mrb[16].mxu1  ;;  %v3199_v55 = vpop.f32.mrb[16].mxu0 }
 0x11b   : > { %v3288_v56 = vpop.f32.mrb[17].mxu1  ;;  %v3200_v57 = vpop.f32.mrb[17].mxu0 }
 0x11c   : > { %v3289_v61 = vadd.f32 %v3288_v56, %v3287_v54  ;;  %v3290_v63 = vpop.f32.mrb[18].mxu1  ;;  %v4446_v0 = vadd.f32 %v3200_v57, %v3199_v55  ;;  %v3202_v1 = vpop.f32.mrb[18].mxu0 }
 0x11d   : > { %v3291_v6 = vpop.f32.mrb[19].mxu1  ;;  %v3203_v7 = vpop.f32.mrb[19].mxu0 }
 0x11e   : > { %v4451_v8 = vadd.f32 %v3289_v61, %v4400_v62  ;;  %v3292_v9 = vadd.f32 %v3291_v6, %v3290_v63  ;;  %v4453_v10 = vadd.f32 %v3203_v7, %v3202_v1  ;;  %v3993_v61 = vld [vmem:[%s4095_s11 + $0x408] ss:$36 sps:$4 sm:$0xff]   ;;  %v3995_v6 = vld [vmem:[%s4095_s11 + $0x454] ss:$36 sps:$4 sm:$0xff]  }
 0x11f   : > { %2412 = vmatmul.mubr.bf16.gmra.mrb[124].mxu1 %v3978_v58  ;;  %3660 = vmatmul.mubr.bf16.gmra.mrb[124].mxu0 %v3979_v59  ;;  %v3994_v63 = vld [vmem:[%s4095_s11 + $0x3c8] ss:$36 sps:$4 sm:$0xff]   ;;  %v3997_v7 = vld [vmem:[%s4095_s11 + $0x410] ss:$36 sps:$4 sm:$0xff]  }
 0x120   : > { %v4456_v11 = vadd.f32 %v3292_v9, %v4406_v5  ;;  %2419 = vmatprep.mubr.bf16.mxu1 %v3980_v2  ;;  %3663 = vmatprep.mubr.bf16.mxu0 %v3982_v3 }
 0x122   : > { %v3293_v13 = vpop.f32.mrb[20].mxu1  ;;  %v3205_v15 = vpop.f32.mrb[20].mxu0 }
 0x123   : > { %v3294_v16 = vpop.f32.mrb[21].mxu1  ;;  %v3206_v17 = vpop.f32.mrb[21].mxu0 }
 0x124   : > { %v3295_v62 = vadd.f32 %v3294_v16, %v3293_v13  ;;  %v3296_v22 = vpop.f32.mrb[22].mxu1  ;;  %v4460_v23 = vadd.f32 %v3206_v17, %v3205_v15  ;;  %v3208_v24 = vpop.f32.mrb[22].mxu0 }
 0x125   : > { %v3297_v27 = vpop.f32.mrb[23].mxu1  ;;  %v3209_v5 = vpop.f32.mrb[23].mxu0 }
 0x126   : > { %v4465_v29 = vadd.f32 %v3295_v62, %v4412_v14  ;;  %v3298_v31 = vadd.f32 %v3297_v27, %v3296_v22  ;;  %v4467_v32 = vadd.f32 %v3209_v5, %v3208_v24  ;;  %v3998_v24 = vld [vmem:[%s4095_s11 + $0x450] ss:$36 sps:$4 sm:$0xff]  }
 0x127   : > { %2420 = vmatmul.mubr.bf16.gmra.mrb[128].mxu1 %v3983_v18  ;;  %3664 = vmatmul.mubr.bf16.gmra.mrb[128].mxu0 %v3984_v19 }
 0x128   : > { %v4470_v33 = vadd.f32 %v3298_v31, %v4418_v21  ;;  %2427 = vmatprep.mubr.bf16.mxu1 %v3985_v25  ;;  %3667 = vmatprep.mubr.bf16.mxu0 %v3987_v26  ;;  %v3999_v25 = vld [vmem:[%s4095_s11 + $0x458] ss:$36 sps:$4 sm:$0xff]  }
 0x12a   : > { %v3299_v34 = vpop.f32.mrb[24].mxu1  ;;  %v3211_v35 = vpop.f32.mrb[24].mxu0 }
 0x12b   : > { %v3300_v38 = vpop.f32.mrb[25].mxu1  ;;  %v3212_v39 = vpop.f32.mrb[25].mxu0 }
 0x12c   : > { %v3301_v14 = vadd.f32 %v3300_v38, %v3299_v34  ;;  %v3302_v42 = vpop.f32.mrb[26].mxu1  ;;  %v4474_v43 = vadd.f32 %v3212_v39, %v3211_v35  ;;  %v3214_v45 = vpop.f32.mrb[26].mxu0 }
 0x12d   : > { %v3303_v49 = vpop.f32.mrb[27].mxu1  ;;  %v3215_v21 = vpop.f32.mrb[27].mxu0 }
 0x12e   : > { %v4479_v50 = vadd.f32 %v3301_v14, %v4424_v30  ;;  %v3304_v51 = vadd.f32 %v3303_v49, %v3302_v42  ;;  %v4481_v54 = vadd.f32 %v3215_v21, %v3214_v45 }
 0x12f   : > { %2428 = vmatmul.mubr.bf16.gmra.mrb[132].mxu1 %v3988_v40  ;;  %3668 = vmatmul.mubr.bf16.gmra.mrb[132].mxu0 %v3989_v41 }
 0x130   : > { %v4484_v55 = vadd.f32 %v3304_v51, %v4430_v37  ;;  %2435 = vmatprep.mubr.bf16.mxu1 %v3990_v47  ;;  %3671 = vmatprep.mubr.bf16.mxu0 %v3992_v48 }
 0x132   : > { %v3305_v56 = vpop.f32.mrb[28].mxu1  ;;  %v3217_v57 = vpop.f32.mrb[28].mxu0 }
 0x133   : > { %v3306_v58 = vpop.f32.mrb[29].mxu1  ;;  %v3218_v59 = vpop.f32.mrb[29].mxu0 }
 0x134   : > { %v3307_v30 = vadd.f32 %v3306_v58, %v3305_v56  ;;  %v3308_v1 = vpop.f32.mrb[30].mxu1  ;;  %v4488_v2 = vadd.f32 %v3218_v59, %v3217_v57  ;;  %v3220_v3 = vpop.f32.mrb[30].mxu0 }
 0x135   : > { %v3309_v9 = vpop.f32.mrb[31].mxu1  ;;  %v3221_v37 = vpop.f32.mrb[31].mxu0 }
 0x136   : > { %v4493_v13 = vadd.f32 %v3307_v30, %v4436_v46  ;;  %v3310_v15 = vadd.f32 %v3309_v9, %v3308_v1  ;;  %v4495_v16 = vadd.f32 %v3221_v37, %v3220_v3 }
 0x137   : > { %2436 = vmatmul.mubr.bf16.gmra.mrb[136].mxu1 %v3993_v61  ;;  %3672 = vmatmul.mubr.bf16.gmra.mrb[136].mxu0 %v3994_v63 }
 0x138   : > { %v4498_v17 = vadd.f32 %v3310_v15, %v4442_v53  ;;  %2443 = vmatprep.mubr.bf16.mxu1 %v3995_v6  ;;  %3675 = vmatprep.mubr.bf16.mxu0 %v3997_v7 }
 0x13a   : > { %v3311_v18 = vpop.f32.mrb[32].mxu1  ;;  %v3223_v19 = vpop.f32.mrb[32].mxu0 }
 0x13b   : > { %v3312_v62 = vpop.f32.mrb[33].mxu1  ;;  %v3224_v22 = vpop.f32.mrb[33].mxu0 }
 0x13c   : > { %v3313_v26 = vadd.f32 %v3312_v62, %v3311_v18  ;;  %v3314_v27 = vpop.f32.mrb[34].mxu1  ;;  %v3225_v46 = vadd.f32 %v3224_v22, %v3223_v19  ;;  %v3226_v5 = vpop.f32.mrb[34].mxu0 }
 0x13d   : > { %v3315_v31 = vpop.f32.mrb[35].mxu1  ;;  %v3227_v34 = vpop.f32.mrb[35].mxu0 }
 0x13e   : > { %v4503_v35 = vadd.f32 %v3313_v26, %v4446_v0  ;;  %v3316_v38 = vadd.f32 %v3315_v31, %v3314_v27  ;;  %v3228_v53 = vadd.f32 %v3227_v34, %v3226_v5 }
 0x13f   : > { %2444 = vmatmul.mubr.bf16.gmra.mrb[140].mxu1 %v3998_v24  ;;  %3676 = vmatmul.mubr.bf16.gmra.mrb[140].mxu0 %v3999_v25 }
 0x140   : > { %v4506_v39 = vadd.f32 %v3316_v38, %v4453_v10 }
 0x142   : > { %v3317_v40 = vpop.f32.mrb[36].mxu1  ;;  %v3229_v41 = vpop.f32.mrb[36].mxu0 }
 0x143   : > { %v3318_v14 = vpop.f32.mrb[37].mxu1  ;;  %v3230_v42 = vpop.f32.mrb[37].mxu0 }
 0x144   : > { %v3319_v45 = vadd.f32 %v3318_v14, %v3317_v40  ;;  %v3320_v47 = vpop.f32.mrb[38].mxu1  ;;  %v3231_v48 = vadd.f32 %v3230_v42, %v3229_v41  ;;  %v3232_v49 = vpop.f32.mrb[38].mxu0 }
 0x145   : > { %v3321_v21 = vpop.f32.mrb[39].mxu1  ;;  %v3233_v51 = vpop.f32.mrb[39].mxu0 }
 0x146   : > { %v4509_v0 = vadd.f32 %v3319_v45, %v4460_v23  ;;  %v3322_v56 = vadd.f32 %v3321_v21, %v3320_v47  ;;  %v3234_v57 = vadd.f32 %v3233_v51, %v3232_v49 }
 0x148   : > { %v4512_v58 = vadd.f32 %v3322_v56, %v4467_v32 }
 0x14a   : > { %v3323_v10 = vpop.f32.mrb[40].mxu1  ;;  %v3235_v59 = vpop.f32.mrb[40].mxu0 }
 0x14b   : > { %v3324_v61 = vpop.f32.mrb[41].mxu1  ;;  %v3236_v63 = vpop.f32.mrb[41].mxu0 }
 0x14c   : > { %v3325_v30 = vadd.f32 %v3324_v61, %v3323_v10  ;;  %v3326_v1 = vpop.f32.mrb[42].mxu1  ;;  %v4514_v3 = vadd.f32 %v3236_v63, %v3235_v59  ;;  %v3238_v6 = vpop.f32.mrb[42].mxu0 }
 0x14d   : > { %v3327_v7 = vpop.f32.mrb[43].mxu1  ;;  %v3239_v9 = vpop.f32.mrb[43].mxu0 }
 0x14e   : > { %v4517_v37 = vadd.f32 %v3325_v30, %v4474_v43  ;;  %v3328_v23 = vadd.f32 %v3327_v7, %v3326_v1  ;;  %v3240_v15 = vadd.f32 %v3239_v9, %v3238_v6 }
 0x150   : > { %v4520_v18 = vadd.f32 %v3328_v23, %v4481_v54 }
 0x152   : > { %v3329_v32 = vpop.f32.mrb[44].mxu1  ;;  %v3241_v19 = vpop.f32.mrb[44].mxu0 }
 0x153   : > { %v3330_v62 = vpop.f32.mrb[45].mxu1  ;;  %v3242_v22 = vpop.f32.mrb[45].mxu0 }
 0x154   : > { %v3331_v24 = vadd.f32 %v3330_v62, %v3329_v32  ;;  %v3332_v25 = vpop.f32.mrb[46].mxu1  ;;  %v4522_v26 = vadd.f32 %v3242_v22, %v3241_v19  ;;  %v3244_v27 = vpop.f32.mrb[46].mxu0 }
 0x155   : > { %v3333_v5 = vpop.f32.mrb[47].mxu1  ;;  %v3245_v31 = vpop.f32.mrb[47].mxu0 }
 0x156   : > { %v4525_v34 = vadd.f32 %v3331_v24, %v4488_v2  ;;  %v3334_v43 = vadd.f32 %v3333_v5, %v3332_v25  ;;  %v4527_v38 = vadd.f32 %v3245_v31, %v3244_v27 }
 0x158   : > { %v4530_v54 = vadd.f32 %v3334_v43, %v4495_v16 }
 0x15a   : > { %v3335_v40 = vpop.f32.mrb[48].mxu1  ;;  %v3399_v41 = vpop.f32.mrb[48].mxu0 }
 0x15b   : > { %v3336_v14 = vpop.f32.mrb[49].mxu1  ;;  %v3400_v42 = vpop.f32.mrb[49].mxu0 }
 0x15c   : > { %v3337_v45 = vadd.f32 %v3336_v14, %v3335_v40  ;;  %v3401_v47 = vadd.f32 %v3400_v42, %v3399_v41  ;;  %v3338_v49 = vpop.f32.mrb[50].mxu1  ;;  %v3402_v21 = vpop.f32.mrb[50].mxu0 }
 0x15d   : > { %v3339_v51 = vpop.f32.mrb[51].mxu1  ;;  %v3403_v56 = vpop.f32.mrb[51].mxu0 }
 0x15e   : > { %v4532_v10 = vadd.f32 %v3337_v45, %v3225_v46  ;;  %v4535_v2 = vadd.f32 %v3401_v47, %v4451_v8  ;;  %v3340_v59 = vadd.f32 %v3339_v51, %v3338_v49  ;;  %v3404_v61 = vadd.f32 %v3403_v56, %v3402_v21 }
 0x160   : > { %v4537_v63 = vadd.f32 %v3340_v59, %v3228_v53  ;;  %v4540_v16 = vadd.f32 %v3404_v61, %v4456_v11 }
 0x162   : > { %v3341_v30 = vpop.f32.mrb[52].mxu1  ;;  %v3405_v1 = vpop.f32.mrb[52].mxu0 }
 0x163   : > { %v3342_v6 = vpop.f32.mrb[53].mxu1  ;;  %v3406_v7 = vpop.f32.mrb[53].mxu0 }
 0x164   : > { %v3343_v9 = vadd.f32 %v3342_v6, %v3341_v30  ;;  %v3407_v23 = vadd.f32 %v3406_v7, %v3405_v1  ;;  %v3344_v32 = vpop.f32.mrb[54].mxu1  ;;  %v3408_v19 = vpop.f32.mrb[54].mxu0 }
 0x165   : > { %v3345_v46 = vpop.f32.mrb[55].mxu1  ;;  %v3409_v62 = vpop.f32.mrb[55].mxu0 }
 0x166   : > { %v4542_v22 = vadd.f32 %v3343_v9, %v3231_v48  ;;  %v4545_v8 = vadd.f32 %v3407_v23, %v4465_v29  ;;  %v3346_v53 = vadd.f32 %v3345_v46, %v3344_v32  ;;  %v3410_v24 = vadd.f32 %v3409_v62, %v3408_v19 }
 0x168   : > { %v4547_v25 = vadd.f32 %v3346_v53, %v3234_v57  ;;  %v4550_v11 = vadd.f32 %v3410_v24, %v4470_v33 }
 0x16a   : > { %v3347_v27 = vpop.f32.mrb[56].mxu1  ;;  %v3411_v5 = vpop.f32.mrb[56].mxu0 }
 0x16b   : > { %v3348_v31 = vpop.f32.mrb[57].mxu1  ;;  %v3412_v43 = vpop.f32.mrb[57].mxu0 }
 0x16c   : > { %v3349_v40 = vadd.f32 %v3348_v31, %v3347_v27  ;;  %v3413_v41 = vadd.f32 %v3412_v43, %v3411_v5  ;;  %v3350_v14 = vpop.f32.mrb[58].mxu1  ;;  %v3414_v42 = vpop.f32.mrb[58].mxu0 }
 0x16d   : > { %v3351_v48 = vpop.f32.mrb[59].mxu1  ;;  %v3415_v45 = vpop.f32.mrb[59].mxu0 }
 0x16e   : > { %v4553_v29 = vadd.f32 %v3349_v40, %v4514_v3  ;;  %v4556_v47 = vadd.f32 %v3413_v41, %v4479_v50  ;;  %v3352_v57 = vadd.f32 %v3351_v48, %v3350_v14  ;;  %v3416_v49 = vadd.f32 %v3415_v45, %v3414_v42 }
 0x170   : > { %v4558_v33 = vadd.f32 %v3352_v57, %v3240_v15  ;;  %v4561_v21 = vadd.f32 %v3416_v49, %v4484_v55 }
 0x172   : > { %v3353_v51 = vpop.f32.mrb[60].mxu1  ;;  %v3417_v56 = vpop.f32.mrb[60].mxu0 }
 0x173   : > { %v3354_v59 = vpop.f32.mrb[61].mxu1  ;;  %v3418_v61 = vpop.f32.mrb[61].mxu0 }
 0x174   : > { %v3355_v30 = vadd.f32 %v3354_v59, %v3353_v51  ;;  %v3419_v1 = vadd.f32 %v3418_v61, %v3417_v56  ;;  %v3356_v6 = vpop.f32.mrb[62].mxu1  ;;  %v3420_v7 = vpop.f32.mrb[62].mxu0 }
 0x175   : > { %v3357_v3 = vpop.f32.mrb[63].mxu1  ;;  %v3421_v9 = vpop.f32.mrb[63].mxu0 }
 0x176   : > { %v4564_v50 = vadd.f32 %v3355_v30, %v4522_v26  ;;  %v4567_v23 = vadd.f32 %v3419_v1, %v4493_v13  ;;  %v3358_v15 = vadd.f32 %v3357_v3, %v3356_v6  ;;  %v3422_v32 = vadd.f32 %v3421_v9, %v3420_v7 }
 0x178   : > { %v4570_v55 = vadd.f32 %v3358_v15, %v4527_v38  ;;  %v4573_v19 = vadd.f32 %v3422_v32, %v4498_v17 }
 0x17a   : > { %v3359_v46 = vpop.f32.mrb[64].mxu1  ;;  %v3423_v62 = vpop.f32.mrb[64].mxu0 }
 0x17b   : > { %v3360_v53 = vpop.f32.mrb[65].mxu1  ;;  %v3424_v24 = vpop.f32.mrb[65].mxu0 }
 0x17c   : > { %v3361_v27 = vadd.f32 %v3360_v53, %v3359_v46  ;;  %v3425_v5 = vadd.f32 %v3424_v24, %v3423_v62  ;;  %v3362_v31 = vpop.f32.mrb[66].mxu1  ;;  %v3426_v26 = vpop.f32.mrb[66].mxu0 }
 0x17d   : > { %v3363_v43 = vpop.f32.mrb[67].mxu1  ;;  %v3427_v40 = vpop.f32.mrb[67].mxu0 }
 0x17e   : > { %v4576_v13 = vadd.f32 %v3361_v27, %v4398_v60  ;;  %v4579_v41 = vadd.f32 %v3425_v5, %v4503_v35  ;;  %v3364_v38 = vadd.f32 %v3363_v43, %v3362_v31  ;;  %v3428_v14 = vadd.f32 %v3427_v40, %v3426_v26 }
 0x180   : > { %v4582_v17 = vadd.f32 %v3364_v38, %v4404_v4  ;;  %v4585_v42 = vadd.f32 %v3428_v14, %v4506_v39 }
 0x182   : > { %v3365_v48 = vpop.f32.mrb[68].mxu1  ;;  %v3429_v45 = vpop.f32.mrb[68].mxu0 }
 0x183   : > { %v3366_v57 = vpop.f32.mrb[69].mxu1  ;;  %v3430_v49 = vpop.f32.mrb[69].mxu0 }
 0x184   : > { %v3367_v51 = vadd.f32 %v3366_v57, %v3365_v48  ;;  %v3431_v56 = vadd.f32 %v3430_v49, %v3429_v45  ;;  %v3368_v59 = vpop.f32.mrb[70].mxu1  ;;  %v3432_v60 = vpop.f32.mrb[70].mxu0 }
 0x185   : > { %v3369_v61 = vpop.f32.mrb[71].mxu1  ;;  %v3433_v30 = vpop.f32.mrb[71].mxu0 }
 0x186   : > { %v4588_v35 = vadd.f32 %v3367_v51, %v4410_v12  ;;  %v4591_v1 = vadd.f32 %v3431_v56, %v4509_v0  ;;  %v3370_v4 = vadd.f32 %v3369_v61, %v3368_v59  ;;  %v3434_v6 = vadd.f32 %v3433_v30, %v3432_v60 }
 0x188   : > { %v4594_v39 = vadd.f32 %v3370_v4, %v4416_v20  ;;  %v4597_v7 = vadd.f32 %v3434_v6, %v4512_v58 }
 0x18a   : > { %v3371_v3 = vpop.f32.mrb[72].mxu1  ;;  %v3435_v9 = vpop.f32.mrb[72].mxu0 }
 0x18b   : > { %v3372_v15 = vpop.f32.mrb[73].mxu1  ;;  %v3436_v32 = vpop.f32.mrb[73].mxu0 }
 0x18c   : > { %v3373_v46 = vadd.f32 %v3372_v15, %v3371_v3  ;;  %v3437_v62 = vadd.f32 %v3436_v32, %v3435_v9  ;;  %v3374_v53 = vpop.f32.mrb[74].mxu1  ;;  %v3438_v12 = vpop.f32.mrb[74].mxu0 }
 0x18d   : > { %v3375_v24 = vpop.f32.mrb[75].mxu1  ;;  %v3439_v27 = vpop.f32.mrb[75].mxu0 }
 0x18e   : > { %v4600_v0 = vadd.f32 %v3373_v46, %v4422_v28  ;;  %v4603_v5 = vadd.f32 %v3437_v62, %v4517_v37  ;;  %v3376_v20 = vadd.f32 %v3375_v24, %v3374_v53  ;;  %v3440_v31 = vadd.f32 %v3439_v27, %v3438_v12 }
 0x190   : > { %v4606_v58 = vadd.f32 %v3376_v20, %v4428_v36  ;;  %v4609_v26 = vadd.f32 %v3440_v31, %v4520_v18 }
 0x192   : > { %v3377_v43 = vpop.f32.mrb[76].mxu1  ;;  %v3441_v40 = vpop.f32.mrb[76].mxu0 }
 0x193   : > { %v3378_v38 = vpop.f32.mrb[77].mxu1  ;;  %v3442_v14 = vpop.f32.mrb[77].mxu0 }
 0x194   : > { %v3379_v48 = vadd.f32 %v3378_v38, %v3377_v43  ;;  %v3443_v45 = vadd.f32 %v3442_v14, %v3441_v40  ;;  %v3380_v57 = vpop.f32.mrb[78].mxu1  ;;  %v3444_v28 = vpop.f32.mrb[78].mxu0 }
 0x195   : > { %v3381_v49 = vpop.f32.mrb[79].mxu1  ;;  %v3445_v51 = vpop.f32.mrb[79].mxu0 }
 0x196   : > { %v4612_v37 = vadd.f32 %v3379_v48, %v4434_v44  ;;  %v4615_v56 = vadd.f32 %v3443_v45, %v4525_v34  ;;  %v3382_v36 = vadd.f32 %v3381_v49, %v3380_v57  ;;  %v3446_v59 = vadd.f32 %v3445_v51, %v3444_v28 }
 0x198   : > { %v4618_v18 = vadd.f32 %v3382_v36, %v4440_v52  ;;  %v4621_v60 = vadd.f32 %v3446_v59, %v4530_v54 }
 0x19a   : > { %v3447_v61 = vpop.f32.mrb[80].mxu0  ;;  %v3511_v30 = vpop.f32.mrb[80].mxu1 }
 0x19b   : > { %v3448_v4 = vpop.f32.mrb[81].mxu0  ;;  %v3512_v6 = vpop.f32.mrb[81].mxu1 }
 0x19c   : > { %v3449_v3 = vadd.f32 %v3448_v4, %v3447_v61  ;;  %v3513_v9 = vadd.f32 %v3512_v6, %v3511_v30  ;;  %v3450_v15 = vpop.f32.mrb[82].mxu0  ;;  %v3514_v44 = vpop.f32.mrb[82].mxu1 }
 0x19d   : > { %v3451_v32 = vpop.f32.mrb[83].mxu0  ;;  %v3515_v46 = vpop.f32.mrb[83].mxu1 }
 0x19e   : > { %v4624_v34 = vadd.f32 %v3449_v3, %v4532_v10  ;;  %v3452_v62 = vadd.f32 %v3451_v32, %v3450_v15  ;;  %v3516_v53 = vadd.f32 %v3515_v46, %v3514_v44  ;;  %v4627_v52 = vadd.f32 %v3513_v9, %v4535_v2 }
 0x1a0   : > { %v4630_v54 = vadd.f32 %v3452_v62, %v4537_v63  ;;  %v4633_v12 = vadd.f32 %v3516_v53, %v4540_v16 }
 0x1a2   : > { %v3453_v24 = vpop.f32.mrb[84].mxu0  ;;  %v3517_v27 = vpop.f32.mrb[84].mxu1 }
 0x1a3   : > { %v3454_v20 = vpop.f32.mrb[85].mxu0  ;;  %v3518_v31 = vpop.f32.mrb[85].mxu1 }
 0x1a4   : > { %v3455_v43 = vadd.f32 %v3454_v20, %v3453_v24  ;;  %v3519_v40 = vadd.f32 %v3518_v31, %v3517_v27  ;;  %v3456_v38 = vpop.f32.mrb[86].mxu0  ;;  %v3520_v10 = vpop.f32.mrb[86].mxu1 }
 0x1a5   : > { %v3457_v14 = vpop.f32.mrb[87].mxu0  ;;  %v3521_v48 = vpop.f32.mrb[87].mxu1 }
 0x1a6   : > { %v4636_v45 = vadd.f32 %v3455_v43, %v4542_v22  ;;  %v3458_v2 = vadd.f32 %v3457_v14, %v3456_v38  ;;  %v3522_v57 = vadd.f32 %v3521_v48, %v3520_v10  ;;  %v4639_v63 = vadd.f32 %v3519_v40, %v4545_v8 }
 0x1a8   : > { %v4642_v16 = vadd.f32 %v3458_v2, %v4547_v25  ;;  %v4645_v28 = vadd.f32 %v3522_v57, %v4550_v11 }
 0x1aa   : > { %v3459_v49 = vpop.f32.mrb[88].mxu0  ;;  %v3523_v51 = vpop.f32.mrb[88].mxu1 }
 0x1ab   : > { %v3460_v36 = vpop.f32.mrb[89].mxu0  ;;  %v3524_v59 = vpop.f32.mrb[89].mxu1 }
 0x1ac   : > { %v3461_v61 = vadd.f32 %v3460_v36, %v3459_v49  ;;  %v3525_v30 = vadd.f32 %v3524_v59, %v3523_v51  ;;  %v3462_v4 = vpop.f32.mrb[90].mxu0  ;;  %v3526_v22 = vpop.f32.mrb[90].mxu1 }
 0x1ad   : > { %v3463_v6 = vpop.f32.mrb[91].mxu0  ;;  %v3527_v3 = vpop.f32.mrb[91].mxu1 }
 0x1ae   : > { %v4648_v9 = vadd.f32 %v3461_v61, %v4553_v29  ;;  %v3464_v8 = vadd.f32 %v3463_v6, %v3462_v4  ;;  %v3528_v15 = vadd.f32 %v3527_v3, %v3526_v22  ;;  %v4651_v25 = vadd.f32 %v3525_v30, %v4556_v47 }
 0x1b0   : > { %v4654_v11 = vadd.f32 %v3464_v8, %v4558_v33  ;;  %v4657_v44 = vadd.f32 %v3528_v15, %v4561_v21 }
 0x1b2   : > { %v3465_v32 = vpop.f32.mrb[92].mxu0  ;;  %v3529_v46 = vpop.f32.mrb[92].mxu1 }
 0x1b3   : > { %v3466_v62 = vpop.f32.mrb[93].mxu0  ;;  %v3530_v53 = vpop.f32.mrb[93].mxu1 }
 0x1b4   : > { %v3467_v24 = vadd.f32 %v3466_v62, %v3465_v32  ;;  %v3531_v27 = vadd.f32 %v3530_v53, %v3529_v46  ;;  %v3468_v20 = vpop.f32.mrb[94].mxu0  ;;  %v3532_v29 = vpop.f32.mrb[94].mxu1 }
 0x1b5   : > { %v3469_v31 = vpop.f32.mrb[95].mxu0  ;;  %v3533_v43 = vpop.f32.mrb[95].mxu1 }
 0x1b6   : > { %v4660_v40 = vadd.f32 %v3467_v24, %v4564_v50  ;;  %v3470_v47 = vadd.f32 %v3469_v31, %v3468_v20  ;;  %v3534_v38 = vadd.f32 %v3533_v43, %v3532_v29  ;;  %v4663_v33 = vadd.f32 %v3531_v27, %v4567_v23 }
 0x1b8   : > { %v4666_v21 = vadd.f32 %v3470_v47, %v4570_v55  ;;  %v4669_v10 = vadd.f32 %v3534_v38, %v4573_v19 }
 0x1ba   : > { %v3471_v14 = vpop.f32.mrb[96].mxu0  ;;  %v3535_v48 = vpop.f32.mrb[96].mxu1 }
 0x1bb   : > { %v3472_v2 = vpop.f32.mrb[97].mxu0  ;;  %v3536_v57 = vpop.f32.mrb[97].mxu1 }
 0x1bc   : > { %v3473_v49 = vadd.f32 %v3472_v2, %v3471_v14  ;;  %v3537_v51 = vadd.f32 %v3536_v57, %v3535_v48  ;;  %v3474_v36 = vpop.f32.mrb[98].mxu0  ;;  %v3538_v50 = vpop.f32.mrb[98].mxu1 }
 0x1bd   : > { %v3475_v59 = vpop.f32.mrb[99].mxu0  ;;  %v3539_v61 = vpop.f32.mrb[99].mxu1 }
 0x1be   : > { %v4672_v30 = vadd.f32 %v3473_v49, %v4576_v13  ;;  %v3476_v23 = vadd.f32 %v3475_v59, %v3474_v36  ;;  %v3540_v4 = vadd.f32 %v3539_v61, %v3538_v50  ;;  %v4675_v55 = vadd.f32 %v3537_v51, %v4579_v41 }
 0x1c0   : > { %v4678_v19 = vadd.f32 %v3476_v23, %v4582_v17  ;;  %v4681_v22 = vadd.f32 %v3540_v4, %v4585_v42 }
 0x1c2   : > { %v3477_v6 = vpop.f32.mrb[100].mxu0  ;;  %v3541_v3 = vpop.f32.mrb[100].mxu1 }
 0x1c3   : > { %v3478_v8 = vpop.f32.mrb[101].mxu0  ;;  %v3542_v15 = vpop.f32.mrb[101].mxu1 }
 0x1c4   : > { %v3479_v32 = vadd.f32 %v3478_v8, %v3477_v6  ;;  %v3543_v46 = vadd.f32 %v3542_v15, %v3541_v3  ;;  %v3480_v62 = vpop.f32.mrb[102].mxu0  ;;  %v3544_v13 = vpop.f32.mrb[102].mxu1 }
 0x1c5   : > { %v3481_v53 = vpop.f32.mrb[103].mxu0  ;;  %v3545_v24 = vpop.f32.mrb[103].mxu1 }
 0x1c6   : > { %v4684_v27 = vadd.f32 %v3479_v32, %v4588_v35  ;;  %v3482_v41 = vadd.f32 %v3481_v53, %v3480_v62  ;;  %v3546_v20 = vadd.f32 %v3545_v24, %v3544_v13  ;;  %v4687_v17 = vadd.f32 %v3543_v46, %v4591_v1 }
 0x1c8   : > { %v4690_v42 = vadd.f32 %v3482_v41, %v4594_v39  ;;  %v4693_v29 = vadd.f32 %v3546_v20, %v4597_v7  ;;  %v4722_v41 = vld [vmem:[%s4855_s2] ss:$0 sm:$0xff] }
 0x1ca   : > { %v3483_v31 = vpop.f32.mrb[104].mxu0  ;;  %v3547_v43 = vpop.f32.mrb[104].mxu1 }
 0x1cb   : > { %v3484_v47 = vpop.f32.mrb[105].mxu0  ;;  %v3548_v38 = vpop.f32.mrb[105].mxu1 }
 0x1cc   : > { %v3485_v14 = vadd.f32 %v3484_v47, %v3483_v31  ;;  %v3549_v48 = vadd.f32 %v3548_v38, %v3547_v43  ;;  %v3486_v2 = vpop.f32.mrb[106].mxu0  ;;  %v3550_v35 = vpop.f32.mrb[106].mxu1 }
 0x1cd   : > { %v3487_v57 = vpop.f32.mrb[107].mxu0  ;;  %v3551_v49 = vpop.f32.mrb[107].mxu1 }
 0x1ce   : > { %v4696_v51 = vadd.f32 %v3485_v14, %v4600_v0  ;;  %v3488_v1 = vadd.f32 %v3487_v57, %v3486_v2  ;;  %v3552_v36 = vadd.f32 %v3551_v49, %v3550_v35  ;;  %v4699_v39 = vadd.f32 %v3549_v48, %v4603_v5 }
 0x1d0   : > { %v4702_v7 = vadd.f32 %v3488_v1, %v4606_v58  ;;  %v4705_v50 = vadd.f32 %v3552_v36, %v4609_v26 }
 0x1d2   : > { %v3489_v59 = vpop.f32.mrb[108].mxu0  ;;  %v3553_v61 = vpop.f32.mrb[108].mxu1 }
 0x1d3   : > { %v3490_v23 = vpop.f32.mrb[109].mxu0  ;;  %v3554_v4 = vpop.f32.mrb[109].mxu1 }
 0x1d4   : > { %v3491_v6 = vadd.f32 %v3490_v23, %v3489_v59  ;;  %v3555_v3 = vadd.f32 %v3554_v4, %v3553_v61  ;;  %v3492_v0 = vpop.f32.mrb[110].mxu0  ;;  %v3556_v8 = vpop.f32.mrb[110].mxu1 }
 0x1d5   : > { %v3493_v15 = vpop.f32.mrb[111].mxu0  ;;  %v3557_v32 = vpop.f32.mrb[111].mxu1 }
 0x1d6   : > { %v4708_v5 = vadd.f32 %v3491_v6, %v4612_v37  ;;  %v3494_v46 = vadd.f32 %v3493_v15, %v3492_v0  ;;  %v3558_v58 = vadd.f32 %v3557_v32, %v3556_v8  ;;  %v4711_v62 = vadd.f32 %v3555_v3, %v4615_v56 }
 0x1d8   : > { %v4714_v26 = vadd.f32 %v3494_v46, %v4618_v18  ;;  %v4717_v13 = vadd.f32 %v3558_v58, %v4621_v60 }
 0x1da   : > { %v3559_v53 = vpop.f32.mrb[112].mxu1  ;;  %v3649_v24 = vpop.f32.mrb[112].mxu0 }
 0x1db   : > { %v2495_v37 = vadd.f32 %v3649_v24, %v4639_v63  ;;  %v3560_v20 = vpop.f32.mrb[113].mxu1  ;;  %v2486_v31 = vpop.f32.mrb[113].mxu0 }
 0x1dc   : > { %v3561_v56 = vadd.f32 %v3560_v20, %v3559_v53  ;;  %v2487_v43 = vadd.f32 %v2486_v31, %v4627_v52  ;;  %v3562_v18 = vpop.f32.mrb[114].mxu1  ;;  %v3650_v47 = vpop.f32.mrb[114].mxu0 }
 0x1dd   : > { %v2721_v60 = vadd.f32 %v4722_v41, %v2495_v37  ;;  %v2498_v38 = vadd.f32 %v3650_v47, %v4645_v28  ;;  %v3563_v14 = vpop.f32.mrb[115].mxu1  ;;  %v2489_v48 = vpop.f32.mrb[115].mxu0 }
 0x1de   : > { %v2719_v63 = vadd.f32 %v4722_v41, %v2487_v43  ;;  %v3564_v2 = vadd.f32 %v3563_v14, %v3562_v18  ;;  %v2490_v52 = vadd.f32 %v2489_v48, %v4633_v12  ;;  %v4737_v35 = vadd.f32 %v3561_v56, %v4624_v34 }
 0x1df   : > { %v2753_v28 = vmax.f32 %v2721_v60, 0.0  ;;  %v2722_v57 = vadd.f32 %v4722_v41, %v2498_v38 }
 0x1e0   : > { %v2751_v49 = vmax.f32 %v2719_v63, 0.0  ;;  %v2720_v1 = vadd.f32 %v4722_v41, %v2490_v52  ;;  %v4742_v36 = vadd.f32 %v3564_v2, %v4630_v54 }
 0x1e1   : > { %2785 = vst [vmem:[%s4732_s9 + $0x10] sm:$0xff] %v2753_v28  ;;  %v2754_v59 = vmax.f32 %v2722_v57, 0.0 }
 0x1e2   : > { %2783 = vst [vmem:[%s4732_s9] sm:$0xff] %v2751_v49  ;;  %v2752_v61 = vmax.f32 %v2720_v1, 0.0  ;;  %v3565_v23 = vpop.f32.mrb[116].mxu1  ;;  %v3653_v4 = vpop.f32.mrb[116].mxu0 }
 0x1e3   : > { %2786 = vst [vmem:[%s4732_s9 + $0x18] sm:$0xff] %v2754_v59  ;;  %v2511_v34 = vadd.f32 %v3653_v4, %v4663_v33  ;;  %v3566_v12 = vpop.f32.mrb[117].mxu1  ;;  %v2502_v6 = vpop.f32.mrb[117].mxu0 }
 0x1e4   : > { %2784 = vst [vmem:[%s4732_s9 + $0x8] sm:$0xff] %v2752_v61  ;;  %v3567_v3 = vadd.f32 %v3566_v12, %v3565_v23  ;;  %v2503_v0 = vadd.f32 %v2502_v6, %v4651_v25  ;;  %v3568_v8 = vpop.f32.mrb[118].mxu1  ;;  %v3654_v15 = vpop.f32.mrb[118].mxu0 }
 0x1e5   : > { %v2725_v54 = vadd.f32 %v4722_v41, %v2511_v34  ;;  %v2514_v32 = vadd.f32 %v3654_v15, %v4669_v10  ;;  %v3569_v46 = vpop.f32.mrb[119].mxu1  ;;  %v2505_v58 = vpop.f32.mrb[119].mxu0 }
 0x1e6   : > { %v2723_v53 = vadd.f32 %v4722_v41, %v2503_v0  ;;  %v3570_v33 = vadd.f32 %v3569_v46, %v3568_v8  ;;  %v2506_v24 = vadd.f32 %v2505_v58, %v4657_v44  ;;  %v4755_v37 = vadd.f32 %v3567_v3, %v4636_v45 }
 0x1e7   : > { %v2757_v25 = vmax.f32 %v2725_v54, 0.0  ;;  %v2726_v20 = vadd.f32 %v4722_v41, %v2514_v32 }
 0x1e8   : > { %v2755_v31 = vmax.f32 %v2723_v53, 0.0  ;;  %v2724_v56 = vadd.f32 %v4722_v41, %v2506_v24  ;;  %v4760_v10 = vadd.f32 %v3570_v33, %v4642_v16 }
 0x1e9   : > { %2789 = vst [vmem:[%s4732_s9 + $0x30] sm:$0xff] %v2757_v25  ;;  %v2758_v43 = vmax.f32 %v2726_v20, 0.0 }
 0x1ea   : > { %2787 = vst [vmem:[%s4732_s9 + $0x20] sm:$0xff] %v2755_v31  ;;  %v2756_v18 = vmax.f32 %v2724_v56, 0.0  ;;  %v3571_v47 = vpop.f32.mrb[120].mxu1  ;;  %v3657_v60 = vpop.f32.mrb[120].mxu0 }
 0x1eb   : > { %2790 = vst [vmem:[%s4732_s9 + $0x38] sm:$0xff] %v2758_v43  ;;  %v2527_v45 = vadd.f32 %v3657_v60, %v4687_v17  ;;  %v3572_v44 = vpop.f32.mrb[121].mxu1  ;;  %v2518_v38 = vpop.f32.mrb[121].mxu0 }
 0x1ec   : > { %2788 = vst [vmem:[%s4732_s9 + $0x28] sm:$0xff] %v2756_v18  ;;  %v3573_v14 = vadd.f32 %v3572_v44, %v3571_v47  ;;  %v2519_v48 = vadd.f32 %v2518_v38, %v4675_v55  ;;  %v3574_v63 = vpop.f32.mrb[122].mxu1  ;;  %v3658_v2 = vpop.f32.mrb[122].mxu0 }
 0x1ed   : > { %v2729_v16 = vadd.f32 %v4722_v41, %v2527_v45  ;;  %v2530_v52 = vadd.f32 %v3658_v2, %v4693_v29  ;;  %v3575_v28 = vpop.f32.mrb[123].mxu1  ;;  %v2521_v57 = vpop.f32.mrb[123].mxu0 }
 0x1ee   : > { %v2727_v49 = vadd.f32 %v4722_v41, %v2519_v48  ;;  %v3576_v17 = vadd.f32 %v3575_v28, %v3574_v63  ;;  %v2522_v1 = vadd.f32 %v2521_v57, %v4681_v22  ;;  %v4773_v59 = vadd.f32 %v3573_v14, %v4648_v9 }
 0x1ef   : > { %v2761_v55 = vmax.f32 %v2729_v16, 0.0  ;;  %v2730_v61 = vadd.f32 %v4722_v41, %v2530_v52 }
 0x1f0   : > { %v2759_v23 = vmax.f32 %v2727_v49, 0.0  ;;  %v2728_v4 = vadd.f32 %v4722_v41, %v2522_v1  ;;  %v4778_v29 = vadd.f32 %v3576_v17, %v4654_v11 }
 0x1f1   : > { %2793 = vst [vmem:[%s4732_s9 + $0x50] sm:$0xff] %v2761_v55  ;;  %v2762_v34 = vmax.f32 %v2730_v61, 0.0 }
 0x1f2   : > { %2791 = vst [vmem:[%s4732_s9 + $0x40] sm:$0xff] %v2759_v23  ;;  %v2760_v12 = vmax.f32 %v2728_v4, 0.0  ;;  %v3577_v6 = vpop.f32.mrb[124].mxu1  ;;  %v3661_v3 = vpop.f32.mrb[124].mxu0 }
 0x1f3   : > { %2794 = vst [vmem:[%s4732_s9 + $0x58] sm:$0xff] %v2762_v34  ;;  %v2543_v9 = vadd.f32 %v3661_v3, %v4711_v62  ;;  %v3578_v22 = vpop.f32.mrb[125].mxu1  ;;  %v2534_v0 = vpop.f32.mrb[125].mxu0 }
 0x1f4   : > { %2792 = vst [vmem:[%s4732_s9 + $0x48] sm:$0xff] %v2760_v12  ;;  %v3579_v8 = vadd.f32 %v3578_v22, %v3577_v6  ;;  %v2535_v15 = vadd.f32 %v2534_v0, %v4699_v39  ;;  %v3580_v54 = vpop.f32.mrb[126].mxu1  ;;  %v3662_v32 = vpop.f32.mrb[126].mxu0 }
 0x1f5   : > { %v2733_v11 = vadd.f32 %v4722_v41, %v2543_v9  ;;  %v2546_v46 = vadd.f32 %v3662_v32, %v4717_v13  ;;  %v3581_v58 = vpop.f32.mrb[127].mxu1  ;;  %v2537_v53 = vpop.f32.mrb[127].mxu0 }
 0x1f6   : > { %v2731_v33 = vadd.f32 %v4722_v41, %v2535_v15  ;;  %v3582_v62 = vadd.f32 %v3581_v58, %v3580_v54  ;;  %v2538_v24 = vadd.f32 %v2537_v53, %v4705_v50  ;;  %v2414_v25 = vadd.f32 %v3579_v8, %v4660_v40 }
 0x1f7   : > { %v2765_v39 = vmax.f32 %v2733_v11, 0.0  ;;  %v2734_v20 = vadd.f32 %v4722_v41, %v2546_v46 }
 0x1f8   : > { %v2763_v31 = vmax.f32 %v2731_v33, 0.0  ;;  %v2732_v56 = vadd.f32 %v4722_v41, %v2538_v24  ;;  %v2417_v43 = vadd.f32 %v3582_v62, %v4666_v21 }
 0x1f9   : > { %2797 = vst [vmem:[%s4732_s9 + $0x70] sm:$0xff] %v2765_v39  ;;  %v2766_v13 = vmax.f32 %v2734_v20, 0.0 }
 0x1fa   : > { %2795 = vst [vmem:[%s4732_s9 + $0x60] sm:$0xff] %v2763_v31  ;;  %v2764_v18 = vmax.f32 %v2732_v56, 0.0  ;;  %v3583_v47 = vpop.f32.mrb[128].mxu1  ;;  %v3665_v60 = vpop.f32.mrb[128].mxu0 }
 0x1fb   : > { %2798 = vst [vmem:[%s4732_s9 + $0x78] sm:$0xff] %v2766_v13  ;;  %v2559_v50 = vadd.f32 %v3665_v60, %v4755_v37  ;;  %v3584_v45 = vpop.f32.mrb[129].mxu1  ;;  %v2550_v40 = vpop.f32.mrb[129].mxu0 }
 0x1fc   : > { %2796 = vst [vmem:[%s4732_s9 + $0x68] sm:$0xff] %v2764_v18  ;;  %v3585_v44 = vadd.f32 %v3584_v45, %v3583_v47  ;;  %v2551_v38 = vadd.f32 %v2550_v40, %v4737_v35  ;;  %v3586_v14 = vpop.f32.mrb[130].mxu1  ;;  %v3666_v48 = vpop.f32.mrb[130].mxu0 }
 0x1fd   : > { %v2737_v21 = vadd.f32 %v4722_v41, %v2559_v50  ;;  %v2562_v63 = vadd.f32 %v3666_v48, %v4760_v10  ;;  %v3587_v2 = vpop.f32.mrb[131].mxu1  ;;  %v2553_v16 = vpop.f32.mrb[131].mxu0 }
 0x1fe   : > { %v2735_v52 = vadd.f32 %v4722_v41, %v2551_v38  ;;  %v3588_v37 = vadd.f32 %v3587_v2, %v3586_v14  ;;  %v2554_v28 = vadd.f32 %v2553_v16, %v4742_v36  ;;  %v2422_v57 = vadd.f32 %v3585_v44, %v4672_v30 }
 0x1ff   : > { %v2769_v35 = vmax.f32 %v2737_v21, 0.0  ;;  %v2738_v49 = vadd.f32 %v4722_v41, %v2562_v63 }
 0x200   : > { %v2767_v17 = vmax.f32 %v2735_v52, 0.0  ;;  %v2736_v1 = vadd.f32 %v4722_v41, %v2554_v28  ;;  %v2425_v55 = vadd.f32 %v3588_v37, %v4678_v19 }
 0x201   : > { %2801 = vst [vmem:[%s4732_s9 + $0x90] sm:$0xff] %v2769_v35  ;;  %v2770_v10 = vmax.f32 %v2738_v49, 0.0 }
 0x202   : > { %2799 = vst [vmem:[%s4732_s9 + $0x80] sm:$0xff] %v2767_v17  ;;  %v2768_v61 = vmax.f32 %v2736_v1, 0.0  ;;  %v3589_v23 = vpop.f32.mrb[132].mxu1  ;;  %v3669_v4 = vpop.f32.mrb[132].mxu0 }
 0x203   : > { %2802 = vst [vmem:[%s4732_s9 + $0x98] sm:$0xff] %v2770_v10  ;;  %v2575_v34 = vadd.f32 %v3669_v4, %v2414_v25  ;;  %v3590_v36 = vpop.f32.mrb[133].mxu1  ;;  %v2566_v12 = vpop.f32.mrb[133].mxu0 }
 0x204   : > { %2800 = vst [vmem:[%s4732_s9 + $0x88] sm:$0xff] %v2768_v61  ;;  %v3591_v30 = vadd.f32 %v3590_v36, %v3589_v23  ;;  %v2567_v6 = vadd.f32 %v2566_v12, %v4773_v59  ;;  %v3592_v3 = vpop.f32.mrb[134].mxu1  ;;  %v3670_v9 = vpop.f32.mrb[134].mxu0 }
 0x205   : > { %v2741_v19 = vadd.f32 %v4722_v41, %v2575_v34  ;;  %v2578_v22 = vadd.f32 %v3670_v9, %v2417_v43  ;;  %v3593_v0 = vpop.f32.mrb[135].mxu1  ;;  %v2569_v8 = vpop.f32.mrb[135].mxu0 }
 0x206   : > { %v2739_v15 = vadd.f32 %v4722_v41, %v2567_v6  ;;  %v3594_v54 = vadd.f32 %v3593_v0, %v3592_v3  ;;  %v2570_v32 = vadd.f32 %v2569_v8, %v4778_v29  ;;  %v2430_v11 = vadd.f32 %v3591_v30, %v4684_v27 }
 0x207   : > { %v2773_v46 = vmax.f32 %v2741_v19, 0.0  ;;  %v2742_v59 = vadd.f32 %v4722_v41, %v2578_v22 }
 0x208   : > { %v2771_v58 = vmax.f32 %v2739_v15, 0.0  ;;  %v2740_v53 = vadd.f32 %v4722_v41, %v2570_v32  ;;  %v2433_v33 = vadd.f32 %v3594_v54, %v4690_v42 }
 0x209   : > { %2805 = vst [vmem:[%s4732_s9 + $0xb0] sm:$0xff] %v2773_v46  ;;  %v2774_v62 = vmax.f32 %v2742_v59, 0.0 }
 0x20a   : > { %2803 = vst [vmem:[%s4732_s9 + $0xa0] sm:$0xff] %v2771_v58  ;;  %v2772_v24 = vmax.f32 %v2740_v53, 0.0  ;;  %v3595_v25 = vpop.f32.mrb[136].mxu1  ;;  %v3673_v39 = vpop.f32.mrb[136].mxu0 }
 0x20b   : > { %2806 = vst [vmem:[%s4732_s9 + $0xb8] sm:$0xff] %v2774_v62  ;;  %v2591_v20 = vadd.f32 %v3673_v39, %v2430_v11  ;;  %v3596_v29 = vpop.f32.mrb[137].mxu1  ;;  %v2582_v31 = vpop.f32.mrb[137].mxu0 }
 0x20c   : > { %2804 = vst [vmem:[%s4732_s9 + $0xa8] sm:$0xff] %v2772_v24  ;;  %v3597_v27 = vadd.f32 %v3596_v29, %v3595_v25  ;;  %v2583_v56 = vadd.f32 %v2582_v31, %v2422_v57  ;;  %v3598_v43 = vpop.f32.mrb[138].mxu1  ;;  %v3674_v13 = vpop.f32.mrb[138].mxu0 }
 0x20d   : > { %v2745_v18 = vadd.f32 %v4722_v41, %v2591_v20  ;;  %v2594_v42 = vadd.f32 %v3674_v13, %v2433_v33  ;;  %v3599_v47 = vpop.f32.mrb[139].mxu1  ;;  %v2585_v60 = vpop.f32.mrb[139].mxu0 }
 0x20e   : > { %v2743_v50 = vadd.f32 %v4722_v41, %v2583_v56  ;;  %v3600_v45 = vadd.f32 %v3599_v47, %v3598_v43  ;;  %v2586_v40 = vadd.f32 %v2585_v60, %v2425_v55  ;;  %v2438_v44 = vadd.f32 %v3597_v27, %v4696_v51 }
 0x20f   : > { %v2777_v38 = vmax.f32 %v2745_v18, 0.0  ;;  %v2746_v14 = vadd.f32 %v4722_v41, %v2594_v42 }
 0x210   : > { %v2775_v48 = vmax.f32 %v2743_v50, 0.0  ;;  %v2744_v21 = vadd.f32 %v4722_v41, %v2586_v40  ;;  %v2441_v63 = vadd.f32 %v3600_v45, %v4702_v7 }
 0x211   : > { %2809 = vst [vmem:[%s4732_s9 + $0xd0] sm:$0xff] %v2777_v38  ;;  %v2778_v2 = vmax.f32 %v2746_v14, 0.0 }
 0x212   : > { %2807 = vst [vmem:[%s4732_s9 + $0xc0] sm:$0xff] %v2775_v48  ;;  %v2776_v16 = vmax.f32 %v2744_v21, 0.0  ;;  %v3601_v52 = vpop.f32.mrb[140].mxu1  ;;  %v3677_v37 = vpop.f32.mrb[140].mxu0 }
 0x213   : > { %2810 = vst [vmem:[%s4732_s9 + $0xd8] sm:$0xff] %v2778_v2  ;;  %v3602_v28 = vpop.f32.mrb[141].mxu1  ;;  %v2598_v57 = vpop.f32.mrb[141].mxu0 }
 0x214   : > { %2808 = vst [vmem:[%s4732_s9 + $0xc8] sm:$0xff] %v2776_v16  ;;  %v3603_v51 = vadd.f32 %v3602_v28, %v3601_v52  ;;  %v2599_v35 = vadd.f32 %v2598_v57, %v2438_v44  ;;  %v3604_v49 = vpop.f32.mrb[142].mxu1  ;;  %v3678_v17 = vpop.f32.mrb[142].mxu0 }
 0x215   : > { %v3605_v1 = vpop.f32.mrb[143].mxu1  ;;  %v2601_v55 = vpop.f32.mrb[143].mxu0 }
 0x216   : > { %v2446_v7 = vadd.f32 %v3603_v51, %v4708_v5  ;;  %v2747_v10 = vadd.f32 %v4722_v41, %v2599_v35  ;;  %v3606_v61 = vadd.f32 %v3605_v1, %v3604_v49  ;;  %v2602_v23 = vadd.f32 %v2601_v55, %v2441_v63 }
 0x218   : > { %v2607_v4 = vadd.f32 %v3677_v37, %v2446_v7  ;;  %v2779_v34 = vmax.f32 %v2747_v10, 0.0  ;;  %v2449_v36 = vadd.f32 %v3606_v61, %v4714_v26  ;;  %v2748_v12 = vadd.f32 %v4722_v41, %v2602_v23 }
 0x21a   : > { %v2749_v30 = vadd.f32 %v4722_v41, %v2607_v4  ;;  %2811 = vst [vmem:[%s4732_s9 + $0xe0] sm:$0xff] %v2779_v34  ;;  %v2610_v6 = vadd.f32 %v3678_v17, %v2449_v36  ;;  %v2780_v3 = vmax.f32 %v2748_v12, 0.0 }
 0x21c   : > { %v2781_v9 = vmax.f32 %v2749_v30, 0.0  ;;  %v2750_v19 = vadd.f32 %v4722_v41, %v2610_v6  ;;  %2812 = vst [vmem:[%s4732_s9 + $0xe8] sm:$0xff] %v2780_v3 }
 0x21e   : > { %2813 = vst [vmem:[%s4732_s9 + $0xf0] sm:$0xff] %v2781_v9  ;;  %v2782_v5 = vmax.f32 %v2750_v19, 0.0 }
 0x220   : > { %2814 = vst [vmem:[%s4732_s9 + $0xf8] sm:$0xff] %v2782_v5 }
 0x221 PF: > { %s13_s14 = sadd.s32 1, %s4022_s14   ;;  %s4857_s12 = smov %s4018_s13 }
 0x222   : > { %p10_p5 = scmp.ge.s32.totalorder %s13_s14, 4   ;;  %s4858_s13 = smov %s4860_s15 }
 0x224   :  { %12 = sbr.rel (!%p10_p5) target bundleno = 2 (0x2), region = 76 }

// kernel: dsamnet_forward.25
= control target key start
LH: loop header
LB: loop body
LE: loop exit
PB: predicated region body
PF: predicated region fallthrough
CT: control target
= control target key end

     0   :  { %s1897_s12 = smov 0   ;;  %s1899_s13 = smov 0   ;;  %s2151_s0 = inlined_call_operand.vmem [shape: bf16[512,384], index: 0, kind: input, shape index: {}]   ;;  %s2152_s1 = inlined_call_operand.vmem [shape: bf16[384,128], index: 1, kind: input, shape index: {}]   ;;  %s2153_s2 = inlined_call_operand.vmem [shape: f32[1,128], index: 2, kind: input, shape index: {}]   ;;  %s2154_s3 = inlined_call_operand.vmem [shape: f32[512,128], index: 3, kind: output, shape index: {}]  }
   0x1   :  { %s1901_s14 = smov 0  }
   0x2 LB: > { %s32_s15 = sadd.s32 1, %s1871_s13  ;;  %p1460_p0 = scmp.ge.s32.totalorder %s1875_s14, 1  ;;  %s1875_s14 = sphi %s1901_s14, %s13_s14   ;;  %s1871_s13 = sphi %s1899_s13, %s2156_s13   ;;  %s1867_s12 = sphi %s1897_s12, %s2155_s12  }
   0x3   : > { %p34_p1 = scmp.ge.s32.totalorder %s32_s15, 2  ;;  %p191_p2 = scmp.lt.s32.totalorder %s1875_s14, 3 }
   0x5   : > { %s2158_s15 = smov (%p34_p1, %s32_s15), 0  ;;  %p192_p3 = pnand %p1460_p0, %p191_p2 }
   0x6   : > { %v1765_v0 = vld [vmem:[%s2152_s1 + $0x40] sm:$0xff] (!%p192_p3)   ;;  %s1461_s18 = sshll.u32 (!%p192_p3), %s1867_s12, 5  ;;  %v1767_v2 = vld [vmem:[%s2152_s1 + $0x48] sm:$0xff] (!%p192_p3)   ;;  %v1769_v4 = vld [vmem:[%s2152_s1 + $0x50] sm:$0xff] (!%p192_p3)  }
   0x7   : > { %195 = sbr.rel (%p192_p3) target bundleno = 349 (0x15d), region = 32  ;;  %v1766_v1 = vld [vmem:[%s2152_s1] sm:$0xff] (!%p192_p3)   ;;  %1540 = vmatprep.subr.bf16.mxu0 (!%p192_p3), %v1765_v0  ;;  %1724 = vmatprep.subr.bf16.mxu1 (!%p192_p3), %v1765_v0  ;;  %p236_p4 = scmp.lt.s32.totalorder (!%p192_p3), %s1461_s18, 63  ;;  %v1768_v3 = vld [vmem:[%s2152_s1 + $0x8] sm:$0xff] (!%p192_p3)   ;;  %v1770_v5 = vld [vmem:[%s2152_s1 + $0x10] sm:$0xff] (!%p192_p3)  }
   0x8   : > { %1541 = vmatpush3.bf16.msra.mxu0 (!%p192_p3), %v1766_v1  ;;  %1732 = vmatpush3.bf16.msra.mxu1 (!%p192_p3), %v1766_v1  ;;  %v1771_v6 = vld [vmem:[%s2152_s1 + $0x58] sm:$0xff] (!%p192_p3)   ;;  %v1773_v8 = vld [vmem:[%s2152_s1 + $0x60] sm:$0xff] (!%p192_p3)   ;;  %v1775_v10 = vld [vmem:[%s2152_s1 + $0x68] sm:$0xff] (!%p192_p3)  }
   0x9   : > { %1542 = vmatprep.subr.bf16.mxu0 (!%p192_p3), %v1767_v2  ;;  %1725 = vmatprep.subr.bf16.mxu1 (!%p192_p3), %v1767_v2  ;;  %v1772_v7 = vld [vmem:[%s2152_s1 + $0x18] sm:$0xff] (!%p192_p3)   ;;  %v1774_v9 = vld [vmem:[%s2152_s1 + $0x20] sm:$0xff] (!%p192_p3)   ;;  %v1776_v13 = vld [vmem:[%s2152_s1 + $0x28] sm:$0xff] (!%p192_p3)  }
   0xa   : > { %v1777_v14 = vld [vmem:[%s2152_s1 + $0x70] sm:$0xff] (!%p192_p3)   ;;  %v1779_v16 = vld [vmem:[%s2152_s1 + $0x78] sm:$0xff] (!%p192_p3)   ;;  %v1787_v18 = vld [vmem:[%s2152_s1 + $0x80] sm:$0xff] (!%p192_p3)  }
   0xb   : > { %v1778_v15 = vld [vmem:[%s2152_s1 + $0x30] sm:$0xff] (!%p192_p3)   ;;  %v1780_v17 = vld [vmem:[%s2152_s1 + $0x38] sm:$0xff] (!%p192_p3)   ;;  %v1788_v22 = vld [vmem:[%s2152_s1 + $0x88] sm:$0xff] (!%p192_p3)  }
   0xc   : > { %1543 = vmatpush3.bf16.msra.mxu0 (!%p192_p3), %v1768_v3  ;;  %1733 = vmatpush3.bf16.msra.mxu1 (!%p192_p3), %v1768_v3  ;;  %v1795_v25 = vld [vmem:[%s2152_s1 + $0x90] sm:$0xff] (!%p192_p3)   ;;  %v1796_v27 = vld [vmem:[%s2152_s1 + $0x98] sm:$0xff] (!%p192_p3)   ;;  %v1803_v30 = vld [vmem:[%s2152_s1 + $0xa0] sm:$0xff] (!%p192_p3)  }
   0xd   : > { %1544 = vmatprep.subr.bf16.mxu0 (!%p192_p3), %v1769_v4  ;;  %1726 = vmatprep.subr.bf16.mxu1 (!%p192_p3), %v1769_v4  ;;  %v1804_v33 = vld [vmem:[%s2152_s1 + $0xa8] sm:$0xff] (!%p192_p3)   ;;  %v1811_v36 = vld [vmem:[%s2152_s1 + $0xb0] sm:$0xff] (!%p192_p3)   ;;  %v1812_v40 = vld [vmem:[%s2152_s1 + $0xb8] sm:$0xff] (!%p192_p3)  }
   0xe   : > { %s2160_s18 = smov (!%p236_p4, %s1461_s18), 63 }
   0xf   : > { %s1740_s4 = smul.u32 12, %s2160_s18 }
  0x10   : > { %1545 = vmatpush3.bf16.msra.mxu0 %v1770_v5  ;;  %1734 = vmatpush3.bf16.msra.mxu1 %v1770_v5 }
  0x11   : > { %1546 = vmatprep.subr.bf16.mxu0 %v1771_v6  ;;  %1727 = vmatprep.subr.bf16.mxu1 %v1771_v6  ;;  %s1948_s11 = scalar_lea.vmem %s2151_s0, %s1740_s4 }
  0x12   : > { %v1783_v11 = vld [vmem:[%s1948_s11 + $0x4] ss:$12 sps:$4 sm:$0xff]   ;;  %v1781_v19 = vld [vmem:[%s1948_s11] ss:$12 sps:$4 sm:$0xff]   ;;  %v1789_v21 = vld [vmem:[%s1948_s11 + $0x1c] ss:$12 sps:$4 sm:$0xff]  }
  0x13   : > { %v1786_v12 = vld [vmem:[%s1948_s11 + $0x124] ss:$12 sps:$4 sm:$0xff]   ;;  %880 = vmatprep.mubr.bf16.mxu0 %v1783_v11  ;;  %v1784_v20 = vld [vmem:[%s1948_s11 + $0x120] ss:$12 sps:$4 sm:$0xff]   ;;  %v1791_v23 = vld [vmem:[%s1948_s11 + $0x13c] ss:$12 sps:$4 sm:$0xff]  }
  0x14   : > { %1547 = vmatpush3.bf16.msra.mxu0 %v1772_v7  ;;  %1735 = vmatpush3.bf16.msra.mxu1 %v1772_v7  ;;  %v1793_v24 = vld [vmem:[%s1948_s11 + $0x18] ss:$12 sps:$4 sm:$0xff]   ;;  %v1797_v28 = vld [vmem:[%s1948_s11 + $0x34] ss:$12 sps:$4 sm:$0xff]   ;;  %v1801_v31 = vld [vmem:[%s1948_s11 + $0x30] ss:$12 sps:$4 sm:$0xff]  }
  0x15   : > { %1548 = vmatprep.subr.bf16.mxu0 %v1773_v8  ;;  %1728 = vmatprep.subr.bf16.mxu1 %v1773_v8  ;;  %v1794_v26 = vld [vmem:[%s1948_s11 + $0x138] ss:$12 sps:$4 sm:$0xff]   ;;  %v1799_v29 = vld [vmem:[%s1948_s11 + $0x154] ss:$12 sps:$4 sm:$0xff]   ;;  %v1802_v32 = vld [vmem:[%s1948_s11 + $0x150] ss:$12 sps:$4 sm:$0xff]  }
  0x16   : > { %976 = vmatprep.mubr.bf16.mxu1 %v1786_v12  ;;  %v1805_v34 = vld [vmem:[%s1948_s11 + $0x4c] ss:$12 sps:$4 sm:$0xff]   ;;  %v1809_v37 = vld [vmem:[%s1948_s11 + $0x48] ss:$12 sps:$4 sm:$0xff]   ;;  %v1813_v39 = vld [vmem:[%s1948_s11 + $0x64] ss:$12 sps:$4 sm:$0xff]  }
  0x17   : > { %v1807_v35 = vld [vmem:[%s1948_s11 + $0x16c] ss:$12 sps:$4 sm:$0xff]   ;;  %v1810_v38 = vld [vmem:[%s1948_s11 + $0x168] ss:$12 sps:$4 sm:$0xff]   ;;  %v1822_v47 = vld [vmem:[%s1948_s11 + $0x50] ss:$12 sps:$4 sm:$0xff]  }
  0x18   : > { %1549 = vmatpush3.bf16.msra.mxu0 %v1774_v9  ;;  %1736 = vmatpush3.bf16.msra.mxu1 %v1774_v9  ;;  %v1815_v41 = vld [vmem:[%s1948_s11 + $0x8] ss:$12 sps:$4 sm:$0xff]   ;;  %v1816_v42 = vld [vmem:[%s1948_s11 + $0x60] ss:$12 sps:$4 sm:$0xff]   ;;  %v1820_v45 = vld [vmem:[%s1948_s11 + $0x38] ss:$12 sps:$4 sm:$0xff]  }
  0x19   : > { %1550 = vmatprep.subr.bf16.mxu0 %v1775_v10  ;;  %1729 = vmatprep.subr.bf16.mxu1 %v1775_v10  ;;  %v1817_v43 = vld [vmem:[%s1948_s11 + $0x20] ss:$12 sps:$4 sm:$0xff]   ;;  %v1818_v44 = vld [vmem:[%s1948_s11 + $0x7c] ss:$12 sps:$4 sm:$0xff]   ;;  %v1821_v46 = vld [vmem:[%s1948_s11 + $0x78] ss:$12 sps:$4 sm:$0xff]  }
  0x1a   : > { %v1823_v48 = vld [vmem:[%s1948_s11 + $0x94] ss:$12 sps:$4 sm:$0xff]   ;;  %v1826_v50 = vld [vmem:[%s1948_s11 + $0x90] ss:$12 sps:$4 sm:$0xff]   ;;  %v1828_v52 = vld [vmem:[%s1948_s11 + $0xac] ss:$12 sps:$4 sm:$0xff]  }
  0x1b   : > { %v1825_v49 = vld [vmem:[%s1948_s11 + $0x68] ss:$12 sps:$4 sm:$0xff]   ;;  %v1827_v51 = vld [vmem:[%s1948_s11 + $0x80] ss:$12 sps:$4 sm:$0xff]   ;;  %v1830_v53 = vld [vmem:[%s1948_s11 + $0x98] ss:$12 sps:$4 sm:$0xff]  }
  0x1c   : > { %1551 = vmatpush3.bf16.msra.mxu0 %v1776_v13  ;;  %1737 = vmatpush3.bf16.msra.mxu1 %v1776_v13  ;;  %v1831_v54 = vld [vmem:[%s1948_s11 + $0xa8] ss:$12 sps:$4 sm:$0xff]   ;;  %v1832_v55 = vld [vmem:[%s1948_s11 + $0xb0] ss:$12 sps:$4 sm:$0xff]   ;;  %v1836_v58 = vld [vmem:[%s1948_s11 + $0xc0] ss:$12 sps:$4 sm:$0xff]  }
  0x1d   : > { %1552 = vmatprep.subr.bf16.mxu0 %v1777_v14  ;;  %1730 = vmatprep.subr.bf16.mxu1 %v1777_v14  ;;  %v1833_v56 = vld [vmem:[%s1948_s11 + $0xc4] ss:$12 sps:$4 sm:$0xff]   ;;  %v1835_v57 = vld [vmem:[%s1948_s11 + $0xc8] ss:$12 sps:$4 sm:$0xff]   ;;  %v1837_v59 = vld [vmem:[%s1948_s11 + $0xe0] ss:$12 sps:$4 sm:$0xff]  }
  0x1e   : > { %v1838_v60 = vld [vmem:[%s1948_s11 + $0xdc] ss:$12 sps:$4 sm:$0xff]   ;;  %v1840_v61 = vld [vmem:[%s1948_s11 + $0xf8] ss:$12 sps:$4 sm:$0xff]   ;;  %v1843_v0 = vld [vmem:[%s1948_s11 + $0xf4] ss:$12 sps:$4 sm:$0xff]  }
  0x1f   : > { %v1841_v62 = vld [vmem:[%s1948_s11 + $0xd8] ss:$12 sps:$4 sm:$0xff]   ;;  %v1842_v63 = vld [vmem:[%s1948_s11 + $0x110] ss:$12 sps:$4 sm:$0xff]   ;;  %v1845_v1 = vld [vmem:[%s1948_s11 + $0x128] ss:$12 sps:$4 sm:$0xff]  }
  0x20   : > { %1553 = vmatpush3.bf16.msra.mxu0 %v1778_v15  ;;  %1738 = vmatpush3.bf16.msra.mxu1 %v1778_v15  ;;  %v1846_v2 = vld [vmem:[%s1948_s11 + $0xf0] ss:$12 sps:$4 sm:$0xff]   ;;  %v1847_v3 = vld [vmem:[%s1948_s11 + $0x140] ss:$12 sps:$4 sm:$0xff]   ;;  %v1850_v5 = vld [vmem:[%s1948_s11 + $0x158] ss:$12 sps:$4 sm:$0xff]  }
  0x21   : > { %1554 = vmatprep.subr.bf16.mxu0 %v1779_v16  ;;  %1731 = vmatprep.subr.bf16.mxu1 %v1779_v16  ;;  %v1848_v4 = vld [vmem:[%s1948_s11 + $0x10c] ss:$12 sps:$4 sm:$0xff]   ;;  %v1851_v6 = vld [vmem:[%s1948_s11 + $0x108] ss:$12 sps:$4 sm:$0xff]   ;;  %v1852_v7 = vld [vmem:[%s1948_s11 + $0x170] ss:$12 sps:$4 sm:$0xff]  }
  0x22   : > { %s1464_s11 = sshll.u32 %s2160_s18, 3 }
  0x23   : > { %s2068_s28 = scalar_lea.vmem %s2154_s3, %s1464_s11 }
  0x24   : > { %1555 = vmatpush3.bf16.msra.mxu0 %v1780_v17  ;;  %1739 = vmatpush3.bf16.msra.mxu1 %v1780_v17 }
  0x25   : > { %1676 = vmatprep.subr.bf16.mxu1 %v1787_v18 }
  0x27   : > { %881 = vmatmul.mubr.bf16.vlgmr.msra.gmra.mrb[0].mxu0 %v1781_v19  ;;  %977 = vmatmul.mubr.bf16.vlgmr.msra.gmra.mrb[0].mxu1 %v1784_v20 }
  0x28   : > { %1677 = vmatpush3.bf16.msra.mxu1 %v1787_v18  ;;  %888 = vmatprep.mubr.bf16.mxu0 %v1789_v21 }
  0x29   : > { %1678 = vmatprep.subr.bf16.mxu1 %v1788_v22  ;;  %984 = vmatprep.mubr.bf16.mxu1 %v1791_v23 }
  0x2c   : > { %1679 = vmatpush3.bf16.msra.mxu1 %v1788_v22 }
  0x2d   : > { %1680 = vmatprep.subr.bf16.mxu1 %v1795_v25 }
  0x2f   : > { %889 = vmatmul.mubr.bf16.gmra.mrb[4].mxu0 %v1793_v24  ;;  %985 = vmatmul.mubr.bf16.gmra.mrb[4].mxu1 %v1794_v26 }
  0x30   : > { %1681 = vmatpush3.bf16.msra.mxu1 %v1795_v25  ;;  %896 = vmatprep.mubr.bf16.mxu0 %v1797_v28 }
  0x31   : > { %1682 = vmatprep.subr.bf16.mxu1 %v1796_v27  ;;  %992 = vmatprep.mubr.bf16.mxu1 %v1799_v29 }
  0x34   : > { %1683 = vmatpush3.bf16.msra.mxu1 %v1796_v27 }
  0x35   : > { %1684 = vmatprep.subr.bf16.mxu1 %v1803_v30 }
  0x37   : > { %897 = vmatmul.mubr.bf16.gmra.mrb[8].mxu0 %v1801_v31  ;;  %993 = vmatmul.mubr.bf16.gmra.mrb[8].mxu1 %v1802_v32 }
  0x38   : > { %1685 = vmatpush3.bf16.msra.mxu1 %v1803_v30  ;;  %904 = vmatprep.mubr.bf16.mxu0 %v1805_v34 }
  0x39   : > { %1686 = vmatprep.subr.bf16.mxu1 %v1804_v33  ;;  %1000 = vmatprep.mubr.bf16.mxu1 %v1807_v35 }
  0x3c   : > { %1687 = vmatpush3.bf16.msra.mxu1 %v1804_v33 }
  0x3d   : > { %1688 = vmatprep.subr.bf16.mxu1 %v1811_v36 }
  0x3f   : > { %905 = vmatmul.mubr.bf16.gmra.mrb[12].mxu0 %v1809_v37  ;;  %1001 = vmatmul.mubr.bf16.gmra.mrb[12].mxu1 %v1810_v38 }
  0x40   : > { %1689 = vmatpush3.bf16.msra.mxu1 %v1811_v36  ;;  %912 = vmatprep.mubr.bf16.mxu0 %v1813_v39 }
  0x41   : > { %1690 = vmatprep.subr.bf16.mxu1 %v1812_v40  ;;  %1692 = vmatprep.mubr.bf16.mxu1 %v1815_v41 }
  0x44   : > { %1691 = vmatpush3.bf16.msra.mxu1 %v1812_v40 }
  0x47   : > { %913 = vmatmul.mubr.bf16.gmra.mrb[16].mxu0 %v1816_v42  ;;  %1693 = vmatmul.mubr.bf16.vlgmr.msra.gmra.mrb[16].mxu1 %v1817_v43 }
  0x48   : > { %920 = vmatprep.mubr.bf16.mxu0 %v1818_v44  ;;  %1696 = vmatprep.mubr.bf16.mxu1 %v1820_v45 }
  0x4f   : > { %921 = vmatmul.mubr.bf16.gmra.mrb[20].mxu0 %v1821_v46  ;;  %1697 = vmatmul.mubr.bf16.gmra.mrb[20].mxu1 %v1822_v47 }
  0x50   : > { %928 = vmatprep.mubr.bf16.mxu0 %v1823_v48  ;;  %1700 = vmatprep.mubr.bf16.mxu1 %v1825_v49 }
  0x57   : > { %929 = vmatmul.mubr.bf16.gmra.mrb[24].mxu0 %v1826_v50  ;;  %1701 = vmatmul.mubr.bf16.gmra.mrb[24].mxu1 %v1827_v51 }
  0x58   : > { %936 = vmatprep.mubr.bf16.mxu0 %v1828_v52  ;;  %1704 = vmatprep.mubr.bf16.mxu1 %v1830_v53 }
  0x5f   : > { %937 = vmatmul.mubr.bf16.gmra.mrb[28].mxu0 %v1831_v54  ;;  %1705 = vmatmul.mubr.bf16.gmra.mrb[28].mxu1 %v1832_v55 }
  0x60   : > { %944 = vmatprep.mubr.bf16.mxu0 %v1833_v56  ;;  %1708 = vmatprep.mubr.bf16.mxu1 %v1835_v57 }
  0x67   : > { %945 = vmatmul.mubr.bf16.gmra.mrb[32].mxu0 %v1836_v58  ;;  %1709 = vmatmul.mubr.bf16.gmra.mrb[32].mxu1 %v1837_v59  ;;  %v2063_v58 = vld [vmem:[%s2153_s2] ss:$0 sm:$0xff] }
  0x68   : > { %952 = vmatprep.mubr.bf16.mxu0 %v1838_v60  ;;  %1712 = vmatprep.mubr.bf16.mxu1 %v1840_v61 }
  0x6f   : > { %953 = vmatmul.mubr.bf16.gmra.mrb[36].mxu0 %v1841_v62  ;;  %1713 = vmatmul.mubr.bf16.gmra.mrb[36].mxu1 %v1842_v63 }
  0x70   : > { %960 = vmatprep.mubr.bf16.mxu0 %v1843_v0  ;;  %1716 = vmatprep.mubr.bf16.mxu1 %v1845_v1 }
  0x77   : > { %961 = vmatmul.mubr.bf16.gmra.mrb[40].mxu0 %v1846_v2  ;;  %1717 = vmatmul.mubr.bf16.gmra.mrb[40].mxu1 %v1847_v3 }
  0x78   : > { %968 = vmatprep.mubr.bf16.mxu0 %v1848_v4  ;;  %1720 = vmatprep.mubr.bf16.mxu1 %v1850_v5 }
  0x7f   : > { %969 = vmatmul.mubr.bf16.gmra.mrb[44].mxu0 %v1851_v6  ;;  %1721 = vmatmul.mubr.bf16.gmra.mrb[44].mxu1 %v1852_v7 }
  0xfa   : > { %v1556_v8 = vpop.f32.mrb[0].mxu0  ;;  %v1628_v9 = vpop.f32.mrb[0].mxu1 }
  0xfb   : > { %v1557_v10 = vpop.f32.mrb[1].mxu0  ;;  %v1629_v11 = vpop.f32.mrb[1].mxu1 }
  0xfc   : > { %v1558_v12 = vadd.f32 %v1557_v10, %v1556_v8  ;;  %v2043_v13 = vadd.f32 %v1629_v11, %v1628_v9  ;;  %v1559_v14 = vpop.f32.mrb[2].mxu0  ;;  %v1631_v15 = vpop.f32.mrb[2].mxu1 }
  0xfd   : > { %v1560_v16 = vpop.f32.mrb[3].mxu0  ;;  %v1632_v17 = vpop.f32.mrb[3].mxu1 }
  0xfe   : > { %v1561_v18 = vadd.f32 %v1560_v16, %v1559_v14  ;;  %v2045_v19 = vadd.f32 %v1632_v17, %v1631_v15 }
 0x102   : > { %v1562_v20 = vpop.f32.mrb[4].mxu0  ;;  %v1634_v21 = vpop.f32.mrb[4].mxu1 }
 0x103   : > { %v1563_v22 = vpop.f32.mrb[5].mxu0  ;;  %v1635_v23 = vpop.f32.mrb[5].mxu1 }
 0x104   : > { %v1564_v24 = vadd.f32 %v1563_v22, %v1562_v20  ;;  %v2047_v25 = vadd.f32 %v1635_v23, %v1634_v21  ;;  %v1565_v26 = vpop.f32.mrb[6].mxu0  ;;  %v1637_v27 = vpop.f32.mrb[6].mxu1 }
 0x105   : > { %v1566_v28 = vpop.f32.mrb[7].mxu0  ;;  %v1638_v29 = vpop.f32.mrb[7].mxu1 }
 0x106   : > { %v1567_v30 = vadd.f32 %v1566_v28, %v1565_v26  ;;  %v2049_v31 = vadd.f32 %v1638_v29, %v1637_v27 }
 0x10a   : > { %v1568_v32 = vpop.f32.mrb[8].mxu0  ;;  %v1640_v33 = vpop.f32.mrb[8].mxu1 }
 0x10b   : > { %v1569_v34 = vpop.f32.mrb[9].mxu0  ;;  %v1641_v35 = vpop.f32.mrb[9].mxu1 }
 0x10c   : > { %v1570_v36 = vadd.f32 %v1569_v34, %v1568_v32  ;;  %v2051_v37 = vadd.f32 %v1641_v35, %v1640_v33  ;;  %v1571_v38 = vpop.f32.mrb[10].mxu0  ;;  %v1643_v39 = vpop.f32.mrb[10].mxu1 }
 0x10d   : > { %v1572_v40 = vpop.f32.mrb[11].mxu0  ;;  %v1644_v41 = vpop.f32.mrb[11].mxu1 }
 0x10e   : > { %v1573_v42 = vadd.f32 %v1572_v40, %v1571_v38  ;;  %v2053_v43 = vadd.f32 %v1644_v41, %v1643_v39 }
 0x112   : > { %v1574_v44 = vpop.f32.mrb[12].mxu0  ;;  %v1646_v45 = vpop.f32.mrb[12].mxu1 }
 0x113   : > { %v1575_v46 = vpop.f32.mrb[13].mxu0  ;;  %v1647_v47 = vpop.f32.mrb[13].mxu1 }
 0x114   : > { %v1576_v48 = vadd.f32 %v1575_v46, %v1574_v44  ;;  %v2055_v49 = vadd.f32 %v1647_v47, %v1646_v45  ;;  %v1577_v50 = vpop.f32.mrb[14].mxu0  ;;  %v1649_v51 = vpop.f32.mrb[14].mxu1 }
 0x115   : > { %v1578_v52 = vpop.f32.mrb[15].mxu0  ;;  %v1650_v53 = vpop.f32.mrb[15].mxu1 }
 0x116   : > { %v1579_v54 = vadd.f32 %v1578_v52, %v1577_v50  ;;  %v2057_v55 = vadd.f32 %v1650_v53, %v1649_v51 }
 0x11a   : > { %v1580_v56 = vpop.f32.mrb[16].mxu0  ;;  %v1694_v57 = vpop.f32.mrb[16].mxu1 }
 0x11b   : > { %v1052_v59 = vadd.f32 %v1694_v57, %v1564_v24  ;;  %v1581_v60 = vpop.f32.mrb[17].mxu0  ;;  %v1043_v61 = vpop.f32.mrb[17].mxu1 }
 0x11c   : > { %v1582_v62 = vadd.f32 %v1581_v60, %v1580_v56  ;;  %v1044_v63 = vadd.f32 %v1558_v12, %v1043_v61  ;;  %v1583_v0 = vpop.f32.mrb[18].mxu0  ;;  %v1695_v1 = vpop.f32.mrb[18].mxu1 }
 0x11d   : > { %v1278_v2 = vadd.f32 %v2063_v58, %v1052_v59  ;;  %v1055_v3 = vadd.f32 %v1695_v1, %v1567_v30  ;;  %v1584_v4 = vpop.f32.mrb[19].mxu0  ;;  %v1046_v5 = vpop.f32.mrb[19].mxu1 }
 0x11e   : > { %v1276_v6 = vadd.f32 %v2063_v58, %v1044_v63  ;;  %v1585_v7 = vadd.f32 %v1584_v4, %v1583_v0  ;;  %v1047_v8 = vadd.f32 %v1561_v18, %v1046_v5 }
 0x11f   : > { %1310 = vst [vmem:[%s2068_s28 + $0x10] sm:$0xff] %v1278_v2  ;;  %v1279_v9 = vadd.f32 %v2063_v58, %v1055_v3 }
 0x120   : > { %1308 = vst [vmem:[%s2068_s28] sm:$0xff] %v1276_v6  ;;  %v1277_v10 = vadd.f32 %v2063_v58, %v1047_v8 }
 0x121   : > { %1311 = vst [vmem:[%s2068_s28 + $0x18] sm:$0xff] %v1279_v9 }
 0x122   : > { %1309 = vst [vmem:[%s2068_s28 + $0x8] sm:$0xff] %v1277_v10  ;;  %v1586_v11 = vpop.f32.mrb[20].mxu0  ;;  %v1698_v12 = vpop.f32.mrb[20].mxu1 }
 0x123   : > { %v1068_v14 = vadd.f32 %v1698_v12, %v1576_v48  ;;  %v1587_v15 = vpop.f32.mrb[21].mxu0  ;;  %v1059_v16 = vpop.f32.mrb[21].mxu1 }
 0x124   : > { %v1588_v17 = vadd.f32 %v1587_v15, %v1586_v11  ;;  %v1060_v20 = vadd.f32 %v1570_v36, %v1059_v16  ;;  %v1589_v18 = vpop.f32.mrb[22].mxu0  ;;  %v1699_v21 = vpop.f32.mrb[22].mxu1 }
 0x125   : > { %v1282_v22 = vadd.f32 %v2063_v58, %v1068_v14  ;;  %v1071_v23 = vadd.f32 %v1699_v21, %v1579_v54  ;;  %v1590_v24 = vpop.f32.mrb[23].mxu0  ;;  %v1062_v26 = vpop.f32.mrb[23].mxu1 }
 0x126   : > { %v1280_v27 = vadd.f32 %v2063_v58, %v1060_v20  ;;  %v1591_v28 = vadd.f32 %v1590_v24, %v1589_v18  ;;  %v1063_v29 = vadd.f32 %v1573_v42, %v1062_v26 }
 0x127   : > { %1314 = vst [vmem:[%s2068_s28 + $0x30] sm:$0xff] %v1282_v22  ;;  %v1283_v30 = vadd.f32 %v2063_v58, %v1071_v23 }
 0x128   : > { %1312 = vst [vmem:[%s2068_s28 + $0x20] sm:$0xff] %v1280_v27  ;;  %v1281_v32 = vadd.f32 %v2063_v58, %v1063_v29 }
 0x129   : > { %1315 = vst [vmem:[%s2068_s28 + $0x38] sm:$0xff] %v1283_v30 }
 0x12a   : > { %1313 = vst [vmem:[%s2068_s28 + $0x28] sm:$0xff] %v1281_v32  ;;  %v1592_v33 = vpop.f32.mrb[24].mxu0  ;;  %v1702_v34 = vpop.f32.mrb[24].mxu1 }
 0x12b   : > { %v1084_v35 = vadd.f32 %v1702_v34, %v1588_v17  ;;  %v1593_v36 = vpop.f32.mrb[25].mxu0  ;;  %v1075_v38 = vpop.f32.mrb[25].mxu1 }
 0x12c   : > { %v1594_v39 = vadd.f32 %v1593_v36, %v1592_v33  ;;  %v1076_v40 = vadd.f32 %v1582_v62, %v1075_v38  ;;  %v1595_v41 = vpop.f32.mrb[26].mxu0  ;;  %v1703_v42 = vpop.f32.mrb[26].mxu1 }
 0x12d   : > { %v1286_v44 = vadd.f32 %v2063_v58, %v1084_v35  ;;  %v1087_v45 = vadd.f32 %v1703_v42, %v1591_v28  ;;  %v1596_v46 = vpop.f32.mrb[27].mxu0  ;;  %v1078_v47 = vpop.f32.mrb[27].mxu1 }
 0x12e   : > { %v1284_v48 = vadd.f32 %v2063_v58, %v1076_v40  ;;  %v1597_v50 = vadd.f32 %v1596_v46, %v1595_v41  ;;  %v1079_v51 = vadd.f32 %v1585_v7, %v1078_v47 }
 0x12f   : > { %1318 = vst [vmem:[%s2068_s28 + $0x50] sm:$0xff] %v1286_v44  ;;  %v1287_v52 = vadd.f32 %v2063_v58, %v1087_v45 }
 0x130   : > { %1316 = vst [vmem:[%s2068_s28 + $0x40] sm:$0xff] %v1284_v48  ;;  %v1285_v53 = vadd.f32 %v2063_v58, %v1079_v51 }
 0x131   : > { %1319 = vst [vmem:[%s2068_s28 + $0x58] sm:$0xff] %v1287_v52 }
 0x132   : > { %1317 = vst [vmem:[%s2068_s28 + $0x48] sm:$0xff] %v1285_v53  ;;  %v1598_v54 = vpop.f32.mrb[28].mxu0  ;;  %v1706_v56 = vpop.f32.mrb[28].mxu1 }
 0x133   : > { %v1599_v57 = vpop.f32.mrb[29].mxu0  ;;  %v1091_v59 = vpop.f32.mrb[29].mxu1 }
 0x134   : > { %v1600_v60 = vadd.f32 %v1599_v57, %v1598_v54  ;;  %v1092_v61 = vadd.f32 %v1594_v39, %v1091_v59  ;;  %v1601_v62 = vpop.f32.mrb[30].mxu0  ;;  %v1707_v63 = vpop.f32.mrb[30].mxu1 }
 0x135   : > { %v1602_v0 = vpop.f32.mrb[31].mxu0  ;;  %v1094_v1 = vpop.f32.mrb[31].mxu1 }
 0x136   : > { %v1100_v2 = vadd.f32 %v1706_v56, %v1600_v60  ;;  %v1288_v3 = vadd.f32 %v2063_v58, %v1092_v61  ;;  %v1603_v4 = vadd.f32 %v1602_v0, %v1601_v62  ;;  %v1095_v5 = vadd.f32 %v1597_v50, %v1094_v1 }
 0x138   : > { %v1290_v6 = vadd.f32 %v2063_v58, %v1100_v2  ;;  %1320 = vst [vmem:[%s2068_s28 + $0x60] sm:$0xff] %v1288_v3  ;;  %v1103_v7 = vadd.f32 %v1707_v63, %v1603_v4  ;;  %v1289_v8 = vadd.f32 %v2063_v58, %v1095_v5 }
 0x13a   : > { %1322 = vst [vmem:[%s2068_s28 + $0x70] sm:$0xff] %v1290_v6  ;;  %v1291_v9 = vadd.f32 %v2063_v58, %v1103_v7  ;;  %1321 = vst [vmem:[%s2068_s28 + $0x68] sm:$0xff] %v1289_v8  ;;  %v1604_v10 = vpop.f32.mrb[32].mxu0  ;;  %v1710_v11 = vpop.f32.mrb[32].mxu1 }
 0x13b   : > { %v1605_v12 = vpop.f32.mrb[33].mxu0  ;;  %v1107_v14 = vpop.f32.mrb[33].mxu1 }
 0x13c   : > { %1323 = vst [vmem:[%s2068_s28 + $0x78] sm:$0xff] %v1291_v9  ;;  %v1606_v15 = vadd.f32 %v1605_v12, %v1604_v10  ;;  %v1607_v16 = vpop.f32.mrb[34].mxu0  ;;  %v1711_v17 = vpop.f32.mrb[34].mxu1 }
 0x13d   : > { %v1608_v20 = vpop.f32.mrb[35].mxu0  ;;  %v1110_v18 = vpop.f32.mrb[35].mxu1 }
 0x13e   : > { %v1108_v21 = vadd.f32 %v1606_v15, %v1107_v14  ;;  %v1609_v22 = vadd.f32 %v1608_v20, %v1607_v16 }
 0x140   : > { %v1292_v23 = vadd.f32 %v2063_v58, %v1108_v21  ;;  %v1111_v24 = vadd.f32 %v1609_v22, %v1110_v18 }
 0x142   : > { %1324 = vst [vmem:[%s2068_s28 + $0x80] sm:$0xff] %v1292_v23  ;;  %v1293_v26 = vadd.f32 %v2063_v58, %v1111_v24  ;;  %v1610_v27 = vpop.f32.mrb[36].mxu0  ;;  %v1714_v28 = vpop.f32.mrb[36].mxu1 }
 0x143   : > { %v1611_v29 = vpop.f32.mrb[37].mxu0  ;;  %v1123_v30 = vpop.f32.mrb[37].mxu1 }
 0x144   : > { %1325 = vst [vmem:[%s2068_s28 + $0x88] sm:$0xff] %v1293_v26  ;;  %v1612_v32 = vadd.f32 %v1611_v29, %v1610_v27  ;;  %v1613_v33 = vpop.f32.mrb[38].mxu0  ;;  %v1715_v34 = vpop.f32.mrb[38].mxu1 }
 0x145   : > { %v1614_v35 = vpop.f32.mrb[39].mxu0  ;;  %v1126_v36 = vpop.f32.mrb[39].mxu1 }
 0x146   : > { %v1116_v38 = vadd.f32 %v1710_v11, %v1612_v32  ;;  %v1615_v39 = vadd.f32 %v1614_v35, %v1613_v33 }
 0x148   : > { %v1294_v40 = vadd.f32 %v2063_v58, %v1116_v38  ;;  %v1119_v41 = vadd.f32 %v1711_v17, %v1615_v39 }
 0x14a   : > { %1326 = vst [vmem:[%s2068_s28 + $0x90] sm:$0xff] %v1294_v40  ;;  %v1295_v42 = vadd.f32 %v2063_v58, %v1119_v41  ;;  %v1616_v44 = vpop.f32.mrb[40].mxu0  ;;  %v1718_v45 = vpop.f32.mrb[40].mxu1 }
 0x14b   : > { %v1148_v46 = vadd.f32 %v1718_v45, %v2047_v25  ;;  %v1617_v47 = vpop.f32.mrb[41].mxu0  ;;  %v1139_v48 = vpop.f32.mrb[41].mxu1 }
 0x14c   : > { %1327 = vst [vmem:[%s2068_s28 + $0x98] sm:$0xff] %v1295_v42  ;;  %v1618_v50 = vadd.f32 %v1617_v47, %v1616_v44  ;;  %v1140_v51 = vadd.f32 %v2043_v13, %v1139_v48  ;;  %v1619_v52 = vpop.f32.mrb[42].mxu0  ;;  %v1719_v53 = vpop.f32.mrb[42].mxu1 }
 0x14d   : > { %v1302_v54 = vadd.f32 %v2063_v58, %v1148_v46  ;;  %v1151_v56 = vadd.f32 %v1719_v53, %v2049_v31  ;;  %v1620_v57 = vpop.f32.mrb[43].mxu0  ;;  %v1142_v59 = vpop.f32.mrb[43].mxu1 }
 0x14e   : > { %v1124_v25 = vadd.f32 %v1618_v50, %v1123_v30  ;;  %v1300_v60 = vadd.f32 %v2063_v58, %v1140_v51  ;;  %v1621_v61 = vadd.f32 %v1620_v57, %v1619_v52  ;;  %v1143_v62 = vadd.f32 %v2045_v19, %v1142_v59 }
 0x14f   : > { %1334 = vst [vmem:[%s2068_s28 + $0xd0] sm:$0xff] %v1302_v54  ;;  %v1303_v13 = vadd.f32 %v2063_v58, %v1151_v56 }
 0x150   : > { %v1296_v63 = vadd.f32 %v2063_v58, %v1124_v25  ;;  %1332 = vst [vmem:[%s2068_s28 + $0xc0] sm:$0xff] %v1300_v60  ;;  %v1127_v0 = vadd.f32 %v1621_v61, %v1126_v36  ;;  %v1301_v1 = vadd.f32 %v2063_v58, %v1143_v62 }
 0x151   : > { %1335 = vst [vmem:[%s2068_s28 + $0xd8] sm:$0xff] %v1303_v13 }
 0x152   : > { %1328 = vst [vmem:[%s2068_s28 + $0xa0] sm:$0xff] %v1296_v63  ;;  %v1297_v31 = vadd.f32 %v2063_v58, %v1127_v0  ;;  %1333 = vst [vmem:[%s2068_s28 + $0xc8] sm:$0xff] %v1301_v1  ;;  %v1622_v2 = vpop.f32.mrb[44].mxu0  ;;  %v1722_v3 = vpop.f32.mrb[44].mxu1 }
 0x153   : > { %v1164_v4 = vadd.f32 %v1722_v3, %v2055_v49  ;;  %v1623_v19 = vpop.f32.mrb[45].mxu0  ;;  %v1155_v5 = vpop.f32.mrb[45].mxu1 }
 0x154   : > { %1329 = vst [vmem:[%s2068_s28 + $0xa8] sm:$0xff] %v1297_v31  ;;  %v1624_v6 = vadd.f32 %v1623_v19, %v1622_v2  ;;  %v1156_v7 = vadd.f32 %v2051_v37, %v1155_v5  ;;  %v1625_v8 = vpop.f32.mrb[46].mxu0  ;;  %v1723_v9 = vpop.f32.mrb[46].mxu1 }
 0x155   : > { %v1306_v10 = vadd.f32 %v2063_v58, %v1164_v4  ;;  %v1167_v11 = vadd.f32 %v1723_v9, %v2057_v55  ;;  %v1626_v12 = vpop.f32.mrb[47].mxu0  ;;  %v1158_v49 = vpop.f32.mrb[47].mxu1 }
 0x156   : > { %v1132_v14 = vadd.f32 %v1714_v28, %v1624_v6  ;;  %v1304_v15 = vadd.f32 %v2063_v58, %v1156_v7  ;;  %v1627_v16 = vadd.f32 %v1626_v12, %v1625_v8  ;;  %v1159_v17 = vadd.f32 %v2053_v43, %v1158_v49 }
 0x157   : > { %1338 = vst [vmem:[%s2068_s28 + $0xf0] sm:$0xff] %v1306_v10  ;;  %v1307_v37 = vadd.f32 %v2063_v58, %v1167_v11 }
 0x158   : > { %v1298_v20 = vadd.f32 %v2063_v58, %v1132_v14  ;;  %1336 = vst [vmem:[%s2068_s28 + $0xe0] sm:$0xff] %v1304_v15  ;;  %v1135_v18 = vadd.f32 %v1715_v34, %v1627_v16  ;;  %v1305_v21 = vadd.f32 %v2063_v58, %v1159_v17 }
 0x159   : > { %1339 = vst [vmem:[%s2068_s28 + $0xf8] sm:$0xff] %v1307_v37 }
 0x15a   : > { %1330 = vst [vmem:[%s2068_s28 + $0xb0] sm:$0xff] %v1298_v20  ;;  %v1299_v55 = vadd.f32 %v2063_v58, %v1135_v18  ;;  %1337 = vst [vmem:[%s2068_s28 + $0xe8] sm:$0xff] %v1305_v21 }
 0x15c   : > { %1331 = vst [vmem:[%s2068_s28 + $0xb8] sm:$0xff] %v1299_v55 }
 0x15d PF: > { %s13_s14 = sadd.s32 1, %s1875_s14   ;;  %s2155_s12 = smov %s1871_s13 }
 0x15e   : > { %p10_p5 = scmp.ge.s32.totalorder %s13_s14, 4   ;;  %s2156_s13 = smov %s2158_s15 }
 0x160   :  { %12 = sbr.rel (!%p10_p5) target bundleno = 2 (0x2), region = 76 }

// kernel: dsamnet_forward.22
= control target key start
LH: loop header
LB: loop body
LE: loop exit
PB: predicated region body
PF: predicated region fallthrough
CT: control target
= control target key end

     0   :  { %s2634_s12 = smov 0   ;;  %s2636_s13 = smov 0   ;;  %s3058_s0 = inlined_call_operand.vmem [shape: bf16[512,640], index: 0, kind: input, shape index: {}]   ;;  %s3059_s1 = inlined_call_operand.vmem [shape: bf16[640,128], index: 1, kind: input, shape index: {}]   ;;  %s3060_s2 = inlined_call_operand.vmem [shape: f32[1,128], index: 2, kind: input, shape index: {}]   ;;  %s3061_s3 = inlined_call_operand.vmem [shape: f32[512,128], index: 3, kind: output, shape index: {}]  }
   0x1   :  { %s2638_s14 = smov 0  }
   0x2 LB: > { %s32_s15 = sadd.s32 1, %s2608_s13  ;;  %p1973_p0 = scmp.ge.s32.totalorder %s2612_s14, 1  ;;  %s2612_s14 = sphi %s2638_s14, %s13_s14   ;;  %s2608_s13 = sphi %s2636_s13, %s3063_s13   ;;  %s2604_s12 = sphi %s2634_s12, %s3062_s12  }
   0x3   : > { %p34_p1 = scmp.ge.s32.totalorder %s32_s15, 2  ;;  %p191_p2 = scmp.lt.s32.totalorder %s2612_s14, 3 }
   0x5   : > { %s3065_s15 = smov (%p34_p1, %s32_s15), 0  ;;  %p192_p3 = pnand %p1973_p0, %p191_p2 }
   0x6   : > { %v2438_v0 = vld [vmem:[%s3059_s1 + $0x40] sm:$0xff] (!%p192_p3)   ;;  %s1974_s18 = sshll.u32 (!%p192_p3), %s2604_s12, 5  ;;  %v2440_v2 = vld [vmem:[%s3059_s1 + $0x48] sm:$0xff] (!%p192_p3)   ;;  %v2442_v4 = vld [vmem:[%s3059_s1 + $0x50] sm:$0xff] (!%p192_p3)  }
   0x7   : > { %195 = sbr.rel (%p192_p3) target bundleno = 417 (0x1a1), region = 32  ;;  %v2439_v1 = vld [vmem:[%s3059_s1] sm:$0xff] (!%p192_p3)   ;;  %2101 = vmatprep.subr.bf16.mxu0 (!%p192_p3), %v2438_v0  ;;  %2397 = vmatprep.subr.bf16.mxu1 (!%p192_p3), %v2438_v0  ;;  %p236_p4 = scmp.lt.s32.totalorder (!%p192_p3), %s1974_s18, 63  ;;  %v2441_v3 = vld [vmem:[%s3059_s1 + $0x8] sm:$0xff] (!%p192_p3)   ;;  %v2443_v5 = vld [vmem:[%s3059_s1 + $0x10] sm:$0xff] (!%p192_p3)  }
   0x8   : > { %2102 = vmatpush3.bf16.msra.mxu0 (!%p192_p3), %v2439_v1  ;;  %2405 = vmatpush3.bf16.msra.mxu1 (!%p192_p3), %v2439_v1  ;;  %v2444_v6 = vld [vmem:[%s3059_s1 + $0x58] sm:$0xff] (!%p192_p3)   ;;  %v2446_v8 = vld [vmem:[%s3059_s1 + $0x60] sm:$0xff] (!%p192_p3)   ;;  %v2448_v10 = vld [vmem:[%s3059_s1 + $0x68] sm:$0xff] (!%p192_p3)  }
   0x9   : > { %2103 = vmatprep.subr.bf16.mxu0 (!%p192_p3), %v2440_v2  ;;  %2398 = vmatprep.subr.bf16.mxu1 (!%p192_p3), %v2440_v2  ;;  %v2445_v7 = vld [vmem:[%s3059_s1 + $0x18] sm:$0xff] (!%p192_p3)   ;;  %v2447_v9 = vld [vmem:[%s3059_s1 + $0x20] sm:$0xff] (!%p192_p3)   ;;  %v2449_v13 = vld [vmem:[%s3059_s1 + $0x28] sm:$0xff] (!%p192_p3)  }
   0xa   : > { %v2450_v14 = vld [vmem:[%s3059_s1 + $0x70] sm:$0xff] (!%p192_p3)   ;;  %v2452_v16 = vld [vmem:[%s3059_s1 + $0x78] sm:$0xff] (!%p192_p3)   ;;  %v2460_v18 = vld [vmem:[%s3059_s1 + $0xc0] sm:$0xff] (!%p192_p3)  }
   0xb   : > { %v2451_v15 = vld [vmem:[%s3059_s1 + $0x30] sm:$0xff] (!%p192_p3)   ;;  %v2453_v17 = vld [vmem:[%s3059_s1 + $0x38] sm:$0xff] (!%p192_p3)   ;;  %v2463_v19 = vld [vmem:[%s3059_s1 + $0x100] sm:$0xff] (!%p192_p3)  }
   0xc   : > { %2104 = vmatpush3.bf16.msra.mxu0 (!%p192_p3), %v2441_v3  ;;  %2406 = vmatpush3.bf16.msra.mxu1 (!%p192_p3), %v2441_v3  ;;  %v2461_v22 = vld [vmem:[%s3059_s1 + $0x80] sm:$0xff] (!%p192_p3)   ;;  %v2462_v23 = vld [vmem:[%s3059_s1 + $0xc8] sm:$0xff] (!%p192_p3)   ;;  %v2471_v29 = vld [vmem:[%s3059_s1 + $0xd0] sm:$0xff] (!%p192_p3)  }
   0xd   : > { %2105 = vmatprep.subr.bf16.mxu0 (!%p192_p3), %v2442_v4  ;;  %2399 = vmatprep.subr.bf16.mxu1 (!%p192_p3), %v2442_v4  ;;  %v2482_v26 = vld [vmem:[%s3059_s1 + $0x108] sm:$0xff] (!%p192_p3)   ;;  %v2472_v31 = vld [vmem:[%s3059_s1 + $0x90] sm:$0xff] (!%p192_p3)   ;;  %v2473_v33 = vld [vmem:[%s3059_s1 + $0xd8] sm:$0xff] (!%p192_p3)  }
   0xe   : > { %s3067_s18 = smov (!%p236_p4, %s1974_s18), 63  ;;  %v2464_v27 = vld [vmem:[%s3059_s1 + $0x88] sm:$0xff]   ;;  %v2474_v35 = vld [vmem:[%s3059_s1 + $0x98] sm:$0xff]   ;;  %v2481_v36 = vld [vmem:[%s3059_s1 + $0xe0] sm:$0xff]  }
   0xf   : > { %s2413_s4 = smul.u32 20, %s3067_s18  ;;  %v2495_v38 = vld [vmem:[%s3059_s1 + $0x110] sm:$0xff]   ;;  %v2483_v40 = vld [vmem:[%s3059_s1 + $0xa0] sm:$0xff]   ;;  %v2484_v41 = vld [vmem:[%s3059_s1 + $0xe8] sm:$0xff]   ;;  %s1977_s8 = sshll.u32 %s3067_s18, 3 }
  0x10   : > { %2106 = vmatpush3.bf16.msra.mxu0 %v2443_v5  ;;  %2407 = vmatpush3.bf16.msra.mxu1 %v2443_v5  ;;  %v2485_v44 = vld [vmem:[%s3059_s1 + $0xa8] sm:$0xff]   ;;  %v2509_v45 = vld [vmem:[%s3059_s1 + $0x118] sm:$0xff]   ;;  %v2492_v48 = vld [vmem:[%s3059_s1 + $0xf0] sm:$0xff]   ;;  %s2937_s12 = scalar_lea.vmem %s3061_s3, %s1977_s8 }
  0x11   : > { %2107 = vmatprep.subr.bf16.mxu0 %v2444_v6  ;;  %2400 = vmatprep.subr.bf16.mxu1 %v2444_v6  ;;  %s2685_s11 = scalar_lea.vmem %s3058_s0, %s2413_s4  ;;  %v2493_v49 = vld [vmem:[%s3059_s1 + $0xb0] sm:$0xff]   ;;  %v2494_v50 = vld [vmem:[%s3059_s1 + $0xf8] sm:$0xff]   ;;  %v2516_v52 = vld [vmem:[%s3059_s1 + $0x120] sm:$0xff]  }
  0x12   : > { %v2456_v11 = vld [vmem:[%s2685_s11 + $0x4] ss:$20 sps:$4 sm:$0xff]   ;;  %v2454_v20 = vld [vmem:[%s2685_s11] ss:$20 sps:$4 sm:$0xff]   ;;  %v2469_v28 = vld [vmem:[%s2685_s11 + $0x28] ss:$20 sps:$4 sm:$0xff]  }
  0x13   : > { %v2459_v12 = vld [vmem:[%s2685_s11 + $0x1e4] ss:$20 sps:$4 sm:$0xff]   ;;  %1200 = vmatprep.mubr.bf16.mxu0 %v2456_v11  ;;  %v2457_v21 = vld [vmem:[%s2685_s11 + $0x1e0] ss:$20 sps:$4 sm:$0xff]   ;;  %v2470_v30 = vld [vmem:[%s2685_s11 + $0x208] ss:$20 sps:$4 sm:$0xff]  }
  0x14   : > { %2108 = vmatpush3.bf16.msra.mxu0 %v2445_v7  ;;  %2408 = vmatpush3.bf16.msra.mxu1 %v2445_v7  ;;  %v2465_v24 = vld [vmem:[%s2685_s11 + $0x2c] ss:$20 sps:$4 sm:$0xff]   ;;  %v2475_v32 = vld [vmem:[%s2685_s11 + $0x54] ss:$20 sps:$4 sm:$0xff]   ;;  %v2479_v37 = vld [vmem:[%s2685_s11 + $0x50] ss:$20 sps:$4 sm:$0xff]  }
  0x15   : > { %2109 = vmatprep.subr.bf16.mxu0 %v2446_v8  ;;  %2401 = vmatprep.subr.bf16.mxu1 %v2446_v8  ;;  %v2467_v25 = vld [vmem:[%s2685_s11 + $0x20c] ss:$20 sps:$4 sm:$0xff]   ;;  %v2477_v34 = vld [vmem:[%s2685_s11 + $0x234] ss:$20 sps:$4 sm:$0xff]   ;;  %v2480_v39 = vld [vmem:[%s2685_s11 + $0x230] ss:$20 sps:$4 sm:$0xff]  }
  0x16   : > { %1296 = vmatprep.mubr.bf16.mxu1 %v2459_v12  ;;  %v2486_v42 = vld [vmem:[%s2685_s11 + $0x7c] ss:$20 sps:$4 sm:$0xff]   ;;  %v2490_v46 = vld [vmem:[%s2685_s11 + $0x78] ss:$20 sps:$4 sm:$0xff]   ;;  %v2502_v56 = vld [vmem:[%s2685_s11 + $0xa0] ss:$20 sps:$4 sm:$0xff]  }
  0x17   : > { %v2488_v43 = vld [vmem:[%s2685_s11 + $0x25c] ss:$20 sps:$4 sm:$0xff]   ;;  %v2491_v47 = vld [vmem:[%s2685_s11 + $0x258] ss:$20 sps:$4 sm:$0xff]   ;;  %v2505_v59 = vld [vmem:[%s2685_s11 + $0x34] ss:$20 sps:$4 sm:$0xff]  }
  0x18   : > { %2110 = vmatpush3.bf16.msra.mxu0 %v2447_v9  ;;  %2409 = vmatpush3.bf16.msra.mxu1 %v2447_v9  ;;  %v2497_v51 = vld [vmem:[%s2685_s11 + $0xa4] ss:$20 sps:$4 sm:$0xff]   ;;  %v2501_v53 = vld [vmem:[%s2685_s11 + $0xc] ss:$20 sps:$4 sm:$0xff]   ;;  %v2499_v55 = vld [vmem:[%s2685_s11 + $0x8] ss:$20 sps:$4 sm:$0xff]  }
  0x19   : > { %2111 = vmatprep.subr.bf16.mxu0 %v2448_v10  ;;  %2402 = vmatprep.subr.bf16.mxu1 %v2448_v10  ;;  %v2496_v54 = vld [vmem:[%s3059_s1 + $0xb8] sm:$0xff]   ;;  %v2529_v57 = vld [vmem:[%s3059_s1 + $0x128] sm:$0xff]   ;;  %v2536_v60 = vld [vmem:[%s3059_s1 + $0x130] sm:$0xff]  }
  0x1a   : > { %v2503_v58 = vld [vmem:[%s2685_s11 + $0xcc] ss:$20 sps:$4 sm:$0xff]   ;;  %v2507_v61 = vld [vmem:[%s2685_s11 + $0xc8] ss:$20 sps:$4 sm:$0xff]   ;;  %v2508_v62 = vld [vmem:[%s2685_s11 + $0x30] ss:$20 sps:$4 sm:$0xff]  }
  0x1b   : > { %v2510_v63 = vld [vmem:[%s2685_s11 + $0xf4] ss:$20 sps:$4 sm:$0xff]   ;;  %v2512_v0 = vld [vmem:[%s2685_s11 + $0x5c] ss:$20 sps:$4 sm:$0xff]   ;;  %v2515_v3 = vld [vmem:[%s2685_s11 + $0x58] ss:$20 sps:$4 sm:$0xff]  }
  0x1c   : > { %2112 = vmatpush3.bf16.msra.mxu0 %v2449_v13  ;;  %2410 = vmatpush3.bf16.msra.mxu1 %v2449_v13  ;;  %v2549_v1 = vld [vmem:[%s3059_s1 + $0x138] sm:$0xff]   ;;  %v2514_v2 = vld [vmem:[%s2685_s11 + $0xf0] ss:$20 sps:$4 sm:$0xff]   ;;  %v2522_v7 = vld [vmem:[%s2685_s11 + $0x80] ss:$20 sps:$4 sm:$0xff]  }
  0x1d   : > { %2113 = vmatprep.subr.bf16.mxu0 %v2450_v14  ;;  %2403 = vmatprep.subr.bf16.mxu1 %v2450_v14  ;;  %v2517_v4 = vld [vmem:[%s2685_s11 + $0x11c] ss:$20 sps:$4 sm:$0xff]   ;;  %v2519_v5 = vld [vmem:[%s2685_s11 + $0x84] ss:$20 sps:$4 sm:$0xff]   ;;  %v2525_v9 = vld [vmem:[%s2685_s11 + $0xac] ss:$20 sps:$4 sm:$0xff]  }
  0x1e   : > { %v2521_v6 = vld [vmem:[%s2685_s11 + $0x118] ss:$20 sps:$4 sm:$0xff]   ;;  %v2527_v10 = vld [vmem:[%s2685_s11 + $0x140] ss:$20 sps:$4 sm:$0xff]   ;;  %v2528_v11 = vld [vmem:[%s2685_s11 + $0xa8] ss:$20 sps:$4 sm:$0xff]  }
  0x1f   : > { %v2523_v8 = vld [vmem:[%s2685_s11 + $0x144] ss:$20 sps:$4 sm:$0xff]   ;;  %v2530_v12 = vld [vmem:[%s2685_s11 + $0x16c] ss:$20 sps:$4 sm:$0xff]   ;;  %v2532_v13 = vld [vmem:[%s2685_s11 + $0xd4] ss:$20 sps:$4 sm:$0xff]  }
  0x20   : > { %2114 = vmatpush3.bf16.msra.mxu0 %v2451_v15  ;;  %2411 = vmatpush3.bf16.msra.mxu1 %v2451_v15  ;;  %v2534_v14 = vld [vmem:[%s2685_s11 + $0x168] ss:$20 sps:$4 sm:$0xff]   ;;  %v2535_v15 = vld [vmem:[%s2685_s11 + $0xd0] ss:$20 sps:$4 sm:$0xff]  }
  0x21   : > { %2115 = vmatprep.subr.bf16.mxu0 %v2452_v16  ;;  %2404 = vmatprep.subr.bf16.mxu1 %v2452_v16  ;;  %v2537_v16 = vld [vmem:[%s2685_s11 + $0x194] ss:$20 sps:$4 sm:$0xff]  }
  0x24   : > { %2116 = vmatpush3.bf16.msra.mxu0 %v2453_v17  ;;  %2412 = vmatpush3.bf16.msra.mxu1 %v2453_v17  ;;  %v2539_v17 = vld [vmem:[%s2685_s11 + $0xfc] ss:$20 sps:$4 sm:$0xff]  }
  0x25   : > { %2213 = vmatprep.subr.bf16.mxu1 %v2460_v18  ;;  %2349 = vmatprep.subr.bf16.mxu0 %v2463_v19  ;;  %v2541_v18 = vld [vmem:[%s2685_s11 + $0x190] ss:$20 sps:$4 sm:$0xff]  }
  0x27   : > { %1201 = vmatmul.mubr.bf16.vlgmr.msra.gmra.mrb[0].mxu0 %v2454_v20  ;;  %1297 = vmatmul.mubr.bf16.vlgmr.msra.gmra.mrb[0].mxu1 %v2457_v21  ;;  %v2543_v20 = vld [vmem:[%s2685_s11 + $0x1bc] ss:$20 sps:$4 sm:$0xff]   ;;  %v2545_v21 = vld [vmem:[%s2685_s11 + $0x124] ss:$20 sps:$4 sm:$0xff]  }
  0x28   : > { %2214 = vmatpush3.bf16.msra.mxu1 %v2461_v22  ;;  %2350 = vmatpush3.bf16.msra.mxu0 %v2463_v19  ;;  %v2542_v19 = vld [vmem:[%s2685_s11 + $0xf8] ss:$20 sps:$4 sm:$0xff]  }
  0x29   : > { %2215 = vmatprep.subr.bf16.mxu1 %v2462_v23  ;;  %1208 = vmatprep.mubr.bf16.mxu0 %v2465_v24  ;;  %v2547_v22 = vld [vmem:[%s2685_s11 + $0x1b8] ss:$20 sps:$4 sm:$0xff]   ;;  %v2548_v23 = vld [vmem:[%s2685_s11 + $0x120] ss:$20 sps:$4 sm:$0xff]  }
  0x2a   : > { %1304 = vmatprep.mubr.bf16.mxu1 %v2467_v25  ;;  %2351 = vmatprep.subr.bf16.mxu0 %v2482_v26  ;;  %v2550_v24 = vld [vmem:[%s2685_s11 + $0x14c] ss:$20 sps:$4 sm:$0xff]   ;;  %v2552_v25 = vld [vmem:[%s2685_s11 + $0x10] ss:$20 sps:$4 sm:$0xff]  }
  0x2c   : > { %2216 = vmatpush3.bf16.msra.mxu1 %v2464_v27  ;;  %2352 = vmatpush3.bf16.msra.mxu0 %v2482_v26  ;;  %v2553_v26 = vld [vmem:[%s2685_s11 + $0x148] ss:$20 sps:$4 sm:$0xff]   ;;  %v2554_v27 = vld [vmem:[%s2685_s11 + $0x38] ss:$20 sps:$4 sm:$0xff]  }
  0x2d   : > { %2217 = vmatprep.subr.bf16.mxu1 %v2471_v29  ;;  %2353 = vmatprep.subr.bf16.mxu0 %v2495_v38  ;;  %v2557_v29 = vld [vmem:[%s2685_s11 + $0x60] ss:$20 sps:$4 sm:$0xff]  }
  0x2f   : > { %1209 = vmatmul.mubr.bf16.gmra.mrb[4].mxu0 %v2469_v28  ;;  %1305 = vmatmul.mubr.bf16.gmra.mrb[4].mxu1 %v2470_v30  ;;  %v2555_v28 = vld [vmem:[%s2685_s11 + $0x174] ss:$20 sps:$4 sm:$0xff]   ;;  %v2558_v30 = vld [vmem:[%s2685_s11 + $0x170] ss:$20 sps:$4 sm:$0xff]  }
  0x30   : > { %2218 = vmatpush3.bf16.msra.mxu1 %v2472_v31  ;;  %1216 = vmatprep.mubr.bf16.mxu0 %v2475_v32  ;;  %v2559_v31 = vld [vmem:[%s2685_s11 + $0x88] ss:$20 sps:$4 sm:$0xff]  }
  0x31   : > { %2219 = vmatprep.subr.bf16.mxu1 %v2473_v33  ;;  %1312 = vmatprep.mubr.bf16.mxu1 %v2477_v34  ;;  %v2560_v32 = vld [vmem:[%s2685_s11 + $0x19c] ss:$20 sps:$4 sm:$0xff]   ;;  %v2563_v34 = vld [vmem:[%s2685_s11 + $0x198] ss:$20 sps:$4 sm:$0xff]  }
  0x32   : > { %2354 = vmatpush3.bf16.msra.mxu0 %v2495_v38  ;;  %v2562_v33 = vld [vmem:[%s2685_s11 + $0xb0] ss:$20 sps:$4 sm:$0xff]   ;;  %v2568_v38 = vld [vmem:[%s2685_s11 + $0x1c0] ss:$20 sps:$4 sm:$0xff]  }
  0x33   : > { %2355 = vmatprep.subr.bf16.mxu0 %v2509_v45 }
  0x34   : > { %2220 = vmatpush3.bf16.msra.mxu1 %v2474_v35  ;;  %v2564_v35 = vld [vmem:[%s2685_s11 + $0xd8] ss:$20 sps:$4 sm:$0xff]  }
  0x35   : > { %2221 = vmatprep.subr.bf16.mxu1 %v2481_v36  ;;  %v2565_v36 = vld [vmem:[%s2685_s11 + $0x1c4] ss:$20 sps:$4 sm:$0xff]  }
  0x36   : > { %2356 = vmatpush3.bf16.msra.mxu0 %v2509_v45  ;;  %v2577_v45 = vld [vmem:[%s2685_s11 + $0x1a0] ss:$20 sps:$4 sm:$0xff]  }
  0x37   : > { %1217 = vmatmul.mubr.bf16.gmra.mrb[8].mxu0 %v2479_v37  ;;  %1313 = vmatmul.mubr.bf16.gmra.mrb[8].mxu1 %v2480_v39  ;;  %v2567_v37 = vld [vmem:[%s2685_s11 + $0x100] ss:$20 sps:$4 sm:$0xff]   ;;  %v2569_v39 = vld [vmem:[%s2685_s11 + $0x128] ss:$20 sps:$4 sm:$0xff]  }
  0x38   : > { %2222 = vmatpush3.bf16.msra.mxu1 %v2483_v40  ;;  %1224 = vmatprep.mubr.bf16.mxu0 %v2486_v42  ;;  %v2570_v40 = vld [vmem:[%s2685_s11 + $0x1ec] ss:$20 sps:$4 sm:$0xff]   ;;  %v2573_v42 = vld [vmem:[%s2685_s11 + $0x1e8] ss:$20 sps:$4 sm:$0xff]  }
  0x39   : > { %2223 = vmatprep.subr.bf16.mxu1 %v2484_v41  ;;  %1320 = vmatprep.mubr.bf16.mxu1 %v2488_v43  ;;  %v2572_v41 = vld [vmem:[%s2685_s11 + $0x150] ss:$20 sps:$4 sm:$0xff]   ;;  %v2574_v43 = vld [vmem:[%s2685_s11 + $0x178] ss:$20 sps:$4 sm:$0xff]  }
  0x3a   : > { %2357 = vmatprep.subr.bf16.mxu0 %v2516_v52 }
  0x3b   : > { %2358 = vmatpush3.bf16.msra.mxu0 %v2516_v52  ;;  %v2585_v52 = vld [vmem:[%s2685_s11 + $0x264] ss:$20 sps:$4 sm:$0xff]  }
  0x3c   : > { %2224 = vmatpush3.bf16.msra.mxu1 %v2485_v44  ;;  %2359 = vmatprep.subr.bf16.mxu0 %v2529_v57  ;;  %v2575_v44 = vld [vmem:[%s2685_s11 + $0x214] ss:$20 sps:$4 sm:$0xff]  }
  0x3d   : > { %2225 = vmatprep.subr.bf16.mxu1 %v2492_v48  ;;  %v2580_v48 = vld [vmem:[%s2685_s11 + $0x23c] ss:$20 sps:$4 sm:$0xff]  }
  0x3f   : > { %1225 = vmatmul.mubr.bf16.gmra.mrb[12].mxu0 %v2490_v46  ;;  %1321 = vmatmul.mubr.bf16.gmra.mrb[12].mxu1 %v2491_v47  ;;  %v2578_v46 = vld [vmem:[%s2685_s11 + $0x210] ss:$20 sps:$4 sm:$0xff]   ;;  %v2579_v47 = vld [vmem:[%s2685_s11 + $0x1c8] ss:$20 sps:$4 sm:$0xff]  }
  0x40   : > { %2226 = vmatpush3.bf16.msra.mxu1 %v2493_v49  ;;  %1232 = vmatprep.mubr.bf16.mxu0 %v2497_v51  ;;  %v2582_v49 = vld [vmem:[%s2685_s11 + $0x1f0] ss:$20 sps:$4 sm:$0xff]   ;;  %v2584_v51 = vld [vmem:[%s2685_s11 + $0x218] ss:$20 sps:$4 sm:$0xff]  }
  0x41   : > { %2227 = vmatprep.subr.bf16.mxu1 %v2494_v50  ;;  %1361 = vmatprep.mubr.bf16.mxu1 %v2501_v53  ;;  %v2583_v50 = vld [vmem:[%s2685_s11 + $0x238] ss:$20 sps:$4 sm:$0xff]   ;;  %v2587_v53 = vld [vmem:[%s2685_s11 + $0x240] ss:$20 sps:$4 sm:$0xff]  }
  0x42   : > { %2360 = vmatpush3.bf16.msra.mxu0 %v2529_v57 }
  0x43   : > { %2361 = vmatprep.subr.bf16.mxu0 %v2536_v60 }
  0x44   : > { %2228 = vmatpush3.bf16.msra.mxu1 %v2496_v54  ;;  %v2588_v54 = vld [vmem:[%s2685_s11 + $0x260] ss:$20 sps:$4 sm:$0xff]  }
  0x46   : > { %2362 = vmatpush3.bf16.msra.mxu0 %v2536_v60 }
  0x47   : > { %1233 = vmatmul.mubr.bf16.gmra.mrb[16].mxu0 %v2502_v56  ;;  %1362 = vmatmul.mubr.bf16.vlgmr.msra.gmra.mrb[16].mxu1 %v2499_v55  ;;  %v2589_v55 = vld [vmem:[%s2685_s11 + $0x268] ss:$20 sps:$4 sm:$0xff]  }
  0x48   : > { %1240 = vmatprep.mubr.bf16.mxu0 %v2503_v58  ;;  %1369 = vmatprep.mubr.bf16.mxu1 %v2505_v59 }
  0x49   : > { %2363 = vmatprep.subr.bf16.mxu0 %v2549_v1 }
  0x4a   : > { %2364 = vmatpush3.bf16.msra.mxu0 %v2549_v1 }
  0x4f   : > { %1241 = vmatmul.mubr.bf16.gmra.mrb[20].mxu0 %v2507_v61  ;;  %1370 = vmatmul.mubr.bf16.gmra.mrb[20].mxu1 %v2508_v62 }
  0x50   : > { %1248 = vmatprep.mubr.bf16.mxu0 %v2510_v63  ;;  %1377 = vmatprep.mubr.bf16.mxu1 %v2512_v0 }
  0x57   : > { %1249 = vmatmul.mubr.bf16.gmra.mrb[24].mxu0 %v2514_v2  ;;  %1378 = vmatmul.mubr.bf16.gmra.mrb[24].mxu1 %v2515_v3 }
  0x58   : > { %1256 = vmatprep.mubr.bf16.mxu0 %v2517_v4  ;;  %1385 = vmatprep.mubr.bf16.mxu1 %v2519_v5 }
  0x5f   : > { %1257 = vmatmul.mubr.bf16.gmra.mrb[28].mxu0 %v2521_v6  ;;  %1386 = vmatmul.mubr.bf16.gmra.mrb[28].mxu1 %v2522_v7 }
  0x60   : > { %1264 = vmatprep.mubr.bf16.mxu0 %v2523_v8  ;;  %1393 = vmatprep.mubr.bf16.mxu1 %v2525_v9 }
  0x67   : > { %1265 = vmatmul.mubr.bf16.gmra.mrb[32].mxu0 %v2527_v10  ;;  %1394 = vmatmul.mubr.bf16.gmra.mrb[32].mxu1 %v2528_v11 }
  0x68   : > { %1272 = vmatprep.mubr.bf16.mxu0 %v2530_v12  ;;  %1401 = vmatprep.mubr.bf16.mxu1 %v2532_v13 }
  0x6f   : > { %1273 = vmatmul.mubr.bf16.gmra.mrb[36].mxu0 %v2534_v14  ;;  %1402 = vmatmul.mubr.bf16.gmra.mrb[36].mxu1 %v2535_v15 }
  0x70   : > { %1280 = vmatprep.mubr.bf16.mxu0 %v2537_v16  ;;  %1409 = vmatprep.mubr.bf16.mxu1 %v2539_v17 }
  0x77   : > { %1281 = vmatmul.mubr.bf16.gmra.mrb[40].mxu0 %v2541_v18  ;;  %1410 = vmatmul.mubr.bf16.gmra.mrb[40].mxu1 %v2542_v19 }
  0x78   : > { %1288 = vmatprep.mubr.bf16.mxu0 %v2543_v20  ;;  %1417 = vmatprep.mubr.bf16.mxu1 %v2545_v21 }
  0x7f   : > { %1289 = vmatmul.mubr.bf16.gmra.mrb[44].mxu0 %v2547_v22  ;;  %1418 = vmatmul.mubr.bf16.gmra.mrb[44].mxu1 %v2548_v23 }
  0x80   : > { %1425 = vmatprep.mubr.bf16.mxu1 %v2550_v24  ;;  %2365 = vmatprep.mubr.bf16.mxu0 %v2552_v25 }
  0x87   : > { %1426 = vmatmul.mubr.bf16.gmra.mrb[48].mxu1 %v2553_v26  ;;  %2366 = vmatmul.mubr.bf16.vlgmr.msra.gmra.mrb[48].mxu0 %v2554_v27 }
  0x88   : > { %1433 = vmatprep.mubr.bf16.mxu1 %v2555_v28  ;;  %2369 = vmatprep.mubr.bf16.mxu0 %v2557_v29 }
  0x8f   : > { %1434 = vmatmul.mubr.bf16.gmra.mrb[52].mxu1 %v2558_v30  ;;  %2370 = vmatmul.mubr.bf16.gmra.mrb[52].mxu0 %v2559_v31 }
  0x90   : > { %1441 = vmatprep.mubr.bf16.mxu1 %v2560_v32  ;;  %2373 = vmatprep.mubr.bf16.mxu0 %v2562_v33 }
  0x97   : > { %1442 = vmatmul.mubr.bf16.gmra.mrb[56].mxu1 %v2563_v34  ;;  %2374 = vmatmul.mubr.bf16.gmra.mrb[56].mxu0 %v2564_v35 }
  0x98   : > { %1449 = vmatprep.mubr.bf16.mxu1 %v2565_v36  ;;  %2377 = vmatprep.mubr.bf16.mxu0 %v2567_v37 }
  0x9f   : > { %1450 = vmatmul.mubr.bf16.gmra.mrb[60].mxu1 %v2568_v38  ;;  %2378 = vmatmul.mubr.bf16.gmra.mrb[60].mxu0 %v2569_v39 }
  0xa0   : > { %1457 = vmatprep.mubr.bf16.mxu1 %v2570_v40  ;;  %2381 = vmatprep.mubr.bf16.mxu0 %v2572_v41 }
  0xa7   : > { %1458 = vmatmul.mubr.bf16.gmra.mrb[64].mxu1 %v2573_v42  ;;  %2382 = vmatmul.mubr.bf16.gmra.mrb[64].mxu0 %v2574_v43 }
  0xa8   : > { %1465 = vmatprep.mubr.bf16.mxu1 %v2575_v44  ;;  %2385 = vmatprep.mubr.bf16.mxu0 %v2577_v45 }
  0xaf   : > { %1466 = vmatmul.mubr.bf16.gmra.mrb[68].mxu1 %v2578_v46  ;;  %2386 = vmatmul.mubr.bf16.gmra.mrb[68].mxu0 %v2579_v47 }
  0xb0   : > { %1473 = vmatprep.mubr.bf16.mxu1 %v2580_v48  ;;  %2389 = vmatprep.mubr.bf16.mxu0 %v2582_v49 }
  0xb7   : > { %1474 = vmatmul.mubr.bf16.gmra.mrb[72].mxu1 %v2583_v50  ;;  %2390 = vmatmul.mubr.bf16.gmra.mrb[72].mxu0 %v2584_v51 }
  0xb8   : > { %1481 = vmatprep.mubr.bf16.mxu1 %v2585_v52  ;;  %2393 = vmatprep.mubr.bf16.mxu0 %v2587_v53 }
  0xbf   : > { %1482 = vmatmul.mubr.bf16.gmra.mrb[76].mxu1 %v2588_v54  ;;  %2394 = vmatmul.mubr.bf16.gmra.mrb[76].mxu0 %v2589_v55 }
  0xfa   : > { %v2189_v56 = vpop.f32.mrb[0].mxu1  ;;  %v2117_v57 = vpop.f32.mrb[0].mxu0 }
  0xfb   : > { %v2190_v58 = vpop.f32.mrb[1].mxu1  ;;  %v2118_v59 = vpop.f32.mrb[1].mxu0 }
  0xfc   : > { %v2860_v60 = vadd.f32 %v2190_v58, %v2189_v56  ;;  %v2192_v61 = vpop.f32.mrb[2].mxu1  ;;  %v2119_v62 = vadd.f32 %v2118_v59, %v2117_v57  ;;  %v2120_v63 = vpop.f32.mrb[2].mxu0 }
  0xfd   : > { %v2193_v0 = vpop.f32.mrb[3].mxu1  ;;  %v2121_v1 = vpop.f32.mrb[3].mxu0 }
  0xfe   : > { %v2862_v2 = vadd.f32 %v2193_v0, %v2192_v61  ;;  %v2122_v3 = vadd.f32 %v2121_v1, %v2120_v63 }
 0x102   : > { %v2195_v4 = vpop.f32.mrb[4].mxu1  ;;  %v2123_v5 = vpop.f32.mrb[4].mxu0 }
 0x103   : > { %v2196_v6 = vpop.f32.mrb[5].mxu1  ;;  %v2124_v7 = vpop.f32.mrb[5].mxu0 }
 0x104   : > { %v2864_v8 = vadd.f32 %v2196_v6, %v2195_v4  ;;  %v2198_v9 = vpop.f32.mrb[6].mxu1  ;;  %v2125_v10 = vadd.f32 %v2124_v7, %v2123_v5  ;;  %v2126_v11 = vpop.f32.mrb[6].mxu0 }
 0x105   : > { %v2199_v12 = vpop.f32.mrb[7].mxu1  ;;  %v2127_v13 = vpop.f32.mrb[7].mxu0 }
 0x106   : > { %v2866_v14 = vadd.f32 %v2199_v12, %v2198_v9  ;;  %v2128_v15 = vadd.f32 %v2127_v13, %v2126_v11 }
 0x10a   : > { %v2201_v16 = vpop.f32.mrb[8].mxu1  ;;  %v2129_v17 = vpop.f32.mrb[8].mxu0 }
 0x10b   : > { %v2202_v18 = vpop.f32.mrb[9].mxu1  ;;  %v2130_v19 = vpop.f32.mrb[9].mxu0 }
 0x10c   : > { %v2868_v20 = vadd.f32 %v2202_v18, %v2201_v16  ;;  %v2204_v21 = vpop.f32.mrb[10].mxu1  ;;  %v2131_v22 = vadd.f32 %v2130_v19, %v2129_v17  ;;  %v2132_v23 = vpop.f32.mrb[10].mxu0 }
 0x10d   : > { %v2205_v24 = vpop.f32.mrb[11].mxu1  ;;  %v2133_v25 = vpop.f32.mrb[11].mxu0 }
 0x10e   : > { %v2870_v26 = vadd.f32 %v2205_v24, %v2204_v21  ;;  %v2134_v27 = vadd.f32 %v2133_v25, %v2132_v23 }
 0x112   : > { %v2207_v28 = vpop.f32.mrb[12].mxu1  ;;  %v2135_v29 = vpop.f32.mrb[12].mxu0 }
 0x113   : > { %v2208_v30 = vpop.f32.mrb[13].mxu1  ;;  %v2136_v31 = vpop.f32.mrb[13].mxu0 }
 0x114   : > { %v2872_v32 = vadd.f32 %v2208_v30, %v2207_v28  ;;  %v2210_v33 = vpop.f32.mrb[14].mxu1  ;;  %v2137_v34 = vadd.f32 %v2136_v31, %v2135_v29  ;;  %v2138_v35 = vpop.f32.mrb[14].mxu0 }
 0x115   : > { %v2211_v36 = vpop.f32.mrb[15].mxu1  ;;  %v2139_v37 = vpop.f32.mrb[15].mxu0 }
 0x116   : > { %v2874_v38 = vadd.f32 %v2211_v36, %v2210_v33  ;;  %v2140_v39 = vadd.f32 %v2139_v37, %v2138_v35 }
 0x11a   : > { %v2229_v40 = vpop.f32.mrb[16].mxu1  ;;  %v2141_v41 = vpop.f32.mrb[16].mxu0 }
 0x11b   : > { %v2230_v42 = vpop.f32.mrb[17].mxu1  ;;  %v2142_v43 = vpop.f32.mrb[17].mxu0 }
 0x11c   : > { %v2231_v44 = vadd.f32 %v2230_v42, %v2229_v40  ;;  %v2232_v45 = vpop.f32.mrb[18].mxu1  ;;  %v2143_v46 = vadd.f32 %v2142_v43, %v2141_v41  ;;  %v2144_v47 = vpop.f32.mrb[18].mxu0 }
 0x11d   : > { %v2233_v48 = vpop.f32.mrb[19].mxu1  ;;  %v2145_v49 = vpop.f32.mrb[19].mxu0 }
 0x11e   : > { %v2234_v50 = vadd.f32 %v2233_v48, %v2232_v45  ;;  %v2146_v51 = vadd.f32 %v2145_v49, %v2144_v47  ;;  %v2876_v52 = vadd.f32 %v2231_v44, %v2119_v62 }
 0x120   : > { %v2878_v53 = vadd.f32 %v2234_v50, %v2122_v3 }
 0x122   : > { %v2235_v54 = vpop.f32.mrb[20].mxu1  ;;  %v2147_v55 = vpop.f32.mrb[20].mxu0 }
 0x123   : > { %v2236_v56 = vpop.f32.mrb[21].mxu1  ;;  %v2148_v57 = vpop.f32.mrb[21].mxu0 }
 0x124   : > { %v2237_v58 = vadd.f32 %v2236_v56, %v2235_v54  ;;  %v2238_v59 = vpop.f32.mrb[22].mxu1  ;;  %v2149_v61 = vadd.f32 %v2148_v57, %v2147_v55  ;;  %v2150_v63 = vpop.f32.mrb[22].mxu0 }
 0x125   : > { %v2239_v0 = vpop.f32.mrb[23].mxu1  ;;  %v2151_v1 = vpop.f32.mrb[23].mxu0 }
 0x126   : > { %v2240_v4 = vadd.f32 %v2239_v0, %v2238_v59  ;;  %v2152_v5 = vadd.f32 %v2151_v1, %v2150_v63  ;;  %v2880_v6 = vadd.f32 %v2237_v58, %v2125_v10 }
 0x128   : > { %v2882_v7 = vadd.f32 %v2240_v4, %v2128_v15 }
 0x12a   : > { %v2241_v62 = vpop.f32.mrb[24].mxu1  ;;  %v2153_v9 = vpop.f32.mrb[24].mxu0 }
 0x12b   : > { %v2242_v3 = vpop.f32.mrb[25].mxu1  ;;  %v2154_v11 = vpop.f32.mrb[25].mxu0 }
 0x12c   : > { %v2243_v12 = vadd.f32 %v2242_v3, %v2241_v62  ;;  %v2244_v13 = vpop.f32.mrb[26].mxu1  ;;  %v2155_v16 = vadd.f32 %v2154_v11, %v2153_v9  ;;  %v2156_v17 = vpop.f32.mrb[26].mxu0 }
 0x12d   : > { %v2245_v18 = vpop.f32.mrb[27].mxu1  ;;  %v2157_v19 = vpop.f32.mrb[27].mxu0 }
 0x12e   : > { %v2246_v21 = vadd.f32 %v2245_v18, %v2244_v13  ;;  %v2158_v23 = vadd.f32 %v2157_v19, %v2156_v17  ;;  %v2884_v24 = vadd.f32 %v2243_v12, %v2131_v22 }
 0x130   : > { %v2886_v25 = vadd.f32 %v2246_v21, %v2134_v27 }
 0x132   : > { %v2247_v10 = vpop.f32.mrb[28].mxu1  ;;  %v2159_v28 = vpop.f32.mrb[28].mxu0 }
 0x133   : > { %v2248_v15 = vpop.f32.mrb[29].mxu1  ;;  %v2160_v29 = vpop.f32.mrb[29].mxu0 }
 0x134   : > { %v2249_v30 = vadd.f32 %v2248_v15, %v2247_v10  ;;  %v2250_v31 = vpop.f32.mrb[30].mxu1  ;;  %v2161_v33 = vadd.f32 %v2160_v29, %v2159_v28  ;;  %v2162_v35 = vpop.f32.mrb[30].mxu0 }
 0x135   : > { %v2251_v36 = vpop.f32.mrb[31].mxu1  ;;  %v2163_v37 = vpop.f32.mrb[31].mxu0 }
 0x136   : > { %v2252_v40 = vadd.f32 %v2251_v36, %v2250_v31  ;;  %v2164_v41 = vadd.f32 %v2163_v37, %v2162_v35  ;;  %v2888_v42 = vadd.f32 %v2249_v30, %v2137_v34 }
 0x138   : > { %v2890_v43 = vadd.f32 %v2252_v40, %v2140_v39 }
 0x13a   : > { %v2253_v22 = vpop.f32.mrb[32].mxu1  ;;  %v2165_v44 = vpop.f32.mrb[32].mxu0 }
 0x13b   : > { %v2254_v27 = vpop.f32.mrb[33].mxu1  ;;  %v2166_v45 = vpop.f32.mrb[33].mxu0 }
 0x13c   : > { %v2255_v47 = vadd.f32 %v2254_v27, %v2253_v22  ;;  %v2256_v48 = vpop.f32.mrb[34].mxu1  ;;  %v2892_v49 = vadd.f32 %v2166_v45, %v2165_v44  ;;  %v2168_v50 = vpop.f32.mrb[34].mxu0 }
 0x13d   : > { %v2257_v54 = vpop.f32.mrb[35].mxu1  ;;  %v2169_v55 = vpop.f32.mrb[35].mxu0 }
 0x13e   : > { %v2258_v56 = vadd.f32 %v2257_v54, %v2256_v48  ;;  %v2894_v57 = vadd.f32 %v2169_v55, %v2168_v50  ;;  %v2896_v58 = vadd.f32 %v2255_v47, %v2143_v46 }
 0x140   : > { %v2898_v34 = vadd.f32 %v2258_v56, %v2146_v51 }
 0x142   : > { %v2259_v39 = vpop.f32.mrb[36].mxu1  ;;  %v2171_v59 = vpop.f32.mrb[36].mxu0 }
 0x143   : > { %v2260_v63 = vpop.f32.mrb[37].mxu1  ;;  %v2172_v0 = vpop.f32.mrb[37].mxu0 }
 0x144   : > { %v2261_v1 = vadd.f32 %v2260_v63, %v2259_v39  ;;  %v2262_v4 = vpop.f32.mrb[38].mxu1  ;;  %v2900_v62 = vadd.f32 %v2172_v0, %v2171_v59  ;;  %v2174_v9 = vpop.f32.mrb[38].mxu0  ;;  %v2927_v63 = vld [vmem:[%s3060_s2] ss:$0 sm:$0xff] }
 0x145   : > { %v2263_v3 = vpop.f32.mrb[39].mxu1  ;;  %v2175_v11 = vpop.f32.mrb[39].mxu0 }
 0x146   : > { %v2264_v12 = vadd.f32 %v2263_v3, %v2262_v4  ;;  %v2902_v13 = vadd.f32 %v2175_v11, %v2174_v9  ;;  %v2904_v17 = vadd.f32 %v2261_v1, %v2149_v61 }
 0x148   : > { %v2906_v46 = vadd.f32 %v2264_v12, %v2152_v5 }
 0x14a   : > { %v2265_v51 = vpop.f32.mrb[40].mxu1  ;;  %v2177_v18 = vpop.f32.mrb[40].mxu0 }
 0x14b   : > { %v2266_v19 = vpop.f32.mrb[41].mxu1  ;;  %v2178_v21 = vpop.f32.mrb[41].mxu0 }
 0x14c   : > { %v2267_v10 = vadd.f32 %v2266_v19, %v2265_v51  ;;  %v2268_v28 = vpop.f32.mrb[42].mxu1  ;;  %v2908_v15 = vadd.f32 %v2178_v21, %v2177_v18  ;;  %v2180_v29 = vpop.f32.mrb[42].mxu0 }
 0x14d   : > { %v2269_v30 = vpop.f32.mrb[43].mxu1  ;;  %v2181_v31 = vpop.f32.mrb[43].mxu0 }
 0x14e   : > { %v2270_v35 = vadd.f32 %v2269_v30, %v2268_v28  ;;  %v2910_v36 = vadd.f32 %v2181_v31, %v2180_v29  ;;  %v2912_v37 = vadd.f32 %v2267_v10, %v2155_v16 }
 0x150   : > { %v2914_v61 = vadd.f32 %v2270_v35, %v2158_v23 }
 0x152   : > { %v2271_v5 = vpop.f32.mrb[44].mxu1  ;;  %v2183_v40 = vpop.f32.mrb[44].mxu0 }
 0x153   : > { %v2272_v22 = vpop.f32.mrb[45].mxu1  ;;  %v2184_v44 = vpop.f32.mrb[45].mxu0 }
 0x154   : > { %v2273_v27 = vadd.f32 %v2272_v22, %v2271_v5  ;;  %v2274_v45 = vpop.f32.mrb[46].mxu1  ;;  %v2916_v47 = vadd.f32 %v2184_v44, %v2183_v40  ;;  %v2186_v48 = vpop.f32.mrb[46].mxu0 }
 0x155   : > { %v2275_v50 = vpop.f32.mrb[47].mxu1  ;;  %v2187_v54 = vpop.f32.mrb[47].mxu0 }
 0x156   : > { %v2276_v55 = vadd.f32 %v2275_v50, %v2274_v45  ;;  %v2918_v56 = vadd.f32 %v2187_v54, %v2186_v48  ;;  %v2920_v39 = vadd.f32 %v2273_v27, %v2161_v33 }
 0x158   : > { %v2922_v16 = vadd.f32 %v2276_v55, %v2164_v41 }
 0x15a   : > { %v2277_v23 = vpop.f32.mrb[48].mxu1  ;;  %v2367_v59 = vpop.f32.mrb[48].mxu0 }
 0x15b   : > { %v1533_v0 = vadd.f32 %v2367_v59, %v2880_v6  ;;  %v2278_v1 = vpop.f32.mrb[49].mxu1  ;;  %v1524_v4 = vpop.f32.mrb[49].mxu0 }
 0x15c   : > { %v2279_v9 = vadd.f32 %v2278_v1, %v2277_v23  ;;  %v1525_v3 = vadd.f32 %v1524_v4, %v2876_v52  ;;  %v2280_v11 = vpop.f32.mrb[50].mxu1  ;;  %v2368_v33 = vpop.f32.mrb[50].mxu0 }
 0x15d   : > { %v1759_v41 = vadd.f32 %v2927_v63, %v1533_v0  ;;  %v1536_v12 = vadd.f32 %v2368_v33, %v2882_v7  ;;  %v2281_v51 = vpop.f32.mrb[51].mxu1  ;;  %v1527_v18 = vpop.f32.mrb[51].mxu0 }
 0x15e   : > { %v1757_v6 = vadd.f32 %v2927_v63, %v1525_v3  ;;  %v2282_v19 = vadd.f32 %v2281_v51, %v2280_v11  ;;  %v1528_v52 = vadd.f32 %v1527_v18, %v2878_v53  ;;  %v2942_v21 = vadd.f32 %v2279_v9, %v2892_v49 }
 0x15f   : > { %v1791_v7 = vmax.f32 %v1759_v41, 0.0  ;;  %v1760_v10 = vadd.f32 %v2927_v63, %v1536_v12 }
 0x160   : > { %v1789_v28 = vmax.f32 %v1757_v6, 0.0  ;;  %v1758_v29 = vadd.f32 %v2927_v63, %v1528_v52  ;;  %v2947_v30 = vadd.f32 %v2282_v19, %v2894_v57 }
 0x161   : > { %1823 = vst [vmem:[%s2937_s12 + $0x10] sm:$0xff] %v1791_v7  ;;  %v1792_v31 = vmax.f32 %v1760_v10, 0.0 }
 0x162   : > { %1821 = vst [vmem:[%s2937_s12] sm:$0xff] %v1789_v28  ;;  %v1790_v35 = vmax.f32 %v1758_v29, 0.0  ;;  %v2283_v5 = vpop.f32.mrb[52].mxu1  ;;  %v2371_v40 = vpop.f32.mrb[52].mxu0 }
 0x163   : > { %1824 = vst [vmem:[%s2937_s12 + $0x18] sm:$0xff] %v1792_v31  ;;  %v1549_v53 = vadd.f32 %v2371_v40, %v2888_v42  ;;  %v2284_v49 = vpop.f32.mrb[53].mxu1  ;;  %v1540_v22 = vpop.f32.mrb[53].mxu0 }
 0x164   : > { %1822 = vst [vmem:[%s2937_s12 + $0x8] sm:$0xff] %v1790_v35  ;;  %v2285_v44 = vadd.f32 %v2284_v49, %v2283_v5  ;;  %v1541_v27 = vadd.f32 %v1540_v22, %v2884_v24  ;;  %v2286_v45 = vpop.f32.mrb[54].mxu1  ;;  %v2372_v48 = vpop.f32.mrb[54].mxu0 }
 0x165   : > { %v1763_v57 = vadd.f32 %v2927_v63, %v1549_v53  ;;  %v1552_v50 = vadd.f32 %v2372_v48, %v2890_v43  ;;  %v2287_v54 = vpop.f32.mrb[55].mxu1  ;;  %v1543_v55 = vpop.f32.mrb[55].mxu0 }
 0x166   : > { %v1761_v23 = vadd.f32 %v2927_v63, %v1541_v27  ;;  %v2288_v42 = vadd.f32 %v2287_v54, %v2286_v45  ;;  %v1544_v59 = vadd.f32 %v1543_v55, %v2886_v25  ;;  %v2960_v0 = vadd.f32 %v2285_v44, %v2900_v62 }
 0x167   : > { %v1795_v24 = vmax.f32 %v1763_v57, 0.0  ;;  %v1764_v1 = vadd.f32 %v2927_v63, %v1552_v50 }
 0x168   : > { %v1793_v4 = vmax.f32 %v1761_v23, 0.0  ;;  %v1762_v9 = vadd.f32 %v2927_v63, %v1544_v59  ;;  %v2965_v43 = vadd.f32 %v2288_v42, %v2902_v13 }
 0x169   : > { %1827 = vst [vmem:[%s2937_s12 + $0x30] sm:$0xff] %v1795_v24  ;;  %v1796_v3 = vmax.f32 %v1764_v1, 0.0 }
 0x16a   : > { %1825 = vst [vmem:[%s2937_s12 + $0x20] sm:$0xff] %v1793_v4  ;;  %v1794_v11 = vmax.f32 %v1762_v9, 0.0  ;;  %v2289_v33 = vpop.f32.mrb[56].mxu1  ;;  %v2375_v41 = vpop.f32.mrb[56].mxu0 }
 0x16b   : > { %1828 = vst [vmem:[%s2937_s12 + $0x38] sm:$0xff] %v1796_v3  ;;  %v1565_v25 = vadd.f32 %v2375_v41, %v2904_v17  ;;  %v2290_v62 = vpop.f32.mrb[57].mxu1  ;;  %v1556_v12 = vpop.f32.mrb[57].mxu0 }
 0x16c   : > { %1826 = vst [vmem:[%s2937_s12 + $0x28] sm:$0xff] %v1794_v11  ;;  %v2291_v51 = vadd.f32 %v2290_v62, %v2289_v33  ;;  %v1557_v18 = vadd.f32 %v1556_v12, %v2896_v58  ;;  %v2292_v6 = vpop.f32.mrb[58].mxu1  ;;  %v2376_v19 = vpop.f32.mrb[58].mxu0 }
 0x16d   : > { %v1767_v13 = vadd.f32 %v2927_v63, %v1565_v25  ;;  %v1568_v52 = vadd.f32 %v2376_v19, %v2906_v46  ;;  %v2293_v7 = vpop.f32.mrb[59].mxu1  ;;  %v1559_v10 = vpop.f32.mrb[59].mxu0 }
 0x16e   : > { %v1765_v28 = vadd.f32 %v2927_v63, %v1557_v18  ;;  %v2294_v17 = vadd.f32 %v2293_v7, %v2292_v6  ;;  %v1560_v29 = vadd.f32 %v1559_v10, %v2898_v34  ;;  %v2978_v31 = vadd.f32 %v2291_v51, %v2908_v15 }
 0x16f   : > { %v1799_v58 = vmax.f32 %v1767_v13, 0.0  ;;  %v1768_v35 = vadd.f32 %v2927_v63, %v1568_v52 }
 0x170   : > { %v1797_v5 = vmax.f32 %v1765_v28, 0.0  ;;  %v1766_v40 = vadd.f32 %v2927_v63, %v1560_v29  ;;  %v2983_v46 = vadd.f32 %v2294_v17, %v2910_v36 }
 0x171   : > { %1831 = vst [vmem:[%s2937_s12 + $0x50] sm:$0xff] %v1799_v58  ;;  %v1800_v53 = vmax.f32 %v1768_v35, 0.0 }
 0x172   : > { %1829 = vst [vmem:[%s2937_s12 + $0x40] sm:$0xff] %v1797_v5  ;;  %v1798_v49 = vmax.f32 %v1766_v40, 0.0  ;;  %v2295_v22 = vpop.f32.mrb[60].mxu1  ;;  %v2379_v44 = vpop.f32.mrb[60].mxu0 }
 0x173   : > { %1832 = vst [vmem:[%s2937_s12 + $0x58] sm:$0xff] %v1800_v53  ;;  %v1581_v34 = vadd.f32 %v2379_v44, %v2920_v39  ;;  %v2296_v15 = vpop.f32.mrb[61].mxu1  ;;  %v1572_v27 = vpop.f32.mrb[61].mxu0 }
 0x174   : > { %1830 = vst [vmem:[%s2937_s12 + $0x48] sm:$0xff] %v1798_v49  ;;  %v2297_v45 = vadd.f32 %v2296_v15, %v2295_v22  ;;  %v1573_v48 = vadd.f32 %v1572_v27, %v2912_v37  ;;  %v2298_v57 = vpop.f32.mrb[62].mxu1  ;;  %v2380_v50 = vpop.f32.mrb[62].mxu0 }
 0x175   : > { %v1771_v36 = vadd.f32 %v2927_v63, %v1581_v34  ;;  %v1584_v54 = vadd.f32 %v2380_v50, %v2922_v16  ;;  %v2299_v55 = vpop.f32.mrb[63].mxu1  ;;  %v1575_v23 = vpop.f32.mrb[63].mxu0 }
 0x176   : > { %v1769_v42 = vadd.f32 %v2927_v63, %v1573_v48  ;;  %v2300_v39 = vadd.f32 %v2299_v55, %v2298_v57  ;;  %v1576_v59 = vadd.f32 %v1575_v23, %v2914_v61  ;;  %v1452_v24 = vadd.f32 %v2297_v45, %v2916_v47 }
 0x177   : > { %v1803_v37 = vmax.f32 %v1771_v36, 0.0  ;;  %v1772_v1 = vadd.f32 %v2927_v63, %v1584_v54 }
 0x178   : > { %v1801_v4 = vmax.f32 %v1769_v42, 0.0  ;;  %v1770_v9 = vadd.f32 %v2927_v63, %v1576_v59  ;;  %v1455_v3 = vadd.f32 %v2300_v39, %v2918_v56 }
 0x179   : > { %1835 = vst [vmem:[%s2937_s12 + $0x70] sm:$0xff] %v1803_v37  ;;  %v1804_v16 = vmax.f32 %v1772_v1, 0.0 }
 0x17a   : > { %1833 = vst [vmem:[%s2937_s12 + $0x60] sm:$0xff] %v1801_v4  ;;  %v1802_v11 = vmax.f32 %v1770_v9, 0.0  ;;  %v2301_v33 = vpop.f32.mrb[64].mxu1  ;;  %v2383_v41 = vpop.f32.mrb[64].mxu0 }
 0x17b   : > { %1836 = vst [vmem:[%s2937_s12 + $0x78] sm:$0xff] %v1804_v16  ;;  %v1597_v61 = vadd.f32 %v2383_v41, %v2960_v0  ;;  %v2302_v25 = vpop.f32.mrb[65].mxu1  ;;  %v1588_v47 = vpop.f32.mrb[65].mxu0 }
 0x17c   : > { %1834 = vst [vmem:[%s2937_s12 + $0x68] sm:$0xff] %v1802_v11  ;;  %v2303_v62 = vadd.f32 %v2302_v25, %v2301_v33  ;;  %v1589_v12 = vadd.f32 %v1588_v47, %v2942_v21  ;;  %v2304_v51 = vpop.f32.mrb[66].mxu1  ;;  %v2384_v18 = vpop.f32.mrb[66].mxu0 }
 0x17d   : > { %v1775_v56 = vadd.f32 %v2927_v63, %v1597_v61  ;;  %v1600_v6 = vadd.f32 %v2384_v18, %v2965_v43  ;;  %v2305_v19 = vpop.f32.mrb[67].mxu1  ;;  %v1591_v13 = vpop.f32.mrb[67].mxu0 }
 0x17e   : > { %v1773_v52 = vadd.f32 %v2927_v63, %v1589_v12  ;;  %v2306_v0 = vadd.f32 %v2305_v19, %v2304_v51  ;;  %v1592_v7 = vadd.f32 %v1591_v13, %v2947_v30  ;;  %v1460_v10 = vadd.f32 %v2303_v62, %v2860_v60 }
 0x17f   : > { %v1807_v21 = vmax.f32 %v1775_v56, 0.0  ;;  %v1776_v28 = vadd.f32 %v2927_v63, %v1600_v6 }
 0x180   : > { %v1805_v17 = vmax.f32 %v1773_v52, 0.0  ;;  %v1774_v29 = vadd.f32 %v2927_v63, %v1592_v7  ;;  %v1463_v58 = vadd.f32 %v2306_v0, %v2862_v2 }
 0x181   : > { %1839 = vst [vmem:[%s2937_s12 + $0x90] sm:$0xff] %v1807_v21  ;;  %v1808_v43 = vmax.f32 %v1776_v28, 0.0 }
 0x182   : > { %1837 = vst [vmem:[%s2937_s12 + $0x80] sm:$0xff] %v1805_v17  ;;  %v1806_v35 = vmax.f32 %v1774_v29, 0.0  ;;  %v2307_v5 = vpop.f32.mrb[68].mxu1  ;;  %v2387_v40 = vpop.f32.mrb[68].mxu0 }
 0x183   : > { %1840 = vst [vmem:[%s2937_s12 + $0x98] sm:$0xff] %v1808_v43  ;;  %v1613_v53 = vadd.f32 %v2387_v40, %v1452_v24  ;;  %v2308_v30 = vpop.f32.mrb[69].mxu1  ;;  %v1604_v49 = vpop.f32.mrb[69].mxu0 }
 0x184   : > { %1838 = vst [vmem:[%s2937_s12 + $0x88] sm:$0xff] %v1806_v35  ;;  %v2309_v60 = vadd.f32 %v2308_v30, %v2307_v5  ;;  %v1605_v22 = vadd.f32 %v1604_v49, %v2978_v31  ;;  %v2310_v44 = vpop.f32.mrb[70].mxu1  ;;  %v2388_v34 = vpop.f32.mrb[70].mxu0 }
 0x185   : > { %v1779_v2 = vadd.f32 %v2927_v63, %v1613_v53  ;;  %v1616_v15 = vadd.f32 %v2388_v34, %v1455_v3  ;;  %v2311_v27 = vpop.f32.mrb[71].mxu1  ;;  %v1607_v45 = vpop.f32.mrb[71].mxu0 }
 0x186   : > { %v1777_v48 = vadd.f32 %v2927_v63, %v1605_v22  ;;  %v2312_v57 = vadd.f32 %v2311_v27, %v2310_v44  ;;  %v1608_v50 = vadd.f32 %v1607_v45, %v2983_v46  ;;  %v1468_v36 = vadd.f32 %v2309_v60, %v2864_v8 }
 0x187   : > { %v1811_v54 = vmax.f32 %v1779_v2, 0.0  ;;  %v1780_v31 = vadd.f32 %v2927_v63, %v1616_v15 }
 0x188   : > { %v1809_v55 = vmax.f32 %v1777_v48, 0.0  ;;  %v1778_v23 = vadd.f32 %v2927_v63, %v1608_v50  ;;  %v1471_v42 = vadd.f32 %v2312_v57, %v2866_v14 }
 0x189   : > { %1843 = vst [vmem:[%s2937_s12 + $0xb0] sm:$0xff] %v1811_v54  ;;  %v1812_v39 = vmax.f32 %v1780_v31, 0.0 }
 0x18a   : > { %1841 = vst [vmem:[%s2937_s12 + $0xa0] sm:$0xff] %v1809_v55  ;;  %v1810_v59 = vmax.f32 %v1778_v23, 0.0  ;;  %v2313_v24 = vpop.f32.mrb[72].mxu1  ;;  %v2391_v37 = vpop.f32.mrb[72].mxu0 }
 0x18b   : > { %1844 = vst [vmem:[%s2937_s12 + $0xb8] sm:$0xff] %v1812_v39  ;;  %v1629_v1 = vadd.f32 %v2391_v37, %v1468_v36  ;;  %v2314_v46 = vpop.f32.mrb[73].mxu1  ;;  %v1620_v4 = vpop.f32.mrb[73].mxu0 }
 0x18c   : > { %1842 = vst [vmem:[%s2937_s12 + $0xa8] sm:$0xff] %v1810_v59  ;;  %v2315_v8 = vadd.f32 %v2314_v46, %v2313_v24  ;;  %v1621_v9 = vadd.f32 %v1620_v4, %v1460_v10  ;;  %v2316_v3 = vpop.f32.mrb[74].mxu1  ;;  %v2392_v16 = vpop.f32.mrb[74].mxu0 }
 0x18d   : > { %v1783_v11 = vadd.f32 %v2927_v63, %v1629_v1  ;;  %v1632_v14 = vadd.f32 %v2392_v16, %v1471_v42  ;;  %v2317_v33 = vpop.f32.mrb[75].mxu1  ;;  %v1623_v41 = vpop.f32.mrb[75].mxu0 }
 0x18e   : > { %v1781_v61 = vadd.f32 %v2927_v63, %v1621_v9  ;;  %v2318_v25 = vadd.f32 %v2317_v33, %v2316_v3  ;;  %v1624_v47 = vadd.f32 %v1623_v41, %v1463_v58  ;;  %v1476_v62 = vadd.f32 %v2315_v8, %v2868_v20 }
 0x18f   : > { %v1815_v12 = vmax.f32 %v1783_v11, 0.0  ;;  %v1784_v51 = vadd.f32 %v2927_v63, %v1632_v14 }
 0x190   : > { %v1813_v18 = vmax.f32 %v1781_v61, 0.0  ;;  %v1782_v56 = vadd.f32 %v2927_v63, %v1624_v47  ;;  %v1479_v6 = vadd.f32 %v2318_v25, %v2870_v26 }
 0x191   : > { %1847 = vst [vmem:[%s2937_s12 + $0xd0] sm:$0xff] %v1815_v12  ;;  %v1816_v19 = vmax.f32 %v1784_v51, 0.0 }
 0x192   : > { %1845 = vst [vmem:[%s2937_s12 + $0xc0] sm:$0xff] %v1813_v18  ;;  %v1814_v13 = vmax.f32 %v1782_v56, 0.0  ;;  %v2319_v52 = vpop.f32.mrb[76].mxu1  ;;  %v2395_v0 = vpop.f32.mrb[76].mxu0 }
 0x193   : > { %1848 = vst [vmem:[%s2937_s12 + $0xd8] sm:$0xff] %v1816_v19  ;;  %v2320_v7 = vpop.f32.mrb[77].mxu1  ;;  %v1636_v10 = vpop.f32.mrb[77].mxu0 }
 0x194   : > { %1846 = vst [vmem:[%s2937_s12 + $0xc8] sm:$0xff] %v1814_v13  ;;  %v2321_v20 = vadd.f32 %v2320_v7, %v2319_v52  ;;  %v1637_v21 = vadd.f32 %v1636_v10, %v1476_v62  ;;  %v2322_v28 = vpop.f32.mrb[78].mxu1  ;;  %v2396_v17 = vpop.f32.mrb[78].mxu0 }
 0x195   : > { %v2323_v29 = vpop.f32.mrb[79].mxu1  ;;  %v1639_v58 = vpop.f32.mrb[79].mxu0 }
 0x196   : > { %v1484_v26 = vadd.f32 %v2321_v20, %v2872_v32  ;;  %v1785_v43 = vadd.f32 %v2927_v63, %v1637_v21  ;;  %v2324_v35 = vadd.f32 %v2323_v29, %v2322_v28  ;;  %v1640_v5 = vadd.f32 %v1639_v58, %v1479_v6 }
 0x198   : > { %v1645_v40 = vadd.f32 %v2395_v0, %v1484_v26  ;;  %v1817_v53 = vmax.f32 %v1785_v43, 0.0  ;;  %v1487_v30 = vadd.f32 %v2324_v35, %v2874_v38  ;;  %v1786_v49 = vadd.f32 %v2927_v63, %v1640_v5 }
 0x19a   : > { %v1787_v60 = vadd.f32 %v2927_v63, %v1645_v40  ;;  %1849 = vst [vmem:[%s2937_s12 + $0xe0] sm:$0xff] %v1817_v53  ;;  %v1648_v22 = vadd.f32 %v2396_v17, %v1487_v30  ;;  %v1818_v44 = vmax.f32 %v1786_v49, 0.0 }
 0x19c   : > { %v1819_v34 = vmax.f32 %v1787_v60, 0.0  ;;  %v1788_v2 = vadd.f32 %v2927_v63, %v1648_v22  ;;  %1850 = vst [vmem:[%s2937_s12 + $0xe8] sm:$0xff] %v1818_v44 }
 0x19e   : > { %1851 = vst [vmem:[%s2937_s12 + $0xf0] sm:$0xff] %v1819_v34  ;;  %v1820_v32 = vmax.f32 %v1788_v2, 0.0 }
 0x1a0   : > { %1852 = vst [vmem:[%s2937_s12 + $0xf8] sm:$0xff] %v1820_v32 }
 0x1a1 PF: > { %s13_s14 = sadd.s32 1, %s2612_s14   ;;  %s3062_s12 = smov %s2608_s13 }
 0x1a2   : > { %p10_p5 = scmp.ge.s32.totalorder %s13_s14, 4   ;;  %s3063_s13 = smov %s3065_s15 }
 0x1a4   :  { %12 = sbr.rel (!%p10_p5) target bundleno = 2 (0x2), region = 76 }

// kernel: dsamnet_forward.15
= control target key start
LH: loop header
LB: loop body
LE: loop exit
PB: predicated region body
PF: predicated region fallthrough
CT: control target
= control target key end

     0   :  { %s2099_s1 = inlined_call_operand.vmem [shape: bf16[1152,256], index: 1, kind: input, shape index: {}]   ;;  %s2100_s0 = inlined_call_operand.vmem [shape: bf16[16,1152], index: 0, kind: input, shape index: {}]   ;;  %s2101_s2 = inlined_call_operand.vmem [shape: f32[1,256], index: 2, kind: input, shape index: {}]   ;;  %s2102_s3 = inlined_call_operand.vmem [shape: f32[16,256], index: 3, kind: output, shape index: {}]  }
   0x1   :  { %v1375_v0 = vld [vmem:[%s2099_s1 + $0x4] ss:$8 sps:$4 sm:$0xff]   ;;  %v1379_v2 = vld [vmem:[%s2099_s1] ss:$8 sps:$4 sm:$0xff]   ;;  %v1381_v4 = vld [vmem:[%s2099_s1 + $0x14] ss:$8 sps:$4 sm:$0xff]  }
   0x2   :  { %v1377_v1 = vld [vmem:[%s2099_s1 + $0x204] ss:$8 sps:$4 sm:$0xff]   ;;  %947 = vmatprep.subr.bf16.mxu1 %v1375_v0  ;;  %v1380_v3 = vld [vmem:[%s2099_s1 + $0x200] ss:$8 sps:$4 sm:$0xff]   ;;  %v1383_v5 = vld [vmem:[%s2099_s1 + $0x214] ss:$8 sps:$4 sm:$0xff]  }
   0x3   :  { %1033 = vmatprep.subr.bf16.mxu0 %v1377_v1  ;;  %948 = vmatpush1.bf16.msra.mxu1 %v1379_v2  ;;  %v1385_v6 = vld [vmem:[%s2099_s1 + $0x10] ss:$8 sps:$4 sm:$0xff]   ;;  %v1387_v8 = vld [vmem:[%s2099_s1 + $0x24] ss:$8 sps:$4 sm:$0xff]   ;;  %v1391_v10 = vld [vmem:[%s2099_s1 + $0x20] ss:$8 sps:$4 sm:$0xff]  }
   0x4   :  { %1034 = vmatpush1.bf16.msra.mxu0 %v1380_v3  ;;  %949 = vmatprep.subr.bf16.mxu1 %v1381_v4  ;;  %v1386_v7 = vld [vmem:[%s2099_s1 + $0x210] ss:$8 sps:$4 sm:$0xff]   ;;  %v1389_v9 = vld [vmem:[%s2099_s1 + $0x224] ss:$8 sps:$4 sm:$0xff]   ;;  %v1392_v11 = vld [vmem:[%s2099_s1 + $0x220] ss:$8 sps:$4 sm:$0xff]  }
   0x5   :  { %1035 = vmatprep.subr.bf16.mxu0 %v1383_v5  ;;  %v1393_v12 = vld [vmem:[%s2099_s1 + $0x34] ss:$8 sps:$4 sm:$0xff]   ;;  %v1397_v14 = vld [vmem:[%s2099_s1 + $0x30] ss:$8 sps:$4 sm:$0xff]   ;;  %v1399_v16 = vld [vmem:[%s2099_s1 + $0x44] ss:$8 sps:$4 sm:$0xff]  }
   0x6   :  { %v1395_v13 = vld [vmem:[%s2099_s1 + $0x234] ss:$8 sps:$4 sm:$0xff]   ;;  %v1398_v15 = vld [vmem:[%s2099_s1 + $0x230] ss:$8 sps:$4 sm:$0xff]   ;;  %v1401_v17 = vld [vmem:[%s2099_s1 + $0x244] ss:$8 sps:$4 sm:$0xff]  }
   0x7   :  { %950 = vmatpush1.bf16.msra.mxu1 %v1385_v6  ;;  %v1403_v18 = vld [vmem:[%s2099_s1 + $0x40] ss:$8 sps:$4 sm:$0xff]   ;;  %v1405_v20 = vld [vmem:[%s2099_s1 + $0x54] ss:$8 sps:$4 sm:$0xff]   ;;  %v1409_v22 = vld [vmem:[%s2099_s1 + $0x50] ss:$8 sps:$4 sm:$0xff]  }
   0x8   :  { %1036 = vmatpush1.bf16.msra.mxu0 %v1386_v7  ;;  %951 = vmatprep.subr.bf16.mxu1 %v1387_v8  ;;  %v1404_v19 = vld [vmem:[%s2099_s1 + $0x240] ss:$8 sps:$4 sm:$0xff]   ;;  %v1407_v21 = vld [vmem:[%s2099_s1 + $0x254] ss:$8 sps:$4 sm:$0xff]   ;;  %v1410_v23 = vld [vmem:[%s2099_s1 + $0x250] ss:$8 sps:$4 sm:$0xff]  }
   0x9   :  { %1037 = vmatprep.subr.bf16.mxu0 %v1389_v9  ;;  %v1411_v24 = vld [vmem:[%s2099_s1 + $0x64] ss:$8 sps:$4 sm:$0xff]   ;;  %v1415_v26 = vld [vmem:[%s2099_s1 + $0x60] ss:$8 sps:$4 sm:$0xff]   ;;  %v1417_v28 = vld [vmem:[%s2099_s1 + $0x74] ss:$8 sps:$4 sm:$0xff]  }
   0xa   :  { %v1413_v25 = vld [vmem:[%s2099_s1 + $0x264] ss:$8 sps:$4 sm:$0xff]   ;;  %v1416_v27 = vld [vmem:[%s2099_s1 + $0x260] ss:$8 sps:$4 sm:$0xff]   ;;  %v1419_v29 = vld [vmem:[%s2099_s1 + $0x274] ss:$8 sps:$4 sm:$0xff]  }
   0xb   :  { %952 = vmatpush1.bf16.msra.mxu1 %v1391_v10  ;;  %v1421_v30 = vld [vmem:[%s2099_s1 + $0x70] ss:$8 sps:$4 sm:$0xff]   ;;  %v1423_v32 = vld [vmem:[%s2099_s1 + $0x84] ss:$8 sps:$4 sm:$0xff]   ;;  %v1427_v34 = vld [vmem:[%s2099_s1 + $0x80] ss:$8 sps:$4 sm:$0xff]  }
   0xc   :  { %1038 = vmatpush1.bf16.msra.mxu0 %v1392_v11  ;;  %953 = vmatprep.subr.bf16.mxu1 %v1393_v12  ;;  %v1422_v31 = vld [vmem:[%s2099_s1 + $0x270] ss:$8 sps:$4 sm:$0xff]   ;;  %v1425_v33 = vld [vmem:[%s2099_s1 + $0x284] ss:$8 sps:$4 sm:$0xff]   ;;  %v1428_v35 = vld [vmem:[%s2099_s1 + $0x280] ss:$8 sps:$4 sm:$0xff]  }
   0xd   :  { %1039 = vmatprep.subr.bf16.mxu0 %v1395_v13  ;;  %v1429_v36 = vld [vmem:[%s2099_s1 + $0x94] ss:$8 sps:$4 sm:$0xff]   ;;  %v1433_v38 = vld [vmem:[%s2099_s1 + $0x90] ss:$8 sps:$4 sm:$0xff]   ;;  %v1435_v40 = vld [vmem:[%s2099_s1 + $0xa4] ss:$8 sps:$4 sm:$0xff]  }
   0xe   :  { %v1431_v37 = vld [vmem:[%s2099_s1 + $0x294] ss:$8 sps:$4 sm:$0xff]   ;;  %v1434_v39 = vld [vmem:[%s2099_s1 + $0x290] ss:$8 sps:$4 sm:$0xff]   ;;  %v1437_v41 = vld [vmem:[%s2099_s1 + $0x2a4] ss:$8 sps:$4 sm:$0xff]  }
   0xf   :  { %954 = vmatpush1.bf16.msra.mxu1 %v1397_v14  ;;  %v1439_v42 = vld [vmem:[%s2099_s1 + $0xa0] ss:$8 sps:$4 sm:$0xff]   ;;  %v1441_v44 = vld [vmem:[%s2099_s1 + $0xb4] ss:$8 sps:$4 sm:$0xff]   ;;  %v1445_v46 = vld [vmem:[%s2099_s1 + $0xb0] ss:$8 sps:$4 sm:$0xff]  }
  0x10   :  { %1040 = vmatpush1.bf16.msra.mxu0 %v1398_v15  ;;  %955 = vmatprep.subr.bf16.mxu1 %v1399_v16  ;;  %v1440_v43 = vld [vmem:[%s2099_s1 + $0x2a0] ss:$8 sps:$4 sm:$0xff]   ;;  %v1443_v45 = vld [vmem:[%s2099_s1 + $0x2b4] ss:$8 sps:$4 sm:$0xff]   ;;  %v1446_v47 = vld [vmem:[%s2099_s1 + $0x2b0] ss:$8 sps:$4 sm:$0xff]  }
  0x11   :  { %1041 = vmatprep.subr.bf16.mxu0 %v1401_v17  ;;  %v1473_v48 = vld [vmem:[%s2100_s0 + $0x4] ss:$36 sps:$4 sm:$0xff]   ;;  %v1479_v51 = vld [vmem:[%s2100_s0 + $0x14] ss:$36 sps:$4 sm:$0xff]  }
  0x12   :  { %v1447_v49 = vld [vmem:[%s2099_s1 + $0xc4] ss:$8 sps:$4 sm:$0xff]   ;;  %979 = vmatprep.mubr.bf16.mxu1 %v1473_v48  ;;  %v1451_v52 = vld [vmem:[%s2099_s1 + $0xc0] ss:$8 sps:$4 sm:$0xff]   ;;  %v1453_v54 = vld [vmem:[%s2099_s1 + $0xd4] ss:$8 sps:$4 sm:$0xff]   ;;  %1065 = vmatprep.mubr.bf16.mxu0 %v1479_v51 }
  0x13   :  { %956 = vmatpush1.bf16.msra.mxu1 %v1403_v18  ;;  %v1449_v50 = vld [vmem:[%s2099_s1 + $0x2c4] ss:$8 sps:$4 sm:$0xff]   ;;  %v1452_v53 = vld [vmem:[%s2099_s1 + $0x2c0] ss:$8 sps:$4 sm:$0xff]   ;;  %v1455_v55 = vld [vmem:[%s2099_s1 + $0x2d4] ss:$8 sps:$4 sm:$0xff]  }
  0x14   :  { %1042 = vmatpush1.bf16.msra.mxu0 %v1404_v19  ;;  %957 = vmatprep.subr.bf16.mxu1 %v1405_v20  ;;  %v1457_v56 = vld [vmem:[%s2099_s1 + $0xd0] ss:$8 sps:$4 sm:$0xff]   ;;  %v1459_v58 = vld [vmem:[%s2099_s1 + $0xe4] ss:$8 sps:$4 sm:$0xff]   ;;  %v1463_v60 = vld [vmem:[%s2099_s1 + $0xe0] ss:$8 sps:$4 sm:$0xff]  }
  0x15   :  { %1043 = vmatprep.subr.bf16.mxu0 %v1407_v21  ;;  %v1458_v57 = vld [vmem:[%s2099_s1 + $0x2d0] ss:$8 sps:$4 sm:$0xff]   ;;  %v1461_v59 = vld [vmem:[%s2099_s1 + $0x2e4] ss:$8 sps:$4 sm:$0xff]   ;;  %v1464_v61 = vld [vmem:[%s2099_s1 + $0x2e0] ss:$8 sps:$4 sm:$0xff]  }
  0x16   :  { %v1465_v62 = vld [vmem:[%s2099_s1 + $0xf4] ss:$8 sps:$4 sm:$0xff]   ;;  %v1469_v0 = vld [vmem:[%s2099_s1 + $0xf0] ss:$8 sps:$4 sm:$0xff]   ;;  %v1476_v2 = vld [vmem:[%s2099_s1 + $0x104] ss:$8 sps:$4 sm:$0xff]  }
  0x17   :  { %958 = vmatpush1.bf16.msra.mxu1 %v1409_v22  ;;  %v1467_v63 = vld [vmem:[%s2099_s1 + $0x2f4] ss:$8 sps:$4 sm:$0xff]   ;;  %v1470_v1 = vld [vmem:[%s2099_s1 + $0x2f0] ss:$8 sps:$4 sm:$0xff]   ;;  %v1482_v3 = vld [vmem:[%s2099_s1 + $0x304] ss:$8 sps:$4 sm:$0xff]  }
  0x18   :  { %1044 = vmatpush1.bf16.msra.mxu0 %v1410_v23  ;;  %959 = vmatprep.subr.bf16.mxu1 %v1411_v24  ;;  %v1471_v4 = vld [vmem:[%s2100_s0] ss:$36 sps:$4 sm:$0xff]   ;;  %v1477_v6 = vld [vmem:[%s2100_s0 + $0x10] ss:$36 sps:$4 sm:$0xff]  }
  0x19   :  { %1045 = vmatprep.subr.bf16.mxu0 %v1413_v25  ;;  %v1474_v5 = vld [vmem:[%s2099_s1 + $0x100] ss:$8 sps:$4 sm:$0xff]   ;;  %v1485_v8 = vld [vmem:[%s2099_s1 + $0x114] ss:$8 sps:$4 sm:$0xff]   ;;  %v1483_v10 = vld [vmem:[%s2099_s1 + $0x110] ss:$8 sps:$4 sm:$0xff]  }
  0x1a   :  { %v1480_v7 = vld [vmem:[%s2099_s1 + $0x300] ss:$8 sps:$4 sm:$0xff]   ;;  %v1488_v9 = vld [vmem:[%s2099_s1 + $0x314] ss:$8 sps:$4 sm:$0xff]   ;;  %v1486_v11 = vld [vmem:[%s2099_s1 + $0x310] ss:$8 sps:$4 sm:$0xff]  }
  0x1b   :  { %960 = vmatpush1.bf16.msra.mxu1 %v1415_v26  ;;  %v1491_v12 = vld [vmem:[%s2099_s1 + $0x124] ss:$8 sps:$4 sm:$0xff]   ;;  %v1489_v14 = vld [vmem:[%s2099_s1 + $0x120] ss:$8 sps:$4 sm:$0xff]   ;;  %v1497_v16 = vld [vmem:[%s2099_s1 + $0x134] ss:$8 sps:$4 sm:$0xff]  }
  0x1c   :  { %1046 = vmatpush1.bf16.msra.mxu0 %v1416_v27  ;;  %961 = vmatprep.subr.bf16.mxu1 %v1417_v28  ;;  %v1494_v13 = vld [vmem:[%s2099_s1 + $0x324] ss:$8 sps:$4 sm:$0xff]   ;;  %v1492_v15 = vld [vmem:[%s2099_s1 + $0x320] ss:$8 sps:$4 sm:$0xff]   ;;  %v1500_v17 = vld [vmem:[%s2099_s1 + $0x334] ss:$8 sps:$4 sm:$0xff]  }
  0x1d   :  { %1047 = vmatprep.subr.bf16.mxu0 %v1419_v29  ;;  %v1495_v18 = vld [vmem:[%s2099_s1 + $0x130] ss:$8 sps:$4 sm:$0xff]   ;;  %v1503_v20 = vld [vmem:[%s2099_s1 + $0x144] ss:$8 sps:$4 sm:$0xff]   ;;  %v1501_v22 = vld [vmem:[%s2099_s1 + $0x140] ss:$8 sps:$4 sm:$0xff]  }
  0x1e   :  { %v1498_v19 = vld [vmem:[%s2099_s1 + $0x330] ss:$8 sps:$4 sm:$0xff]   ;;  %v1506_v21 = vld [vmem:[%s2099_s1 + $0x344] ss:$8 sps:$4 sm:$0xff]   ;;  %v1504_v23 = vld [vmem:[%s2099_s1 + $0x340] ss:$8 sps:$4 sm:$0xff]  }
  0x1f   :  { %962 = vmatpush1.bf16.msra.mxu1 %v1421_v30  ;;  %v1509_v24 = vld [vmem:[%s2099_s1 + $0x154] ss:$8 sps:$4 sm:$0xff]   ;;  %v1507_v26 = vld [vmem:[%s2099_s1 + $0x150] ss:$8 sps:$4 sm:$0xff]   ;;  %v1515_v28 = vld [vmem:[%s2099_s1 + $0x164] ss:$8 sps:$4 sm:$0xff]  }
  0x20   :  { %1048 = vmatpush1.bf16.msra.mxu0 %v1422_v31  ;;  %963 = vmatprep.subr.bf16.mxu1 %v1423_v32  ;;  %v1512_v25 = vld [vmem:[%s2099_s1 + $0x354] ss:$8 sps:$4 sm:$0xff]   ;;  %v1510_v27 = vld [vmem:[%s2099_s1 + $0x350] ss:$8 sps:$4 sm:$0xff]   ;;  %v1518_v29 = vld [vmem:[%s2099_s1 + $0x364] ss:$8 sps:$4 sm:$0xff]  }
  0x21   :  { %1049 = vmatprep.subr.bf16.mxu0 %v1425_v33  ;;  %v1513_v30 = vld [vmem:[%s2099_s1 + $0x160] ss:$8 sps:$4 sm:$0xff]   ;;  %v1521_v32 = vld [vmem:[%s2099_s1 + $0x174] ss:$8 sps:$4 sm:$0xff]  }
  0x22   :  { %v1516_v31 = vld [vmem:[%s2099_s1 + $0x360] ss:$8 sps:$4 sm:$0xff]   ;;  %v1524_v33 = vld [vmem:[%s2099_s1 + $0x374] ss:$8 sps:$4 sm:$0xff]  }
  0x23   :  { %964 = vmatpush1.bf16.msra.mxu1 %v1427_v34  ;;  %v1575_v34 = vld [vmem:[%s2100_s0 + $0xc] ss:$36 sps:$4 sm:$0xff]   ;;  %v1537_v48 = vld [vmem:[%s2099_s1 + $0x1a0] ss:$8 sps:$4 sm:$0xff]   ;;  %v1548_v51 = vld [vmem:[%s2099_s1 + $0x3b4] ss:$8 sps:$4 sm:$0xff]  }
  0x24   :  { %1050 = vmatpush1.bf16.msra.mxu0 %v1428_v35  ;;  %965 = vmatprep.subr.bf16.mxu1 %v1429_v36  ;;  %v1578_v35 = vld [vmem:[%s2100_s0 + $0x1c] ss:$36 sps:$4 sm:$0xff]   ;;  %v1519_v36 = vld [vmem:[%s2099_s1 + $0x170] ss:$8 sps:$4 sm:$0xff]  }
  0x25   :  { %1051 = vmatprep.subr.bf16.mxu0 %v1431_v37  ;;  %v1522_v37 = vld [vmem:[%s2099_s1 + $0x370] ss:$8 sps:$4 sm:$0xff]  }
  0x27   :  { %966 = vmatpush1.bf16.msra.mxu1 %v1433_v38  ;;  %v1527_v38 = vld [vmem:[%s2099_s1 + $0x184] ss:$8 sps:$4 sm:$0xff]  }
  0x28   :  { %1052 = vmatpush1.bf16.msra.mxu0 %v1434_v39  ;;  %967 = vmatprep.subr.bf16.mxu1 %v1435_v40  ;;  %v1530_v39 = vld [vmem:[%s2099_s1 + $0x384] ss:$8 sps:$4 sm:$0xff]   ;;  %v1525_v40 = vld [vmem:[%s2099_s1 + $0x180] ss:$8 sps:$4 sm:$0xff]  }
  0x29   :  { %1053 = vmatprep.subr.bf16.mxu0 %v1437_v41  ;;  %v1528_v41 = vld [vmem:[%s2099_s1 + $0x380] ss:$8 sps:$4 sm:$0xff]  }
  0x2b   :  { %968 = vmatpush1.bf16.msra.mxu1 %v1439_v42  ;;  %v1533_v42 = vld [vmem:[%s2099_s1 + $0x194] ss:$8 sps:$4 sm:$0xff]  }
  0x2c   :  { %1054 = vmatpush1.bf16.msra.mxu0 %v1440_v43  ;;  %969 = vmatprep.subr.bf16.mxu1 %v1441_v44  ;;  %v1536_v43 = vld [vmem:[%s2099_s1 + $0x394] ss:$8 sps:$4 sm:$0xff]   ;;  %v1531_v44 = vld [vmem:[%s2099_s1 + $0x190] ss:$8 sps:$4 sm:$0xff]  }
  0x2d   :  { %1055 = vmatprep.subr.bf16.mxu0 %v1443_v45  ;;  %v1534_v45 = vld [vmem:[%s2099_s1 + $0x390] ss:$8 sps:$4 sm:$0xff]  }
  0x2f   :  { %970 = vmatpush1.bf16.msra.mxu1 %v1445_v46  ;;  %v1539_v46 = vld [vmem:[%s2099_s1 + $0x1a4] ss:$8 sps:$4 sm:$0xff]  }
  0x30   :  { %1056 = vmatpush1.bf16.msra.mxu0 %v1446_v47  ;;  %971 = vmatprep.subr.bf16.mxu1 %v1447_v49  ;;  %v1542_v47 = vld [vmem:[%s2099_s1 + $0x3a4] ss:$8 sps:$4 sm:$0xff]   ;;  %v1540_v49 = vld [vmem:[%s2099_s1 + $0x3a0] ss:$8 sps:$4 sm:$0xff]  }
  0x31   :  { %1057 = vmatprep.subr.bf16.mxu0 %v1449_v50  ;;  %v1545_v50 = vld [vmem:[%s2099_s1 + $0x1b4] ss:$8 sps:$4 sm:$0xff]  }
  0x33   :  { %972 = vmatpush1.bf16.msra.mxu1 %v1451_v52  ;;  %v1543_v52 = vld [vmem:[%s2099_s1 + $0x1b0] ss:$8 sps:$4 sm:$0xff]  }
  0x34   :  { %1058 = vmatpush1.bf16.msra.mxu0 %v1452_v53  ;;  %973 = vmatprep.subr.bf16.mxu1 %v1453_v54  ;;  %v1546_v53 = vld [vmem:[%s2099_s1 + $0x3b0] ss:$8 sps:$4 sm:$0xff]   ;;  %v1551_v54 = vld [vmem:[%s2099_s1 + $0x1c4] ss:$8 sps:$4 sm:$0xff]  }
  0x35   :  { %1059 = vmatprep.subr.bf16.mxu0 %v1455_v55  ;;  %v1554_v55 = vld [vmem:[%s2099_s1 + $0x3c4] ss:$8 sps:$4 sm:$0xff]  }
  0x37   :  { %974 = vmatpush1.bf16.msra.mxu1 %v1457_v56  ;;  %v1549_v56 = vld [vmem:[%s2099_s1 + $0x1c0] ss:$8 sps:$4 sm:$0xff]  }
  0x38   :  { %1060 = vmatpush1.bf16.msra.mxu0 %v1458_v57  ;;  %975 = vmatprep.subr.bf16.mxu1 %v1459_v58  ;;  %v1552_v57 = vld [vmem:[%s2099_s1 + $0x3c0] ss:$8 sps:$4 sm:$0xff]   ;;  %v1557_v58 = vld [vmem:[%s2099_s1 + $0x1d4] ss:$8 sps:$4 sm:$0xff]  }
  0x39   :  { %1061 = vmatprep.subr.bf16.mxu0 %v1461_v59  ;;  %v1560_v59 = vld [vmem:[%s2099_s1 + $0x3d4] ss:$8 sps:$4 sm:$0xff]  }
  0x3b   :  { %976 = vmatpush1.bf16.msra.mxu1 %v1463_v60  ;;  %v1555_v60 = vld [vmem:[%s2099_s1 + $0x1d0] ss:$8 sps:$4 sm:$0xff]  }
  0x3c   :  { %1062 = vmatpush1.bf16.msra.mxu0 %v1464_v61  ;;  %977 = vmatprep.subr.bf16.mxu1 %v1465_v62  ;;  %v1558_v61 = vld [vmem:[%s2099_s1 + $0x3d0] ss:$8 sps:$4 sm:$0xff]   ;;  %v1563_v62 = vld [vmem:[%s2099_s1 + $0x1e4] ss:$8 sps:$4 sm:$0xff]  }
  0x3d   :  { %1063 = vmatprep.subr.bf16.mxu0 %v1467_v63  ;;  %v1566_v63 = vld [vmem:[%s2099_s1 + $0x3e4] ss:$8 sps:$4 sm:$0xff]  }
  0x3f   :  { %978 = vmatpush1.bf16.msra.mxu1 %v1469_v0  ;;  %v1561_v0 = vld [vmem:[%s2099_s1 + $0x1e0] ss:$8 sps:$4 sm:$0xff]  }
  0x40   :  { %1064 = vmatpush1.bf16.msra.mxu0 %v1470_v1  ;;  %990 = vmatprep.subr.bf16.mxu1 %v1476_v2  ;;  %v1564_v1 = vld [vmem:[%s2099_s1 + $0x3e0] ss:$8 sps:$4 sm:$0xff]   ;;  %v1569_v2 = vld [vmem:[%s2099_s1 + $0x1f4] ss:$8 sps:$4 sm:$0xff]  }
  0x41   :  { %1076 = vmatprep.subr.bf16.mxu0 %v1482_v3  ;;  %v1572_v3 = vld [vmem:[%s2099_s1 + $0x3f4] ss:$8 sps:$4 sm:$0xff]  }
  0x42   :  { %980 = vmatmul.mubr.bf16.vlgmr.msra.gmra.mrb[0].mxu1 %v1471_v4  ;;  %v1567_v4 = vld [vmem:[%s2099_s1 + $0x1f0] ss:$8 sps:$4 sm:$0xff]  }
  0x43   :  { %1066 = vmatmul.mubr.bf16.vlgmr.msra.gmra.mrb[0].mxu0 %v1477_v6  ;;  %991 = vmatpush1.bf16.msra.mxu1 %v1474_v5  ;;  %v1570_v5 = vld [vmem:[%s2099_s1 + $0x3f0] ss:$8 sps:$4 sm:$0xff]   ;;  %v1581_v6 = vld [vmem:[%s2099_s1 + $0x404] ss:$8 sps:$4 sm:$0xff]  }
  0x44   :  { %1077 = vmatpush1.bf16.msra.mxu0 %v1480_v7  ;;  %992 = vmatprep.subr.bf16.mxu1 %v1485_v8  ;;  %v1573_v7 = vld [vmem:[%s2100_s0 + $0x8] ss:$36 sps:$4 sm:$0xff]   ;;  %v1576_v8 = vld [vmem:[%s2100_s0 + $0x18] ss:$36 sps:$4 sm:$0xff]  }
  0x45   :  { %1078 = vmatprep.subr.bf16.mxu0 %v1488_v9  ;;  %1022 = vmatprep.mubr.bf16.mxu1 %v1575_v34  ;;  %v1579_v9 = vld [vmem:[%s2099_s1 + $0x400] ss:$8 sps:$4 sm:$0xff]  }
  0x46   :  { %1108 = vmatprep.mubr.bf16.mxu0 %v1578_v35 }
  0x47   :  { %993 = vmatpush1.bf16.msra.mxu1 %v1483_v10  ;;  %v1584_v10 = vld [vmem:[%s2099_s1 + $0x414] ss:$8 sps:$4 sm:$0xff]  }
  0x48   :  { %1079 = vmatpush1.bf16.msra.mxu0 %v1486_v11  ;;  %994 = vmatprep.subr.bf16.mxu1 %v1491_v12  ;;  %v1582_v11 = vld [vmem:[%s2099_s1 + $0x410] ss:$8 sps:$4 sm:$0xff]   ;;  %v1604_v12 = vmov 0  }
  0x49   :  { %1080 = vmatprep.subr.bf16.mxu0 %v1494_v13  ;;  %v1587_v13 = vld [vmem:[%s2099_s1 + $0x424] ss:$8 sps:$4 sm:$0xff]  }
  0x4b   :  { %995 = vmatpush1.bf16.msra.mxu1 %v1489_v14  ;;  %v1585_v14 = vld [vmem:[%s2099_s1 + $0x420] ss:$8 sps:$4 sm:$0xff]  }
  0x4c   :  { %1081 = vmatpush1.bf16.msra.mxu0 %v1492_v15  ;;  %996 = vmatprep.subr.bf16.mxu1 %v1497_v16  ;;  %v1590_v15 = vld [vmem:[%s2099_s1 + $0x434] ss:$8 sps:$4 sm:$0xff]   ;;  %v1588_v16 = vld [vmem:[%s2099_s1 + $0x430] ss:$8 sps:$4 sm:$0xff]  }
  0x4d   :  { %1082 = vmatprep.subr.bf16.mxu0 %v1500_v17  ;;  %v1593_v17 = vld [vmem:[%s2099_s1 + $0x444] ss:$8 sps:$4 sm:$0xff]  }
  0x4f   :  { %997 = vmatpush1.bf16.msra.mxu1 %v1495_v18  ;;  %v1591_v18 = vld [vmem:[%s2099_s1 + $0x440] ss:$8 sps:$4 sm:$0xff]  }
  0x50   :  { %1083 = vmatpush1.bf16.msra.mxu0 %v1498_v19  ;;  %998 = vmatprep.subr.bf16.mxu1 %v1503_v20  ;;  %v1596_v19 = vld [vmem:[%s2099_s1 + $0x454] ss:$8 sps:$4 sm:$0xff]   ;;  %v1594_v20 = vld [vmem:[%s2099_s1 + $0x450] ss:$8 sps:$4 sm:$0xff]  }
  0x51   :  { %1084 = vmatprep.subr.bf16.mxu0 %v1506_v21  ;;  %v1599_v21 = vld [vmem:[%s2099_s1 + $0x464] ss:$8 sps:$4 sm:$0xff]  }
  0x53   :  { %999 = vmatpush1.bf16.msra.mxu1 %v1501_v22  ;;  %v1597_v22 = vld [vmem:[%s2099_s1 + $0x460] ss:$8 sps:$4 sm:$0xff]  }
  0x54   :  { %1085 = vmatpush1.bf16.msra.mxu0 %v1504_v23  ;;  %1000 = vmatprep.subr.bf16.mxu1 %v1509_v24  ;;  %v1602_v23 = vld [vmem:[%s2099_s1 + $0x474] ss:$8 sps:$4 sm:$0xff]   ;;  %v1600_v24 = vld [vmem:[%s2099_s1 + $0x470] ss:$8 sps:$4 sm:$0xff]  }
  0x55   :  { %1086 = vmatprep.subr.bf16.mxu0 %v1512_v25  ;;  %v1603_v25 = vld [vmem:[%s2100_s0 + $0x20] ss:$36 sps:$4 sm:$0xff]  }
  0x57   :  { %1001 = vmatpush1.bf16.msra.mxu1 %v1507_v26 }
  0x58   :  { %1087 = vmatpush1.bf16.msra.mxu0 %v1510_v27  ;;  %1002 = vmatprep.subr.bf16.mxu1 %v1515_v28 }
  0x59   :  { %1088 = vmatprep.subr.bf16.mxu0 %v1518_v29 }
  0x5b   :  { %1003 = vmatpush1.bf16.msra.mxu1 %v1513_v30  ;;  %v1179_v30 = vlaneseq }
  0x5c   :  { %1089 = vmatpush1.bf16.msra.mxu0 %v1516_v31  ;;  %1004 = vmatprep.subr.bf16.mxu1 %v1521_v32 }
  0x5d   :  { %1090 = vmatprep.subr.bf16.mxu0 %v1524_v33  ;;  %v1180_v31 = vshrl.u32 %v1179_v30, 7  ;;  %v1177_v33 = vld [vmem:[%s2101_s2] sm:$0x3] }
  0x5f   :  { %1005 = vmatpush1.bf16.msra.mxu1 %v1519_v36  ;;  %v1181_v32 = vsub.s32 0, %v1180_v31  ;;  %v1185_v34 = vsub.s32 1, %v1180_v31 }
  0x60   :  { %1091 = vmatpush1.bf16.msra.mxu0 %v1522_v37  ;;  %1006 = vmatprep.subr.bf16.mxu1 %v1527_v38 }
  0x61   :  { %1092 = vmatprep.subr.bf16.mxu0 %v1530_v39  ;;  %v1182_v35 = vrot.slane %v1177_v33, %v1181_v32  ;;  %v1186_v37 = vrot.slane %v1177_v33, %v1185_v34 }
  0x63   :  { %1007 = vmatpush1.bf16.msra.mxu1 %v1525_v40 }
  0x64   :  { %1093 = vmatpush1.bf16.msra.mxu0 %v1528_v41  ;;  %1008 = vmatprep.subr.bf16.mxu1 %v1533_v42 }
  0x65   :  { %1094 = vmatprep.subr.bf16.mxu0 %v1536_v43 }
  0x67   :  { %1009 = vmatpush1.bf16.msra.mxu1 %v1531_v44 }
  0x68   :  { %1095 = vmatpush1.bf16.msra.mxu0 %v1534_v45  ;;  %1010 = vmatprep.subr.bf16.mxu1 %v1539_v46 }
  0x69   :  { %1096 = vmatprep.subr.bf16.mxu0 %v1542_v47 }
  0x6b   :  { %1011 = vmatpush1.bf16.msra.mxu1 %v1537_v48 }
  0x6c   :  { %1097 = vmatpush1.bf16.msra.mxu0 %v1540_v49  ;;  %1012 = vmatprep.subr.bf16.mxu1 %v1545_v50 }
  0x6d   :  { %1098 = vmatprep.subr.bf16.mxu0 %v1548_v51 }
  0x6f   :  { %1013 = vmatpush1.bf16.msra.mxu1 %v1543_v52 }
  0x70   :  { %1099 = vmatpush1.bf16.msra.mxu0 %v1546_v53  ;;  %1014 = vmatprep.subr.bf16.mxu1 %v1551_v54 }
  0x71   :  { %1100 = vmatprep.subr.bf16.mxu0 %v1554_v55 }
  0x73   :  { %1015 = vmatpush1.bf16.msra.mxu1 %v1549_v56 }
  0x74   :  { %1101 = vmatpush1.bf16.msra.mxu0 %v1552_v57  ;;  %1016 = vmatprep.subr.bf16.mxu1 %v1557_v58 }
  0x75   :  { %1102 = vmatprep.subr.bf16.mxu0 %v1560_v59 }
  0x77   :  { %1017 = vmatpush1.bf16.msra.mxu1 %v1555_v60 }
  0x78   :  { %1103 = vmatpush1.bf16.msra.mxu0 %v1558_v61  ;;  %1018 = vmatprep.subr.bf16.mxu1 %v1563_v62 }
  0x79   :  { %1104 = vmatprep.subr.bf16.mxu0 %v1566_v63 }
  0x7b   :  { %1019 = vmatpush1.bf16.msra.mxu1 %v1561_v0 }
  0x7c   :  { %1105 = vmatpush1.bf16.msra.mxu0 %v1564_v1  ;;  %1020 = vmatprep.subr.bf16.mxu1 %v1569_v2 }
  0x7d   :  { %1106 = vmatprep.subr.bf16.mxu0 %v1572_v3 }
  0x7f   :  { %1021 = vmatpush1.bf16.msra.mxu1 %v1567_v4 }
  0x80   :  { %1107 = vmatpush1.bf16.msra.mxu0 %v1570_v5 }
  0x81   :  { %1119 = vmatprep.subr.bf16.mxu0 %v1581_v6 }
  0x82   :  { %1023 = vmatmul.mubr.bf16.vlgmr.msra.gmra.mrb[0].mxu1 %v1573_v7 }
  0x83   :  { %1109 = vmatmul.mubr.bf16.vlgmr.msra.gmra.mrb[0].mxu0 %v1576_v8 }
  0x84   :  { %1120 = vmatpush1.bf16.msra.mxu0 %v1579_v9  ;;  %1151 = vmatprep.mubr.bf16.mxu0 %v1604_v12 }
  0x85   :  { %1121 = vmatprep.subr.bf16.mxu0 %v1584_v10 }
  0x88   :  { %1122 = vmatpush1.bf16.msra.mxu0 %v1582_v11 }
  0x89   :  { %1123 = vmatprep.subr.bf16.mxu0 %v1587_v13 }
  0x8c   :  { %1124 = vmatpush1.bf16.msra.mxu0 %v1585_v14 }
  0x8d   :  { %1125 = vmatprep.subr.bf16.mxu0 %v1590_v15 }
  0x90   :  { %1126 = vmatpush1.bf16.msra.mxu0 %v1588_v16 }
  0x91   :  { %1127 = vmatprep.subr.bf16.mxu0 %v1593_v17 }
  0x94   :  { %1128 = vmatpush1.bf16.msra.mxu0 %v1591_v18 }
  0x95   :  { %1129 = vmatprep.subr.bf16.mxu0 %v1596_v19 }
  0x98   :  { %1130 = vmatpush1.bf16.msra.mxu0 %v1594_v20 }
  0x99   :  { %1131 = vmatprep.subr.bf16.mxu0 %v1599_v21 }
  0x9c   :  { %1132 = vmatpush1.bf16.msra.mxu0 %v1597_v22 }
  0x9d   :  { %1133 = vmatprep.subr.bf16.mxu0 %v1602_v23 }
  0xa0   :  { %1134 = vmatpush1.bf16.msra.mxu0 %v1600_v24 }
  0xa3   :  { %1152 = vmatmul.mubr.bf16.vlgmr.msra.gmra.mrb[0].mxu0 %v1603_v25 }
 0x155   :  { %v1024_v26 = vpop.f32.mrb[0].mxu1 }
 0x156   :  { %v1026_v27 = vpop.f32.mrb[1].mxu1 }
 0x157   :  { %v1028_v28 = vpop.f32.mrb[2].mxu1 }
 0x158   :  { %v1030_v29 = vpop.f32.mrb[3].mxu1 }
 0x176   :  { %v1153_v36 = vpop.f32.mrb[0].mxu0 }
 0x177   :  { %v1358_v38 = vadd.f32 %v1153_v36, %v1024_v26  ;;  %v1155_v39 = vpop.f32.mrb[1].mxu0 }
 0x178   :  { %v1359_v40 = vadd.f32 %v1155_v39, %v1026_v27  ;;  %v1157_v41 = vpop.f32.mrb[2].mxu0 }
 0x179   :  { %v1189_v42 = vadd.f32 %v1358_v38, %v1182_v35  ;;  %v1360_v43 = vadd.f32 %v1157_v41, %v1028_v28  ;;  %v1159_v44 = vpop.f32.mrb[3].mxu0 }
 0x17a   :  { %v1190_v45 = vadd.f32 %v1359_v40, %v1186_v37  ;;  %v1361_v46 = vadd.f32 %v1159_v44, %v1030_v29 }
 0x17b   :  { %v1193_v47 = vmax.f32 %v1189_v42, 0.0  ;;  %v1191_v48 = vadd.f32 %v1360_v43, %v1182_v35 }
 0x17c   :  { %v1194_v49 = vmax.f32 %v1190_v45, 0.0  ;;  %v1192_v50 = vadd.f32 %v1361_v46, %v1186_v37 }
 0x17d   :  { %1197 = vst [vmem:[%s2102_s3] sm:$0xff] %v1193_v47  ;;  %v1195_v51 = vmax.f32 %v1191_v48, 0.0 }
 0x17e   :  { %1198 = vst [vmem:[%s2102_s3 + $0x8] sm:$0xff] %v1194_v49  ;;  %v1196_v52 = vmax.f32 %v1192_v50, 0.0 }
 0x17f   :  { %1199 = vst [vmem:[%s2102_s3 + $0x10] sm:$0xff] %v1195_v51 }
 0x180   :  { %1200 = vst [vmem:[%s2102_s3 + $0x18] sm:$0xff] %v1196_v52 }

// kernel: dsamnet_forward.16
= control target key start
LH: loop header
LB: loop body
LE: loop exit
PB: predicated region body
PF: predicated region fallthrough
CT: control target
= control target key end

     0   :  { %s3488_s0 = inlined_call_operand.vmem [shape: bf16[16,2304], index: 0, kind: input, shape index: {}]   ;;  %s3489_s1 = inlined_call_operand.vmem [shape: bf16[2304,512], index: 1, kind: input, shape index: {}]   ;;  %s3490_s2 = inlined_call_operand.vmem [shape: f32[1,512], index: 2, kind: input, shape index: {}]   ;;  %s3491_s3 = inlined_call_operand.vmem [shape: f32[16,512], index: 3, kind: output, shape index: {}]  }
   0x1   :  { %3493 = sst [smem:[#allocation7_spill]] %s3488_s0 }
   0x2   :  { %3494 = sst [smem:[#allocation8_spill]] %s3489_s1 }
   0x3   :  { %s2857_s12 = smov 0   ;;  %s2859_s13 = smov 0  }
   0x4   :  { %s2861_s14 = smov 0   ;;  %s2863_s15 = smov 0  }
   0x5   :  { %s2865_s16 = smov 0   ;;  %s2867_s17 = smov 0  }
   0x6   :  { %s2869_s18 = smov 0   ;;  %s2871_s19 = smov 0  }
   0x7   :  { %s2873_s20 = smov 0   ;;  %s2875_s21 = smov 0  }
   0x8   :  { %s2877_s22 = smov 0  }
   0x9 LB: > { %s2230_s23 = sadd.s32 4294967295, %s2833_s22   ;;  %s25_s24 = sadd.s32 1, %s2825_s20  ;;  %s2833_s22 = sphi %s2877_s22, %s13_s22   ;;  %s2829_s21 = sphi %s2875_s21, %s3511_s21   ;;  %s2825_s20 = sphi %s2873_s20, %s3510_s20   ;;  %s2821_s19 = sphi %s2871_s19, %s3509_s19   ;;  %s2817_s18 = sphi %s2869_s18, %s3508_s18   ;;  %s2813_s17 = sphi %s2867_s17, %s3507_s17   ;;  %s2809_s16 = sphi %s2865_s16, %s3506_s16   ;;  %s2805_s15 = sphi %s2863_s15, %s3505_s15   ;;  %s2801_s14 = sphi %s2861_s14, %s3504_s14   ;;  %s2797_s13 = sphi %s2859_s13, %s3503_s13   ;;  %s2793_s12 = sphi %s2857_s12, %s3502_s12  }
   0xa   : > { %p26_p0 = scmp.ge.s32.totalorder %s25_s24, 2  ;;  %s28_s25 = sadd.s32 1, %s2829_s21 }
   0xb   : > { %s41_s26 = sadd.s32 1, %s2813_s17  ;;  %p48_p1 = scmp.ne.s32.totalorder %s2813_s17, %s2809_s16 }
   0xc   : > { %s3513_s24 = smov (%p26_p0, %s25_s24), 0  ;;  %s3515_s25 = smov (!%p26_p0, %s28_s25), %s2829_s21 }
   0xd   : > { %s37_s27 = ssub.s32 %s2825_s20, %s3513_s24  ;;  %p49_p2 = scmp.eq.s32.totalorder %s2833_s22, 0 }
   0xe   : > { %p30_p3 = scmp.ge.s32.totalorder %s3515_s25, 2  ;;  %p39_p4 = scmp.eq.s32.totalorder %s37_s27, 0 }
   0xf   : > { %p2924_p5 = por %p49_p2, %p48_p1  ;;  %s69_s29 = sadd.s32 1, %s2805_s15 }
  0x10   : > { %s3517_s25 = smov (%p30_p3, %s3515_s25), 0  ;;  %p76_p6 = scmp.ne.s32.totalorder %s2805_s15, %s2801_s14 }
  0x11   : > { %3496 = sst [smem:[#allocation6_spill]] %s3517_s25  ;;  %s65_s4 = ssub.s32 %s2829_s21, %s3517_s25 }
  0x12   : > { %s2932_s30 = scalar_select %p39_p4, %s2813_s17, %s41_s26  }
  0x13   : > { %s66_s5 = sor.u32 %s65_s4, %s37_s27  ;;  %p121_p7 = scmp.eq.s32.totalorder %s65_s4, 0 }
  0x14   : > { %p67_p8 = scmp.eq.s32.totalorder %s66_s5, 0  ;;  %p2938_p9 = por %p76_p6, %p49_p2 }
  0x15   : > { %s123_s7 = sadd.s32 1, %s2797_s13  ;;  %p133_p10 = scmp.ne.s32.totalorder %s2797_s13, %s2793_s12 }
  0x16   : > { %s2946_s8 = scalar_select %p67_p8, %s2805_s15, %s69_s29  }
  0x17   : > { %s2949_s9 = scalar_select %p121_p7, %s2797_s13, %s123_s7  }
  0x18   : > { %p134_p11 = scmp.eq.s32.totalorder %s2230_s23, 3  ;;  %p2233_p13 = scmp.ge.s32.totalorder %s2833_s22, 4 }
  0x1a   : > { %p2951_p12 = por %p134_p11, %p133_p10  ;;  %156 = sbr.rel (%p2233_p13) target bundleno = 129 (0x81), region = 16 }
  0x21   : > { %159 = sbr.rel (!%p2924_p5) target bundleno = 47 (0x2f), region = 20  ;;  %s161_s11 = sand.u32 (%p2924_p5), 1, %s2813_s17  }
  0x22   : > { %s2405_s26 = smul.u32 (%p2924_p5), 36, %s2825_s20  ;;  %s3499_s0 = sld [smem:[#allocation7_spill]] (%p2924_p5) }
  0x23   : > { %s2424_s27 = smul.u32 (%p2924_p5), 72, %s161_s11 }
  0x25   : > { %s163_s23 = scalar_lea.vmem (%p2924_p5), [#allocation3], %s2424_s27 }
  0x28   : > { %s169_s5 = scalar_lea.vmem %s3499_s0, %s2405_s26 }
  0x29   : > { %v184_v0 = vld [vmem:[%s169_s5] sm:$0xff]  ;;  %v186_v1 = vld [vmem:[%s169_s5 + $0x8] sm:$0xff]  ;;  %v188_v2 = vld [vmem:[%s169_s5 + $0x10] sm:$0xff] }
  0x2a   : > { %185 = vst [vmem:[%s163_s23] sm:$0xff] %v184_v0  ;;  %187 = vst [vmem:[%s163_s23 + $0x8] sm:$0xff] %v186_v1  ;;  %v190_v3 = vld [vmem:[%s169_s5 + $0x18] sm:$0xff]  ;;  %v192_v4 = vld [vmem:[%s169_s5 + $0x48] sm:$0xff] }
  0x2b   : > { %189 = vst [vmem:[%s163_s23 + $0x10] sm:$0xff] %v188_v2  ;;  %v194_v5 = vld [vmem:[%s169_s5 + $0x50] sm:$0xff]  ;;  %191 = vst [vmem:[%s163_s23 + $0x18] sm:$0xff] %v190_v3  ;;  %v196_v6 = vld [vmem:[%s169_s5 + $0x58] sm:$0xff] }
  0x2c   : > { %193 = vst [vmem:[%s163_s23 + $0x24] sm:$0xff] %v192_v4  ;;  %195 = vst [vmem:[%s163_s23 + $0x2c] sm:$0xff] %v194_v5  ;;  %v198_v7 = vld [vmem:[%s169_s5 + $0x60] sm:$0xff]  ;;  %v2237_v9 = vld [vmem:[%s169_s5 + $0x68] sm:$0xf] }
  0x2d   : > { %v2235_v8 = vld [vmem:[%s169_s5 + $0x20] sm:$0xf]  ;;  %197 = vst [vmem:[%s163_s23 + $0x34] sm:$0xff] %v196_v6  ;;  %199 = vst [vmem:[%s163_s23 + $0x3c] sm:$0xff] %v198_v7 }
  0x2e   : > { %2236 = vst [vmem:[%s163_s23 + $0x20] sm:$0xf] %v2235_v8  ;;  %2238 = vst [vmem:[%s163_s23 + $0x44] sm:$0xf] %v2237_v9 }
  0x2f PF: > { %216 = sbr.rel (!%p2938_p9) target bundleno = 129 (0x81), region = 46  ;;  %s218_s28 = sand.u32 (%p2938_p9), 1, %s2805_s15  }
  0x30   : > { %s2425_s7 = smul.u32 (%p2938_p9), 1152, %s218_s28  ;;  %s2239_s11 = sshll.u32 (%p2938_p9), %s2829_s21, 1 }
  0x31   : > { %s2406_s26 = smul.u32 (%p2938_p9), 576, %s2825_s20  ;;  %s3500_s1 = sld [smem:[#allocation8_spill]] (%p2938_p9) }
  0x32   : > { %s2976_s6 = scalar_lea.vmem (%p2938_p9), [#allocation4], %s2425_s7 }
  0x33   : > { %s224_s27 = sadd.s32 (%p2938_p9), %s2406_s26, %s2239_s11 }
  0x34   : > { %s2241_s29 = sshll.u32 (%p2938_p9), %s224_s27, 2 }
  0x37   : > { %s2971_s25 = scalar_lea.vmem %s3500_s1, %s2241_s29 }
  0x38   : > { %v540_v10 = vld [vmem:[%s2971_s25] sm:$0xff]  ;;  %v542_v11 = vld [vmem:[%s2971_s25 + $0x10] sm:$0xff] }
  0x39   : > { %v544_v12 = vld [vmem:[%s2971_s25 + $0x20] sm:$0xff]  ;;  %541 = vst [vmem:[%s2976_s6] sm:$0xff] %v540_v10  ;;  %543 = vst [vmem:[%s2976_s6 + $0x8] sm:$0xff] %v542_v11  ;;  %v546_v13 = vld [vmem:[%s2971_s25 + $0x30] sm:$0xff] }
  0x3a   : > { %545 = vst [vmem:[%s2976_s6 + $0x10] sm:$0xff] %v544_v12  ;;  %v548_v14 = vld [vmem:[%s2971_s25 + $0x40] sm:$0xff]  ;;  %v550_v15 = vld [vmem:[%s2971_s25 + $0x50] sm:$0xff]  ;;  %547 = vst [vmem:[%s2976_s6 + $0x18] sm:$0xff] %v546_v13 }
  0x3b   : > { %549 = vst [vmem:[%s2976_s6 + $0x20] sm:$0xff] %v548_v14  ;;  %551 = vst [vmem:[%s2976_s6 + $0x28] sm:$0xff] %v550_v15  ;;  %v552_v16 = vld [vmem:[%s2971_s25 + $0x60] sm:$0xff]  ;;  %v554_v17 = vld [vmem:[%s2971_s25 + $0x70] sm:$0xff] }
  0x3c   : > { %v556_v18 = vld [vmem:[%s2971_s25 + $0x80] sm:$0xff]  ;;  %553 = vst [vmem:[%s2976_s6 + $0x30] sm:$0xff] %v552_v16  ;;  %555 = vst [vmem:[%s2976_s6 + $0x38] sm:$0xff] %v554_v17  ;;  %v558_v19 = vld [vmem:[%s2971_s25 + $0x90] sm:$0xff] }
  0x3d   : > { %557 = vst [vmem:[%s2976_s6 + $0x40] sm:$0xff] %v556_v18  ;;  %v560_v20 = vld [vmem:[%s2971_s25 + $0xa0] sm:$0xff]  ;;  %v562_v21 = vld [vmem:[%s2971_s25 + $0xb0] sm:$0xff]  ;;  %559 = vst [vmem:[%s2976_s6 + $0x48] sm:$0xff] %v558_v19 }
  0x3e   : > { %561 = vst [vmem:[%s2976_s6 + $0x50] sm:$0xff] %v560_v20  ;;  %563 = vst [vmem:[%s2976_s6 + $0x58] sm:$0xff] %v562_v21  ;;  %v564_v22 = vld [vmem:[%s2971_s25 + $0xc0] sm:$0xff]  ;;  %v566_v23 = vld [vmem:[%s2971_s25 + $0xd0] sm:$0xff] }
  0x3f   : > { %v568_v24 = vld [vmem:[%s2971_s25 + $0xe0] sm:$0xff]  ;;  %565 = vst [vmem:[%s2976_s6 + $0x60] sm:$0xff] %v564_v22  ;;  %567 = vst [vmem:[%s2976_s6 + $0x68] sm:$0xff] %v566_v23  ;;  %v570_v25 = vld [vmem:[%s2971_s25 + $0xf0] sm:$0xff] }
  0x40   : > { %569 = vst [vmem:[%s2976_s6 + $0x70] sm:$0xff] %v568_v24  ;;  %v572_v26 = vld [vmem:[%s2971_s25 + $0x100] sm:$0xff]  ;;  %v574_v27 = vld [vmem:[%s2971_s25 + $0x110] sm:$0xff]  ;;  %571 = vst [vmem:[%s2976_s6 + $0x78] sm:$0xff] %v570_v25 }
  0x41   : > { %573 = vst [vmem:[%s2976_s6 + $0x80] sm:$0xff] %v572_v26  ;;  %575 = vst [vmem:[%s2976_s6 + $0x88] sm:$0xff] %v574_v27  ;;  %v576_v28 = vld [vmem:[%s2971_s25 + $0x120] sm:$0xff]  ;;  %v578_v29 = vld [vmem:[%s2971_s25 + $0x130] sm:$0xff] }
  0x42   : > { %v580_v30 = vld [vmem:[%s2971_s25 + $0x140] sm:$0xff]  ;;  %577 = vst [vmem:[%s2976_s6 + $0x90] sm:$0xff] %v576_v28  ;;  %579 = vst [vmem:[%s2976_s6 + $0x98] sm:$0xff] %v578_v29  ;;  %v582_v31 = vld [vmem:[%s2971_s25 + $0x150] sm:$0xff] }
  0x43   : > { %581 = vst [vmem:[%s2976_s6 + $0xa0] sm:$0xff] %v580_v30  ;;  %v584_v32 = vld [vmem:[%s2971_s25 + $0x160] sm:$0xff]  ;;  %v586_v33 = vld [vmem:[%s2971_s25 + $0x170] sm:$0xff]  ;;  %583 = vst [vmem:[%s2976_s6 + $0xa8] sm:$0xff] %v582_v31 }
  0x44   : > { %585 = vst [vmem:[%s2976_s6 + $0xb0] sm:$0xff] %v584_v32  ;;  %587 = vst [vmem:[%s2976_s6 + $0xb8] sm:$0xff] %v586_v33  ;;  %v588_v34 = vld [vmem:[%s2971_s25 + $0x180] sm:$0xff]  ;;  %v590_v35 = vld [vmem:[%s2971_s25 + $0x190] sm:$0xff] }
  0x45   : > { %v592_v36 = vld [vmem:[%s2971_s25 + $0x1a0] sm:$0xff]  ;;  %589 = vst [vmem:[%s2976_s6 + $0xc0] sm:$0xff] %v588_v34  ;;  %591 = vst [vmem:[%s2976_s6 + $0xc8] sm:$0xff] %v590_v35  ;;  %v594_v37 = vld [vmem:[%s2971_s25 + $0x1b0] sm:$0xff] }
  0x46   : > { %593 = vst [vmem:[%s2976_s6 + $0xd0] sm:$0xff] %v592_v36  ;;  %v596_v38 = vld [vmem:[%s2971_s25 + $0x1c0] sm:$0xff]  ;;  %v598_v39 = vld [vmem:[%s2971_s25 + $0x1d0] sm:$0xff]  ;;  %595 = vst [vmem:[%s2976_s6 + $0xd8] sm:$0xff] %v594_v37 }
  0x47   : > { %597 = vst [vmem:[%s2976_s6 + $0xe0] sm:$0xff] %v596_v38  ;;  %599 = vst [vmem:[%s2976_s6 + $0xe8] sm:$0xff] %v598_v39  ;;  %v600_v40 = vld [vmem:[%s2971_s25 + $0x1e0] sm:$0xff]  ;;  %v602_v41 = vld [vmem:[%s2971_s25 + $0x1f0] sm:$0xff] }
  0x48   : > { %v604_v42 = vld [vmem:[%s2971_s25 + $0x200] sm:$0xff]  ;;  %601 = vst [vmem:[%s2976_s6 + $0xf0] sm:$0xff] %v600_v40  ;;  %603 = vst [vmem:[%s2976_s6 + $0xf8] sm:$0xff] %v602_v41  ;;  %v606_v43 = vld [vmem:[%s2971_s25 + $0x210] sm:$0xff] }
  0x49   : > { %605 = vst [vmem:[%s2976_s6 + $0x100] sm:$0xff] %v604_v42  ;;  %v608_v44 = vld [vmem:[%s2971_s25 + $0x220] sm:$0xff]  ;;  %v610_v45 = vld [vmem:[%s2971_s25 + $0x230] sm:$0xff]  ;;  %607 = vst [vmem:[%s2976_s6 + $0x108] sm:$0xff] %v606_v43 }
  0x4a   : > { %609 = vst [vmem:[%s2976_s6 + $0x110] sm:$0xff] %v608_v44  ;;  %611 = vst [vmem:[%s2976_s6 + $0x118] sm:$0xff] %v610_v45  ;;  %v612_v46 = vld [vmem:[%s2971_s25 + $0x240] sm:$0xff]  ;;  %v614_v47 = vld [vmem:[%s2971_s25 + $0x250] sm:$0xff] }
  0x4b   : > { %v616_v48 = vld [vmem:[%s2971_s25 + $0x260] sm:$0xff]  ;;  %613 = vst [vmem:[%s2976_s6 + $0x120] sm:$0xff] %v612_v46  ;;  %615 = vst [vmem:[%s2976_s6 + $0x128] sm:$0xff] %v614_v47  ;;  %v618_v49 = vld [vmem:[%s2971_s25 + $0x270] sm:$0xff] }
  0x4c   : > { %617 = vst [vmem:[%s2976_s6 + $0x130] sm:$0xff] %v616_v48  ;;  %v620_v50 = vld [vmem:[%s2971_s25 + $0x280] sm:$0xff]  ;;  %v622_v51 = vld [vmem:[%s2971_s25 + $0x290] sm:$0xff]  ;;  %619 = vst [vmem:[%s2976_s6 + $0x138] sm:$0xff] %v618_v49 }
  0x4d   : > { %621 = vst [vmem:[%s2976_s6 + $0x140] sm:$0xff] %v620_v50  ;;  %623 = vst [vmem:[%s2976_s6 + $0x148] sm:$0xff] %v622_v51  ;;  %v624_v52 = vld [vmem:[%s2971_s25 + $0x2a0] sm:$0xff]  ;;  %v626_v53 = vld [vmem:[%s2971_s25 + $0x2b0] sm:$0xff] }
  0x4e   : > { %v628_v54 = vld [vmem:[%s2971_s25 + $0x2c0] sm:$0xff]  ;;  %625 = vst [vmem:[%s2976_s6 + $0x150] sm:$0xff] %v624_v52  ;;  %627 = vst [vmem:[%s2976_s6 + $0x158] sm:$0xff] %v626_v53  ;;  %v630_v55 = vld [vmem:[%s2971_s25 + $0x2d0] sm:$0xff] }
  0x4f   : > { %629 = vst [vmem:[%s2976_s6 + $0x160] sm:$0xff] %v628_v54  ;;  %v632_v56 = vld [vmem:[%s2971_s25 + $0x2e0] sm:$0xff]  ;;  %v634_v57 = vld [vmem:[%s2971_s25 + $0x2f0] sm:$0xff]  ;;  %631 = vst [vmem:[%s2976_s6 + $0x168] sm:$0xff] %v630_v55 }
  0x50   : > { %633 = vst [vmem:[%s2976_s6 + $0x170] sm:$0xff] %v632_v56  ;;  %635 = vst [vmem:[%s2976_s6 + $0x178] sm:$0xff] %v634_v57  ;;  %v636_v58 = vld [vmem:[%s2971_s25 + $0x300] sm:$0xff]  ;;  %v638_v59 = vld [vmem:[%s2971_s25 + $0x310] sm:$0xff] }
  0x51   : > { %v640_v60 = vld [vmem:[%s2971_s25 + $0x320] sm:$0xff]  ;;  %637 = vst [vmem:[%s2976_s6 + $0x180] sm:$0xff] %v636_v58  ;;  %639 = vst [vmem:[%s2976_s6 + $0x188] sm:$0xff] %v638_v59  ;;  %v642_v61 = vld [vmem:[%s2971_s25 + $0x330] sm:$0xff] }
  0x52   : > { %641 = vst [vmem:[%s2976_s6 + $0x190] sm:$0xff] %v640_v60  ;;  %v644_v62 = vld [vmem:[%s2971_s25 + $0x340] sm:$0xff]  ;;  %v646_v63 = vld [vmem:[%s2971_s25 + $0x350] sm:$0xff]  ;;  %643 = vst [vmem:[%s2976_s6 + $0x198] sm:$0xff] %v642_v61 }
  0x53   : > { %645 = vst [vmem:[%s2976_s6 + $0x1a0] sm:$0xff] %v644_v62  ;;  %647 = vst [vmem:[%s2976_s6 + $0x1a8] sm:$0xff] %v646_v63  ;;  %v648_v0 = vld [vmem:[%s2971_s25 + $0x360] sm:$0xff]  ;;  %v650_v1 = vld [vmem:[%s2971_s25 + $0x370] sm:$0xff] }
  0x54   : > { %v652_v2 = vld [vmem:[%s2971_s25 + $0x380] sm:$0xff]  ;;  %649 = vst [vmem:[%s2976_s6 + $0x1b0] sm:$0xff] %v648_v0  ;;  %651 = vst [vmem:[%s2976_s6 + $0x1b8] sm:$0xff] %v650_v1  ;;  %v654_v3 = vld [vmem:[%s2971_s25 + $0x390] sm:$0xff] }
  0x55   : > { %653 = vst [vmem:[%s2976_s6 + $0x1c0] sm:$0xff] %v652_v2  ;;  %v656_v4 = vld [vmem:[%s2971_s25 + $0x3a0] sm:$0xff]  ;;  %v658_v5 = vld [vmem:[%s2971_s25 + $0x3b0] sm:$0xff]  ;;  %655 = vst [vmem:[%s2976_s6 + $0x1c8] sm:$0xff] %v654_v3 }
  0x56   : > { %657 = vst [vmem:[%s2976_s6 + $0x1d0] sm:$0xff] %v656_v4  ;;  %659 = vst [vmem:[%s2976_s6 + $0x1d8] sm:$0xff] %v658_v5  ;;  %v660_v6 = vld [vmem:[%s2971_s25 + $0x3c0] sm:$0xff]  ;;  %v662_v7 = vld [vmem:[%s2971_s25 + $0x3d0] sm:$0xff] }
  0x57   : > { %v664_v8 = vld [vmem:[%s2971_s25 + $0x3e0] sm:$0xff]  ;;  %661 = vst [vmem:[%s2976_s6 + $0x1e0] sm:$0xff] %v660_v6  ;;  %663 = vst [vmem:[%s2976_s6 + $0x1e8] sm:$0xff] %v662_v7  ;;  %v666_v9 = vld [vmem:[%s2971_s25 + $0x3f0] sm:$0xff] }
  0x58   : > { %665 = vst [vmem:[%s2976_s6 + $0x1f0] sm:$0xff] %v664_v8  ;;  %v668_v10 = vld [vmem:[%s2971_s25 + $0x400] sm:$0xff]  ;;  %v670_v11 = vld [vmem:[%s2971_s25 + $0x410] sm:$0xff]  ;;  %667 = vst [vmem:[%s2976_s6 + $0x1f8] sm:$0xff] %v666_v9 }
  0x59   : > { %669 = vst [vmem:[%s2976_s6 + $0x200] sm:$0xff] %v668_v10  ;;  %671 = vst [vmem:[%s2976_s6 + $0x208] sm:$0xff] %v670_v11  ;;  %v672_v12 = vld [vmem:[%s2971_s25 + $0x420] sm:$0xff]  ;;  %v674_v13 = vld [vmem:[%s2971_s25 + $0x430] sm:$0xff] }
  0x5a   : > { %v676_v14 = vld [vmem:[%s2971_s25 + $0x440] sm:$0xff]  ;;  %673 = vst [vmem:[%s2976_s6 + $0x210] sm:$0xff] %v672_v12  ;;  %675 = vst [vmem:[%s2976_s6 + $0x218] sm:$0xff] %v674_v13  ;;  %v678_v15 = vld [vmem:[%s2971_s25 + $0x450] sm:$0xff] }
  0x5b   : > { %677 = vst [vmem:[%s2976_s6 + $0x220] sm:$0xff] %v676_v14  ;;  %v680_v16 = vld [vmem:[%s2971_s25 + $0x460] sm:$0xff]  ;;  %v682_v17 = vld [vmem:[%s2971_s25 + $0x470] sm:$0xff]  ;;  %679 = vst [vmem:[%s2976_s6 + $0x228] sm:$0xff] %v678_v15 }
  0x5c   : > { %681 = vst [vmem:[%s2976_s6 + $0x230] sm:$0xff] %v680_v16  ;;  %683 = vst [vmem:[%s2976_s6 + $0x238] sm:$0xff] %v682_v17  ;;  %v684_v18 = vld [vmem:[%s2971_s25 + $0x480] sm:$0xff]  ;;  %v686_v19 = vld [vmem:[%s2971_s25 + $0x490] sm:$0xff] }
  0x5d   : > { %v688_v20 = vld [vmem:[%s2971_s25 + $0x4a0] sm:$0xff]  ;;  %685 = vst [vmem:[%s2976_s6 + $0x240] sm:$0xff] %v684_v18  ;;  %687 = vst [vmem:[%s2976_s6 + $0x248] sm:$0xff] %v686_v19  ;;  %v690_v21 = vld [vmem:[%s2971_s25 + $0x4b0] sm:$0xff] }
  0x5e   : > { %689 = vst [vmem:[%s2976_s6 + $0x250] sm:$0xff] %v688_v20  ;;  %v692_v22 = vld [vmem:[%s2971_s25 + $0x4c0] sm:$0xff]  ;;  %v694_v23 = vld [vmem:[%s2971_s25 + $0x4d0] sm:$0xff]  ;;  %691 = vst [vmem:[%s2976_s6 + $0x258] sm:$0xff] %v690_v21 }
  0x5f   : > { %693 = vst [vmem:[%s2976_s6 + $0x260] sm:$0xff] %v692_v22  ;;  %695 = vst [vmem:[%s2976_s6 + $0x268] sm:$0xff] %v694_v23  ;;  %v696_v24 = vld [vmem:[%s2971_s25 + $0x4e0] sm:$0xff]  ;;  %v698_v25 = vld [vmem:[%s2971_s25 + $0x4f0] sm:$0xff] }
  0x60   : > { %v700_v26 = vld [vmem:[%s2971_s25 + $0x500] sm:$0xff]  ;;  %697 = vst [vmem:[%s2976_s6 + $0x270] sm:$0xff] %v696_v24  ;;  %699 = vst [vmem:[%s2976_s6 + $0x278] sm:$0xff] %v698_v25  ;;  %v702_v27 = vld [vmem:[%s2971_s25 + $0x510] sm:$0xff] }
  0x61   : > { %701 = vst [vmem:[%s2976_s6 + $0x280] sm:$0xff] %v700_v26  ;;  %v704_v28 = vld [vmem:[%s2971_s25 + $0x520] sm:$0xff]  ;;  %v706_v29 = vld [vmem:[%s2971_s25 + $0x530] sm:$0xff]  ;;  %703 = vst [vmem:[%s2976_s6 + $0x288] sm:$0xff] %v702_v27 }
  0x62   : > { %705 = vst [vmem:[%s2976_s6 + $0x290] sm:$0xff] %v704_v28  ;;  %707 = vst [vmem:[%s2976_s6 + $0x298] sm:$0xff] %v706_v29  ;;  %v708_v30 = vld [vmem:[%s2971_s25 + $0x540] sm:$0xff]  ;;  %v710_v31 = vld [vmem:[%s2971_s25 + $0x550] sm:$0xff] }
  0x63   : > { %v712_v32 = vld [vmem:[%s2971_s25 + $0x560] sm:$0xff]  ;;  %709 = vst [vmem:[%s2976_s6 + $0x2a0] sm:$0xff] %v708_v30  ;;  %711 = vst [vmem:[%s2976_s6 + $0x2a8] sm:$0xff] %v710_v31  ;;  %v714_v33 = vld [vmem:[%s2971_s25 + $0x570] sm:$0xff] }
  0x64   : > { %713 = vst [vmem:[%s2976_s6 + $0x2b0] sm:$0xff] %v712_v32  ;;  %v716_v34 = vld [vmem:[%s2971_s25 + $0x580] sm:$0xff]  ;;  %v718_v35 = vld [vmem:[%s2971_s25 + $0x590] sm:$0xff]  ;;  %715 = vst [vmem:[%s2976_s6 + $0x2b8] sm:$0xff] %v714_v33 }
  0x65   : > { %717 = vst [vmem:[%s2976_s6 + $0x2c0] sm:$0xff] %v716_v34  ;;  %719 = vst [vmem:[%s2976_s6 + $0x2c8] sm:$0xff] %v718_v35  ;;  %v720_v36 = vld [vmem:[%s2971_s25 + $0x5a0] sm:$0xff]  ;;  %v722_v37 = vld [vmem:[%s2971_s25 + $0x5b0] sm:$0xff] }
  0x66   : > { %v724_v38 = vld [vmem:[%s2971_s25 + $0x5c0] sm:$0xff]  ;;  %721 = vst [vmem:[%s2976_s6 + $0x2d0] sm:$0xff] %v720_v36  ;;  %723 = vst [vmem:[%s2976_s6 + $0x2d8] sm:$0xff] %v722_v37  ;;  %v726_v39 = vld [vmem:[%s2971_s25 + $0x5d0] sm:$0xff] }
  0x67   : > { %725 = vst [vmem:[%s2976_s6 + $0x2e0] sm:$0xff] %v724_v38  ;;  %v728_v40 = vld [vmem:[%s2971_s25 + $0x5e0] sm:$0xff]  ;;  %v730_v41 = vld [vmem:[%s2971_s25 + $0x5f0] sm:$0xff]  ;;  %727 = vst [vmem:[%s2976_s6 + $0x2e8] sm:$0xff] %v726_v39 }
  0x68   : > { %729 = vst [vmem:[%s2976_s6 + $0x2f0] sm:$0xff] %v728_v40  ;;  %731 = vst [vmem:[%s2976_s6 + $0x2f8] sm:$0xff] %v730_v41  ;;  %v732_v42 = vld [vmem:[%s2971_s25 + $0x600] sm:$0xff]  ;;  %v734_v43 = vld [vmem:[%s2971_s25 + $0x610] sm:$0xff] }
  0x69   : > { %v736_v44 = vld [vmem:[%s2971_s25 + $0x620] sm:$0xff]  ;;  %733 = vst [vmem:[%s2976_s6 + $0x300] sm:$0xff] %v732_v42  ;;  %735 = vst [vmem:[%s2976_s6 + $0x308] sm:$0xff] %v734_v43  ;;  %v738_v45 = vld [vmem:[%s2971_s25 + $0x630] sm:$0xff] }
  0x6a   : > { %737 = vst [vmem:[%s2976_s6 + $0x310] sm:$0xff] %v736_v44  ;;  %v740_v46 = vld [vmem:[%s2971_s25 + $0x640] sm:$0xff]  ;;  %v742_v47 = vld [vmem:[%s2971_s25 + $0x650] sm:$0xff]  ;;  %739 = vst [vmem:[%s2976_s6 + $0x318] sm:$0xff] %v738_v45 }
  0x6b   : > { %741 = vst [vmem:[%s2976_s6 + $0x320] sm:$0xff] %v740_v46  ;;  %743 = vst [vmem:[%s2976_s6 + $0x328] sm:$0xff] %v742_v47  ;;  %v744_v48 = vld [vmem:[%s2971_s25 + $0x660] sm:$0xff]  ;;  %v746_v49 = vld [vmem:[%s2971_s25 + $0x670] sm:$0xff] }
  0x6c   : > { %v748_v50 = vld [vmem:[%s2971_s25 + $0x680] sm:$0xff]  ;;  %745 = vst [vmem:[%s2976_s6 + $0x330] sm:$0xff] %v744_v48  ;;  %747 = vst [vmem:[%s2976_s6 + $0x338] sm:$0xff] %v746_v49  ;;  %v750_v51 = vld [vmem:[%s2971_s25 + $0x690] sm:$0xff] }
  0x6d   : > { %749 = vst [vmem:[%s2976_s6 + $0x340] sm:$0xff] %v748_v50  ;;  %v752_v52 = vld [vmem:[%s2971_s25 + $0x6a0] sm:$0xff]  ;;  %v754_v53 = vld [vmem:[%s2971_s25 + $0x6b0] sm:$0xff]  ;;  %751 = vst [vmem:[%s2976_s6 + $0x348] sm:$0xff] %v750_v51 }
  0x6e   : > { %753 = vst [vmem:[%s2976_s6 + $0x350] sm:$0xff] %v752_v52  ;;  %755 = vst [vmem:[%s2976_s6 + $0x358] sm:$0xff] %v754_v53  ;;  %v756_v54 = vld [vmem:[%s2971_s25 + $0x6c0] sm:$0xff]  ;;  %v758_v55 = vld [vmem:[%s2971_s25 + $0x6d0] sm:$0xff] }
  0x6f   : > { %v760_v56 = vld [vmem:[%s2971_s25 + $0x6e0] sm:$0xff]  ;;  %757 = vst [vmem:[%s2976_s6 + $0x360] sm:$0xff] %v756_v54  ;;  %759 = vst [vmem:[%s2976_s6 + $0x368] sm:$0xff] %v758_v55  ;;  %v762_v57 = vld [vmem:[%s2971_s25 + $0x6f0] sm:$0xff] }
  0x70   : > { %761 = vst [vmem:[%s2976_s6 + $0x370] sm:$0xff] %v760_v56  ;;  %v764_v58 = vld [vmem:[%s2971_s25 + $0x700] sm:$0xff]  ;;  %v766_v59 = vld [vmem:[%s2971_s25 + $0x710] sm:$0xff]  ;;  %763 = vst [vmem:[%s2976_s6 + $0x378] sm:$0xff] %v762_v57 }
  0x71   : > { %765 = vst [vmem:[%s2976_s6 + $0x380] sm:$0xff] %v764_v58  ;;  %767 = vst [vmem:[%s2976_s6 + $0x388] sm:$0xff] %v766_v59  ;;  %v768_v60 = vld [vmem:[%s2971_s25 + $0x720] sm:$0xff]  ;;  %v770_v61 = vld [vmem:[%s2971_s25 + $0x730] sm:$0xff] }
  0x72   : > { %v772_v62 = vld [vmem:[%s2971_s25 + $0x740] sm:$0xff]  ;;  %769 = vst [vmem:[%s2976_s6 + $0x390] sm:$0xff] %v768_v60  ;;  %771 = vst [vmem:[%s2976_s6 + $0x398] sm:$0xff] %v770_v61  ;;  %v774_v63 = vld [vmem:[%s2971_s25 + $0x750] sm:$0xff] }
  0x73   : > { %773 = vst [vmem:[%s2976_s6 + $0x3a0] sm:$0xff] %v772_v62  ;;  %v776_v0 = vld [vmem:[%s2971_s25 + $0x760] sm:$0xff]  ;;  %v778_v1 = vld [vmem:[%s2971_s25 + $0x770] sm:$0xff]  ;;  %775 = vst [vmem:[%s2976_s6 + $0x3a8] sm:$0xff] %v774_v63 }
  0x74   : > { %777 = vst [vmem:[%s2976_s6 + $0x3b0] sm:$0xff] %v776_v0  ;;  %779 = vst [vmem:[%s2976_s6 + $0x3b8] sm:$0xff] %v778_v1  ;;  %v780_v2 = vld [vmem:[%s2971_s25 + $0x780] sm:$0xff]  ;;  %v782_v3 = vld [vmem:[%s2971_s25 + $0x790] sm:$0xff] }
  0x75   : > { %v784_v4 = vld [vmem:[%s2971_s25 + $0x7a0] sm:$0xff]  ;;  %781 = vst [vmem:[%s2976_s6 + $0x3c0] sm:$0xff] %v780_v2  ;;  %783 = vst [vmem:[%s2976_s6 + $0x3c8] sm:$0xff] %v782_v3  ;;  %v786_v5 = vld [vmem:[%s2971_s25 + $0x7b0] sm:$0xff] }
  0x76   : > { %785 = vst [vmem:[%s2976_s6 + $0x3d0] sm:$0xff] %v784_v4  ;;  %v788_v6 = vld [vmem:[%s2971_s25 + $0x7c0] sm:$0xff]  ;;  %v790_v7 = vld [vmem:[%s2971_s25 + $0x7d0] sm:$0xff]  ;;  %787 = vst [vmem:[%s2976_s6 + $0x3d8] sm:$0xff] %v786_v5 }
  0x77   : > { %789 = vst [vmem:[%s2976_s6 + $0x3e0] sm:$0xff] %v788_v6  ;;  %791 = vst [vmem:[%s2976_s6 + $0x3e8] sm:$0xff] %v790_v7  ;;  %v792_v8 = vld [vmem:[%s2971_s25 + $0x7e0] sm:$0xff]  ;;  %v794_v9 = vld [vmem:[%s2971_s25 + $0x7f0] sm:$0xff] }
  0x78   : > { %v796_v10 = vld [vmem:[%s2971_s25 + $0x800] sm:$0xff]  ;;  %793 = vst [vmem:[%s2976_s6 + $0x3f0] sm:$0xff] %v792_v8  ;;  %795 = vst [vmem:[%s2976_s6 + $0x3f8] sm:$0xff] %v794_v9  ;;  %v798_v11 = vld [vmem:[%s2971_s25 + $0x810] sm:$0xff] }
  0x79   : > { %797 = vst [vmem:[%s2976_s6 + $0x400] sm:$0xff] %v796_v10  ;;  %v800_v12 = vld [vmem:[%s2971_s25 + $0x820] sm:$0xff]  ;;  %v802_v13 = vld [vmem:[%s2971_s25 + $0x830] sm:$0xff]  ;;  %799 = vst [vmem:[%s2976_s6 + $0x408] sm:$0xff] %v798_v11 }
  0x7a   : > { %801 = vst [vmem:[%s2976_s6 + $0x410] sm:$0xff] %v800_v12  ;;  %803 = vst [vmem:[%s2976_s6 + $0x418] sm:$0xff] %v802_v13  ;;  %v804_v14 = vld [vmem:[%s2971_s25 + $0x840] sm:$0xff]  ;;  %v806_v15 = vld [vmem:[%s2971_s25 + $0x850] sm:$0xff] }
  0x7b   : > { %v808_v16 = vld [vmem:[%s2971_s25 + $0x860] sm:$0xff]  ;;  %805 = vst [vmem:[%s2976_s6 + $0x420] sm:$0xff] %v804_v14  ;;  %807 = vst [vmem:[%s2976_s6 + $0x428] sm:$0xff] %v806_v15  ;;  %v810_v17 = vld [vmem:[%s2971_s25 + $0x870] sm:$0xff] }
  0x7c   : > { %809 = vst [vmem:[%s2976_s6 + $0x430] sm:$0xff] %v808_v16  ;;  %v812_v18 = vld [vmem:[%s2971_s25 + $0x880] sm:$0xff]  ;;  %v814_v19 = vld [vmem:[%s2971_s25 + $0x890] sm:$0xff]  ;;  %811 = vst [vmem:[%s2976_s6 + $0x438] sm:$0xff] %v810_v17 }
  0x7d   : > { %813 = vst [vmem:[%s2976_s6 + $0x440] sm:$0xff] %v812_v18  ;;  %815 = vst [vmem:[%s2976_s6 + $0x448] sm:$0xff] %v814_v19  ;;  %v816_v20 = vld [vmem:[%s2971_s25 + $0x8a0] sm:$0xff]  ;;  %v818_v21 = vld [vmem:[%s2971_s25 + $0x8b0] sm:$0xff] }
  0x7e   : > { %v820_v22 = vld [vmem:[%s2971_s25 + $0x8c0] sm:$0xff]  ;;  %817 = vst [vmem:[%s2976_s6 + $0x450] sm:$0xff] %v816_v20  ;;  %819 = vst [vmem:[%s2976_s6 + $0x458] sm:$0xff] %v818_v21  ;;  %v822_v23 = vld [vmem:[%s2971_s25 + $0x8d0] sm:$0xff] }
  0x7f   : > { %821 = vst [vmem:[%s2976_s6 + $0x460] sm:$0xff] %v820_v22  ;;  %v824_v24 = vld [vmem:[%s2971_s25 + $0x8e0] sm:$0xff]  ;;  %v826_v25 = vld [vmem:[%s2971_s25 + $0x8f0] sm:$0xff]  ;;  %823 = vst [vmem:[%s2976_s6 + $0x468] sm:$0xff] %v822_v23 }
  0x80   : > { %825 = vst [vmem:[%s2976_s6 + $0x470] sm:$0xff] %v824_v24  ;;  %827 = vst [vmem:[%s2976_s6 + $0x478] sm:$0xff] %v826_v25 }
  0x81 PF: > { %p2242_p0 = scmp.ge.s32.totalorder %s2833_s22, 1  ;;  %p840_p1 = scmp.lt.s32.totalorder %s2833_s22, 5 }
  0x83   : > { %p841_p2 = pnand %p2242_p0, %p840_p1 }
  0x84   : > { %s847_s0 = sand.u32 (!%p841_p2), 1, %s2809_s16   ;;  %s854_s5 = sand.u32 (!%p841_p2), 1, %s2801_s14  }
  0x85   : > { %844 = sbr.rel (%p841_p2) target bundleno = 549 (0x225), region = 88  ;;  %s881_s28 = sand.u32 (!%p841_p2), 1, %s2793_s12  }
  0x86   : > { %s2426_s23 = smul.u32 (!%p841_p2), 72, %s847_s0  ;;  %s2243_s7 = sshll.u32 (!%p841_p2), %s881_s28, 5 }
  0x87   : > { %s2427_s25 = smul.u32 (!%p841_p2), 1152, %s854_s5  ;;  %s2244_s11 = sshll.u32 (!%p841_p2), %s2821_s19, 1 }
  0x88   : > { %p889_p3 = scmp.lt.s32.totalorder (!%p841_p2), %s2244_s11, 3  ;;  %s3275_s4 = scalar_lea.vmem (!%p841_p2), [#allocation3], %s2426_s23 }
  0x89   : > { %s3277_s6 = scalar_lea.vmem (!%p841_p2), [#allocation4], %s2427_s25  ;;  %s3279_s1 = scalar_lea.vmem (!%p841_p2), [#allocation5], %s2243_s7 }
  0x8a   : > { %p2245_p4 = scmp.ne.s32.totalorder (!%p841_p2), %s2817_s18, 0 }
  0x8c   : > { %s3519_s11 = smov (!%p889_p3, %s2244_s11), 3  ;;  %899 = sbr.rel (%p2245_p4) target bundleno = 147 (0x93), region = 100 }
  0x8d   : > { %s891_s29 = scalar_lea.vmem %s3490_s2, %s3519_s11  ;;  %v2835_v26 = vmov (!%p2245_p4), 0.0  }
  0x8e   : > { %900 = vst [vmem:[#allocation2] sm:$0xff] (!%p2245_p4), %v2835_v26  ;;  %901 = vst [vmem:[#allocation2 + $0x8] sm:$0xff] (!%p2245_p4), %v2835_v26 }
  0x8f   : > { %902 = vst [vmem:[#allocation2 + $0x10] sm:$0xff] (!%p2245_p4), %v2835_v26  ;;  %903 = vst [vmem:[#allocation2 + $0x18] sm:$0xff] (!%p2245_p4), %v2835_v26 }
  0x93 PF: > { %v2518_v27 = vld [vmem:[%s3277_s6 + $0x4] ss:$8 sps:$4 sm:$0xff]   ;;  %v2522_v29 = vld [vmem:[%s3277_s6] ss:$8 sps:$4 sm:$0xff]   ;;  %v2524_v31 = vld [vmem:[%s3277_s6 + $0x14] ss:$8 sps:$4 sm:$0xff]  }
  0x94   : > { %v2520_v28 = vld [vmem:[%s3277_s6 + $0x204] ss:$8 sps:$4 sm:$0xff]   ;;  %1828 = vmatprep.subr.bf16.mxu1 %v2518_v27  ;;  %v2523_v30 = vld [vmem:[%s3277_s6 + $0x200] ss:$8 sps:$4 sm:$0xff]   ;;  %v2526_v32 = vld [vmem:[%s3277_s6 + $0x214] ss:$8 sps:$4 sm:$0xff]  }
  0x95   : > { %1914 = vmatprep.subr.bf16.mxu0 %v2520_v28  ;;  %1829 = vmatpush1.bf16.msra.mxu1 %v2522_v29  ;;  %v2528_v33 = vld [vmem:[%s3277_s6 + $0x10] ss:$8 sps:$4 sm:$0xff]   ;;  %v2530_v35 = vld [vmem:[%s3277_s6 + $0x24] ss:$8 sps:$4 sm:$0xff]   ;;  %v2534_v37 = vld [vmem:[%s3277_s6 + $0x20] ss:$8 sps:$4 sm:$0xff]  }
  0x96   : > { %1915 = vmatpush1.bf16.msra.mxu0 %v2523_v30  ;;  %1830 = vmatprep.subr.bf16.mxu1 %v2524_v31  ;;  %v2529_v34 = vld [vmem:[%s3277_s6 + $0x210] ss:$8 sps:$4 sm:$0xff]   ;;  %v2532_v36 = vld [vmem:[%s3277_s6 + $0x224] ss:$8 sps:$4 sm:$0xff]   ;;  %v2535_v38 = vld [vmem:[%s3277_s6 + $0x220] ss:$8 sps:$4 sm:$0xff]  }
  0x97   : > { %1916 = vmatprep.subr.bf16.mxu0 %v2526_v32  ;;  %v2536_v39 = vld [vmem:[%s3277_s6 + $0x34] ss:$8 sps:$4 sm:$0xff]   ;;  %v2540_v41 = vld [vmem:[%s3277_s6 + $0x30] ss:$8 sps:$4 sm:$0xff]   ;;  %v2542_v43 = vld [vmem:[%s3277_s6 + $0x44] ss:$8 sps:$4 sm:$0xff]  }
  0x98   : > { %v2538_v40 = vld [vmem:[%s3277_s6 + $0x234] ss:$8 sps:$4 sm:$0xff]   ;;  %v2541_v42 = vld [vmem:[%s3277_s6 + $0x230] ss:$8 sps:$4 sm:$0xff]   ;;  %v2544_v44 = vld [vmem:[%s3277_s6 + $0x244] ss:$8 sps:$4 sm:$0xff]  }
  0x99   : > { %1831 = vmatpush1.bf16.msra.mxu1 %v2528_v33  ;;  %v2546_v45 = vld [vmem:[%s3277_s6 + $0x40] ss:$8 sps:$4 sm:$0xff]   ;;  %v2548_v47 = vld [vmem:[%s3277_s6 + $0x54] ss:$8 sps:$4 sm:$0xff]   ;;  %v2552_v49 = vld [vmem:[%s3277_s6 + $0x50] ss:$8 sps:$4 sm:$0xff]  }
  0x9a   : > { %1917 = vmatpush1.bf16.msra.mxu0 %v2529_v34  ;;  %1832 = vmatprep.subr.bf16.mxu1 %v2530_v35  ;;  %v2547_v46 = vld [vmem:[%s3277_s6 + $0x240] ss:$8 sps:$4 sm:$0xff]   ;;  %v2550_v48 = vld [vmem:[%s3277_s6 + $0x254] ss:$8 sps:$4 sm:$0xff]   ;;  %v2553_v50 = vld [vmem:[%s3277_s6 + $0x250] ss:$8 sps:$4 sm:$0xff]  }
  0x9b   : > { %1918 = vmatprep.subr.bf16.mxu0 %v2532_v36  ;;  %v2554_v51 = vld [vmem:[%s3277_s6 + $0x64] ss:$8 sps:$4 sm:$0xff]   ;;  %v2558_v53 = vld [vmem:[%s3277_s6 + $0x60] ss:$8 sps:$4 sm:$0xff]   ;;  %v2560_v55 = vld [vmem:[%s3277_s6 + $0x74] ss:$8 sps:$4 sm:$0xff]  }
  0x9c   : > { %v2556_v52 = vld [vmem:[%s3277_s6 + $0x264] ss:$8 sps:$4 sm:$0xff]   ;;  %v2559_v54 = vld [vmem:[%s3277_s6 + $0x260] ss:$8 sps:$4 sm:$0xff]   ;;  %v2562_v56 = vld [vmem:[%s3277_s6 + $0x274] ss:$8 sps:$4 sm:$0xff]  }
  0x9d   : > { %1833 = vmatpush1.bf16.msra.mxu1 %v2534_v37  ;;  %v2564_v57 = vld [vmem:[%s3277_s6 + $0x70] ss:$8 sps:$4 sm:$0xff]   ;;  %v2566_v59 = vld [vmem:[%s3277_s6 + $0x84] ss:$8 sps:$4 sm:$0xff]   ;;  %v2570_v61 = vld [vmem:[%s3277_s6 + $0x80] ss:$8 sps:$4 sm:$0xff]  }
  0x9e   : > { %1919 = vmatpush1.bf16.msra.mxu0 %v2535_v38  ;;  %1834 = vmatprep.subr.bf16.mxu1 %v2536_v39  ;;  %v2565_v58 = vld [vmem:[%s3277_s6 + $0x270] ss:$8 sps:$4 sm:$0xff]   ;;  %v2568_v60 = vld [vmem:[%s3277_s6 + $0x284] ss:$8 sps:$4 sm:$0xff]   ;;  %v2571_v62 = vld [vmem:[%s3277_s6 + $0x280] ss:$8 sps:$4 sm:$0xff]  }
  0x9f   : > { %1920 = vmatprep.subr.bf16.mxu0 %v2538_v40  ;;  %v2572_v63 = vld [vmem:[%s3277_s6 + $0x94] ss:$8 sps:$4 sm:$0xff]   ;;  %v2576_v1 = vld [vmem:[%s3277_s6 + $0x90] ss:$8 sps:$4 sm:$0xff]   ;;  %v2578_v3 = vld [vmem:[%s3277_s6 + $0xa4] ss:$8 sps:$4 sm:$0xff]  }
  0xa0   : > { %v2574_v0 = vld [vmem:[%s3277_s6 + $0x294] ss:$8 sps:$4 sm:$0xff]   ;;  %v2577_v2 = vld [vmem:[%s3277_s6 + $0x290] ss:$8 sps:$4 sm:$0xff]   ;;  %v2580_v4 = vld [vmem:[%s3277_s6 + $0x2a4] ss:$8 sps:$4 sm:$0xff]  }
  0xa1   : > { %1835 = vmatpush1.bf16.msra.mxu1 %v2540_v41  ;;  %v2582_v5 = vld [vmem:[%s3277_s6 + $0xa0] ss:$8 sps:$4 sm:$0xff]   ;;  %v2584_v7 = vld [vmem:[%s3277_s6 + $0xb4] ss:$8 sps:$4 sm:$0xff]   ;;  %v2588_v9 = vld [vmem:[%s3277_s6 + $0xb0] ss:$8 sps:$4 sm:$0xff]  }
  0xa2   : > { %1921 = vmatpush1.bf16.msra.mxu0 %v2541_v42  ;;  %1836 = vmatprep.subr.bf16.mxu1 %v2542_v43  ;;  %v2583_v6 = vld [vmem:[%s3277_s6 + $0x2a0] ss:$8 sps:$4 sm:$0xff]   ;;  %v2586_v8 = vld [vmem:[%s3277_s6 + $0x2b4] ss:$8 sps:$4 sm:$0xff]   ;;  %v2589_v10 = vld [vmem:[%s3277_s6 + $0x2b0] ss:$8 sps:$4 sm:$0xff]  }
  0xa3   : > { %1922 = vmatprep.subr.bf16.mxu0 %v2544_v44  ;;  %v2616_v11 = vld [vmem:[%s3275_s4 + $0x4] ss:$36 sps:$4 sm:$0xff]   ;;  %v2590_v12 = vld [vmem:[%s3277_s6 + $0xc4] ss:$8 sps:$4 sm:$0xff]   ;;  %p2399_p5 = scmp.ne.s32.totalorder %s2817_s18, 1 }
  0xa4   : > { %v2592_v13 = vld [vmem:[%s3277_s6 + $0x2c4] ss:$8 sps:$4 sm:$0xff]   ;;  %1860 = vmatprep.mubr.bf16.mxu1 %v2616_v11  ;;  %v2594_v15 = vld [vmem:[%s3277_s6 + $0xc0] ss:$8 sps:$4 sm:$0xff]   ;;  %v2596_v17 = vld [vmem:[%s3277_s6 + $0xd4] ss:$8 sps:$4 sm:$0xff]  }
  0xa5   : > { %1837 = vmatpush1.bf16.msra.mxu1 %v2546_v45  ;;  %v2622_v14 = vld [vmem:[%s3275_s4 + $0x14] ss:$36 sps:$4 sm:$0xff]   ;;  %v2598_v18 = vld [vmem:[%s3277_s6 + $0x2d4] ss:$8 sps:$4 sm:$0xff]  }
  0xa6   : > { %1923 = vmatpush1.bf16.msra.mxu0 %v2547_v46  ;;  %1838 = vmatprep.subr.bf16.mxu1 %v2548_v47  ;;  %v2595_v16 = vld [vmem:[%s3277_s6 + $0x2c0] ss:$8 sps:$4 sm:$0xff]   ;;  %v2600_v19 = vld [vmem:[%s3277_s6 + $0xd0] ss:$8 sps:$4 sm:$0xff]   ;;  %v2602_v21 = vld [vmem:[%s3277_s6 + $0xe4] ss:$8 sps:$4 sm:$0xff]  }
  0xa7   : > { %1924 = vmatprep.subr.bf16.mxu0 %v2550_v48  ;;  %1946 = vmatprep.mubr.bf16.mxu0 %v2622_v14  ;;  %v2601_v20 = vld [vmem:[%s3277_s6 + $0x2d0] ss:$8 sps:$4 sm:$0xff]   ;;  %v2604_v22 = vld [vmem:[%s3277_s6 + $0x2e4] ss:$8 sps:$4 sm:$0xff]   ;;  %v2606_v23 = vld [vmem:[%s3277_s6 + $0xe0] ss:$8 sps:$4 sm:$0xff]  }
  0xa8   : > { %v2607_v24 = vld [vmem:[%s3277_s6 + $0x2e0] ss:$8 sps:$4 sm:$0xff]   ;;  %v2608_v25 = vld [vmem:[%s3277_s6 + $0xf4] ss:$8 sps:$4 sm:$0xff]   ;;  %v2612_v27 = vld [vmem:[%s3277_s6 + $0xf0] ss:$8 sps:$4 sm:$0xff]  }
  0xa9   : > { %1839 = vmatpush1.bf16.msra.mxu1 %v2552_v49  ;;  %v2610_v26 = vld [vmem:[%s3277_s6 + $0x2f4] ss:$8 sps:$4 sm:$0xff]   ;;  %v2613_v28 = vld [vmem:[%s3277_s6 + $0x2f0] ss:$8 sps:$4 sm:$0xff]   ;;  %v2619_v29 = vld [vmem:[%s3277_s6 + $0x104] ss:$8 sps:$4 sm:$0xff]  }
  0xaa   : > { %1925 = vmatpush1.bf16.msra.mxu0 %v2553_v50  ;;  %1840 = vmatprep.subr.bf16.mxu1 %v2554_v51  ;;  %v2625_v30 = vld [vmem:[%s3277_s6 + $0x304] ss:$8 sps:$4 sm:$0xff]   ;;  %v2614_v31 = vld [vmem:[%s3275_s4] ss:$36 sps:$4 sm:$0xff]   ;;  %v2617_v32 = vld [vmem:[%s3277_s6 + $0x100] ss:$8 sps:$4 sm:$0xff]  }
  0xab   : > { %1926 = vmatprep.subr.bf16.mxu0 %v2556_v52  ;;  %v2620_v33 = vld [vmem:[%s3275_s4 + $0x10] ss:$36 sps:$4 sm:$0xff]   ;;  %v2628_v35 = vld [vmem:[%s3277_s6 + $0x114] ss:$8 sps:$4 sm:$0xff]   ;;  %v2626_v37 = vld [vmem:[%s3277_s6 + $0x110] ss:$8 sps:$4 sm:$0xff]  }
  0xac   : > { %v2623_v34 = vld [vmem:[%s3277_s6 + $0x300] ss:$8 sps:$4 sm:$0xff]   ;;  %v2631_v36 = vld [vmem:[%s3277_s6 + $0x314] ss:$8 sps:$4 sm:$0xff]   ;;  %v2629_v38 = vld [vmem:[%s3277_s6 + $0x310] ss:$8 sps:$4 sm:$0xff]  }
  0xad   : > { %1841 = vmatpush1.bf16.msra.mxu1 %v2558_v53  ;;  %v2634_v39 = vld [vmem:[%s3277_s6 + $0x124] ss:$8 sps:$4 sm:$0xff]   ;;  %v2632_v41 = vld [vmem:[%s3277_s6 + $0x120] ss:$8 sps:$4 sm:$0xff]   ;;  %v2640_v43 = vld [vmem:[%s3277_s6 + $0x134] ss:$8 sps:$4 sm:$0xff]  }
  0xae   : > { %1927 = vmatpush1.bf16.msra.mxu0 %v2559_v54  ;;  %1842 = vmatprep.subr.bf16.mxu1 %v2560_v55  ;;  %v2637_v40 = vld [vmem:[%s3277_s6 + $0x324] ss:$8 sps:$4 sm:$0xff]   ;;  %v2635_v42 = vld [vmem:[%s3277_s6 + $0x320] ss:$8 sps:$4 sm:$0xff]   ;;  %v2643_v44 = vld [vmem:[%s3277_s6 + $0x334] ss:$8 sps:$4 sm:$0xff]  }
  0xaf   : > { %1928 = vmatprep.subr.bf16.mxu0 %v2562_v56  ;;  %v2638_v45 = vld [vmem:[%s3277_s6 + $0x130] ss:$8 sps:$4 sm:$0xff]   ;;  %v2646_v47 = vld [vmem:[%s3277_s6 + $0x144] ss:$8 sps:$4 sm:$0xff]   ;;  %v2644_v49 = vld [vmem:[%s3277_s6 + $0x140] ss:$8 sps:$4 sm:$0xff]  }
  0xb0   : > { %v2641_v46 = vld [vmem:[%s3277_s6 + $0x330] ss:$8 sps:$4 sm:$0xff]   ;;  %v2649_v48 = vld [vmem:[%s3277_s6 + $0x344] ss:$8 sps:$4 sm:$0xff]   ;;  %v2647_v50 = vld [vmem:[%s3277_s6 + $0x340] ss:$8 sps:$4 sm:$0xff]  }
  0xb1   : > { %1843 = vmatpush1.bf16.msra.mxu1 %v2564_v57  ;;  %v2652_v51 = vld [vmem:[%s3277_s6 + $0x154] ss:$8 sps:$4 sm:$0xff]   ;;  %v2650_v53 = vld [vmem:[%s3277_s6 + $0x150] ss:$8 sps:$4 sm:$0xff]   ;;  %v2658_v55 = vld [vmem:[%s3277_s6 + $0x164] ss:$8 sps:$4 sm:$0xff]  }
  0xb2   : > { %1929 = vmatpush1.bf16.msra.mxu0 %v2565_v58  ;;  %1844 = vmatprep.subr.bf16.mxu1 %v2566_v59  ;;  %v2655_v52 = vld [vmem:[%s3277_s6 + $0x354] ss:$8 sps:$4 sm:$0xff]   ;;  %v2653_v54 = vld [vmem:[%s3277_s6 + $0x350] ss:$8 sps:$4 sm:$0xff]   ;;  %v2661_v56 = vld [vmem:[%s3277_s6 + $0x364] ss:$8 sps:$4 sm:$0xff]  }
  0xb3   : > { %1930 = vmatprep.subr.bf16.mxu0 %v2568_v60  ;;  %v2656_v57 = vld [vmem:[%s3277_s6 + $0x160] ss:$8 sps:$4 sm:$0xff]   ;;  %v2664_v59 = vld [vmem:[%s3277_s6 + $0x174] ss:$8 sps:$4 sm:$0xff]  }
  0xb4   : > { %v2659_v58 = vld [vmem:[%s3277_s6 + $0x360] ss:$8 sps:$4 sm:$0xff]   ;;  %v2667_v60 = vld [vmem:[%s3277_s6 + $0x374] ss:$8 sps:$4 sm:$0xff]  }
  0xb5   : > { %1845 = vmatpush1.bf16.msra.mxu1 %v2570_v61  ;;  %v2718_v61 = vld [vmem:[%s3275_s4 + $0xc] ss:$36 sps:$4 sm:$0xff]  }
  0xb6   : > { %1931 = vmatpush1.bf16.msra.mxu0 %v2571_v62  ;;  %1846 = vmatprep.subr.bf16.mxu1 %v2572_v63  ;;  %v2721_v62 = vld [vmem:[%s3275_s4 + $0x1c] ss:$36 sps:$4 sm:$0xff]   ;;  %v2680_v11 = vld [vmem:[%s3277_s6 + $0x1a0] ss:$8 sps:$4 sm:$0xff]  }
  0xb7   : > { %1932 = vmatprep.subr.bf16.mxu0 %v2574_v0  ;;  %v2662_v63 = vld [vmem:[%s3277_s6 + $0x170] ss:$8 sps:$4 sm:$0xff]   ;;  %v2691_v14 = vld [vmem:[%s3277_s6 + $0x3b4] ss:$8 sps:$4 sm:$0xff]  }
  0xb8   : > { %v2665_v0 = vld [vmem:[%s3277_s6 + $0x370] ss:$8 sps:$4 sm:$0xff]  }
  0xb9   : > { %1847 = vmatpush1.bf16.msra.mxu1 %v2576_v1  ;;  %v2670_v1 = vld [vmem:[%s3277_s6 + $0x184] ss:$8 sps:$4 sm:$0xff]  }
  0xba   : > { %1933 = vmatpush1.bf16.msra.mxu0 %v2577_v2  ;;  %1848 = vmatprep.subr.bf16.mxu1 %v2578_v3  ;;  %v2673_v2 = vld [vmem:[%s3277_s6 + $0x384] ss:$8 sps:$4 sm:$0xff]   ;;  %v2668_v3 = vld [vmem:[%s3277_s6 + $0x180] ss:$8 sps:$4 sm:$0xff]  }
  0xbb   : > { %1934 = vmatprep.subr.bf16.mxu0 %v2580_v4  ;;  %v2671_v4 = vld [vmem:[%s3277_s6 + $0x380] ss:$8 sps:$4 sm:$0xff]  }
  0xbd   : > { %1849 = vmatpush1.bf16.msra.mxu1 %v2582_v5  ;;  %v2676_v5 = vld [vmem:[%s3277_s6 + $0x194] ss:$8 sps:$4 sm:$0xff]  }
  0xbe   : > { %1935 = vmatpush1.bf16.msra.mxu0 %v2583_v6  ;;  %1850 = vmatprep.subr.bf16.mxu1 %v2584_v7  ;;  %v2679_v6 = vld [vmem:[%s3277_s6 + $0x394] ss:$8 sps:$4 sm:$0xff]   ;;  %v2674_v7 = vld [vmem:[%s3277_s6 + $0x190] ss:$8 sps:$4 sm:$0xff]  }
  0xbf   : > { %1936 = vmatprep.subr.bf16.mxu0 %v2586_v8  ;;  %v2677_v8 = vld [vmem:[%s3277_s6 + $0x390] ss:$8 sps:$4 sm:$0xff]  }
  0xc1   : > { %1851 = vmatpush1.bf16.msra.mxu1 %v2588_v9  ;;  %v2682_v9 = vld [vmem:[%s3277_s6 + $0x1a4] ss:$8 sps:$4 sm:$0xff]  }
  0xc2   : > { %1937 = vmatpush1.bf16.msra.mxu0 %v2589_v10  ;;  %1852 = vmatprep.subr.bf16.mxu1 %v2590_v12  ;;  %v2685_v10 = vld [vmem:[%s3277_s6 + $0x3a4] ss:$8 sps:$4 sm:$0xff]   ;;  %v2683_v12 = vld [vmem:[%s3277_s6 + $0x3a0] ss:$8 sps:$4 sm:$0xff]  }
  0xc3   : > { %1938 = vmatprep.subr.bf16.mxu0 %v2592_v13  ;;  %v2688_v13 = vld [vmem:[%s3277_s6 + $0x1b4] ss:$8 sps:$4 sm:$0xff]  }
  0xc5   : > { %1853 = vmatpush1.bf16.msra.mxu1 %v2594_v15  ;;  %v2686_v15 = vld [vmem:[%s3277_s6 + $0x1b0] ss:$8 sps:$4 sm:$0xff]  }
  0xc6   : > { %1939 = vmatpush1.bf16.msra.mxu0 %v2595_v16  ;;  %1854 = vmatprep.subr.bf16.mxu1 %v2596_v17  ;;  %v2689_v16 = vld [vmem:[%s3277_s6 + $0x3b0] ss:$8 sps:$4 sm:$0xff]   ;;  %v2694_v17 = vld [vmem:[%s3277_s6 + $0x1c4] ss:$8 sps:$4 sm:$0xff]  }
  0xc7   : > { %1940 = vmatprep.subr.bf16.mxu0 %v2598_v18  ;;  %v2697_v18 = vld [vmem:[%s3277_s6 + $0x3c4] ss:$8 sps:$4 sm:$0xff]  }
  0xc9   : > { %1855 = vmatpush1.bf16.msra.mxu1 %v2600_v19  ;;  %v2692_v19 = vld [vmem:[%s3277_s6 + $0x1c0] ss:$8 sps:$4 sm:$0xff]  }
  0xca   : > { %1941 = vmatpush1.bf16.msra.mxu0 %v2601_v20  ;;  %1856 = vmatprep.subr.bf16.mxu1 %v2602_v21  ;;  %v2695_v20 = vld [vmem:[%s3277_s6 + $0x3c0] ss:$8 sps:$4 sm:$0xff]   ;;  %v2700_v21 = vld [vmem:[%s3277_s6 + $0x1d4] ss:$8 sps:$4 sm:$0xff]  }
  0xcb   : > { %1942 = vmatprep.subr.bf16.mxu0 %v2604_v22  ;;  %v2703_v22 = vld [vmem:[%s3277_s6 + $0x3d4] ss:$8 sps:$4 sm:$0xff]  }
  0xcd   : > { %1857 = vmatpush1.bf16.msra.mxu1 %v2606_v23  ;;  %v2698_v23 = vld [vmem:[%s3277_s6 + $0x1d0] ss:$8 sps:$4 sm:$0xff]  }
  0xce   : > { %1943 = vmatpush1.bf16.msra.mxu0 %v2607_v24  ;;  %1858 = vmatprep.subr.bf16.mxu1 %v2608_v25  ;;  %v2701_v24 = vld [vmem:[%s3277_s6 + $0x3d0] ss:$8 sps:$4 sm:$0xff]   ;;  %v2706_v25 = vld [vmem:[%s3277_s6 + $0x1e4] ss:$8 sps:$4 sm:$0xff]  }
  0xcf   : > { %1944 = vmatprep.subr.bf16.mxu0 %v2610_v26  ;;  %v2709_v26 = vld [vmem:[%s3277_s6 + $0x3e4] ss:$8 sps:$4 sm:$0xff]  }
  0xd1   : > { %1859 = vmatpush1.bf16.msra.mxu1 %v2612_v27  ;;  %v2704_v27 = vld [vmem:[%s3277_s6 + $0x1e0] ss:$8 sps:$4 sm:$0xff]  }
  0xd2   : > { %1945 = vmatpush1.bf16.msra.mxu0 %v2613_v28  ;;  %1871 = vmatprep.subr.bf16.mxu1 %v2619_v29  ;;  %v2707_v28 = vld [vmem:[%s3277_s6 + $0x3e0] ss:$8 sps:$4 sm:$0xff]   ;;  %v2712_v29 = vld [vmem:[%s3277_s6 + $0x1f4] ss:$8 sps:$4 sm:$0xff]  }
  0xd3   : > { %1957 = vmatprep.subr.bf16.mxu0 %v2625_v30  ;;  %v2715_v30 = vld [vmem:[%s3277_s6 + $0x3f4] ss:$8 sps:$4 sm:$0xff]  }
  0xd4   : > { %1861 = vmatmul.mubr.bf16.vlgmr.msra.gmra.mrb[0].mxu1 %v2614_v31  ;;  %v2710_v31 = vld [vmem:[%s3277_s6 + $0x1f0] ss:$8 sps:$4 sm:$0xff]  }
  0xd5   : > { %1947 = vmatmul.mubr.bf16.vlgmr.msra.gmra.mrb[0].mxu0 %v2620_v33  ;;  %1872 = vmatpush1.bf16.msra.mxu1 %v2617_v32  ;;  %v2713_v32 = vld [vmem:[%s3277_s6 + $0x3f0] ss:$8 sps:$4 sm:$0xff]   ;;  %v2724_v33 = vld [vmem:[%s3277_s6 + $0x404] ss:$8 sps:$4 sm:$0xff]  }
  0xd6   : > { %1958 = vmatpush1.bf16.msra.mxu0 %v2623_v34  ;;  %1873 = vmatprep.subr.bf16.mxu1 %v2628_v35  ;;  %v2716_v34 = vld [vmem:[%s3275_s4 + $0x8] ss:$36 sps:$4 sm:$0xff]   ;;  %v2719_v35 = vld [vmem:[%s3275_s4 + $0x18] ss:$36 sps:$4 sm:$0xff]  }
  0xd7   : > { %1959 = vmatprep.subr.bf16.mxu0 %v2631_v36  ;;  %1903 = vmatprep.mubr.bf16.mxu1 %v2718_v61  ;;  %v2722_v36 = vld [vmem:[%s3277_s6 + $0x400] ss:$8 sps:$4 sm:$0xff]  }
  0xd8   : > { %1989 = vmatprep.mubr.bf16.mxu0 %v2721_v62 }
  0xd9   : > { %1874 = vmatpush1.bf16.msra.mxu1 %v2626_v37  ;;  %v2727_v37 = vld [vmem:[%s3277_s6 + $0x414] ss:$8 sps:$4 sm:$0xff]  }
  0xda   : > { %1960 = vmatpush1.bf16.msra.mxu0 %v2629_v38  ;;  %1875 = vmatprep.subr.bf16.mxu1 %v2634_v39  ;;  %v2725_v38 = vld [vmem:[%s3277_s6 + $0x410] ss:$8 sps:$4 sm:$0xff]   ;;  %v2836_v39 = vmov 0  }
  0xdb   : > { %1961 = vmatprep.subr.bf16.mxu0 %v2637_v40  ;;  %v2730_v40 = vld [vmem:[%s3277_s6 + $0x424] ss:$8 sps:$4 sm:$0xff]  }
  0xdd   : > { %1876 = vmatpush1.bf16.msra.mxu1 %v2632_v41  ;;  %v2728_v41 = vld [vmem:[%s3277_s6 + $0x420] ss:$8 sps:$4 sm:$0xff]  }
  0xde   : > { %1962 = vmatpush1.bf16.msra.mxu0 %v2635_v42  ;;  %1877 = vmatprep.subr.bf16.mxu1 %v2640_v43  ;;  %v2733_v42 = vld [vmem:[%s3277_s6 + $0x434] ss:$8 sps:$4 sm:$0xff]   ;;  %v2731_v43 = vld [vmem:[%s3277_s6 + $0x430] ss:$8 sps:$4 sm:$0xff]  }
  0xdf   : > { %1963 = vmatprep.subr.bf16.mxu0 %v2643_v44  ;;  %v2736_v44 = vld [vmem:[%s3277_s6 + $0x444] ss:$8 sps:$4 sm:$0xff]  }
  0xe1   : > { %1878 = vmatpush1.bf16.msra.mxu1 %v2638_v45  ;;  %v2734_v45 = vld [vmem:[%s3277_s6 + $0x440] ss:$8 sps:$4 sm:$0xff]  }
  0xe2   : > { %1964 = vmatpush1.bf16.msra.mxu0 %v2641_v46  ;;  %1879 = vmatprep.subr.bf16.mxu1 %v2646_v47  ;;  %v2739_v46 = vld [vmem:[%s3277_s6 + $0x454] ss:$8 sps:$4 sm:$0xff]   ;;  %v2737_v47 = vld [vmem:[%s3277_s6 + $0x450] ss:$8 sps:$4 sm:$0xff]  }
  0xe3   : > { %1965 = vmatprep.subr.bf16.mxu0 %v2649_v48  ;;  %v2742_v48 = vld [vmem:[%s3277_s6 + $0x464] ss:$8 sps:$4 sm:$0xff]  }
  0xe5   : > { %1880 = vmatpush1.bf16.msra.mxu1 %v2644_v49  ;;  %v2740_v49 = vld [vmem:[%s3277_s6 + $0x460] ss:$8 sps:$4 sm:$0xff]  }
  0xe6   : > { %1966 = vmatpush1.bf16.msra.mxu0 %v2647_v50  ;;  %1881 = vmatprep.subr.bf16.mxu1 %v2652_v51  ;;  %v2745_v50 = vld [vmem:[%s3277_s6 + $0x474] ss:$8 sps:$4 sm:$0xff]   ;;  %v2743_v51 = vld [vmem:[%s3277_s6 + $0x470] ss:$8 sps:$4 sm:$0xff]  }
  0xe7   : > { %1967 = vmatprep.subr.bf16.mxu0 %v2655_v52  ;;  %v2746_v52 = vld [vmem:[%s3275_s4 + $0x20] ss:$36 sps:$4 sm:$0xff]  }
  0xe9   : > { %1882 = vmatpush1.bf16.msra.mxu1 %v2650_v53 }
  0xea   : > { %1968 = vmatpush1.bf16.msra.mxu0 %v2653_v54  ;;  %1883 = vmatprep.subr.bf16.mxu1 %v2658_v55 }
  0xeb   : > { %1969 = vmatprep.subr.bf16.mxu0 %v2661_v56 }
  0xed   : > { %1884 = vmatpush1.bf16.msra.mxu1 %v2656_v57  ;;  %v904_v57 = vld [vmem:[#allocation2] sm:$0xff] }
  0xee   : > { %1970 = vmatpush1.bf16.msra.mxu0 %v2659_v58  ;;  %1885 = vmatprep.subr.bf16.mxu1 %v2664_v59 }
  0xef   : > { %1971 = vmatprep.subr.bf16.mxu0 %v2667_v60  ;;  %v905_v60 = vld [vmem:[#allocation2 + $0x8] sm:$0xff] }
  0xf1   : > { %1886 = vmatpush1.bf16.msra.mxu1 %v2662_v63  ;;  %v906_v63 = vld [vmem:[#allocation2 + $0x10] sm:$0xff] }
  0xf2   : > { %1972 = vmatpush1.bf16.msra.mxu0 %v2665_v0  ;;  %1887 = vmatprep.subr.bf16.mxu1 %v2670_v1 }
  0xf3   : > { %1973 = vmatprep.subr.bf16.mxu0 %v2673_v2 }
  0xf5   : > { %1888 = vmatpush1.bf16.msra.mxu1 %v2668_v3  ;;  %v907_v3 = vld [vmem:[#allocation2 + $0x18] sm:$0xff] }
  0xf6   : > { %1974 = vmatpush1.bf16.msra.mxu0 %v2671_v4  ;;  %1889 = vmatprep.subr.bf16.mxu1 %v2676_v5 }
  0xf7   : > { %1975 = vmatprep.subr.bf16.mxu0 %v2679_v6 }
  0xf9   : > { %1890 = vmatpush1.bf16.msra.mxu1 %v2674_v7 }
  0xfa   : > { %1976 = vmatpush1.bf16.msra.mxu0 %v2677_v8  ;;  %1891 = vmatprep.subr.bf16.mxu1 %v2682_v9  ;;  %v2061_v9 = vlaneseq (!%p2399_p5) }
  0xfb   : > { %1977 = vmatprep.subr.bf16.mxu0 %v2685_v10 }
  0xfc   : > { %v2062_v10 = vshrl.u32 (!%p2399_p5), %v2061_v9, 7 }
  0xfd   : > { %1892 = vmatpush1.bf16.msra.mxu1 %v2680_v11  ;;  %v2059_v11 = vld [vmem:[%s891_s29] sm:$0x3] (!%p2399_p5) }
  0xfe   : > { %1978 = vmatpush1.bf16.msra.mxu0 %v2683_v12  ;;  %1893 = vmatprep.subr.bf16.mxu1 %v2688_v13  ;;  %v2063_v13 = vsub.s32 (!%p2399_p5), 0, %v2062_v10 }
  0xff   : > { %1979 = vmatprep.subr.bf16.mxu0 %v2691_v14  ;;  %v2067_v14 = vsub.s32 (!%p2399_p5), 1, %v2062_v10 }
 0x101   : > { %1894 = vmatpush1.bf16.msra.mxu1 %v2686_v15 }
 0x102   : > { %1980 = vmatpush1.bf16.msra.mxu0 %v2689_v16  ;;  %1895 = vmatprep.subr.bf16.mxu1 %v2694_v17 }
 0x103   : > { %1981 = vmatprep.subr.bf16.mxu0 %v2697_v18  ;;  %v2064_v18 = vrot.slane (!%p2399_p5), %v2059_v11, %v2063_v13 }
 0x105   : > { %1896 = vmatpush1.bf16.msra.mxu1 %v2692_v19  ;;  %v2068_v19 = vrot.slane (!%p2399_p5), %v2059_v11, %v2067_v14 }
 0x106   : > { %1982 = vmatpush1.bf16.msra.mxu0 %v2695_v20  ;;  %1897 = vmatprep.subr.bf16.mxu1 %v2700_v21 }
 0x107   : > { %1983 = vmatprep.subr.bf16.mxu0 %v2703_v22 }
 0x109   : > { %1898 = vmatpush1.bf16.msra.mxu1 %v2698_v23 }
 0x10a   : > { %1984 = vmatpush1.bf16.msra.mxu0 %v2701_v24  ;;  %1899 = vmatprep.subr.bf16.mxu1 %v2706_v25 }
 0x10b   : > { %1985 = vmatprep.subr.bf16.mxu0 %v2709_v26 }
 0x10d   : > { %1900 = vmatpush1.bf16.msra.mxu1 %v2704_v27 }
 0x10e   : > { %1986 = vmatpush1.bf16.msra.mxu0 %v2707_v28  ;;  %1901 = vmatprep.subr.bf16.mxu1 %v2712_v29 }
 0x10f   : > { %1987 = vmatprep.subr.bf16.mxu0 %v2715_v30 }
 0x111   : > { %1902 = vmatpush1.bf16.msra.mxu1 %v2710_v31 }
 0x112   : > { %1988 = vmatpush1.bf16.msra.mxu0 %v2713_v32 }
 0x113   : > { %2000 = vmatprep.subr.bf16.mxu0 %v2724_v33 }
 0x114   : > { %1904 = vmatmul.mubr.bf16.vlgmr.msra.gmra.mrb[0].mxu1 %v2716_v34 }
 0x115   : > { %1990 = vmatmul.mubr.bf16.vlgmr.msra.gmra.mrb[0].mxu0 %v2719_v35 }
 0x116   : > { %2001 = vmatpush1.bf16.msra.mxu0 %v2722_v36  ;;  %2032 = vmatprep.mubr.bf16.mxu0 %v2836_v39 }
 0x117   : > { %2002 = vmatprep.subr.bf16.mxu0 %v2727_v37 }
 0x11a   : > { %2003 = vmatpush1.bf16.msra.mxu0 %v2725_v38 }
 0x11b   : > { %2004 = vmatprep.subr.bf16.mxu0 %v2730_v40 }
 0x11e   : > { %2005 = vmatpush1.bf16.msra.mxu0 %v2728_v41 }
 0x11f   : > { %2006 = vmatprep.subr.bf16.mxu0 %v2733_v42 }
 0x122   : > { %2007 = vmatpush1.bf16.msra.mxu0 %v2731_v43 }
 0x123   : > { %2008 = vmatprep.subr.bf16.mxu0 %v2736_v44 }
 0x126   : > { %2009 = vmatpush1.bf16.msra.mxu0 %v2734_v45 }
 0x127   : > { %2010 = vmatprep.subr.bf16.mxu0 %v2739_v46 }
 0x12a   : > { %2011 = vmatpush1.bf16.msra.mxu0 %v2737_v47 }
 0x12b   : > { %2012 = vmatprep.subr.bf16.mxu0 %v2742_v48 }
 0x12e   : > { %2013 = vmatpush1.bf16.msra.mxu0 %v2740_v49 }
 0x12f   : > { %2014 = vmatprep.subr.bf16.mxu0 %v2745_v50 }
 0x132   : > { %2015 = vmatpush1.bf16.msra.mxu0 %v2743_v51 }
 0x135   : > { %2033 = vmatmul.mubr.bf16.vlgmr.msra.gmra.mrb[0].mxu0 %v2746_v52 }
 0x1e7   : > { %v1905_v53 = vpop.f32.mrb[0].mxu1 }
 0x1e8   : > { %v1907_v54 = vpop.f32.mrb[1].mxu1 }
 0x1e9   : > { %v1909_v55 = vpop.f32.mrb[2].mxu1 }
 0x1ea   : > { %v1911_v56 = vpop.f32.mrb[3].mxu1 }
 0x208   : > { %v2034_v58 = vpop.f32.mrb[0].mxu0 }
 0x209   : > { %v2408_v59 = vadd.f32 %v2034_v58, %v1905_v53  ;;  %v2036_v61 = vpop.f32.mrb[1].mxu0 }
 0x20a   : > { %v2409_v62 = vadd.f32 %v2036_v61, %v1907_v54  ;;  %v2038_v0 = vpop.f32.mrb[2].mxu0  ;;  %2054 = sbr.rel (%p2399_p5) target bundleno = 541 (0x21d), region = 104 }
 0x20b   : > { %v2043_v1 = vadd.f32 %v2408_v59, %v904_v57  ;;  %v2410_v2 = vadd.f32 %v2038_v0, %v1909_v55  ;;  %v2040_v4 = vpop.f32.mrb[3].mxu0 }
 0x20c   : > { %v2044_v5 = vadd.f32 %v2409_v62, %v905_v60  ;;  %v2411_v6 = vadd.f32 %v2040_v4, %v1911_v56 }
 0x20d   : > { %2047 = vst [vmem:[#allocation2] sm:$0xff] %v2043_v1  ;;  %v2045_v7 = vadd.f32 %v2410_v2, %v906_v63 }
 0x20e   : > { %2048 = vst [vmem:[#allocation2 + $0x8] sm:$0xff] %v2044_v5  ;;  %v2046_v8 = vadd.f32 %v2411_v6, %v907_v3 }
 0x20f   : > { %2049 = vst [vmem:[#allocation2 + $0x10] sm:$0xff] %v2045_v7 }
 0x210   : > { %2050 = vst [vmem:[#allocation2 + $0x18] sm:$0xff] %v2046_v8 }
 0x214   : > { %v2055_v12 = vld [vmem:[#allocation2] sm:$0xff] }
 0x215   : > { %v2056_v15 = vld [vmem:[#allocation2 + $0x8] sm:$0xff]  ;;  %v2071_v20 = vadd.f32 %v2064_v18, %v2055_v12 }
 0x216   : > { %v2057_v16 = vld [vmem:[#allocation2 + $0x10] sm:$0xff]  ;;  %v2072_v21 = vadd.f32 %v2068_v19, %v2056_v15 }
 0x217   : > { %v2058_v17 = vld [vmem:[#allocation2 + $0x18] sm:$0xff]  ;;  %v2073_v22 = vadd.f32 %v2064_v18, %v2057_v16  ;;  %v2075_v24 = vmax.f32 %v2071_v20, 0.0 }
 0x218   : > { %v2074_v23 = vadd.f32 %v2068_v19, %v2058_v17  ;;  %v2076_v25 = vmax.f32 %v2072_v21, 0.0 }
 0x219   : > { %v2077_v26 = vmax.f32 %v2073_v22, 0.0  ;;  %2079 = vst [vmem:[%s3279_s1] sm:$0xff] %v2075_v24 }
 0x21a   : > { %v2078_v27 = vmax.f32 %v2074_v23, 0.0  ;;  %2080 = vst [vmem:[%s3279_s1 + $0x8] sm:$0xff] %v2076_v25 }
 0x21b   : > { %2081 = vst [vmem:[%s3279_s1 + $0x10] sm:$0xff] %v2077_v26 }
 0x21c   : > { %2082 = vst [vmem:[%s3279_s1 + $0x18] sm:$0xff] %v2078_v27 }
 0x21d PF: > { %2089 = sbr.rel (!%p2951_p12) target bundleno = 549 (0x225), region = 108  ;;  %s2407_s16 = sshll.u32 (%p2951_p12), %s2821_s19, 4 }
 0x21e   : > { %s2095_s5 = scalar_lea.vmem (%p2951_p12), %s3491_s3, %s2407_s16 }
 0x220   : > { %v2108_v28 = vld [vmem:[%s3279_s1] sm:$0xff] (%p2951_p12) }
 0x221   : > { %v2110_v29 = vld [vmem:[%s3279_s1 + $0x8] sm:$0xff] (%p2951_p12)  ;;  %2109 = vst [vmem:[%s2095_s5] sm:$0xff] (%p2951_p12), %v2108_v28 }
 0x222   : > { %v2112_v30 = vld [vmem:[%s3279_s1 + $0x10] sm:$0xff] (%p2951_p12)  ;;  %2111 = vst [vmem:[%s2095_s5 + $0x8] sm:$0xff] (%p2951_p12), %v2110_v29 }
 0x223   : > { %v2114_v31 = vld [vmem:[%s3279_s1 + $0x18] sm:$0xff] (%p2951_p12)  ;;  %2113 = vst [vmem:[%s2095_s5 + $0x20] sm:$0xff] (%p2951_p12), %v2112_v30 }
 0x224   : > { %2115 = vst [vmem:[%s2095_s5 + $0x28] sm:$0xff] %v2114_v31 }
 0x225 PF: > { %s13_s22 = sadd.s32 1, %s2833_s22   ;;  %s3501_s10 = sld [smem:[#allocation6_spill]] }
 0x226   : > { %p10_p6 = scmp.ge.s32.totalorder %s13_s22, 6   ;;  %s3502_s12 = smov %s2797_s13 }
 0x227   : > { %s3503_s13 = smov %s2949_s9  ;;  %s3504_s14 = smov %s2805_s15 }
 0x228   : > { %s3505_s15 = smov %s2946_s8  ;;  %s3506_s16 = smov %s2813_s17 }
 0x229   : > { %s3507_s17 = smov %s2932_s30  ;;  %s3508_s18 = smov %s2825_s20 }
 0x22a   : > { %s3509_s19 = smov %s2829_s21  ;;  %s3510_s20 = smov %s3513_s24 }
 0x22b   : > { %s3511_s21 = smov %s3501_s10  ;;  %12 = sbr.rel (!%p10_p6) target bundleno = 9 (0x9), region = 179 }

// kernel: dsamnet_forward.17
= control target key start
LH: loop header
LB: loop body
LE: loop exit
PB: predicated region body
PF: predicated region fallthrough
CT: control target
= control target key end

     0   :  { %v1609_v22 = vmov 1983009808   ;;  %v103_v24 = vlaneseq  ;;  %vm393_vm0 = vcmask 31744   ;;  %vm418_vm1 = vcmask 1043456   ;;  %s2196_s1 = inlined_call_operand.vmem [shape: bf16[512,64], index: 1, kind: input, shape index: {}]   ;;  %s2197_s0 = inlined_call_operand.vmem [shape: bf16[4,4,512], index: 0, kind: input, shape index: {}]   ;;  %s2198_s3 = inlined_call_operand.vmem [shape: f32[64,4], index: 3, kind: input, shape index: {}]   ;;  %s2199_s2 = inlined_call_operand.vmem [shape: f32[1,64], index: 2, kind: input, shape index: {}]   ;;  %s2200_s4 = inlined_call_operand.vmem [shape: f32[4,64,64], index: 4, kind: output, shape index: {}]  }
   0x1   :  { %v1638_v0 = vld [vmem:[%s2196_s1 + $0x40] sm:$0xff]   ;;  %v1661_v4 = vld [vmem:[%s2196_s1 + $0x48] sm:$0xff]   ;;  %v1685_v8 = vld [vmem:[%s2196_s1 + $0x50] sm:$0xff]   ;;  %v101_v23 = vunpack.c.l.s4 %v1609_v22  ;;  %vm527_vm2 = vcmask 523264  }
   0x2   :  { %v1643_v1 = vld [vmem:[%s2196_s1 + $0xc0] sm:$0xff]   ;;  %1302 = vmatprep.subr.bf16.mxu0 %v1638_v0  ;;  %v1667_v5 = vld [vmem:[%s2196_s1 + $0xc8] sm:$0xff]   ;;  %v1691_v9 = vld [vmem:[%s2196_s1 + $0xd0] sm:$0xff]   ;;  %v104_v30 = vshrl.u32 %v103_v24, 7 }
   0x3   :  { %v1649_v2 = vld [vmem:[%s2196_s1] sm:$0xff]   ;;  %1324 = vmatprep.subr.bf16.mxu1 %v1643_v1  ;;  %v1673_v6 = vld [vmem:[%s2196_s1 + $0x8] sm:$0xff]   ;;  %v1697_v10 = vld [vmem:[%s2196_s1 + $0x10] sm:$0xff]   ;;  %v102_v29 = vunpack.c.0.s8 %v101_v23 }
   0x4   :  { %v1655_v3 = vld [vmem:[%s2196_s1 + $0x80] sm:$0xff]   ;;  %1303 = vmatpush3.bf16.msra.mxu0 %v1649_v2  ;;  %v1679_v7 = vld [vmem:[%s2196_s1 + $0x88] sm:$0xff]   ;;  %v1703_v11 = vld [vmem:[%s2196_s1 + $0x90] sm:$0xff]  }
   0x5   :  { %1325 = vmatpush3.bf16.msra.mxu1 %v1655_v3  ;;  %1304 = vmatprep.subr.bf16.mxu0 %v1661_v4  ;;  %v1709_v12 = vld [vmem:[%s2196_s1 + $0x58] sm:$0xff]   ;;  %v1733_v16 = vld [vmem:[%s2196_s1 + $0x60] sm:$0xff]   ;;  %v1757_v20 = vld [vmem:[%s2196_s1 + $0x68] sm:$0xff]   ;;  %v1813_v35 = vsub.s32 %v102_v29, %v104_v30 }
   0x6   :  { %1326 = vmatprep.subr.bf16.mxu1 %v1667_v5  ;;  %v1715_v13 = vld [vmem:[%s2196_s1 + $0xd8] sm:$0xff]   ;;  %v1739_v17 = vld [vmem:[%s2196_s1 + $0xe0] sm:$0xff]   ;;  %v1763_v21 = vld [vmem:[%s2196_s1 + $0xe8] sm:$0xff]  }
   0x7   :  { %v1721_v14 = vld [vmem:[%s2196_s1 + $0x18] sm:$0xff]   ;;  %v1745_v18 = vld [vmem:[%s2196_s1 + $0x20] sm:$0xff]   ;;  %v1769_v25 = vld [vmem:[%s2196_s1 + $0x28] sm:$0xff]  }
   0x8   :  { %1305 = vmatpush3.bf16.msra.mxu0 %v1673_v6  ;;  %v1727_v15 = vld [vmem:[%s2196_s1 + $0x98] sm:$0xff]   ;;  %v1751_v19 = vld [vmem:[%s2196_s1 + $0xa0] sm:$0xff]   ;;  %v1775_v26 = vld [vmem:[%s2196_s1 + $0xa8] sm:$0xff]  }
   0x9   :  { %1327 = vmatpush3.bf16.msra.mxu1 %v1679_v7  ;;  %1306 = vmatprep.subr.bf16.mxu0 %v1685_v8  ;;  %v1781_v27 = vld [vmem:[%s2196_s1 + $0x70] sm:$0xff]   ;;  %v1805_v33 = vld [vmem:[%s2196_s1 + $0x78] sm:$0xff]   ;;  %v91_v38 = vld [vmem:[%s2197_s0] sm:$0xff] }
   0xa   :  { %1328 = vmatprep.subr.bf16.mxu1 %v1691_v9  ;;  %v1787_v28 = vld [vmem:[%s2196_s1 + $0xf0] sm:$0xff]   ;;  %v1811_v34 = vld [vmem:[%s2196_s1 + $0xf8] sm:$0xff]   ;;  %v106_v39 = vrot.slane %v91_v38, %v1813_v35  ;;  %v99_v40 = vcombine.high %v91_v38, %v91_v38  ;;  %v1853_v44 = vld [vmem:[%s2198_s3] sm:$0xff] }
   0xb   :  { %v1793_v31 = vld [vmem:[%s2196_s1 + $0x30] sm:$0xff]   ;;  %v1819_v36 = vld [vmem:[%s2196_s1 + $0x38] sm:$0xff]   ;;  %v1248_v45 = vld [vmem:[%s2197_s0 + $0x8] sm:$0xff] }
   0xc   :  { %1307 = vmatpush3.bf16.msra.mxu0 %v1697_v10  ;;  %v1799_v32 = vld [vmem:[%s2196_s1 + $0xb0] sm:$0xff]   ;;  %v1825_v37 = vld [vmem:[%s2196_s1 + $0xb8] sm:$0xff]   ;;  %v114_v41 = vcombine.high %v106_v39, %v106_v39  ;;  %v113_v42 = vrot.slane %v99_v40, %v1813_v35  ;;  %v546_v46 = vrot.slane %v1248_v45, %v1813_v35  ;;  %v1866_v49 = vld [vmem:[%s2199_s2] ss:$0 sm:$0xff]  ;;  %v539_v23 = vcombine.high %v1248_v45, %v1248_v45 }
   0xd   :  { %1329 = vmatpush3.bf16.msra.mxu1 %v1703_v11  ;;  %1308 = vmatprep.subr.bf16.mxu0 %v1709_v12  ;;  %v1872_v62 = vld [vmem:[%s2198_s3 + $0x8] sm:$0xff]  ;;  %v1878_v63 = vld [vmem:[%s2198_s3 + $0x10] sm:$0xff]  ;;  %v1890_v22 = vld [vmem:[%s2198_s3 + $0x18] sm:$0xff] }
   0xe   :  { %1330 = vmatprep.subr.bf16.mxu1 %v1715_v13  ;;  %344 = vmatprep.mubr.bf16.mxu0 %v114_v41  ;;  %v115_v43 = vcombine.high %v113_v42, %v113_v42  ;;  %v554_v47 = vcombine.high %v546_v46, %v546_v46  ;;  %v1896_v24 = vld [vmem:[%s2198_s3 + $0x20] sm:$0xff]  ;;  %v1906_v29 = vld [vmem:[%s2198_s3 + $0x28] sm:$0xff]  ;;  %v553_v30 = vrot.slane %v539_v23, %v1813_v35  ;;  %v1913_v38 = vld [vmem:[%s2198_s3 + $0x30] sm:$0xff] }
  0x10   :  { %1309 = vmatpush3.bf16.msra.mxu0 %v1721_v14  ;;  %384 = vmatprep.mubr.bf16.mxu1 %v115_v43  ;;  %v555_v40 = vcombine.high %v553_v30, %v553_v30 }
  0x11   :  { %1331 = vmatpush3.bf16.msra.mxu1 %v1727_v15  ;;  %1310 = vmatprep.subr.bf16.mxu0 %v1733_v16 }
  0x12   :  { %1332 = vmatprep.subr.bf16.mxu1 %v1739_v17 }
  0x14   :  { %1311 = vmatpush3.bf16.msra.mxu0 %v1745_v18 }
  0x15   :  { %1333 = vmatpush3.bf16.msra.mxu1 %v1751_v19  ;;  %1312 = vmatprep.subr.bf16.mxu0 %v1757_v20 }
  0x16   :  { %1334 = vmatprep.subr.bf16.mxu1 %v1763_v21 }
  0x18   :  { %1313 = vmatpush3.bf16.msra.mxu0 %v1769_v25 }
  0x19   :  { %1335 = vmatpush3.bf16.msra.mxu1 %v1775_v26  ;;  %1314 = vmatprep.subr.bf16.mxu0 %v1781_v27 }
  0x1a   :  { %1336 = vmatprep.subr.bf16.mxu1 %v1787_v28 }
  0x1c   :  { %1315 = vmatpush3.bf16.msra.mxu0 %v1793_v31 }
  0x1d   :  { %1337 = vmatpush3.bf16.msra.mxu1 %v1799_v32  ;;  %1316 = vmatprep.subr.bf16.mxu0 %v1805_v33 }
  0x1e   :  { %1338 = vmatprep.subr.bf16.mxu1 %v1811_v34 }
  0x20   :  { %1317 = vmatpush3.bf16.msra.mxu0 %v1819_v36 }
  0x21   :  { %1339 = vmatpush3.bf16.msra.mxu1 %v1825_v37 }
  0x22   :  { %1355 = vmatprep.subr.bf16.mxu1 %v1638_v0 }
  0x23   :  { %345 = vmatmul.mubr.bf16.vlgmr.msra.gmra.mrb[0].mxu0 %v106_v39  ;;  %v1923_v39 = vld [vmem:[%s2198_s3 + $0x38] sm:$0xff] }
  0x24   :  { %385 = vmatmul.mubr.bf16.vlgmr.msra.gmra.mrb[0].mxu1 %v113_v42  ;;  %1516 = vmatprep.mubr.msk.f32.mxu0 %vm393_vm0, %v1853_v44 }
  0x25   :  { %1356 = vmatpush3.bf16.msra.mxu1 %v1649_v2  ;;  %592 = vmatprep.mubr.bf16.mxu1 %v554_v47  ;;  %v1266_v47 = vld [vmem:[%s2197_s0 + $0x10] sm:$0xff] }
  0x26   :  { %1357 = vmatprep.subr.bf16.mxu1 %v1661_v4 }
  0x29   :  { %1358 = vmatpush3.bf16.msra.mxu1 %v1673_v6 }
  0x2a   :  { %1359 = vmatprep.subr.bf16.mxu1 %v1685_v8 }
  0x2d   :  { %1360 = vmatpush3.bf16.msra.mxu1 %v1697_v10 }
  0x2e   :  { %1361 = vmatprep.subr.bf16.mxu1 %v1709_v12 }
  0x31   :  { %1362 = vmatpush3.bf16.msra.mxu1 %v1721_v14 }
  0x32   :  { %1363 = vmatprep.subr.bf16.mxu1 %v1733_v16 }
  0x35   :  { %1364 = vmatpush3.bf16.msra.mxu1 %v1745_v18 }
  0x36   :  { %1365 = vmatprep.subr.bf16.mxu1 %v1757_v20 }
  0x39   :  { %1366 = vmatpush3.bf16.msra.mxu1 %v1769_v25 }
  0x3a   :  { %1367 = vmatprep.subr.bf16.mxu1 %v1781_v27 }
  0x3d   :  { %1368 = vmatpush3.bf16.msra.mxu1 %v1793_v31 }
  0x3e   :  { %1369 = vmatprep.subr.bf16.mxu1 %v1805_v33 }
  0x41   :  { %1370 = vmatpush3.bf16.msra.mxu1 %v1819_v36 }
  0x44   :  { %593 = vmatmul.mubr.bf16.vlgmr.msra.gmra.mrb[4].mxu1 %v546_v46 }
  0x45   :  { %1530 = vmatprep.mubr.msk.f32.mxu1 %vm393_vm0, %v1853_v44 }
  0xf6   :  { %v1318_v48 = vpop.f32.mrb[0].mxu0 }
  0xf7   :  { %v1319_v50 = vpop.f32.mrb[1].mxu0  ;;  %v1340_v51 = vpop.f32.mrb[0].mxu1 }
  0xf8   :  { %v1320_v52 = vadd.f32 %v1319_v50, %v1318_v48  ;;  %v1321_v53 = vpop.f32.mrb[2].mxu0  ;;  %v1341_v54 = vpop.f32.mrb[1].mxu1  ;;  %v768_v48 = vrot.slane %v1266_v47, %v1813_v35 }
  0xf9   :  { %v1322_v55 = vpop.f32.mrb[3].mxu0  ;;  %v1342_v57 = vadd.f32 %v1341_v54, %v1340_v51  ;;  %v1343_v58 = vpop.f32.mrb[2].mxu1 }
  0xfa   :  { %v347_v56 = vadd.f32 %v1320_v52, %v1866_v49  ;;  %v1344_v59 = vpop.f32.mrb[3].mxu1  ;;  %v776_v50 = vcombine.high %v768_v48, %v768_v48 }
  0xfc   :  { %v387_v60 = vadd.f32 %v1342_v57, %v347_v56 }
  0xfe   :  { %v392_v61 = vmax.f32 %v387_v60, 0.0 }
 0x100   :  { %1514 = vmatprep.subr.msk.mxu0 %vm418_vm1, %v392_v61 }
 0x101   :  { %1515 = vmatpush3.msk.msra.mxu0 %vm418_vm1, %v392_v61 }
 0x102   :  { %1517 = vmatmul.mubr.msk.f32.vlgmr.msra.gmra.mrb[4].mxu0 %vm393_vm0, %v1872_v62  ;;  %1377 = vmatprep.subr.bf16.mxu0 %v1643_v1 }
 0x103   :  { %1378 = vmatpush3.bf16.msra.mxu0 %v1655_v3  ;;  %1519 = vmatprep.mubr.msk.f32.mxu0 %vm393_vm0, %v1878_v63 }
 0x104   :  { %1379 = vmatprep.subr.bf16.mxu0 %v1667_v5 }
 0x106   :  { %1520 = vmatmul.mubr.msk.f32.gmra.mrb[6].mxu0 %vm393_vm0, %v1890_v22 }
 0x107   :  { %1380 = vmatpush3.bf16.msra.mxu0 %v1679_v7  ;;  %1522 = vmatprep.mubr.msk.f32.mxu0 %vm393_vm0, %v1896_v24 }
 0x108   :  { %1381 = vmatprep.subr.bf16.mxu0 %v1691_v9 }
 0x10a   :  { %1523 = vmatmul.mubr.msk.f32.gmra.mrb[8].mxu0 %vm393_vm0, %v1906_v29 }
 0x10b   :  { %1382 = vmatpush3.bf16.msra.mxu0 %v1703_v11  ;;  %1525 = vmatprep.mubr.msk.f32.mxu0 %vm393_vm0, %v1913_v38 }
 0x10c   :  { %1383 = vmatprep.subr.bf16.mxu0 %v1715_v13 }
 0x10e   :  { %1526 = vmatmul.mubr.msk.f32.gmra.mrb[10].mxu0 %vm393_vm0, %v1923_v39 }
 0x10f   :  { %1384 = vmatpush3.bf16.msra.mxu0 %v1727_v15  ;;  %632 = vmatprep.mubr.bf16.mxu0 %v555_v40 }
 0x110   :  { %1385 = vmatprep.subr.bf16.mxu0 %v1739_v17 }
 0x113   :  { %1386 = vmatpush3.bf16.msra.mxu0 %v1751_v19 }
 0x114   :  { %1387 = vmatprep.subr.bf16.mxu0 %v1763_v21 }
 0x117   :  { %1388 = vmatpush3.bf16.msra.mxu0 %v1775_v26  ;;  %v1371_v41 = vpop.f32.mrb[4].mxu1 }
 0x118   :  { %1389 = vmatprep.subr.bf16.mxu0 %v1787_v28  ;;  %v1372_v42 = vpop.f32.mrb[5].mxu1 }
 0x119   :  { %v1373_v43 = vadd.f32 %v1372_v42, %v1371_v41  ;;  %v1374_v45 = vpop.f32.mrb[6].mxu1 }
 0x11a   :  { %v1375_v46 = vpop.f32.mrb[7].mxu1 }
 0x11b   :  { %1390 = vmatpush3.bf16.msra.mxu0 %v1799_v32  ;;  %v595_v59 = vadd.f32 %v1373_v43, %v1866_v49  ;;  %v761_v43 = vcombine.high %v1266_v47, %v1266_v47 }
 0x11c   :  { %1391 = vmatprep.subr.bf16.mxu0 %v1811_v34 }
 0x11d   :  { %v775_v45 = vrot.slane %v761_v43, %v1813_v35 }
 0x11f   :  { %1392 = vmatpush3.bf16.msra.mxu0 %v1825_v37  ;;  %v777_v46 = vcombine.high %v775_v45, %v775_v45 }
 0x120   :  { %1408 = vmatprep.subr.bf16.mxu0 %v1638_v0 }
 0x122   :  { %633 = vmatmul.mubr.bf16.vlgmr.msra.gmra.mrb[12].mxu0 %v553_v30 }
 0x123   :  { %1409 = vmatpush3.bf16.msra.mxu0 %v1649_v2  ;;  %814 = vmatprep.mubr.bf16.mxu0 %v776_v50 }
 0x124   :  { %1410 = vmatprep.subr.bf16.mxu0 %v1661_v4 }
 0x127   :  { %1411 = vmatpush3.bf16.msra.mxu0 %v1673_v6 }
 0x128   :  { %1412 = vmatprep.subr.bf16.mxu0 %v1685_v8 }
 0x12b   :  { %1413 = vmatpush3.bf16.msra.mxu0 %v1697_v10 }
 0x12c   :  { %1414 = vmatprep.subr.bf16.mxu0 %v1709_v12 }
 0x12f   :  { %1415 = vmatpush3.bf16.msra.mxu0 %v1721_v14 }
 0x130   :  { %1416 = vmatprep.subr.bf16.mxu0 %v1733_v16 }
 0x133   :  { %1417 = vmatpush3.bf16.msra.mxu0 %v1745_v18 }
 0x134   :  { %1418 = vmatprep.subr.bf16.mxu0 %v1757_v20 }
 0x137   :  { %1419 = vmatpush3.bf16.msra.mxu0 %v1769_v25 }
 0x138   :  { %1420 = vmatprep.subr.bf16.mxu0 %v1781_v27 }
 0x13b   :  { %1421 = vmatpush3.bf16.msra.mxu0 %v1793_v31 }
 0x13c   :  { %1422 = vmatprep.subr.bf16.mxu0 %v1805_v33 }
 0x13f   :  { %1423 = vmatpush3.bf16.msra.mxu0 %v1819_v36 }
 0x142   :  { %815 = vmatmul.mubr.bf16.vlgmr.msra.gmra.mrb[16].mxu0 %v768_v48 }
 0x143   :  { %1544 = vmatprep.mubr.msk.f32.mxu0 %vm393_vm0, %v1853_v44 }
 0x1d5   :  { %v1518_v51 = vpop.f32.mrb[4].mxu0 }
 0x1d6   :  { %529 = vst.msk [vmem:[%s2200_s4 + $0x8] sm:$0xff] %vm527_vm2, %v1518_v51  ;;  %v488_v52 = vpop.f32.mrb[5].mxu0 }
 0x1d7   :  { %528 = vst.msk [vmem:[%s2200_s4] sm:$0xff] %vm527_vm2, %v488_v52 }
 0x1d9   :  { %v1521_v53 = vpop.f32.mrb[6].mxu0 }
 0x1da   :  { %531 = vst.msk [vmem:[%s2200_s4 + $0x18] sm:$0xff] %vm527_vm2, %v1521_v53  ;;  %v498_v54 = vpop.f32.mrb[7].mxu0 }
 0x1db   :  { %530 = vst.msk [vmem:[%s2200_s4 + $0x10] sm:$0xff] %vm527_vm2, %v498_v54 }
 0x1dd   :  { %v1524_v55 = vpop.f32.mrb[8].mxu0 }
 0x1de   :  { %533 = vst.msk [vmem:[%s2200_s4 + $0x28] sm:$0xff] %vm527_vm2, %v1524_v55  ;;  %v508_v56 = vpop.f32.mrb[9].mxu0 }
 0x1df   :  { %532 = vst.msk [vmem:[%s2200_s4 + $0x20] sm:$0xff] %vm527_vm2, %v508_v56 }
 0x1e1   :  { %v1527_v57 = vpop.f32.mrb[10].mxu0 }
 0x1e2   :  { %535 = vst.msk [vmem:[%s2200_s4 + $0x38] sm:$0xff] %vm527_vm2, %v1527_v57  ;;  %v518_v58 = vpop.f32.mrb[11].mxu0 }
 0x1e3   :  { %534 = vst.msk [vmem:[%s2200_s4 + $0x30] sm:$0xff] %vm527_vm2, %v518_v58 }
 0x1f5   :  { %v1393_v60 = vpop.f32.mrb[12].mxu0 }
 0x1f6   :  { %v1394_v61 = vpop.f32.mrb[13].mxu0 }
 0x1f7   :  { %v1395_v23 = vadd.f32 %v1394_v61, %v1393_v60  ;;  %v1396_v30 = vpop.f32.mrb[14].mxu0 }
 0x1f8   :  { %v1397_v40 = vpop.f32.mrb[15].mxu0 }
 0x1f9   :  { %v635_v41 = vadd.f32 %v1395_v23, %v595_v59 }
 0x1fb   :  { %v640_v42 = vmax.f32 %v635_v41, 0.0 }
 0x1fd   :  { %1528 = vmatprep.subr.msk.mxu1 %vm418_vm1, %v640_v42 }
 0x1fe   :  { %1529 = vmatpush3.msk.msra.mxu1 %vm418_vm1, %v640_v42 }
 0x1ff   :  { %1531 = vmatmul.mubr.msk.f32.vlgmr.msra.gmra.mrb[8].mxu1 %vm393_vm0, %v1872_v62  ;;  %1430 = vmatprep.subr.bf16.mxu1 %v1643_v1 }
 0x200   :  { %1431 = vmatpush3.bf16.msra.mxu1 %v1655_v3  ;;  %1533 = vmatprep.mubr.msk.f32.mxu1 %vm393_vm0, %v1878_v63 }
 0x201   :  { %1432 = vmatprep.subr.bf16.mxu1 %v1667_v5 }
 0x203   :  { %1534 = vmatmul.mubr.msk.f32.gmra.mrb[10].mxu1 %vm393_vm0, %v1890_v22 }
 0x204   :  { %1433 = vmatpush3.bf16.msra.mxu1 %v1679_v7  ;;  %1536 = vmatprep.mubr.msk.f32.mxu1 %vm393_vm0, %v1896_v24 }
 0x205   :  { %1434 = vmatprep.subr.bf16.mxu1 %v1691_v9 }
 0x207   :  { %1537 = vmatmul.mubr.msk.f32.gmra.mrb[12].mxu1 %vm393_vm0, %v1906_v29 }
 0x208   :  { %1435 = vmatpush3.bf16.msra.mxu1 %v1703_v11  ;;  %1539 = vmatprep.mubr.msk.f32.mxu1 %vm393_vm0, %v1913_v38 }
 0x209   :  { %1436 = vmatprep.subr.bf16.mxu1 %v1715_v13 }
 0x20b   :  { %1540 = vmatmul.mubr.msk.f32.gmra.mrb[14].mxu1 %vm393_vm0, %v1923_v39 }
 0x20c   :  { %1437 = vmatpush3.bf16.msra.mxu1 %v1727_v15  ;;  %854 = vmatprep.mubr.bf16.mxu1 %v777_v46 }
 0x20d   :  { %1438 = vmatprep.subr.bf16.mxu1 %v1739_v17 }
 0x210   :  { %1439 = vmatpush3.bf16.msra.mxu1 %v1751_v19 }
 0x211   :  { %1440 = vmatprep.subr.bf16.mxu1 %v1763_v21 }
 0x214   :  { %1441 = vmatpush3.bf16.msra.mxu1 %v1775_v26 }
 0x215   :  { %1442 = vmatprep.subr.bf16.mxu1 %v1787_v28 }
 0x218   :  { %1443 = vmatpush3.bf16.msra.mxu1 %v1799_v32 }
 0x219   :  { %1444 = vmatprep.subr.bf16.mxu1 %v1811_v34 }
 0x21c   :  { %1445 = vmatpush3.bf16.msra.mxu1 %v1825_v37 }
 0x21d   :  { %1461 = vmatprep.subr.bf16.mxu1 %v1638_v0  ;;  %v1424_v0 = vpop.f32.mrb[16].mxu0 }
 0x21f   :  { %855 = vmatmul.mubr.bf16.vlgmr.msra.gmra.mrb[16].mxu1 %v775_v45 }
 0x220   :  { %1462 = vmatpush3.bf16.msra.mxu1 %v1649_v2  ;;  %v1425_v2 = vpop.f32.mrb[17].mxu0 }
 0x221   :  { %1463 = vmatprep.subr.bf16.mxu1 %v1661_v4  ;;  %v1426_v4 = vadd.f32 %v1425_v2, %v1424_v0 }
 0x223   :  { %v817_v47 = vadd.f32 %v1426_v4, %v1866_v49 }
 0x224   :  { %1464 = vmatpush3.bf16.msra.mxu1 %v1673_v6  ;;  %v1427_v6 = vpop.f32.mrb[18].mxu0 }
 0x225   :  { %1465 = vmatprep.subr.bf16.mxu1 %v1685_v8  ;;  %v1428_v8 = vpop.f32.mrb[19].mxu0 }
 0x228   :  { %1466 = vmatpush3.bf16.msra.mxu1 %v1697_v10  ;;  %v1284_v10 = vld [vmem:[%s2197_s0 + $0x18] sm:$0xff] }
 0x229   :  { %1467 = vmatprep.subr.bf16.mxu1 %v1709_v12  ;;  %v990_v12 = vrot.slane %v1284_v10, %v1813_v35  ;;  %v983_v56 = vcombine.high %v1284_v10, %v1284_v10 }
 0x22b   :  { %v997_v57 = vrot.slane %v983_v56, %v1813_v35 }
 0x22c   :  { %1468 = vmatpush3.bf16.msra.mxu1 %v1721_v14  ;;  %v998_v14 = vcombine.high %v990_v12, %v990_v12 }
 0x22d   :  { %1469 = vmatprep.subr.bf16.mxu1 %v1733_v16 }
 0x22e   :  { %1036 = vmatprep.mubr.bf16.mxu1 %v998_v14 }
 0x230   :  { %1470 = vmatpush3.bf16.msra.mxu1 %v1745_v18 }
 0x231   :  { %1471 = vmatprep.subr.bf16.mxu1 %v1757_v20 }
 0x234   :  { %1472 = vmatpush3.bf16.msra.mxu1 %v1769_v25 }
 0x235   :  { %1473 = vmatprep.subr.bf16.mxu1 %v1781_v27 }
 0x238   :  { %1474 = vmatpush3.bf16.msra.mxu1 %v1793_v31 }
 0x239   :  { %1475 = vmatprep.subr.bf16.mxu1 %v1805_v33 }
 0x23c   :  { %1476 = vmatpush3.bf16.msra.mxu1 %v1819_v36 }
 0x23f   :  { %1037 = vmatmul.mubr.bf16.vlgmr.msra.gmra.mrb[20].mxu1 %v990_v12 }
 0x240   :  { %1561 = vmatprep.mubr.msk.f32.mxu1 %vm393_vm0, %v1878_v63 }
 0x2d2   :  { %v1532_v16 = vpop.f32.mrb[8].mxu1 }
 0x2d3   :  { %1259 = vst.msk [vmem:[%s2200_s4 + $0x48] sm:$0xff] %vm527_vm2, %v1532_v16  ;;  %v710_v18 = vpop.f32.mrb[9].mxu1 }
 0x2d4   :  { %1258 = vst.msk [vmem:[%s2200_s4 + $0x40] sm:$0xff] %vm527_vm2, %v710_v18 }
 0x2d6   :  { %v1535_v20 = vpop.f32.mrb[10].mxu1 }
 0x2d7   :  { %1261 = vst.msk [vmem:[%s2200_s4 + $0x58] sm:$0xff] %vm527_vm2, %v1535_v20  ;;  %v720_v25 = vpop.f32.mrb[11].mxu1 }
 0x2d8   :  { %1260 = vst.msk [vmem:[%s2200_s4 + $0x50] sm:$0xff] %vm527_vm2, %v720_v25 }
 0x2da   :  { %v1538_v27 = vpop.f32.mrb[12].mxu1 }
 0x2db   :  { %1263 = vst.msk [vmem:[%s2200_s4 + $0x68] sm:$0xff] %vm527_vm2, %v1538_v27  ;;  %v730_v31 = vpop.f32.mrb[13].mxu1 }
 0x2dc   :  { %1262 = vst.msk [vmem:[%s2200_s4 + $0x60] sm:$0xff] %vm527_vm2, %v730_v31 }
 0x2de   :  { %v1541_v33 = vpop.f32.mrb[14].mxu1 }
 0x2df   :  { %1265 = vst.msk [vmem:[%s2200_s4 + $0x78] sm:$0xff] %vm527_vm2, %v1541_v33  ;;  %v740_v36 = vpop.f32.mrb[15].mxu1 }
 0x2e0   :  { %1264 = vst.msk [vmem:[%s2200_s4 + $0x70] sm:$0xff] %vm527_vm2, %v740_v36 }
 0x2f2   :  { %v1446_v48 = vpop.f32.mrb[16].mxu1 }
 0x2f3   :  { %v1447_v50 = vpop.f32.mrb[17].mxu1 }
 0x2f4   :  { %v1448_v51 = vadd.f32 %v1447_v50, %v1446_v48  ;;  %v1449_v52 = vpop.f32.mrb[18].mxu1 }
 0x2f5   :  { %v1450_v53 = vpop.f32.mrb[19].mxu1 }
 0x2f6   :  { %v857_v54 = vadd.f32 %v1448_v51, %v817_v47 }
 0x2f8   :  { %v862_v55 = vmax.f32 %v857_v54, 0.0 }
 0x2fa   :  { %1542 = vmatprep.subr.msk.mxu0 %vm418_vm1, %v862_v55 }
 0x2fb   :  { %1543 = vmatpush3.msk.msra.mxu0 %vm418_vm1, %v862_v55 }
 0x2fc   :  { %1545 = vmatmul.mubr.msk.f32.vlgmr.msra.gmra.mrb[20].mxu0 %vm393_vm0, %v1872_v62  ;;  %1483 = vmatprep.subr.bf16.mxu0 %v1643_v1  ;;  %v999_v1 = vcombine.high %v997_v57, %v997_v57 }
 0x2fd   :  { %1484 = vmatpush3.bf16.msra.mxu0 %v1655_v3  ;;  %1547 = vmatprep.mubr.msk.f32.mxu0 %vm393_vm0, %v1878_v63 }
 0x2fe   :  { %1485 = vmatprep.subr.bf16.mxu0 %v1667_v5 }
 0x300   :  { %1548 = vmatmul.mubr.msk.f32.gmra.mrb[22].mxu0 %vm393_vm0, %v1890_v22 }
 0x301   :  { %1486 = vmatpush3.bf16.msra.mxu0 %v1679_v7  ;;  %1550 = vmatprep.mubr.msk.f32.mxu0 %vm393_vm0, %v1896_v24 }
 0x302   :  { %1487 = vmatprep.subr.bf16.mxu0 %v1691_v9 }
 0x304   :  { %1551 = vmatmul.mubr.msk.f32.gmra.mrb[24].mxu0 %vm393_vm0, %v1906_v29 }
 0x305   :  { %1488 = vmatpush3.bf16.msra.mxu0 %v1703_v11  ;;  %1553 = vmatprep.mubr.msk.f32.mxu0 %vm393_vm0, %v1913_v38 }
 0x306   :  { %1489 = vmatprep.subr.bf16.mxu0 %v1715_v13 }
 0x308   :  { %1554 = vmatmul.mubr.msk.f32.gmra.mrb[26].mxu0 %vm393_vm0, %v1923_v39 }
 0x309   :  { %1490 = vmatpush3.bf16.msra.mxu0 %v1727_v15  ;;  %1076 = vmatprep.mubr.bf16.mxu0 %v999_v1 }
 0x30a   :  { %1491 = vmatprep.subr.bf16.mxu0 %v1739_v17 }
 0x30d   :  { %1492 = vmatpush3.bf16.msra.mxu0 %v1751_v19 }
 0x30e   :  { %1493 = vmatprep.subr.bf16.mxu0 %v1763_v21 }
 0x311   :  { %1494 = vmatpush3.bf16.msra.mxu0 %v1775_v26 }
 0x312   :  { %1495 = vmatprep.subr.bf16.mxu0 %v1787_v28  ;;  %v1477_v3 = vpop.f32.mrb[20].mxu1 }
 0x313   :  { %v1478_v5 = vpop.f32.mrb[21].mxu1 }
 0x314   :  { %v1479_v7 = vadd.f32 %v1478_v5, %v1477_v3  ;;  %v1480_v9 = vpop.f32.mrb[22].mxu1 }
 0x315   :  { %1496 = vmatpush3.bf16.msra.mxu0 %v1799_v32  ;;  %v1481_v11 = vpop.f32.mrb[23].mxu1 }
 0x316   :  { %1497 = vmatprep.subr.bf16.mxu0 %v1811_v34  ;;  %v1039_v34 = vadd.f32 %v1479_v7, %v1866_v49 }
 0x319   :  { %1498 = vmatpush3.bf16.msra.mxu0 %v1825_v37 }
 0x31c   :  { %1077 = vmatmul.mubr.bf16.vlgmr.msra.gmra.mrb[28].mxu0 %v997_v57 }
 0x31d   :  { %1558 = vmatprep.mubr.msk.f32.mxu0 %vm393_vm0, %v1853_v44 }
 0x3cf   :  { %v1546_v13 = vpop.f32.mrb[20].mxu0 }
 0x3d0   :  { %1277 = vst.msk [vmem:[%s2200_s4 + $0x88] sm:$0xff] %vm527_vm2, %v1546_v13  ;;  %v932_v15 = vpop.f32.mrb[21].mxu0 }
 0x3d1   :  { %1276 = vst.msk [vmem:[%s2200_s4 + $0x80] sm:$0xff] %vm527_vm2, %v932_v15 }
 0x3d3   :  { %v1549_v17 = vpop.f32.mrb[22].mxu0 }
 0x3d4   :  { %1279 = vst.msk [vmem:[%s2200_s4 + $0x98] sm:$0xff] %vm527_vm2, %v1549_v17  ;;  %v942_v19 = vpop.f32.mrb[23].mxu0 }
 0x3d5   :  { %1278 = vst.msk [vmem:[%s2200_s4 + $0x90] sm:$0xff] %vm527_vm2, %v942_v19 }
 0x3d7   :  { %v1552_v21 = vpop.f32.mrb[24].mxu0 }
 0x3d8   :  { %1281 = vst.msk [vmem:[%s2200_s4 + $0xa8] sm:$0xff] %vm527_vm2, %v1552_v21  ;;  %v952_v26 = vpop.f32.mrb[25].mxu0 }
 0x3d9   :  { %1280 = vst.msk [vmem:[%s2200_s4 + $0xa0] sm:$0xff] %vm527_vm2, %v952_v26 }
 0x3db   :  { %v1555_v28 = vpop.f32.mrb[26].mxu0 }
 0x3dc   :  { %1283 = vst.msk [vmem:[%s2200_s4 + $0xb8] sm:$0xff] %vm527_vm2, %v1555_v28  ;;  %v962_v32 = vpop.f32.mrb[27].mxu0 }
 0x3dd   :  { %1282 = vst.msk [vmem:[%s2200_s4 + $0xb0] sm:$0xff] %vm527_vm2, %v962_v32 }
 0x3ef   :  { %v1499_v35 = vpop.f32.mrb[28].mxu0 }
 0x3f0   :  { %v1500_v37 = vpop.f32.mrb[29].mxu0 }
 0x3f1   :  { %v1501_v44 = vadd.f32 %v1500_v37, %v1499_v35  ;;  %v1502_v63 = vpop.f32.mrb[30].mxu0 }
 0x3f2   :  { %v1503_v58 = vpop.f32.mrb[31].mxu0 }
 0x3f3   :  { %v1079_v59 = vadd.f32 %v1501_v44, %v1039_v34 }
 0x3f5   :  { %v1084_v60 = vmax.f32 %v1079_v59, 0.0 }
 0x3f7   :  { %1556 = vmatprep.subr.msk.mxu0 %vm418_vm1, %v1084_v60  ;;  %1570 = vmatprep.subr.msk.mxu1 %vm418_vm1, %v1084_v60 }
 0x3f8   :  { %1557 = vmatpush3.msk.msra.mxu0 %vm418_vm1, %v1084_v60  ;;  %1571 = vmatpush3.msk.msra.mxu1 %vm418_vm1, %v1084_v60 }
 0x3f9   :  { %1562 = vmatmul.mubr.msk.f32.vlgmr.msra.gmra.mrb[24].mxu1 %vm393_vm0, %v1890_v22  ;;  %1559 = vmatmul.mubr.msk.f32.vlgmr.msra.gmra.mrb[32].mxu0 %vm393_vm0, %v1872_v62 }
 0x3fa   :  { %1564 = vmatprep.mubr.msk.f32.mxu1 %vm393_vm0, %v1896_v24 }
 0x3fd   :  { %1565 = vmatmul.mubr.msk.f32.gmra.mrb[26].mxu1 %vm393_vm0, %v1906_v29 }
 0x3fe   :  { %1567 = vmatprep.mubr.msk.f32.mxu1 %vm393_vm0, %v1913_v38 }
 0x401   :  { %1568 = vmatmul.mubr.msk.f32.gmra.mrb[28].mxu1 %vm393_vm0, %v1923_v39 }
 0x4cc   :  { %v1563_v49 = vpop.f32.mrb[24].mxu1  ;;  %v1560_v61 = vpop.f32.mrb[32].mxu0 }
 0x4cd   :  { %1297 = vst.msk [vmem:[%s2200_s4 + $0xd8] sm:$0xff] %vm527_vm2, %v1563_v49  ;;  %v1164_v62 = vpop.f32.mrb[25].mxu1  ;;  %1295 = vst.msk [vmem:[%s2200_s4 + $0xc8] sm:$0xff] %vm527_vm2, %v1560_v61  ;;  %v1154_v22 = vpop.f32.mrb[33].mxu0 }
 0x4ce   :  { %1296 = vst.msk [vmem:[%s2200_s4 + $0xd0] sm:$0xff] %vm527_vm2, %v1164_v62  ;;  %1294 = vst.msk [vmem:[%s2200_s4 + $0xc0] sm:$0xff] %vm527_vm2, %v1154_v22 }
 0x4d0   :  { %v1566_v24 = vpop.f32.mrb[26].mxu1 }
 0x4d1   :  { %1299 = vst.msk [vmem:[%s2200_s4 + $0xe8] sm:$0xff] %vm527_vm2, %v1566_v24  ;;  %v1174_v29 = vpop.f32.mrb[27].mxu1 }
 0x4d2   :  { %1298 = vst.msk [vmem:[%s2200_s4 + $0xe0] sm:$0xff] %vm527_vm2, %v1174_v29 }
 0x4d4   :  { %v1569_v38 = vpop.f32.mrb[28].mxu1 }
 0x4d5   :  { %1301 = vst.msk [vmem:[%s2200_s4 + $0xf8] sm:$0xff] %vm527_vm2, %v1569_v38  ;;  %v1184_v39 = vpop.f32.mrb[29].mxu1 }
 0x4d6   :  { %1300 = vst.msk [vmem:[%s2200_s4 + $0xf0] sm:$0xff] %vm527_vm2, %v1184_v39 }

// kernel: dsamnet_forward.19
= control target key start
LH: loop header
LB: loop body
LE: loop exit
PB: predicated region body
PF: predicated region fallthrough
CT: control target
= control target key end

     0   :  { %s4739_s1 = inlined_call_operand.vmem [shape: bf16[1152,128], index: 1, kind: input, shape index: {}]   ;;  %s4740_s0 = inlined_call_operand.vmem [shape: bf16[256,1152], index: 0, kind: input, shape index: {}]   ;;  %s4741_s2 = inlined_call_operand.vmem [shape: f32[1,128], index: 2, kind: input, shape index: {}]   ;;  %s4742_s3 = inlined_call_operand.vmem [shape: f32[256,128], index: 3, kind: output, shape index: {}]  }
   0x1   :  { %v3319_v0 = vld [vmem:[%s4739_s1 + $0x40] sm:$0xff]   ;;  %v3321_v2 = vld [vmem:[%s4739_s1 + $0x48] sm:$0xff]   ;;  %v3323_v4 = vld [vmem:[%s4739_s1 + $0x50] sm:$0xff]  }
   0x2   :  { %v3320_v1 = vld [vmem:[%s4739_s1] sm:$0xff]   ;;  %2783 = vmatprep.subr.bf16.mxu0 %v3319_v0  ;;  %3303 = vmatprep.subr.bf16.mxu1 %v3319_v0  ;;  %v3322_v3 = vld [vmem:[%s4739_s1 + $0x8] sm:$0xff]   ;;  %v3324_v5 = vld [vmem:[%s4739_s1 + $0x10] sm:$0xff]  }
   0x3   :  { %2784 = vmatpush3.bf16.msra.mxu0 %v3320_v1  ;;  %3311 = vmatpush3.bf16.msra.mxu1 %v3320_v1  ;;  %v3325_v6 = vld [vmem:[%s4739_s1 + $0x58] sm:$0xff]   ;;  %v3327_v8 = vld [vmem:[%s4739_s1 + $0x60] sm:$0xff]   ;;  %v3329_v10 = vld [vmem:[%s4739_s1 + $0x68] sm:$0xff]  }
   0x4   :  { %2785 = vmatprep.subr.bf16.mxu0 %v3321_v2  ;;  %3304 = vmatprep.subr.bf16.mxu1 %v3321_v2  ;;  %v3326_v7 = vld [vmem:[%s4739_s1 + $0x18] sm:$0xff]   ;;  %v3328_v9 = vld [vmem:[%s4739_s1 + $0x20] sm:$0xff]   ;;  %v3330_v13 = vld [vmem:[%s4739_s1 + $0x28] sm:$0xff]  }
   0x5   :  { %v3337_v11 = vld [vmem:[%s4740_s0 + $0x4] ss:$36 sps:$4 sm:$0xff]   ;;  %v3331_v14 = vld [vmem:[%s4739_s1 + $0x70] sm:$0xff]   ;;  %v3333_v16 = vld [vmem:[%s4739_s1 + $0x78] sm:$0xff]  }
   0x6   :  { %v3340_v12 = vld [vmem:[%s4740_s0 + $0x364] ss:$36 sps:$4 sm:$0xff]   ;;  %1587 = vmatprep.mubr.bf16.mxu0 %v3337_v11  ;;  %v3332_v15 = vld [vmem:[%s4739_s1 + $0x30] sm:$0xff]   ;;  %v3334_v17 = vld [vmem:[%s4739_s1 + $0x38] sm:$0xff]  }
   0x7   :  { %2786 = vmatpush3.bf16.msra.mxu0 %v3322_v3  ;;  %3312 = vmatpush3.bf16.msra.mxu1 %v3322_v3  ;;  %v3341_v18 = vld [vmem:[%s4739_s1 + $0xc0] sm:$0xff]   ;;  %v3343_v23 = vld [vmem:[%s4739_s1 + $0xc8] sm:$0xff]   ;;  %v3353_v31 = vld [vmem:[%s4739_s1 + $0xd0] sm:$0xff]  }
   0x8   :  { %2787 = vmatprep.subr.bf16.mxu0 %v3323_v4  ;;  %3305 = vmatprep.subr.bf16.mxu1 %v3323_v4  ;;  %v3335_v19 = vld [vmem:[%s4740_s0] ss:$36 sps:$4 sm:$0xff]   ;;  %v3347_v25 = vld [vmem:[%s4740_s0 + $0x4c] ss:$36 sps:$4 sm:$0xff]   ;;  %v3355_v34 = vld [vmem:[%s4739_s1 + $0xd8] sm:$0xff]  }
   0x9   :  { %1683 = vmatprep.mubr.bf16.mxu1 %v3340_v12  ;;  %v3338_v20 = vld [vmem:[%s4740_s0 + $0x360] ss:$36 sps:$4 sm:$0xff]   ;;  %v3349_v26 = vld [vmem:[%s4740_s0 + $0x3ac] ss:$36 sps:$4 sm:$0xff]   ;;  %v3357_v35 = vld [vmem:[%s4740_s0 + $0x94] ss:$36 sps:$4 sm:$0xff]  }
   0xa   :  { %v3344_v21 = vld [vmem:[%s4739_s1 + $0x140] sm:$0xff]   ;;  %v3345_v27 = vld [vmem:[%s4739_s1 + $0x88] sm:$0xff]   ;;  %v3354_v32 = vld [vmem:[%s4739_s1 + $0x90] sm:$0xff]  }
   0xb   :  { %2788 = vmatpush3.bf16.msra.mxu0 %v3324_v5  ;;  %3313 = vmatpush3.bf16.msra.mxu1 %v3324_v5  ;;  %v3342_v22 = vld [vmem:[%s4739_s1 + $0x80] sm:$0xff]   ;;  %v3364_v28 = vld [vmem:[%s4739_s1 + $0x148] sm:$0xff]   ;;  %v3359_v36 = vld [vmem:[%s4740_s0 + $0x3f4] ss:$36 sps:$4 sm:$0xff]  }
   0xc   :  { %2789 = vmatprep.subr.bf16.mxu0 %v3325_v6  ;;  %3306 = vmatprep.subr.bf16.mxu1 %v3325_v6  ;;  %v3346_v24 = vld [vmem:[%s4739_s1 + $0x100] sm:$0xff]   ;;  %v3351_v29 = vld [vmem:[%s4740_s0 + $0x48] ss:$36 sps:$4 sm:$0xff]   ;;  %v3356_v37 = vld [vmem:[%s4739_s1 + $0x98] sm:$0xff]  }
   0xd   :  { %v3352_v30 = vld [vmem:[%s4740_s0 + $0x3a8] ss:$36 sps:$4 sm:$0xff]   ;;  %v3361_v38 = vld [vmem:[%s4740_s0 + $0x90] ss:$36 sps:$4 sm:$0xff]   ;;  %v3363_v40 = vld [vmem:[%s4739_s1 + $0xe0] sm:$0xff]  }
   0xe   :  { %v3366_v33 = vld [vmem:[%s4739_s1 + $0x108] sm:$0xff]   ;;  %v3362_v39 = vld [vmem:[%s4740_s0 + $0x3f0] ss:$36 sps:$4 sm:$0xff]   ;;  %v3365_v41 = vld [vmem:[%s4739_s1 + $0xa0] sm:$0xff]  }
   0xf   :  { %2790 = vmatpush3.bf16.msra.mxu0 %v3326_v7  ;;  %3314 = vmatpush3.bf16.msra.mxu1 %v3326_v7  ;;  %v3367_v42 = vld [vmem:[%s4739_s1 + $0xe8] sm:$0xff]   ;;  %v3378_v43 = vld [vmem:[%s4739_s1 + $0x150] sm:$0xff]   ;;  %v3369_v44 = vld [vmem:[%s4740_s0 + $0xdc] ss:$36 sps:$4 sm:$0xff]  }
  0x10   :  { %2791 = vmatprep.subr.bf16.mxu0 %v3327_v8  ;;  %3307 = vmatprep.subr.bf16.mxu1 %v3327_v8  ;;  %v3371_v45 = vld [vmem:[%s4740_s0 + $0x43c] ss:$36 sps:$4 sm:$0xff]   ;;  %v3380_v46 = vld [vmem:[%s4739_s1 + $0x110] sm:$0xff]   ;;  %v3368_v47 = vld [vmem:[%s4739_s1 + $0xa8] sm:$0xff]  }
  0x11   :  { %v3375_v48 = vld [vmem:[%s4739_s1 + $0xf0] sm:$0xff]   ;;  %v3373_v49 = vld [vmem:[%s4740_s0 + $0xd8] ss:$36 sps:$4 sm:$0xff]   ;;  %v3381_v53 = vld [vmem:[%s4740_s0 + $0x124] ss:$36 sps:$4 sm:$0xff]  }
  0x12   :  { %v3374_v50 = vld [vmem:[%s4740_s0 + $0x438] ss:$36 sps:$4 sm:$0xff]   ;;  %v3376_v51 = vld [vmem:[%s4739_s1 + $0xb0] sm:$0xff]   ;;  %v3383_v58 = vld [vmem:[%s4740_s0 + $0x8] ss:$36 sps:$4 sm:$0xff]  }
  0x13   :  { %2792 = vmatpush3.bf16.msra.mxu0 %v3328_v9  ;;  %3315 = vmatpush3.bf16.msra.mxu1 %v3328_v9  ;;  %v3377_v52 = vld [vmem:[%s4739_s1 + $0xf8] sm:$0xff]   ;;  %v3385_v54 = vld [vmem:[%s4740_s0 + $0xc] ss:$36 sps:$4 sm:$0xff]   ;;  %v3386_v59 = vld [vmem:[%s4740_s0 + $0x120] ss:$36 sps:$4 sm:$0xff]  }
  0x14   :  { %2793 = vmatprep.subr.bf16.mxu0 %v3329_v10  ;;  %3308 = vmatprep.subr.bf16.mxu1 %v3329_v10  ;;  %v3395_v55 = vld [vmem:[%s4739_s1 + $0x158] sm:$0xff]   ;;  %v3387_v60 = vld [vmem:[%s4739_s1 + $0x1c0] sm:$0xff]   ;;  %v3389_v62 = vld [vmem:[%s4740_s0 + $0x16c] ss:$36 sps:$4 sm:$0xff]  }
  0x15   :  { %v3396_v56 = vld [vmem:[%s4739_s1 + $0x118] sm:$0xff]   ;;  %v3388_v61 = vld [vmem:[%s4739_s1 + $0x180] sm:$0xff]   ;;  %v3403_v1 = vld [vmem:[%s4739_s1 + $0x1c8] sm:$0xff]  }
  0x16   :  { %v3379_v57 = vld [vmem:[%s4739_s1 + $0xb8] sm:$0xff]   ;;  %v3405_v0 = vld [vmem:[%s4739_s1 + $0x160] sm:$0xff]   ;;  %v3404_v3 = vld [vmem:[%s4739_s1 + $0x188] sm:$0xff]  }
  0x17   :  { %2794 = vmatpush3.bf16.msra.mxu0 %v3330_v13  ;;  %3316 = vmatpush3.bf16.msra.mxu1 %v3330_v13  ;;  %v3391_v63 = vld [vmem:[%s4740_s0 + $0x54] ss:$36 sps:$4 sm:$0xff]   ;;  %v3406_v2 = vld [vmem:[%s4739_s1 + $0x120] sm:$0xff]   ;;  %v3393_v4 = vld [vmem:[%s4740_s0 + $0x168] ss:$36 sps:$4 sm:$0xff]  }
  0x18   :  { %2795 = vmatprep.subr.bf16.mxu0 %v3331_v14  ;;  %3309 = vmatprep.subr.bf16.mxu1 %v3331_v14  ;;  %v3394_v5 = vld [vmem:[%s4740_s0 + $0x50] ss:$36 sps:$4 sm:$0xff]   ;;  %v3399_v7 = vld [vmem:[%s4740_s0 + $0x9c] ss:$36 sps:$4 sm:$0xff]   ;;  %v3419_v8 = vld [vmem:[%s4739_s1 + $0x168] sm:$0xff]  }
  0x19   :  { %v3397_v6 = vld [vmem:[%s4740_s0 + $0x1b4] ss:$36 sps:$4 sm:$0xff]   ;;  %v3421_v10 = vld [vmem:[%s4739_s1 + $0x128] sm:$0xff]   ;;  %v3407_v14 = vld [vmem:[%s4740_s0 + $0x1fc] ss:$36 sps:$4 sm:$0xff]  }
  0x1a   :  { %v3420_v9 = vld [vmem:[%s4739_s1 + $0x1d0] sm:$0xff]   ;;  %v3402_v13 = vld [vmem:[%s4740_s0 + $0x98] ss:$36 sps:$4 sm:$0xff]  }
  0x1b   :  { %2796 = vmatpush3.bf16.msra.mxu0 %v3332_v15  ;;  %3317 = vmatpush3.bf16.msra.mxu1 %v3332_v15  ;;  %v3422_v11 = vld [vmem:[%s4739_s1 + $0x190] sm:$0xff]  }
  0x1c   :  { %2797 = vmatprep.subr.bf16.mxu0 %v3333_v16  ;;  %3310 = vmatprep.subr.bf16.mxu1 %v3333_v16  ;;  %v3401_v12 = vld [vmem:[%s4740_s0 + $0x1b0] ss:$36 sps:$4 sm:$0xff]  }
  0x1d   :  { %v3429_v15 = vld [vmem:[%s4739_s1 + $0x170] sm:$0xff]  }
  0x1e   :  { %v3430_v16 = vld [vmem:[%s4739_s1 + $0x130] sm:$0xff]  }
  0x1f   :  { %2798 = vmatpush3.bf16.msra.mxu0 %v3334_v17  ;;  %3318 = vmatpush3.bf16.msra.mxu1 %v3334_v17  ;;  %v3409_v17 = vld [vmem:[%s4740_s0 + $0xe4] ss:$36 sps:$4 sm:$0xff]  }
  0x20   :  { %2895 = vmatprep.subr.bf16.mxu1 %v3341_v18  ;;  %3007 = vmatprep.subr.bf16.mxu0 %v3344_v21  ;;  %v3437_v18 = vld [vmem:[%s4739_s1 + $0x1d8] sm:$0xff]   ;;  %v3412_v21 = vld [vmem:[%s4740_s0 + $0xe0] ss:$36 sps:$4 sm:$0xff]  }
  0x22   :  { %1588 = vmatmul.mubr.bf16.vlgmr.msra.gmra.mrb[0].mxu0 %v3335_v19  ;;  %1684 = vmatmul.mubr.bf16.vlgmr.msra.gmra.mrb[0].mxu1 %v3338_v20  ;;  %v3438_v19 = vld [vmem:[%s4739_s1 + $0x198] sm:$0xff]  }
  0x23   :  { %2896 = vmatpush3.bf16.msra.mxu1 %v3342_v22  ;;  %3008 = vmatpush3.bf16.msra.mxu0 %v3346_v24  ;;  %v3411_v20 = vld [vmem:[%s4740_s0 + $0x1f8] ss:$36 sps:$4 sm:$0xff]   ;;  %v3413_v22 = vld [vmem:[%s4740_s0 + $0x244] ss:$36 sps:$4 sm:$0xff]  }
  0x24   :  { %2897 = vmatprep.subr.bf16.mxu1 %v3343_v23  ;;  %1595 = vmatprep.mubr.bf16.mxu0 %v3347_v25  ;;  %v3415_v23 = vld [vmem:[%s4740_s0 + $0x12c] ss:$36 sps:$4 sm:$0xff]   ;;  %v3445_v24 = vld [vmem:[%s4739_s1 + $0x178] sm:$0xff]  }
  0x25   :  { %1691 = vmatprep.mubr.bf16.mxu1 %v3349_v26  ;;  %3009 = vmatprep.subr.bf16.mxu0 %v3364_v28  ;;  %v3446_v25 = vld [vmem:[%s4739_s1 + $0x138] sm:$0xff]   ;;  %v3453_v26 = vld [vmem:[%s4739_s1 + $0x1e0] sm:$0xff]  }
  0x26   :  { %v3454_v28 = vld [vmem:[%s4739_s1 + $0x1a0] sm:$0xff]  }
  0x27   :  { %2898 = vmatpush3.bf16.msra.mxu1 %v3345_v27  ;;  %3010 = vmatpush3.bf16.msra.mxu0 %v3366_v33  ;;  %v3417_v27 = vld [vmem:[%s4740_s0 + $0x240] ss:$36 sps:$4 sm:$0xff]   ;;  %v3468_v33 = vld [vmem:[%s4739_s1 + $0x1e8] sm:$0xff]  }
  0x28   :  { %2899 = vmatprep.subr.bf16.mxu1 %v3353_v31  ;;  %3011 = vmatprep.subr.bf16.mxu0 %v3378_v43  ;;  %v3423_v31 = vld [vmem:[%s4740_s0 + $0x28c] ss:$36 sps:$4 sm:$0xff]   ;;  %v3439_v43 = vld [vmem:[%s4740_s0 + $0x31c] ss:$36 sps:$4 sm:$0xff]  }
  0x2a   :  { %1596 = vmatmul.mubr.bf16.gmra.mrb[4].mxu0 %v3351_v29  ;;  %1692 = vmatmul.mubr.bf16.gmra.mrb[4].mxu1 %v3352_v30  ;;  %v3455_v29 = vld [vmem:[%s4739_s1 + $0x200] sm:$0xff]   ;;  %v3418_v30 = vld [vmem:[%s4740_s0 + $0x128] ss:$36 sps:$4 sm:$0xff]  }
  0x2b   :  { %2900 = vmatpush3.bf16.msra.mxu1 %v3354_v32  ;;  %1603 = vmatprep.mubr.bf16.mxu0 %v3357_v35  ;;  %v3425_v32 = vld [vmem:[%s4740_s0 + $0x174] ss:$36 sps:$4 sm:$0xff]   ;;  %v3469_v35 = vld [vmem:[%s4739_s1 + $0x1a8] sm:$0xff]  }
  0x2c   :  { %2901 = vmatprep.subr.bf16.mxu1 %v3355_v34  ;;  %1699 = vmatprep.mubr.bf16.mxu1 %v3359_v36  ;;  %v3427_v34 = vld [vmem:[%s4740_s0 + $0x288] ss:$36 sps:$4 sm:$0xff]   ;;  %v3428_v36 = vld [vmem:[%s4740_s0 + $0x170] ss:$36 sps:$4 sm:$0xff]  }
  0x2d   :  { %3012 = vmatpush3.bf16.msra.mxu0 %v3380_v46  ;;  %v3444_v46 = vld [vmem:[%s4740_s0 + $0x200] ss:$36 sps:$4 sm:$0xff]  }
  0x2e   :  { %3013 = vmatprep.subr.bf16.mxu0 %v3395_v55  ;;  %v3470_v55 = vld [vmem:[%s4739_s1 + $0x208] sm:$0xff]  }
  0x2f   :  { %2902 = vmatpush3.bf16.msra.mxu1 %v3356_v37  ;;  %v3431_v37 = vld [vmem:[%s4740_s0 + $0x2d4] ss:$36 sps:$4 sm:$0xff]  }
  0x30   :  { %2903 = vmatprep.subr.bf16.mxu1 %v3363_v40  ;;  %v3436_v40 = vld [vmem:[%s4740_s0 + $0x1b8] ss:$36 sps:$4 sm:$0xff]  }
  0x31   :  { %3014 = vmatpush3.bf16.msra.mxu0 %v3396_v56  ;;  %v3485_v56 = vld [vmem:[%s4739_s1 + $0x210] sm:$0xff]  }
  0x32   :  { %1604 = vmatmul.mubr.bf16.gmra.mrb[8].mxu0 %v3361_v38  ;;  %1700 = vmatmul.mubr.bf16.gmra.mrb[8].mxu1 %v3362_v39  ;;  %v3433_v38 = vld [vmem:[%s4740_s0 + $0x1bc] ss:$36 sps:$4 sm:$0xff]   ;;  %v3435_v39 = vld [vmem:[%s4740_s0 + $0x2d0] ss:$36 sps:$4 sm:$0xff]  }
  0x33   :  { %2904 = vmatpush3.bf16.msra.mxu1 %v3365_v41  ;;  %1611 = vmatprep.mubr.bf16.mxu0 %v3369_v44  ;;  %v3483_v41 = vld [vmem:[%s4739_s1 + $0x1f0] sm:$0xff]   ;;  %v3441_v44 = vld [vmem:[%s4740_s0 + $0x204] ss:$36 sps:$4 sm:$0xff]  }
  0x34   :  { %2905 = vmatprep.subr.bf16.mxu1 %v3367_v42  ;;  %1707 = vmatprep.mubr.bf16.mxu1 %v3371_v45  ;;  %v3484_v42 = vld [vmem:[%s4739_s1 + $0x1b0] sm:$0xff]   ;;  %v3443_v45 = vld [vmem:[%s4740_s0 + $0x318] ss:$36 sps:$4 sm:$0xff]  }
  0x35   :  { %3015 = vmatprep.subr.bf16.mxu0 %v3405_v0  ;;  %v3467_v0 = vld [vmem:[%s4740_s0 + $0xa0] ss:$36 sps:$4 sm:$0xff]  }
  0x36   :  { %3016 = vmatpush3.bf16.msra.mxu0 %v3406_v2  ;;  %v3473_v2 = vld [vmem:[%s4740_s0 + $0xec] ss:$36 sps:$4 sm:$0xff]  }
  0x37   :  { %2906 = vmatpush3.bf16.msra.mxu1 %v3368_v47  ;;  %3017 = vmatprep.subr.bf16.mxu0 %v3419_v8  ;;  %v3498_v47 = vld [vmem:[%s4739_s1 + $0x1f8] sm:$0xff]  }
  0x38   :  { %2907 = vmatprep.subr.bf16.mxu1 %v3375_v48  ;;  %v3499_v48 = vld [vmem:[%s4739_s1 + $0x1b8] sm:$0xff]  }
  0x39   :  { %v3479_v8 = vld [vmem:[%s4740_s0 + $0x134] ss:$36 sps:$4 sm:$0xff]  }
  0x3a   :  { %1612 = vmatmul.mubr.bf16.gmra.mrb[12].mxu0 %v3373_v49  ;;  %1708 = vmatmul.mubr.bf16.gmra.mrb[12].mxu1 %v3374_v50  ;;  %v3447_v49 = vld [vmem:[%s4740_s0 + $0x24c] ss:$36 sps:$4 sm:$0xff]   ;;  %v3451_v50 = vld [vmem:[%s4740_s0 + $0x14] ss:$36 sps:$4 sm:$0xff]  }
  0x3b   :  { %2908 = vmatpush3.bf16.msra.mxu1 %v3376_v51  ;;  %1619 = vmatprep.mubr.bf16.mxu0 %v3381_v53  ;;  %v3449_v51 = vld [vmem:[%s4740_s0 + $0x10] ss:$36 sps:$4 sm:$0xff]  }
  0x3c   :  { %2909 = vmatprep.subr.bf16.mxu1 %v3377_v52  ;;  %1748 = vmatprep.mubr.bf16.mxu1 %v3385_v54  ;;  %v3452_v52 = vld [vmem:[%s4740_s0 + $0x248] ss:$36 sps:$4 sm:$0xff]   ;;  %v3456_v53 = vld [vmem:[%s4740_s0 + $0x294] ss:$36 sps:$4 sm:$0xff]   ;;  %v3458_v54 = vld [vmem:[%s4740_s0 + $0x5c] ss:$36 sps:$4 sm:$0xff]  }
  0x3d   :  { %3018 = vmatpush3.bf16.msra.mxu0 %v3421_v10  ;;  %v3481_v10 = vld [vmem:[%s4740_s0 + $0x368] ss:$36 sps:$4 sm:$0xff]  }
  0x3e   :  { %3019 = vmatprep.subr.bf16.mxu0 %v3429_v15  ;;  %v3491_v15 = vld [vmem:[%s4740_s0 + $0x178] ss:$36 sps:$4 sm:$0xff]  }
  0x3f   :  { %2910 = vmatpush3.bf16.msra.mxu1 %v3379_v57  ;;  %v3460_v57 = vld [vmem:[%s4740_s0 + $0x290] ss:$36 sps:$4 sm:$0xff]  }
  0x40   :  { %3119 = vmatprep.subr.bf16.mxu1 %v3387_v60  ;;  %v3464_v60 = vld [vmem:[%s4740_s0 + $0xa4] ss:$36 sps:$4 sm:$0xff]  }
  0x41   :  { %3020 = vmatpush3.bf16.msra.mxu0 %v3430_v16  ;;  %v3492_v16 = vld [vmem:[%s4740_s0 + $0x3fc] ss:$36 sps:$4 sm:$0xff]  }
  0x42   :  { %1620 = vmatmul.mubr.bf16.gmra.mrb[16].mxu0 %v3386_v59  ;;  %1749 = vmatmul.mubr.bf16.vlgmr.msra.gmra.mrb[16].mxu1 %v3383_v58  ;;  %v3461_v58 = vld [vmem:[%s4740_s0 + $0x58] ss:$36 sps:$4 sm:$0xff]  }
  0x43   :  { %3120 = vmatpush3.bf16.msra.mxu1 %v3388_v61  ;;  %1627 = vmatprep.mubr.bf16.mxu0 %v3389_v62  ;;  %v3462_v59 = vld [vmem:[%s4740_s0 + $0x2dc] ss:$36 sps:$4 sm:$0xff]  }
  0x44   :  { %1756 = vmatprep.mubr.bf16.mxu1 %v3391_v63  ;;  %3121 = vmatprep.subr.bf16.mxu1 %v3403_v1  ;;  %v3500_v61 = vld [vmem:[%s4739_s1 + $0x218] sm:$0xff]   ;;  %v3513_v62 = vld [vmem:[%s4739_s1 + $0x220] sm:$0xff]  }
  0x45   :  { %3021 = vmatprep.subr.bf16.mxu0 %v3445_v24  ;;  %v3466_v63 = vld [vmem:[%s4740_s0 + $0x2d8] ss:$36 sps:$4 sm:$0xff]   ;;  %v3471_v1 = vld [vmem:[%s4740_s0 + $0x324] ss:$36 sps:$4 sm:$0xff]  }
  0x46   :  { %3022 = vmatpush3.bf16.msra.mxu0 %v3446_v25  ;;  %v3507_v24 = vld [vmem:[%s4740_s0 + $0x254] ss:$36 sps:$4 sm:$0xff]   ;;  %v3511_v25 = vld [vmem:[%s4740_s0 + $0x1c] ss:$36 sps:$4 sm:$0xff]  }
  0x47   :  { %3122 = vmatpush3.bf16.msra.mxu1 %v3404_v3  ;;  %3255 = vmatprep.subr.bf16.mxu0 %v3455_v29  ;;  %v3526_v3 = vld [vmem:[%s4739_s1 + $0x228] sm:$0xff]  }
  0x48   :  { %3123 = vmatprep.subr.bf16.mxu1 %v3420_v9  ;;  %v3552_v9 = vld [vmem:[%s4739_s1 + $0x238] sm:$0xff]  }
  0x4a   :  { %1628 = vmatmul.mubr.bf16.gmra.mrb[20].mxu0 %v3393_v4  ;;  %1757 = vmatmul.mubr.bf16.gmra.mrb[20].mxu1 %v3394_v5  ;;  %v3475_v4 = vld [vmem:[%s4740_s0 + $0x320] ss:$36 sps:$4 sm:$0xff]   ;;  %v3476_v5 = vld [vmem:[%s4740_s0 + $0xe8] ss:$36 sps:$4 sm:$0xff]  }
  0x4b   :  { %1635 = vmatprep.mubr.bf16.mxu0 %v3397_v6  ;;  %1764 = vmatprep.mubr.bf16.mxu1 %v3399_v7  ;;  %v3539_v6 = vld [vmem:[%s4739_s1 + $0x230] sm:$0xff]  }
  0x4c   :  { %3124 = vmatpush3.bf16.msra.mxu1 %v3422_v11  ;;  %v3477_v7 = vld [vmem:[%s4740_s0 + $0x36c] ss:$36 sps:$4 sm:$0xff]  }
  0x4d   :  { %3125 = vmatprep.subr.bf16.mxu1 %v3437_v18  ;;  %v3482_v11 = vld [vmem:[%s4740_s0 + $0x130] ss:$36 sps:$4 sm:$0xff]   ;;  %v3496_v18 = vld [vmem:[%s4740_s0 + $0x3f8] ss:$36 sps:$4 sm:$0xff]  }
  0x50   :  { %3126 = vmatpush3.bf16.msra.mxu1 %v3438_v19  ;;  %v3497_v19 = vld [vmem:[%s4740_s0 + $0x1c0] ss:$36 sps:$4 sm:$0xff]  }
  0x51   :  { %3127 = vmatprep.subr.bf16.mxu1 %v3453_v26  ;;  %v3509_v26 = vld [vmem:[%s4740_s0 + $0x18] ss:$36 sps:$4 sm:$0xff]  }
  0x52   :  { %1636 = vmatmul.mubr.bf16.gmra.mrb[24].mxu0 %v3401_v12  ;;  %1765 = vmatmul.mubr.bf16.gmra.mrb[24].mxu1 %v3402_v13  ;;  %v3486_v12 = vld [vmem:[%s4740_s0 + $0x3b4] ss:$36 sps:$4 sm:$0xff]   ;;  %v3488_v13 = vld [vmem:[%s4740_s0 + $0x17c] ss:$36 sps:$4 sm:$0xff]  }
  0x53   :  { %1643 = vmatprep.mubr.bf16.mxu0 %v3407_v14  ;;  %1772 = vmatprep.mubr.bf16.mxu1 %v3409_v17  ;;  %v3490_v14 = vld [vmem:[%s4740_s0 + $0x3b0] ss:$36 sps:$4 sm:$0xff]   ;;  %v3494_v17 = vld [vmem:[%s4740_s0 + $0x1c4] ss:$36 sps:$4 sm:$0xff]  }
  0x54   :  { %3128 = vmatpush3.bf16.msra.mxu1 %v3454_v28  ;;  %v3514_v28 = vld [vmem:[%s4740_s0 + $0x29c] ss:$36 sps:$4 sm:$0xff]  }
  0x55   :  { %3129 = vmatprep.subr.bf16.mxu1 %v3468_v33  ;;  %v3522_v33 = vld [vmem:[%s4740_s0 + $0xac] ss:$36 sps:$4 sm:$0xff]  }
  0x58   :  { %3130 = vmatpush3.bf16.msra.mxu1 %v3469_v35  ;;  %v3525_v35 = vld [vmem:[%s4740_s0 + $0xa8] ss:$36 sps:$4 sm:$0xff]  }
  0x59   :  { %3131 = vmatprep.subr.bf16.mxu1 %v3483_v41  ;;  %v3535_v41 = vld [vmem:[%s4740_s0 + $0x13c] ss:$36 sps:$4 sm:$0xff]  }
  0x5a   :  { %1644 = vmatmul.mubr.bf16.gmra.mrb[28].mxu0 %v3411_v20  ;;  %1773 = vmatmul.mubr.bf16.gmra.mrb[28].mxu1 %v3412_v21  ;;  %v3501_v20 = vld [vmem:[%s4740_s0 + $0x444] ss:$36 sps:$4 sm:$0xff]   ;;  %v3503_v21 = vld [vmem:[%s4740_s0 + $0x20c] ss:$36 sps:$4 sm:$0xff]  }
  0x5b   :  { %1651 = vmatprep.mubr.bf16.mxu0 %v3413_v22  ;;  %1780 = vmatprep.mubr.bf16.mxu1 %v3415_v23  ;;  %v3505_v22 = vld [vmem:[%s4740_s0 + $0x440] ss:$36 sps:$4 sm:$0xff]   ;;  %v3506_v23 = vld [vmem:[%s4740_s0 + $0x208] ss:$36 sps:$4 sm:$0xff]  }
  0x5c   :  { %3132 = vmatpush3.bf16.msra.mxu1 %v3484_v42  ;;  %v3537_v42 = vld [vmem:[%s4740_s0 + $0x370] ss:$36 sps:$4 sm:$0xff]  }
  0x5d   :  { %3133 = vmatprep.subr.bf16.mxu1 %v3498_v47  ;;  %v3545_v47 = vld [vmem:[%s4740_s0 + $0x180] ss:$36 sps:$4 sm:$0xff]  }
  0x60   :  { %3134 = vmatpush3.bf16.msra.mxu1 %v3499_v48  ;;  %v3546_v48 = vld [vmem:[%s4740_s0 + $0x404] ss:$36 sps:$4 sm:$0xff]  }
  0x62   :  { %1652 = vmatmul.mubr.bf16.gmra.mrb[32].mxu0 %v3417_v27  ;;  %1781 = vmatmul.mubr.bf16.gmra.mrb[32].mxu1 %v3418_v30  ;;  %v3512_v27 = vld [vmem:[%s4740_s0 + $0x250] ss:$36 sps:$4 sm:$0xff]   ;;  %v3518_v30 = vld [vmem:[%s4740_s0 + $0x298] ss:$36 sps:$4 sm:$0xff]  }
  0x63   :  { %1659 = vmatprep.mubr.bf16.mxu0 %v3423_v31  ;;  %1788 = vmatprep.mubr.bf16.mxu1 %v3425_v32  ;;  %v3519_v31 = vld [vmem:[%s4740_s0 + $0x60] ss:$36 sps:$4 sm:$0xff]  }
  0x64   :  { %v3520_v32 = vld [vmem:[%s4740_s0 + $0x2e4] ss:$36 sps:$4 sm:$0xff]  }
  0x6a   :  { %1660 = vmatmul.mubr.bf16.gmra.mrb[36].mxu0 %v3427_v34  ;;  %1789 = vmatmul.mubr.bf16.gmra.mrb[36].mxu1 %v3428_v36  ;;  %v3524_v34 = vld [vmem:[%s4740_s0 + $0x2e0] ss:$36 sps:$4 sm:$0xff]   ;;  %v3527_v36 = vld [vmem:[%s4740_s0 + $0x32c] ss:$36 sps:$4 sm:$0xff]  }
  0x6b   :  { %1667 = vmatprep.mubr.bf16.mxu0 %v3431_v37  ;;  %1796 = vmatprep.mubr.bf16.mxu1 %v3433_v38  ;;  %v3529_v37 = vld [vmem:[%s4740_s0 + $0xf4] ss:$36 sps:$4 sm:$0xff]   ;;  %v3531_v38 = vld [vmem:[%s4740_s0 + $0x328] ss:$36 sps:$4 sm:$0xff]  }
  0x72   :  { %1668 = vmatmul.mubr.bf16.gmra.mrb[40].mxu0 %v3435_v39  ;;  %1797 = vmatmul.mubr.bf16.gmra.mrb[40].mxu1 %v3436_v40  ;;  %v3532_v39 = vld [vmem:[%s4740_s0 + $0xf0] ss:$36 sps:$4 sm:$0xff]  }
  0x73   :  { %1675 = vmatprep.mubr.bf16.mxu0 %v3439_v43  ;;  %1804 = vmatprep.mubr.bf16.mxu1 %v3441_v44  ;;  %v3533_v40 = vld [vmem:[%s4740_s0 + $0x374] ss:$36 sps:$4 sm:$0xff]   ;;  %v3540_v44 = vld [vmem:[%s4740_s0 + $0x3bc] ss:$36 sps:$4 sm:$0xff]  }
  0x74   :  { %v3538_v43 = vld [vmem:[%s4740_s0 + $0x138] ss:$36 sps:$4 sm:$0xff]  }
  0x7a   :  { %1676 = vmatmul.mubr.bf16.gmra.mrb[44].mxu0 %v3443_v45  ;;  %1805 = vmatmul.mubr.bf16.gmra.mrb[44].mxu1 %v3444_v46  ;;  %v3542_v45 = vld [vmem:[%s4740_s0 + $0x184] ss:$36 sps:$4 sm:$0xff]   ;;  %v3544_v46 = vld [vmem:[%s4740_s0 + $0x3b8] ss:$36 sps:$4 sm:$0xff]  }
  0x7b   :  { %1812 = vmatprep.mubr.bf16.mxu1 %v3447_v49  ;;  %1909 = vmatprep.mubr.bf16.mxu0 %v3451_v50  ;;  %v3548_v49 = vld [vmem:[%s4740_s0 + $0x1cc] ss:$36 sps:$4 sm:$0xff]   ;;  %v3550_v50 = vld [vmem:[%s4740_s0 + $0x400] ss:$36 sps:$4 sm:$0xff]  }
  0x82   :  { %1813 = vmatmul.mubr.bf16.gmra.mrb[48].mxu1 %v3452_v52  ;;  %1910 = vmatmul.mubr.bf16.vlgmr.msra.gmra.mrb[48].mxu0 %v3449_v51  ;;  %v3551_v51 = vld [vmem:[%s4740_s0 + $0x1c8] ss:$36 sps:$4 sm:$0xff]  }
  0x83   :  { %3256 = vmatpush3.bf16.msra.mxu0 %v3455_v29  ;;  %1820 = vmatprep.mubr.bf16.mxu1 %v3456_v53  ;;  %v3516_v29 = vld [vmem:[%s4740_s0 + $0x64] ss:$36 sps:$4 sm:$0xff]   ;;  %v3553_v52 = vld [vmem:[%s4740_s0 + $0x44c] ss:$36 sps:$4 sm:$0xff]   ;;  %v3555_v53 = vld [vmem:[%s4740_s0 + $0x214] ss:$36 sps:$4 sm:$0xff]  }
  0x84   :  { %1917 = vmatprep.mubr.bf16.mxu0 %v3458_v54  ;;  %3257 = vmatprep.subr.bf16.mxu0 %v3470_v55 }
  0x87   :  { %3258 = vmatpush3.bf16.msra.mxu0 %v3470_v55 }
  0x88   :  { %3259 = vmatprep.subr.bf16.mxu0 %v3485_v56 }
  0x8a   :  { %1821 = vmatmul.mubr.bf16.gmra.mrb[52].mxu1 %v3460_v57  ;;  %1918 = vmatmul.mubr.bf16.gmra.mrb[52].mxu0 %v3461_v58  ;;  %v3557_v58 = vld [vmem:[%s4740_s0 + $0x448] ss:$36 sps:$4 sm:$0xff]  }
  0x8b   :  { %1828 = vmatprep.mubr.bf16.mxu1 %v3462_v59  ;;  %1925 = vmatprep.mubr.bf16.mxu0 %v3464_v60  ;;  %v3558_v59 = vld [vmem:[%s4740_s0 + $0x210] ss:$36 sps:$4 sm:$0xff]  }
  0x8c   :  { %3260 = vmatpush3.bf16.msra.mxu0 %v3485_v56 }
  0x8d   :  { %3261 = vmatprep.subr.bf16.mxu0 %v3500_v61 }
  0x90   :  { %3262 = vmatpush3.bf16.msra.mxu0 %v3500_v61 }
  0x91   :  { %3263 = vmatprep.subr.bf16.mxu0 %v3513_v62 }
  0x92   :  { %1829 = vmatmul.mubr.bf16.gmra.mrb[56].mxu1 %v3466_v63  ;;  %1926 = vmatmul.mubr.bf16.gmra.mrb[56].mxu0 %v3467_v0  ;;  %v3559_v0 = vld [vmem:[%s4740_s0 + $0x25c] ss:$36 sps:$4 sm:$0xff]  }
  0x93   :  { %1836 = vmatprep.mubr.bf16.mxu1 %v3471_v1  ;;  %1933 = vmatprep.mubr.bf16.mxu0 %v3473_v2  ;;  %v3561_v1 = vld [vmem:[%s4740_s0 + $0x20] ss:$36 sps:$4 sm:$0xff]  }
  0x94   :  { %3264 = vmatpush3.bf16.msra.mxu0 %v3513_v62 }
  0x95   :  { %3265 = vmatprep.subr.bf16.mxu0 %v3526_v3 }
  0x98   :  { %3266 = vmatpush3.bf16.msra.mxu0 %v3526_v3 }
  0x99   :  { %3267 = vmatprep.subr.bf16.mxu0 %v3539_v6 }
  0x9a   :  { %1837 = vmatmul.mubr.bf16.gmra.mrb[60].mxu1 %v3475_v4  ;;  %1934 = vmatmul.mubr.bf16.gmra.mrb[60].mxu0 %v3476_v5 }
  0x9b   :  { %1844 = vmatprep.mubr.bf16.mxu1 %v3477_v7  ;;  %1941 = vmatprep.mubr.bf16.mxu0 %v3479_v8 }
  0x9c   :  { %3268 = vmatpush3.bf16.msra.mxu0 %v3539_v6 }
  0x9d   :  { %3269 = vmatprep.subr.bf16.mxu0 %v3552_v9 }
  0xa0   :  { %3270 = vmatpush3.bf16.msra.mxu0 %v3552_v9 }
  0xa2   :  { %1845 = vmatmul.mubr.bf16.gmra.mrb[64].mxu1 %v3481_v10  ;;  %1942 = vmatmul.mubr.bf16.gmra.mrb[64].mxu0 %v3482_v11  ;;  %v3562_v10 = vld [vmem:[%s4740_s0 + $0x258] ss:$36 sps:$4 sm:$0xff]   ;;  %v3563_v11 = vld [vmem:[%s4740_s0 + $0x68] ss:$36 sps:$4 sm:$0xff]  }
  0xa3   :  { %1852 = vmatprep.mubr.bf16.mxu1 %v3486_v12  ;;  %1949 = vmatprep.mubr.bf16.mxu0 %v3488_v13 }
  0xaa   :  { %1853 = vmatmul.mubr.bf16.gmra.mrb[68].mxu1 %v3490_v14  ;;  %1950 = vmatmul.mubr.bf16.gmra.mrb[68].mxu0 %v3491_v15 }
  0xab   :  { %1860 = vmatprep.mubr.bf16.mxu1 %v3492_v16  ;;  %1957 = vmatprep.mubr.bf16.mxu0 %v3494_v17  ;;  %v3564_v16 = vld [vmem:[%s4740_s0 + $0x2a4] ss:$36 sps:$4 sm:$0xff]   ;;  %v3566_v17 = vld [vmem:[%s4740_s0 + $0xb0] ss:$36 sps:$4 sm:$0xff]  }
  0xb2   :  { %1861 = vmatmul.mubr.bf16.gmra.mrb[72].mxu1 %v3496_v18  ;;  %1958 = vmatmul.mubr.bf16.gmra.mrb[72].mxu0 %v3497_v19 }
  0xb3   :  { %1868 = vmatprep.mubr.bf16.mxu1 %v3501_v20  ;;  %1965 = vmatprep.mubr.bf16.mxu0 %v3503_v21 }
  0xba   :  { %1869 = vmatmul.mubr.bf16.gmra.mrb[76].mxu1 %v3505_v22  ;;  %1966 = vmatmul.mubr.bf16.gmra.mrb[76].mxu0 %v3506_v23 }
  0xbb   :  { %1973 = vmatprep.mubr.bf16.mxu0 %v3507_v24  ;;  %2070 = vmatprep.mubr.bf16.mxu1 %v3511_v25 }
  0xc2   :  { %1974 = vmatmul.mubr.bf16.gmra.mrb[80].mxu0 %v3512_v27  ;;  %2071 = vmatmul.mubr.bf16.vlgmr.msra.gmra.mrb[80].mxu1 %v3509_v26  ;;  %v3567_v26 = vld [vmem:[%s4740_s0 + $0x2a0] ss:$36 sps:$4 sm:$0xff]   ;;  %v3568_v27 = vld [vmem:[%s4740_s0 + $0xf8] ss:$36 sps:$4 sm:$0xff]  }
  0xc3   :  { %1981 = vmatprep.mubr.bf16.mxu0 %v3514_v28  ;;  %2078 = vmatprep.mubr.bf16.mxu1 %v3516_v29 }
  0xca   :  { %1982 = vmatmul.mubr.bf16.gmra.mrb[84].mxu0 %v3518_v30  ;;  %2079 = vmatmul.mubr.bf16.gmra.mrb[84].mxu1 %v3519_v31 }
  0xcb   :  { %1989 = vmatprep.mubr.bf16.mxu0 %v3520_v32  ;;  %2086 = vmatprep.mubr.bf16.mxu1 %v3522_v33  ;;  %v3569_v32 = vld [vmem:[%s4740_s0 + $0x2ec] ss:$36 sps:$4 sm:$0xff]   ;;  %v3571_v33 = vld [vmem:[%s4740_s0 + $0x140] ss:$36 sps:$4 sm:$0xff]  }
  0xd2   :  { %1990 = vmatmul.mubr.bf16.gmra.mrb[88].mxu0 %v3524_v34  ;;  %2087 = vmatmul.mubr.bf16.gmra.mrb[88].mxu1 %v3525_v35 }
  0xd3   :  { %1997 = vmatprep.mubr.bf16.mxu0 %v3527_v36  ;;  %2094 = vmatprep.mubr.bf16.mxu1 %v3529_v37 }
  0xda   :  { %1998 = vmatmul.mubr.bf16.gmra.mrb[92].mxu0 %v3531_v38  ;;  %2095 = vmatmul.mubr.bf16.gmra.mrb[92].mxu1 %v3532_v39 }
  0xdb   :  { %2005 = vmatprep.mubr.bf16.mxu0 %v3533_v40  ;;  %2102 = vmatprep.mubr.bf16.mxu1 %v3535_v41 }
  0xe2   :  { %2006 = vmatmul.mubr.bf16.gmra.mrb[96].mxu0 %v3537_v42  ;;  %2103 = vmatmul.mubr.bf16.gmra.mrb[96].mxu1 %v3538_v43  ;;  %v3572_v42 = vld [vmem:[%s4740_s0 + $0x2e8] ss:$36 sps:$4 sm:$0xff]  }
  0xe3   :  { %2013 = vmatprep.mubr.bf16.mxu0 %v3540_v44  ;;  %2110 = vmatprep.mubr.bf16.mxu1 %v3542_v45  ;;  %v3573_v43 = vld [vmem:[%s4740_s0 + $0x188] ss:$36 sps:$4 sm:$0xff]  }
  0xea   :  { %2014 = vmatmul.mubr.bf16.gmra.mrb[100].mxu0 %v3544_v46  ;;  %2111 = vmatmul.mubr.bf16.gmra.mrb[100].mxu1 %v3545_v47 }
  0xeb   :  { %2021 = vmatprep.mubr.bf16.mxu0 %v3546_v48  ;;  %2118 = vmatprep.mubr.bf16.mxu1 %v3548_v49  ;;  %v3574_v48 = vld [vmem:[%s4740_s0 + $0x334] ss:$36 sps:$4 sm:$0xff]  }
  0xec   :  { %v3576_v49 = vld [vmem:[%s4740_s0 + $0x1d0] ss:$36 sps:$4 sm:$0xff]  }
  0xf2   :  { %2022 = vmatmul.mubr.bf16.gmra.mrb[104].mxu0 %v3550_v50  ;;  %2119 = vmatmul.mubr.bf16.gmra.mrb[104].mxu1 %v3551_v51 }
  0xf3   :  { %2029 = vmatprep.mubr.bf16.mxu0 %v3553_v52  ;;  %2126 = vmatprep.mubr.bf16.mxu1 %v3555_v53 }
  0xf5   :  { %v2871_v54 = vpop.f32.mrb[0].mxu1  ;;  %v2799_v55 = vpop.f32.mrb[0].mxu0 }
  0xf6   :  { %v2872_v56 = vpop.f32.mrb[1].mxu1  ;;  %v2800_v57 = vpop.f32.mrb[1].mxu0 }
  0xf7   :  { %v4171_v60 = vadd.f32 %v2872_v56, %v2871_v54  ;;  %v2874_v61 = vpop.f32.mrb[2].mxu1  ;;  %v4173_v62 = vadd.f32 %v2800_v57, %v2799_v55  ;;  %v2802_v63 = vpop.f32.mrb[2].mxu0 }
  0xf8   :  { %v2875_v2 = vpop.f32.mrb[3].mxu1  ;;  %v2803_v3 = vpop.f32.mrb[3].mxu0 }
  0xf9   :  { %v4181_v4 = vadd.f32 %v2875_v2, %v2874_v61  ;;  %v4183_v5 = vadd.f32 %v2803_v3, %v2802_v63  ;;  %v3579_v2 = vld [vmem:[%s4740_s0 + $0x37c] ss:$36 sps:$4 sm:$0xff]  }
  0xfa   :  { %2030 = vmatmul.mubr.bf16.gmra.mrb[108].mxu0 %v3557_v58  ;;  %2127 = vmatmul.mubr.bf16.gmra.mrb[108].mxu1 %v3558_v59  ;;  %v3577_v58 = vld [vmem:[%s4740_s0 + $0x330] ss:$36 sps:$4 sm:$0xff]   ;;  %v3578_v59 = vld [vmem:[%s4740_s0 + $0x218] ss:$36 sps:$4 sm:$0xff]   ;;  %v3581_v3 = vld [vmem:[%s4740_s0 + $0x260] ss:$36 sps:$4 sm:$0xff]  }
  0xfb   :  { %2134 = vmatprep.mubr.bf16.mxu1 %v3559_v0  ;;  %3271 = vmatprep.mubr.bf16.mxu0 %v3561_v1 }
  0xfd   :  { %v2877_v6 = vpop.f32.mrb[4].mxu1  ;;  %v2805_v7 = vpop.f32.mrb[4].mxu0 }
  0xfe   :  { %v2878_v8 = vpop.f32.mrb[5].mxu1  ;;  %v2806_v9 = vpop.f32.mrb[5].mxu0 }
  0xff   :  { %v4191_v12 = vadd.f32 %v2878_v8, %v2877_v6  ;;  %v2880_v13 = vpop.f32.mrb[6].mxu1  ;;  %v4193_v14 = vadd.f32 %v2806_v9, %v2805_v7  ;;  %v2808_v15 = vpop.f32.mrb[6].mxu0 }
 0x100   :  { %v2881_v18 = vpop.f32.mrb[7].mxu1  ;;  %v2809_v19 = vpop.f32.mrb[7].mxu0 }
 0x101   :  { %v4201_v20 = vadd.f32 %v2881_v18, %v2880_v13  ;;  %v4203_v21 = vadd.f32 %v2809_v19, %v2808_v15  ;;  %v3582_v18 = vld [vmem:[%s4740_s0 + $0x378] ss:$36 sps:$4 sm:$0xff]  }
 0x102   :  { %2135 = vmatmul.mubr.bf16.gmra.mrb[112].mxu1 %v3562_v10  ;;  %3272 = vmatmul.mubr.bf16.vlgmr.msra.gmra.mrb[112].mxu0 %v3563_v11 }
 0x103   :  { %2142 = vmatprep.mubr.bf16.mxu1 %v3564_v16  ;;  %3275 = vmatprep.mubr.bf16.mxu0 %v3566_v17 }
 0x105   :  { %v2883_v22 = vpop.f32.mrb[8].mxu1  ;;  %v2811_v23 = vpop.f32.mrb[8].mxu0 }
 0x106   :  { %v2884_v24 = vpop.f32.mrb[9].mxu1  ;;  %v2812_v25 = vpop.f32.mrb[9].mxu0 }
 0x107   :  { %v4211_v28 = vadd.f32 %v2884_v24, %v2883_v22  ;;  %v2886_v29 = vpop.f32.mrb[10].mxu1  ;;  %v4213_v30 = vadd.f32 %v2812_v25, %v2811_v23  ;;  %v2814_v31 = vpop.f32.mrb[10].mxu0  ;;  %v3584_v24 = vld [vmem:[%s4740_s0 + $0x3c4] ss:$36 sps:$4 sm:$0xff]   ;;  %v3586_v25 = vld [vmem:[%s4740_s0 + $0x2f0] ss:$36 sps:$4 sm:$0xff]  }
 0x108   :  { %v2887_v34 = vpop.f32.mrb[11].mxu1  ;;  %v2815_v35 = vpop.f32.mrb[11].mxu0 }
 0x109   :  { %v4221_v36 = vadd.f32 %v2887_v34, %v2886_v29  ;;  %v4223_v37 = vadd.f32 %v2815_v35, %v2814_v31 }
 0x10a   :  { %2143 = vmatmul.mubr.bf16.gmra.mrb[116].mxu1 %v3567_v26  ;;  %3276 = vmatmul.mubr.bf16.gmra.mrb[116].mxu0 %v3568_v27 }
 0x10b   :  { %2150 = vmatprep.mubr.bf16.mxu1 %v3569_v32  ;;  %3279 = vmatprep.mubr.bf16.mxu0 %v3571_v33 }
 0x10d   :  { %v2889_v38 = vpop.f32.mrb[12].mxu1  ;;  %v2817_v39 = vpop.f32.mrb[12].mxu0 }
 0x10e   :  { %v2890_v40 = vpop.f32.mrb[13].mxu1  ;;  %v2818_v41 = vpop.f32.mrb[13].mxu0 }
 0x10f   :  { %v4231_v44 = vadd.f32 %v2890_v40, %v2889_v38  ;;  %v2892_v45 = vpop.f32.mrb[14].mxu1  ;;  %v4233_v46 = vadd.f32 %v2818_v41, %v2817_v39  ;;  %v2820_v47 = vpop.f32.mrb[14].mxu0  ;;  %v3587_v40 = vld [vmem:[%s4740_s0 + $0x3c0] ss:$36 sps:$4 sm:$0xff]  }
 0x110   :  { %v2893_v50 = vpop.f32.mrb[15].mxu1  ;;  %v2821_v51 = vpop.f32.mrb[15].mxu0 }
 0x111   :  { %v4241_v52 = vadd.f32 %v2893_v50, %v2892_v45  ;;  %v4243_v53 = vadd.f32 %v2821_v51, %v2820_v47  ;;  %v3589_v45 = vld [vmem:[%s4740_s0 + $0x40c] ss:$36 sps:$4 sm:$0xff]   ;;  %v3591_v47 = vld [vmem:[%s4740_s0 + $0x380] ss:$36 sps:$4 sm:$0xff]  }
 0x112   :  { %2151 = vmatmul.mubr.bf16.gmra.mrb[120].mxu1 %v3572_v42  ;;  %3280 = vmatmul.mubr.bf16.gmra.mrb[120].mxu0 %v3573_v43 }
 0x113   :  { %2158 = vmatprep.mubr.bf16.mxu1 %v3574_v48  ;;  %3283 = vmatprep.mubr.bf16.mxu0 %v3576_v49 }
 0x115   :  { %v2911_v54 = vpop.f32.mrb[16].mxu1  ;;  %v2823_v55 = vpop.f32.mrb[16].mxu0 }
 0x116   :  { %v2912_v56 = vpop.f32.mrb[17].mxu1  ;;  %v2824_v57 = vpop.f32.mrb[17].mxu0 }
 0x117   :  { %v2913_v61 = vadd.f32 %v2912_v56, %v2911_v54  ;;  %v2914_v63 = vpop.f32.mrb[18].mxu1  ;;  %v4251_v0 = vadd.f32 %v2824_v57, %v2823_v55  ;;  %v2826_v1 = vpop.f32.mrb[18].mxu0 }
 0x118   :  { %v2915_v6 = vpop.f32.mrb[19].mxu1  ;;  %v2827_v7 = vpop.f32.mrb[19].mxu0 }
 0x119   :  { %v4260_v8 = vadd.f32 %v2913_v61, %v4173_v62  ;;  %v2916_v9 = vadd.f32 %v2915_v6, %v2914_v63  ;;  %v4262_v10 = vadd.f32 %v2827_v7, %v2826_v1  ;;  %v3583_v62 = vld [vmem:[%s4740_s0 + $0x2a8] ss:$36 sps:$4 sm:$0xff]   ;;  %v3596_v6 = vld [vmem:[%s4740_s0 + $0x410] ss:$36 sps:$4 sm:$0xff]  }
 0x11a   :  { %2159 = vmatmul.mubr.bf16.gmra.mrb[124].mxu1 %v3577_v58  ;;  %3284 = vmatmul.mubr.bf16.gmra.mrb[124].mxu0 %v3578_v59  ;;  %v3592_v61 = vld [vmem:[%s4740_s0 + $0x408] ss:$36 sps:$4 sm:$0xff]  }
 0x11b   :  { %v4265_v11 = vadd.f32 %v2916_v9, %v4183_v5  ;;  %2166 = vmatprep.mubr.bf16.mxu1 %v3579_v2  ;;  %3287 = vmatprep.mubr.bf16.mxu0 %v3581_v3  ;;  %v3594_v3 = vld [vmem:[%s4740_s0 + $0x454] ss:$36 sps:$4 sm:$0xff]  }
 0x11d   :  { %v2917_v13 = vpop.f32.mrb[20].mxu1  ;;  %v2829_v15 = vpop.f32.mrb[20].mxu0 }
 0x11e   :  { %v2918_v16 = vpop.f32.mrb[21].mxu1  ;;  %v2830_v17 = vpop.f32.mrb[21].mxu0 }
 0x11f   :  { %v2919_v19 = vadd.f32 %v2918_v16, %v2917_v13  ;;  %v2920_v22 = vpop.f32.mrb[22].mxu1  ;;  %v4273_v23 = vadd.f32 %v2830_v17, %v2829_v15  ;;  %v2832_v5 = vpop.f32.mrb[22].mxu0 }
 0x120   :  { %v2921_v26 = vpop.f32.mrb[23].mxu1  ;;  %v2833_v27 = vpop.f32.mrb[23].mxu0 }
 0x121   :  { %v4282_v29 = vadd.f32 %v2919_v19, %v4193_v14  ;;  %v2922_v31 = vadd.f32 %v2921_v26, %v2920_v22  ;;  %v4284_v32 = vadd.f32 %v2833_v27, %v2832_v5  ;;  %v3588_v14 = vld [vmem:[%s4740_s0 + $0x338] ss:$36 sps:$4 sm:$0xff]   ;;  %v3597_v5 = vld [vmem:[%s4740_s0 + $0x450] ss:$36 sps:$4 sm:$0xff]  }
 0x122   :  { %2167 = vmatmul.mubr.bf16.gmra.mrb[128].mxu1 %v3582_v18  ;;  %3288 = vmatmul.mubr.bf16.gmra.mrb[128].mxu0 %v3583_v62 }
 0x123   :  { %v4287_v33 = vadd.f32 %v2922_v31, %v4203_v21  ;;  %2174 = vmatprep.mubr.bf16.mxu1 %v3584_v24  ;;  %3291 = vmatprep.mubr.bf16.mxu0 %v3586_v25 }
 0x125   :  { %v2923_v34 = vpop.f32.mrb[24].mxu1  ;;  %v2835_v35 = vpop.f32.mrb[24].mxu0 }
 0x126   :  { %v2924_v38 = vpop.f32.mrb[25].mxu1  ;;  %v2836_v39 = vpop.f32.mrb[25].mxu0 }
 0x127   :  { %v2925_v41 = vadd.f32 %v2924_v38, %v2923_v34  ;;  %v2926_v42 = vpop.f32.mrb[26].mxu1  ;;  %v4295_v43 = vadd.f32 %v2836_v39, %v2835_v35  ;;  %v2838_v21 = vpop.f32.mrb[26].mxu0 }
 0x128   :  { %v2927_v48 = vpop.f32.mrb[27].mxu1  ;;  %v2839_v49 = vpop.f32.mrb[27].mxu0 }
 0x129   :  { %v4304_v50 = vadd.f32 %v2925_v41, %v4213_v30  ;;  %v2928_v51 = vadd.f32 %v2927_v48, %v2926_v42  ;;  %v4306_v54 = vadd.f32 %v2839_v49, %v2838_v21  ;;  %v3593_v30 = vld [vmem:[%s4740_s0 + $0x3c8] ss:$36 sps:$4 sm:$0xff]  }
 0x12a   :  { %2175 = vmatmul.mubr.bf16.gmra.mrb[132].mxu1 %v3587_v40  ;;  %3292 = vmatmul.mubr.bf16.gmra.mrb[132].mxu0 %v3588_v14 }
 0x12b   :  { %v4309_v55 = vadd.f32 %v2928_v51, %v4223_v37  ;;  %2182 = vmatprep.mubr.bf16.mxu1 %v3589_v45  ;;  %3295 = vmatprep.mubr.bf16.mxu0 %v3591_v47 }
 0x12d   :  { %v2929_v56 = vpop.f32.mrb[28].mxu1  ;;  %v2841_v57 = vpop.f32.mrb[28].mxu0 }
 0x12e   :  { %v2930_v58 = vpop.f32.mrb[29].mxu1  ;;  %v2842_v59 = vpop.f32.mrb[29].mxu0 }
 0x12f   :  { %v2931_v63 = vadd.f32 %v2930_v58, %v2929_v56  ;;  %v2932_v1 = vpop.f32.mrb[30].mxu1  ;;  %v4317_v2 = vadd.f32 %v2842_v59, %v2841_v57  ;;  %v2844_v37 = vpop.f32.mrb[30].mxu0 }
 0x130   :  { %v2933_v7 = vpop.f32.mrb[31].mxu1  ;;  %v2845_v9 = vpop.f32.mrb[31].mxu0 }
 0x131   :  { %v4326_v13 = vadd.f32 %v2931_v63, %v4233_v46  ;;  %v2934_v15 = vadd.f32 %v2933_v7, %v2932_v1  ;;  %v4328_v16 = vadd.f32 %v2845_v9, %v2844_v37  ;;  %v3598_v46 = vld [vmem:[%s4740_s0 + $0x458] ss:$36 sps:$4 sm:$0xff]  }
 0x132   :  { %2183 = vmatmul.mubr.bf16.gmra.mrb[136].mxu1 %v3592_v61  ;;  %3296 = vmatmul.mubr.bf16.gmra.mrb[136].mxu0 %v3593_v30 }
 0x133   :  { %v4331_v17 = vadd.f32 %v2934_v15, %v4243_v53  ;;  %2190 = vmatprep.mubr.bf16.mxu1 %v3594_v3  ;;  %3299 = vmatprep.mubr.bf16.mxu0 %v3596_v6 }
 0x135   :  { %v2935_v18 = vpop.f32.mrb[32].mxu1  ;;  %v2847_v62 = vpop.f32.mrb[32].mxu0 }
 0x136   :  { %v2936_v19 = vpop.f32.mrb[33].mxu1  ;;  %v2848_v22 = vpop.f32.mrb[33].mxu0 }
 0x137   :  { %v2937_v24 = vadd.f32 %v2936_v19, %v2935_v18  ;;  %v2938_v25 = vpop.f32.mrb[34].mxu1  ;;  %v2849_v26 = vadd.f32 %v2848_v22, %v2847_v62  ;;  %v2850_v27 = vpop.f32.mrb[34].mxu0 }
 0x138   :  { %v2939_v53 = vpop.f32.mrb[35].mxu1  ;;  %v2851_v31 = vpop.f32.mrb[35].mxu0 }
 0x139   :  { %v4340_v34 = vadd.f32 %v2937_v24, %v4251_v0  ;;  %v2940_v35 = vadd.f32 %v2939_v53, %v2938_v25  ;;  %v2852_v38 = vadd.f32 %v2851_v31, %v2850_v27 }
 0x13a   :  { %2191 = vmatmul.mubr.bf16.gmra.mrb[140].mxu1 %v3597_v5  ;;  %3300 = vmatmul.mubr.bf16.gmra.mrb[140].mxu0 %v3598_v46 }
 0x13b   :  { %v4343_v39 = vadd.f32 %v2940_v35, %v4262_v10 }
 0x13d   :  { %v2941_v40 = vpop.f32.mrb[36].mxu1  ;;  %v2853_v14 = vpop.f32.mrb[36].mxu0 }
 0x13e   :  { %v2942_v41 = vpop.f32.mrb[37].mxu1  ;;  %v2854_v42 = vpop.f32.mrb[37].mxu0 }
 0x13f   :  { %v2943_v21 = vadd.f32 %v2942_v41, %v2941_v40  ;;  %v2944_v45 = vpop.f32.mrb[38].mxu1  ;;  %v2855_v47 = vadd.f32 %v2854_v42, %v2853_v14  ;;  %v2856_v48 = vpop.f32.mrb[38].mxu0 }
 0x140   :  { %v2945_v49 = vpop.f32.mrb[39].mxu1  ;;  %v2857_v51 = vpop.f32.mrb[39].mxu0 }
 0x141   :  { %v4346_v0 = vadd.f32 %v2943_v21, %v4273_v23  ;;  %v2946_v56 = vadd.f32 %v2945_v49, %v2944_v45  ;;  %v2858_v57 = vadd.f32 %v2857_v51, %v2856_v48 }
 0x143   :  { %v4349_v58 = vadd.f32 %v2946_v56, %v4284_v32 }
 0x145   :  { %v2947_v10 = vpop.f32.mrb[40].mxu1  ;;  %v2859_v59 = vpop.f32.mrb[40].mxu0 }
 0x146   :  { %v2948_v61 = vpop.f32.mrb[41].mxu1  ;;  %v2860_v30 = vpop.f32.mrb[41].mxu0 }
 0x147   :  { %v2949_v63 = vadd.f32 %v2948_v61, %v2947_v10  ;;  %v2950_v1 = vpop.f32.mrb[42].mxu1  ;;  %v4351_v37 = vadd.f32 %v2860_v30, %v2859_v59  ;;  %v2862_v3 = vpop.f32.mrb[42].mxu0 }
 0x148   :  { %v2951_v6 = vpop.f32.mrb[43].mxu1  ;;  %v2863_v7 = vpop.f32.mrb[43].mxu0 }
 0x149   :  { %v4354_v9 = vadd.f32 %v2949_v63, %v4295_v43  ;;  %v2952_v23 = vadd.f32 %v2951_v6, %v2950_v1  ;;  %v2864_v15 = vadd.f32 %v2863_v7, %v2862_v3 }
 0x14b   :  { %v4357_v18 = vadd.f32 %v2952_v23, %v4306_v54 }
 0x14d   :  { %v2953_v32 = vpop.f32.mrb[44].mxu1  ;;  %v2865_v62 = vpop.f32.mrb[44].mxu0 }
 0x14e   :  { %v2954_v19 = vpop.f32.mrb[45].mxu1  ;;  %v2866_v22 = vpop.f32.mrb[45].mxu0 }
 0x14f   :  { %v2955_v5 = vadd.f32 %v2954_v19, %v2953_v32  ;;  %v2956_v46 = vpop.f32.mrb[46].mxu1  ;;  %v4359_v24 = vadd.f32 %v2866_v22, %v2865_v62  ;;  %v2868_v25 = vpop.f32.mrb[46].mxu0 }
 0x150   :  { %v2957_v27 = vpop.f32.mrb[47].mxu1  ;;  %v2869_v53 = vpop.f32.mrb[47].mxu0 }
 0x151   :  { %v4362_v31 = vadd.f32 %v2955_v5, %v4317_v2  ;;  %v2958_v43 = vadd.f32 %v2957_v27, %v2956_v46  ;;  %v4364_v35 = vadd.f32 %v2869_v53, %v2868_v25 }
 0x153   :  { %v4367_v54 = vadd.f32 %v2958_v43, %v4328_v16 }
 0x155   :  { %v2959_v40 = vpop.f32.mrb[48].mxu1  ;;  %v3023_v14 = vpop.f32.mrb[48].mxu0 }
 0x156   :  { %v2960_v41 = vpop.f32.mrb[49].mxu1  ;;  %v3024_v42 = vpop.f32.mrb[49].mxu0 }
 0x157   :  { %v2961_v21 = vadd.f32 %v2960_v41, %v2959_v40  ;;  %v3025_v45 = vadd.f32 %v3024_v42, %v3023_v14  ;;  %v2962_v48 = vpop.f32.mrb[50].mxu1  ;;  %v3026_v49 = vpop.f32.mrb[50].mxu0 }
 0x158   :  { %v2963_v51 = vpop.f32.mrb[51].mxu1  ;;  %v3027_v56 = vpop.f32.mrb[51].mxu0 }
 0x159   :  { %v4369_v10 = vadd.f32 %v2961_v21, %v2849_v26  ;;  %v4372_v2 = vadd.f32 %v3025_v45, %v4260_v8  ;;  %v2964_v59 = vadd.f32 %v2963_v51, %v2962_v48  ;;  %v3028_v61 = vadd.f32 %v3027_v56, %v3026_v49 }
 0x15b   :  { %v4374_v30 = vadd.f32 %v2964_v59, %v2852_v38  ;;  %v4377_v16 = vadd.f32 %v3028_v61, %v4265_v11 }
 0x15d   :  { %v2965_v63 = vpop.f32.mrb[52].mxu1  ;;  %v3029_v1 = vpop.f32.mrb[52].mxu0 }
 0x15e   :  { %v2966_v3 = vpop.f32.mrb[53].mxu1  ;;  %v3030_v6 = vpop.f32.mrb[53].mxu0 }
 0x15f   :  { %v2967_v7 = vadd.f32 %v2966_v3, %v2965_v63  ;;  %v3031_v23 = vadd.f32 %v3030_v6, %v3029_v1  ;;  %v2968_v32 = vpop.f32.mrb[54].mxu1  ;;  %v3032_v62 = vpop.f32.mrb[54].mxu0 }
 0x160   :  { %v2969_v26 = vpop.f32.mrb[55].mxu1  ;;  %v3033_v19 = vpop.f32.mrb[55].mxu0 }
 0x161   :  { %v4379_v22 = vadd.f32 %v2967_v7, %v2855_v47  ;;  %v4382_v8 = vadd.f32 %v3031_v23, %v4282_v29  ;;  %v2970_v38 = vadd.f32 %v2969_v26, %v2968_v32  ;;  %v3034_v5 = vadd.f32 %v3033_v19, %v3032_v62 }
 0x163   :  { %v4384_v46 = vadd.f32 %v2970_v38, %v2858_v57  ;;  %v4387_v11 = vadd.f32 %v3034_v5, %v4287_v33 }
 0x165   :  { %v2971_v25 = vpop.f32.mrb[56].mxu1  ;;  %v3035_v27 = vpop.f32.mrb[56].mxu0 }
 0x166   :  { %v2972_v53 = vpop.f32.mrb[57].mxu1  ;;  %v3036_v43 = vpop.f32.mrb[57].mxu0 }
 0x167   :  { %v2973_v40 = vadd.f32 %v2972_v53, %v2971_v25  ;;  %v3037_v14 = vadd.f32 %v3036_v43, %v3035_v27  ;;  %v2974_v41 = vpop.f32.mrb[58].mxu1  ;;  %v3038_v42 = vpop.f32.mrb[58].mxu0 }
 0x168   :  { %v2975_v47 = vpop.f32.mrb[59].mxu1  ;;  %v3039_v21 = vpop.f32.mrb[59].mxu0 }
 0x169   :  { %v4390_v29 = vadd.f32 %v2973_v40, %v4351_v37  ;;  %v4393_v45 = vadd.f32 %v3037_v14, %v4304_v50  ;;  %v2976_v57 = vadd.f32 %v2975_v47, %v2974_v41  ;;  %v3040_v48 = vadd.f32 %v3039_v21, %v3038_v42 }
 0x16b   :  { %v4395_v33 = vadd.f32 %v2976_v57, %v2864_v15  ;;  %v4398_v49 = vadd.f32 %v3040_v48, %v4309_v55 }
 0x16d   :  { %v2977_v51 = vpop.f32.mrb[60].mxu1  ;;  %v3041_v56 = vpop.f32.mrb[60].mxu0 }
 0x16e   :  { %v2978_v59 = vpop.f32.mrb[61].mxu1  ;;  %v3042_v61 = vpop.f32.mrb[61].mxu0 }
 0x16f   :  { %v2979_v63 = vadd.f32 %v2978_v59, %v2977_v51  ;;  %v3043_v1 = vadd.f32 %v3042_v61, %v3041_v56  ;;  %v2980_v3 = vpop.f32.mrb[62].mxu1  ;;  %v3044_v6 = vpop.f32.mrb[62].mxu0 }
 0x170   :  { %v2981_v37 = vpop.f32.mrb[63].mxu1  ;;  %v3045_v7 = vpop.f32.mrb[63].mxu0 }
 0x171   :  { %v4401_v50 = vadd.f32 %v2979_v63, %v4359_v24  ;;  %v4404_v23 = vadd.f32 %v3043_v1, %v4326_v13  ;;  %v2982_v15 = vadd.f32 %v2981_v37, %v2980_v3  ;;  %v3046_v32 = vadd.f32 %v3045_v7, %v3044_v6 }
 0x173   :  { %v4407_v55 = vadd.f32 %v2982_v15, %v4364_v35  ;;  %v4410_v62 = vadd.f32 %v3046_v32, %v4331_v17 }
 0x175   :  { %v2983_v26 = vpop.f32.mrb[64].mxu1  ;;  %v3047_v19 = vpop.f32.mrb[64].mxu0 }
 0x176   :  { %v2984_v38 = vpop.f32.mrb[65].mxu1  ;;  %v3048_v5 = vpop.f32.mrb[65].mxu0 }
 0x177   :  { %v2985_v25 = vadd.f32 %v2984_v38, %v2983_v26  ;;  %v3049_v27 = vadd.f32 %v3048_v5, %v3047_v19  ;;  %v2986_v53 = vpop.f32.mrb[66].mxu1  ;;  %v3050_v24 = vpop.f32.mrb[66].mxu0 }
 0x178   :  { %v2987_v43 = vpop.f32.mrb[67].mxu1  ;;  %v3051_v40 = vpop.f32.mrb[67].mxu0 }
 0x179   :  { %v4413_v13 = vadd.f32 %v2985_v25, %v4171_v60  ;;  %v4416_v14 = vadd.f32 %v3049_v27, %v4340_v34  ;;  %v2988_v35 = vadd.f32 %v2987_v43, %v2986_v53  ;;  %v3052_v41 = vadd.f32 %v3051_v40, %v3050_v24 }
 0x17b   :  { %v4419_v17 = vadd.f32 %v2988_v35, %v4181_v4  ;;  %v4422_v42 = vadd.f32 %v3052_v41, %v4343_v39 }
 0x17d   :  { %v2989_v47 = vpop.f32.mrb[68].mxu1  ;;  %v3053_v21 = vpop.f32.mrb[68].mxu0 }
 0x17e   :  { %v2990_v57 = vpop.f32.mrb[69].mxu1  ;;  %v3054_v48 = vpop.f32.mrb[69].mxu0 }
 0x17f   :  { %v2991_v51 = vadd.f32 %v2990_v57, %v2989_v47  ;;  %v3055_v56 = vadd.f32 %v3054_v48, %v3053_v21  ;;  %v2992_v59 = vpop.f32.mrb[70].mxu1  ;;  %v3056_v60 = vpop.f32.mrb[70].mxu0 }
 0x180   :  { %v2993_v61 = vpop.f32.mrb[71].mxu1  ;;  %v3057_v63 = vpop.f32.mrb[71].mxu0 }
 0x181   :  { %v4425_v34 = vadd.f32 %v2991_v51, %v4191_v12  ;;  %v4428_v1 = vadd.f32 %v3055_v56, %v4346_v0  ;;  %v2994_v4 = vadd.f32 %v2993_v61, %v2992_v59  ;;  %v3058_v3 = vadd.f32 %v3057_v63, %v3056_v60 }
 0x183   :  { %v4431_v39 = vadd.f32 %v2994_v4, %v4201_v20  ;;  %v4434_v6 = vadd.f32 %v3058_v3, %v4349_v58 }
 0x185   :  { %v2995_v37 = vpop.f32.mrb[72].mxu1  ;;  %v3059_v7 = vpop.f32.mrb[72].mxu0 }
 0x186   :  { %v2996_v15 = vpop.f32.mrb[73].mxu1  ;;  %v3060_v32 = vpop.f32.mrb[73].mxu0 }
 0x187   :  { %v2997_v26 = vadd.f32 %v2996_v15, %v2995_v37  ;;  %v3061_v19 = vadd.f32 %v3060_v32, %v3059_v7  ;;  %v2998_v38 = vpop.f32.mrb[74].mxu1  ;;  %v3062_v12 = vpop.f32.mrb[74].mxu0 }
 0x188   :  { %v2999_v5 = vpop.f32.mrb[75].mxu1  ;;  %v3063_v25 = vpop.f32.mrb[75].mxu0 }
 0x189   :  { %v4437_v0 = vadd.f32 %v2997_v26, %v4211_v28  ;;  %v4440_v27 = vadd.f32 %v3061_v19, %v4354_v9  ;;  %v3000_v20 = vadd.f32 %v2999_v5, %v2998_v38  ;;  %v3064_v53 = vadd.f32 %v3063_v25, %v3062_v12 }
 0x18b   :  { %v4443_v58 = vadd.f32 %v3000_v20, %v4221_v36  ;;  %v4446_v24 = vadd.f32 %v3064_v53, %v4357_v18 }
 0x18d   :  { %v3001_v43 = vpop.f32.mrb[76].mxu1  ;;  %v3065_v40 = vpop.f32.mrb[76].mxu0 }
 0x18e   :  { %v3002_v35 = vpop.f32.mrb[77].mxu1  ;;  %v3066_v41 = vpop.f32.mrb[77].mxu0 }
 0x18f   :  { %v3003_v47 = vadd.f32 %v3002_v35, %v3001_v43  ;;  %v3067_v21 = vadd.f32 %v3066_v41, %v3065_v40  ;;  %v3004_v57 = vpop.f32.mrb[78].mxu1  ;;  %v3068_v28 = vpop.f32.mrb[78].mxu0 }
 0x190   :  { %v3005_v48 = vpop.f32.mrb[79].mxu1  ;;  %v3069_v51 = vpop.f32.mrb[79].mxu0 }
 0x191   :  { %v4449_v9 = vadd.f32 %v3003_v47, %v4231_v44  ;;  %v4452_v56 = vadd.f32 %v3067_v21, %v4362_v31  ;;  %v3006_v36 = vadd.f32 %v3005_v48, %v3004_v57  ;;  %v3070_v59 = vadd.f32 %v3069_v51, %v3068_v28 }
 0x193   :  { %v4455_v18 = vadd.f32 %v3006_v36, %v4241_v52  ;;  %v4458_v60 = vadd.f32 %v3070_v59, %v4367_v54 }
 0x195   :  { %v3071_v61 = vpop.f32.mrb[80].mxu0  ;;  %v3135_v63 = vpop.f32.mrb[80].mxu1 }
 0x196   :  { %v3072_v4 = vpop.f32.mrb[81].mxu0  ;;  %v3136_v3 = vpop.f32.mrb[81].mxu1 }
 0x197   :  { %v3073_v37 = vadd.f32 %v3072_v4, %v3071_v61  ;;  %v3137_v7 = vadd.f32 %v3136_v3, %v3135_v63  ;;  %v3074_v15 = vpop.f32.mrb[82].mxu0  ;;  %v3138_v44 = vpop.f32.mrb[82].mxu1 }
 0x198   :  { %v3075_v32 = vpop.f32.mrb[83].mxu0  ;;  %v3139_v26 = vpop.f32.mrb[83].mxu1 }
 0x199   :  { %v4461_v31 = vadd.f32 %v3073_v37, %v4369_v10  ;;  %v3076_v19 = vadd.f32 %v3075_v32, %v3074_v15  ;;  %v3140_v38 = vadd.f32 %v3139_v26, %v3138_v44  ;;  %v4464_v52 = vadd.f32 %v3137_v7, %v4372_v2 }
 0x19b   :  { %v4467_v54 = vadd.f32 %v3076_v19, %v4374_v30  ;;  %v4470_v12 = vadd.f32 %v3140_v38, %v4377_v16 }
 0x19d   :  { %v3077_v5 = vpop.f32.mrb[84].mxu0  ;;  %v3141_v25 = vpop.f32.mrb[84].mxu1 }
 0x19e   :  { %v3078_v20 = vpop.f32.mrb[85].mxu0  ;;  %v3142_v53 = vpop.f32.mrb[85].mxu1 }
 0x19f   :  { %v3079_v43 = vadd.f32 %v3078_v20, %v3077_v5  ;;  %v3143_v40 = vadd.f32 %v3142_v53, %v3141_v25  ;;  %v3080_v35 = vpop.f32.mrb[86].mxu0  ;;  %v3144_v10 = vpop.f32.mrb[86].mxu1 }
 0x1a0   :  { %v3081_v41 = vpop.f32.mrb[87].mxu0  ;;  %v3145_v47 = vpop.f32.mrb[87].mxu1 }
 0x1a1   :  { %v4473_v21 = vadd.f32 %v3079_v43, %v4379_v22  ;;  %v3082_v2 = vadd.f32 %v3081_v41, %v3080_v35  ;;  %v3146_v57 = vadd.f32 %v3145_v47, %v3144_v10  ;;  %v4476_v30 = vadd.f32 %v3143_v40, %v4382_v8 }
 0x1a3   :  { %v4479_v16 = vadd.f32 %v3082_v2, %v4384_v46  ;;  %v4482_v28 = vadd.f32 %v3146_v57, %v4387_v11 }
 0x1a5   :  { %v3083_v48 = vpop.f32.mrb[88].mxu0  ;;  %v3147_v51 = vpop.f32.mrb[88].mxu1 }
 0x1a6   :  { %v3084_v36 = vpop.f32.mrb[89].mxu0  ;;  %v3148_v59 = vpop.f32.mrb[89].mxu1 }
 0x1a7   :  { %v3085_v61 = vadd.f32 %v3084_v36, %v3083_v48  ;;  %v3149_v63 = vadd.f32 %v3148_v59, %v3147_v51  ;;  %v3086_v4 = vpop.f32.mrb[90].mxu0  ;;  %v3150_v22 = vpop.f32.mrb[90].mxu1 }
 0x1a8   :  { %v3087_v3 = vpop.f32.mrb[91].mxu0  ;;  %v3151_v37 = vpop.f32.mrb[91].mxu1 }
 0x1a9   :  { %v4485_v7 = vadd.f32 %v3085_v61, %v4390_v29  ;;  %v3088_v8 = vadd.f32 %v3087_v3, %v3086_v4  ;;  %v3152_v15 = vadd.f32 %v3151_v37, %v3150_v22  ;;  %v4488_v46 = vadd.f32 %v3149_v63, %v4393_v45 }
 0x1ab   :  { %v4491_v11 = vadd.f32 %v3088_v8, %v4395_v33  ;;  %v4494_v44 = vadd.f32 %v3152_v15, %v4398_v49 }
 0x1ad   :  { %v3089_v32 = vpop.f32.mrb[92].mxu0  ;;  %v3153_v26 = vpop.f32.mrb[92].mxu1 }
 0x1ae   :  { %v3090_v19 = vpop.f32.mrb[93].mxu0  ;;  %v3154_v38 = vpop.f32.mrb[93].mxu1 }
 0x1af   :  { %v3091_v5 = vadd.f32 %v3090_v19, %v3089_v32  ;;  %v3155_v25 = vadd.f32 %v3154_v38, %v3153_v26  ;;  %v3092_v20 = vpop.f32.mrb[94].mxu0  ;;  %v3156_v29 = vpop.f32.mrb[94].mxu1 }
 0x1b0   :  { %v3093_v53 = vpop.f32.mrb[95].mxu0  ;;  %v3157_v43 = vpop.f32.mrb[95].mxu1 }
 0x1b1   :  { %v4497_v40 = vadd.f32 %v3091_v5, %v4401_v50  ;;  %v3094_v45 = vadd.f32 %v3093_v53, %v3092_v20  ;;  %v3158_v35 = vadd.f32 %v3157_v43, %v3156_v29  ;;  %v4500_v33 = vadd.f32 %v3155_v25, %v4404_v23 }
 0x1b3   :  { %v4503_v49 = vadd.f32 %v3094_v45, %v4407_v55  ;;  %v4506_v10 = vadd.f32 %v3158_v35, %v4410_v62 }
 0x1b5   :  { %v3095_v41 = vpop.f32.mrb[96].mxu0  ;;  %v3159_v47 = vpop.f32.mrb[96].mxu1 }
 0x1b6   :  { %v3096_v2 = vpop.f32.mrb[97].mxu0  ;;  %v3160_v57 = vpop.f32.mrb[97].mxu1 }
 0x1b7   :  { %v3097_v48 = vadd.f32 %v3096_v2, %v3095_v41  ;;  %v3161_v51 = vadd.f32 %v3160_v57, %v3159_v47  ;;  %v3098_v36 = vpop.f32.mrb[98].mxu0  ;;  %v3162_v50 = vpop.f32.mrb[98].mxu1 }
 0x1b8   :  { %v3099_v59 = vpop.f32.mrb[99].mxu0  ;;  %v3163_v61 = vpop.f32.mrb[99].mxu1 }
 0x1b9   :  { %v4509_v63 = vadd.f32 %v3097_v48, %v4413_v13  ;;  %v3100_v23 = vadd.f32 %v3099_v59, %v3098_v36  ;;  %v3164_v4 = vadd.f32 %v3163_v61, %v3162_v50  ;;  %v4512_v55 = vadd.f32 %v3161_v51, %v4416_v14 }
 0x1bb   :  { %v4515_v62 = vadd.f32 %v3100_v23, %v4419_v17  ;;  %v4518_v22 = vadd.f32 %v3164_v4, %v4422_v42 }
 0x1bd   :  { %v3101_v3 = vpop.f32.mrb[100].mxu0  ;;  %v3165_v37 = vpop.f32.mrb[100].mxu1 }
 0x1be   :  { %v3102_v8 = vpop.f32.mrb[101].mxu0  ;;  %v3166_v15 = vpop.f32.mrb[101].mxu1 }
 0x1bf   :  { %v3103_v32 = vadd.f32 %v3102_v8, %v3101_v3  ;;  %v3167_v26 = vadd.f32 %v3166_v15, %v3165_v37  ;;  %v3104_v19 = vpop.f32.mrb[102].mxu0  ;;  %v3168_v13 = vpop.f32.mrb[102].mxu1 }
 0x1c0   :  { %v3105_v38 = vpop.f32.mrb[103].mxu0  ;;  %v3169_v5 = vpop.f32.mrb[103].mxu1 }
 0x1c1   :  { %v4521_v25 = vadd.f32 %v3103_v32, %v4425_v34  ;;  %v3106_v14 = vadd.f32 %v3105_v38, %v3104_v19  ;;  %v3170_v20 = vadd.f32 %v3169_v5, %v3168_v13  ;;  %v4524_v17 = vadd.f32 %v3167_v26, %v4428_v1 }
 0x1c3   :  { %v4527_v42 = vadd.f32 %v3106_v14, %v4431_v39  ;;  %v4530_v29 = vadd.f32 %v3170_v20, %v4434_v6  ;;  %v4559_v14 = vld [vmem:[%s4741_s2] ss:$0 sm:$0xff] }
 0x1c5   :  { %v3107_v53 = vpop.f32.mrb[104].mxu0  ;;  %v3171_v43 = vpop.f32.mrb[104].mxu1 }
 0x1c6   :  { %v3108_v45 = vpop.f32.mrb[105].mxu0  ;;  %v3172_v35 = vpop.f32.mrb[105].mxu1 }
 0x1c7   :  { %v3109_v41 = vadd.f32 %v3108_v45, %v3107_v53  ;;  %v3173_v47 = vadd.f32 %v3172_v35, %v3171_v43  ;;  %v3110_v2 = vpop.f32.mrb[106].mxu0  ;;  %v3174_v34 = vpop.f32.mrb[106].mxu1 }
 0x1c8   :  { %v3111_v57 = vpop.f32.mrb[107].mxu0  ;;  %v3175_v48 = vpop.f32.mrb[107].mxu1 }
 0x1c9   :  { %v4533_v51 = vadd.f32 %v3109_v41, %v4437_v0  ;;  %v3112_v1 = vadd.f32 %v3111_v57, %v3110_v2  ;;  %v3176_v36 = vadd.f32 %v3175_v48, %v3174_v34  ;;  %v4536_v39 = vadd.f32 %v3173_v47, %v4440_v27 }
 0x1cb   :  { %v4539_v6 = vadd.f32 %v3112_v1, %v4443_v58  ;;  %v4542_v50 = vadd.f32 %v3176_v36, %v4446_v24 }
 0x1cd   :  { %v3113_v59 = vpop.f32.mrb[108].mxu0  ;;  %v3177_v61 = vpop.f32.mrb[108].mxu1 }
 0x1ce   :  { %v3114_v23 = vpop.f32.mrb[109].mxu0  ;;  %v3178_v4 = vpop.f32.mrb[109].mxu1 }
 0x1cf   :  { %v3115_v3 = vadd.f32 %v3114_v23, %v3113_v59  ;;  %v3179_v37 = vadd.f32 %v3178_v4, %v3177_v61  ;;  %v3116_v8 = vpop.f32.mrb[110].mxu0  ;;  %v3180_v0 = vpop.f32.mrb[110].mxu1 }
 0x1d0   :  { %v3117_v15 = vpop.f32.mrb[111].mxu0  ;;  %v3181_v32 = vpop.f32.mrb[111].mxu1 }
 0x1d1   :  { %v4545_v26 = vadd.f32 %v3115_v3, %v4449_v9  ;;  %v3118_v27 = vadd.f32 %v3117_v15, %v3116_v8  ;;  %v3182_v19 = vadd.f32 %v3181_v32, %v3180_v0  ;;  %v4548_v58 = vadd.f32 %v3179_v37, %v4452_v56 }
 0x1d3   :  { %v4551_v24 = vadd.f32 %v3118_v27, %v4455_v18  ;;  %v4554_v13 = vadd.f32 %v3182_v19, %v4458_v60 }
 0x1d5   :  { %v3183_v38 = vpop.f32.mrb[112].mxu1  ;;  %v3273_v5 = vpop.f32.mrb[112].mxu0 }
 0x1d6   :  { %v2242_v9 = vadd.f32 %v3273_v5, %v4476_v30  ;;  %v3184_v20 = vpop.f32.mrb[113].mxu1  ;;  %v2233_v53 = vpop.f32.mrb[113].mxu0 }
 0x1d7   :  { %v3185_v43 = vadd.f32 %v3184_v20, %v3183_v38  ;;  %v2234_v56 = vadd.f32 %v2233_v53, %v4464_v52  ;;  %v3186_v45 = vpop.f32.mrb[114].mxu1  ;;  %v3274_v18 = vpop.f32.mrb[114].mxu0 }
 0x1d8   :  { %v2468_v35 = vadd.f32 %v4559_v14, %v2242_v9  ;;  %v2245_v60 = vadd.f32 %v3274_v18, %v4482_v28  ;;  %v3187_v41 = vpop.f32.mrb[115].mxu1  ;;  %v2236_v47 = vpop.f32.mrb[115].mxu0 }
 0x1d9   :  { %v2466_v2 = vadd.f32 %v4559_v14, %v2234_v56  ;;  %v3188_v34 = vadd.f32 %v3187_v41, %v3186_v45  ;;  %v2237_v57 = vadd.f32 %v2236_v47, %v4470_v12  ;;  %v4568_v30 = vadd.f32 %v3185_v43, %v4461_v31 }
 0x1da   :  { %v2500_v48 = vmax.f32 %v2468_v35, 0.0  ;;  %v2469_v1 = vadd.f32 %v4559_v14, %v2245_v60 }
 0x1db   :  { %v2498_v52 = vmax.f32 %v2466_v2, 0.0  ;;  %v2467_v36 = vadd.f32 %v4559_v14, %v2237_v57  ;;  %v4573_v59 = vadd.f32 %v3188_v34, %v4467_v54 }
 0x1dc   :  { %2532 = vst [vmem:[%s4742_s3 + $0x10] sm:$0xff] %v2500_v48  ;;  %v2501_v28 = vmax.f32 %v2469_v1, 0.0 }
 0x1dd   :  { %2530 = vst [vmem:[%s4742_s3] sm:$0xff] %v2498_v52  ;;  %v2499_v31 = vmax.f32 %v2467_v36, 0.0  ;;  %v3189_v12 = vpop.f32.mrb[116].mxu1  ;;  %v3277_v61 = vpop.f32.mrb[116].mxu0 }
 0x1de   :  { %2533 = vst [vmem:[%s4742_s3 + $0x18] sm:$0xff] %v2501_v28  ;;  %v2258_v23 = vadd.f32 %v3277_v61, %v4500_v33  ;;  %v3190_v54 = vpop.f32.mrb[117].mxu1  ;;  %v2249_v4 = vpop.f32.mrb[117].mxu0 }
 0x1df   :  { %2531 = vst [vmem:[%s4742_s3 + $0x8] sm:$0xff] %v2499_v31  ;;  %v3191_v3 = vadd.f32 %v3190_v54, %v3189_v12  ;;  %v2250_v37 = vadd.f32 %v2249_v4, %v4488_v46  ;;  %v3192_v8 = vpop.f32.mrb[118].mxu1  ;;  %v3278_v0 = vpop.f32.mrb[118].mxu0 }
 0x1e0   :  { %v2472_v15 = vadd.f32 %v4559_v14, %v2258_v23  ;;  %v2261_v32 = vadd.f32 %v3278_v0, %v4506_v10  ;;  %v3193_v27 = vpop.f32.mrb[119].mxu1  ;;  %v2252_v19 = vpop.f32.mrb[119].mxu0 }
 0x1e1   :  { %v2470_v38 = vadd.f32 %v4559_v14, %v2250_v37  ;;  %v3194_v33 = vadd.f32 %v3193_v27, %v3192_v8  ;;  %v2253_v5 = vadd.f32 %v2252_v19, %v4494_v44  ;;  %v4594_v9 = vadd.f32 %v3191_v3, %v4473_v21 }
 0x1e2   :  { %v2504_v20 = vmax.f32 %v2472_v15, 0.0  ;;  %v2473_v53 = vadd.f32 %v4559_v14, %v2261_v32 }
 0x1e3   :  { %v2502_v46 = vmax.f32 %v2470_v38, 0.0  ;;  %v2471_v43 = vadd.f32 %v4559_v14, %v2253_v5  ;;  %v4599_v56 = vadd.f32 %v3194_v33, %v4479_v16 }
 0x1e4   :  { %2536 = vst [vmem:[%s4742_s3 + $0x30] sm:$0xff] %v2504_v20  ;;  %v2505_v10 = vmax.f32 %v2473_v53, 0.0 }
 0x1e5   :  { %2534 = vst [vmem:[%s4742_s3 + $0x20] sm:$0xff] %v2502_v46  ;;  %v2503_v21 = vmax.f32 %v2471_v43, 0.0  ;;  %v3195_v44 = vpop.f32.mrb[120].mxu1  ;;  %v3281_v45 = vpop.f32.mrb[120].mxu0 }
 0x1e6   :  { %2537 = vst [vmem:[%s4742_s3 + $0x38] sm:$0xff] %v2505_v10  ;;  %v2274_v18 = vadd.f32 %v3281_v45, %v4524_v17  ;;  %v3196_v16 = vpop.f32.mrb[121].mxu1  ;;  %v2265_v35 = vpop.f32.mrb[121].mxu0 }
 0x1e7   :  { %2535 = vst [vmem:[%s4742_s3 + $0x28] sm:$0xff] %v2503_v21  ;;  %v3197_v60 = vadd.f32 %v3196_v16, %v3195_v44  ;;  %v2266_v41 = vadd.f32 %v2265_v35, %v4512_v55  ;;  %v3198_v47 = vpop.f32.mrb[122].mxu1  ;;  %v3282_v2 = vpop.f32.mrb[122].mxu0 }
 0x1e8   :  { %v2476_v34 = vadd.f32 %v4559_v14, %v2274_v18  ;;  %v2277_v57 = vadd.f32 %v3282_v2, %v4530_v29  ;;  %v3199_v48 = vpop.f32.mrb[123].mxu1  ;;  %v2268_v1 = vpop.f32.mrb[123].mxu0 }
 0x1e9   :  { %v2474_v52 = vadd.f32 %v4559_v14, %v2266_v41  ;;  %v3200_v17 = vadd.f32 %v3199_v48, %v3198_v47  ;;  %v2269_v36 = vadd.f32 %v2268_v1, %v4518_v22  ;;  %v4620_v28 = vadd.f32 %v3197_v60, %v4485_v7 }
 0x1ea   :  { %v2508_v31 = vmax.f32 %v2476_v34, 0.0  ;;  %v2477_v12 = vadd.f32 %v4559_v14, %v2277_v57 }
 0x1eb   :  { %v2506_v55 = vmax.f32 %v2474_v52, 0.0  ;;  %v2475_v61 = vadd.f32 %v4559_v14, %v2269_v36  ;;  %v4625_v23 = vadd.f32 %v3200_v17, %v4491_v11 }
 0x1ec   :  { %2540 = vst [vmem:[%s4742_s3 + $0x50] sm:$0xff] %v2508_v31  ;;  %v2509_v29 = vmax.f32 %v2477_v12, 0.0 }
 0x1ed   :  { %2538 = vst [vmem:[%s4742_s3 + $0x40] sm:$0xff] %v2506_v55  ;;  %v2507_v7 = vmax.f32 %v2475_v61, 0.0  ;;  %v3201_v22 = vpop.f32.mrb[124].mxu1  ;;  %v3285_v54 = vpop.f32.mrb[124].mxu0 }
 0x1ee   :  { %2541 = vst [vmem:[%s4742_s3 + $0x58] sm:$0xff] %v2509_v29  ;;  %v2290_v4 = vadd.f32 %v3285_v54, %v4548_v58  ;;  %v3202_v11 = vpop.f32.mrb[125].mxu1  ;;  %v2281_v3 = vpop.f32.mrb[125].mxu0 }
 0x1ef   :  { %2539 = vst [vmem:[%s4742_s3 + $0x48] sm:$0xff] %v2507_v7  ;;  %v3203_v37 = vadd.f32 %v3202_v11, %v3201_v22  ;;  %v2282_v8 = vadd.f32 %v2281_v3, %v4536_v39  ;;  %v3204_v0 = vpop.f32.mrb[126].mxu1  ;;  %v3286_v15 = vpop.f32.mrb[126].mxu0 }
 0x1f0   :  { %v2480_v32 = vadd.f32 %v4559_v14, %v2290_v4  ;;  %v2293_v27 = vadd.f32 %v3286_v15, %v4554_v13  ;;  %v3205_v19 = vpop.f32.mrb[127].mxu1  ;;  %v2284_v38 = vpop.f32.mrb[127].mxu0 }
 0x1f1   :  { %v2478_v33 = vadd.f32 %v4559_v14, %v2282_v8  ;;  %v3206_v58 = vadd.f32 %v3205_v19, %v3204_v0  ;;  %v2285_v5 = vadd.f32 %v2284_v38, %v4542_v50  ;;  %v2161_v20 = vadd.f32 %v3203_v37, %v4497_v40 }
 0x1f2   :  { %v2512_v53 = vmax.f32 %v2480_v32, 0.0  ;;  %v2481_v46 = vadd.f32 %v4559_v14, %v2293_v27 }
 0x1f3   :  { %v2510_v43 = vmax.f32 %v2478_v33, 0.0  ;;  %v2479_v39 = vadd.f32 %v4559_v14, %v2285_v5  ;;  %v2164_v10 = vadd.f32 %v3206_v58, %v4503_v49 }
 0x1f4   :  { %2544 = vst [vmem:[%s4742_s3 + $0x70] sm:$0xff] %v2512_v53  ;;  %v2513_v13 = vmax.f32 %v2481_v46, 0.0 }
 0x1f5   :  { %2542 = vst [vmem:[%s4742_s3 + $0x60] sm:$0xff] %v2510_v43  ;;  %v2511_v50 = vmax.f32 %v2479_v39, 0.0  ;;  %v3207_v21 = vpop.f32.mrb[128].mxu1  ;;  %v3289_v40 = vpop.f32.mrb[128].mxu0 }
 0x1f6   :  { %2545 = vst [vmem:[%s4742_s3 + $0x78] sm:$0xff] %v2513_v13  ;;  %v2306_v44 = vadd.f32 %v3289_v40, %v4594_v9  ;;  %v3208_v45 = vpop.f32.mrb[129].mxu1  ;;  %v2297_v49 = vpop.f32.mrb[129].mxu0 }
 0x1f7   :  { %2543 = vst [vmem:[%s4742_s3 + $0x68] sm:$0xff] %v2511_v50  ;;  %v3209_v18 = vadd.f32 %v3208_v45, %v3207_v21  ;;  %v2298_v16 = vadd.f32 %v2297_v49, %v4568_v30  ;;  %v3210_v35 = vpop.f32.mrb[130].mxu1  ;;  %v3290_v60 = vpop.f32.mrb[130].mxu0 }
 0x1f8   :  { %v2484_v41 = vadd.f32 %v4559_v14, %v2306_v44  ;;  %v2309_v47 = vadd.f32 %v3290_v60, %v4599_v56  ;;  %v3211_v2 = vpop.f32.mrb[131].mxu1  ;;  %v2300_v34 = vpop.f32.mrb[131].mxu0 }
 0x1f9   :  { %v2482_v57 = vadd.f32 %v4559_v14, %v2298_v16  ;;  %v3212_v9 = vadd.f32 %v3211_v2, %v3210_v35  ;;  %v2301_v48 = vadd.f32 %v2300_v34, %v4573_v59  ;;  %v2169_v1 = vadd.f32 %v3209_v18, %v4509_v63 }
 0x1fa   :  { %v2516_v52 = vmax.f32 %v2484_v41, 0.0  ;;  %v2485_v17 = vadd.f32 %v4559_v14, %v2309_v47 }
 0x1fb   :  { %v2514_v36 = vmax.f32 %v2482_v57, 0.0  ;;  %v2483_v30 = vadd.f32 %v4559_v14, %v2301_v48  ;;  %v2172_v31 = vadd.f32 %v3212_v9, %v4515_v62 }
 0x1fc   :  { %2548 = vst [vmem:[%s4742_s3 + $0x90] sm:$0xff] %v2516_v52  ;;  %v2517_v56 = vmax.f32 %v2485_v17, 0.0 }
 0x1fd   :  { %2546 = vst [vmem:[%s4742_s3 + $0x80] sm:$0xff] %v2514_v36  ;;  %v2515_v59 = vmax.f32 %v2483_v30, 0.0  ;;  %v3213_v12 = vpop.f32.mrb[132].mxu1  ;;  %v3293_v63 = vpop.f32.mrb[132].mxu0 }
 0x1fe   :  { %2549 = vst [vmem:[%s4742_s3 + $0x98] sm:$0xff] %v2517_v56  ;;  %v2322_v55 = vadd.f32 %v3293_v63, %v2161_v20  ;;  %v3214_v61 = vpop.f32.mrb[133].mxu1  ;;  %v2313_v29 = vpop.f32.mrb[133].mxu0 }
 0x1ff   :  { %2547 = vst [vmem:[%s4742_s3 + $0x88] sm:$0xff] %v2515_v59  ;;  %v3215_v62 = vadd.f32 %v3214_v61, %v3213_v12  ;;  %v2314_v7 = vadd.f32 %v2313_v29, %v4620_v28  ;;  %v3216_v22 = vpop.f32.mrb[134].mxu1  ;;  %v3294_v54 = vpop.f32.mrb[134].mxu0 }
 0x200   :  { %v2488_v4 = vadd.f32 %v4559_v14, %v2322_v55  ;;  %v2325_v11 = vadd.f32 %v3294_v54, %v2164_v10  ;;  %v3217_v3 = vpop.f32.mrb[135].mxu1  ;;  %v2316_v37 = vpop.f32.mrb[135].mxu0 }
 0x201   :  { %v2486_v8 = vadd.f32 %v4559_v14, %v2314_v7  ;;  %v3218_v0 = vadd.f32 %v3217_v3, %v3216_v22  ;;  %v2317_v15 = vadd.f32 %v2316_v37, %v4625_v23  ;;  %v2177_v32 = vadd.f32 %v3215_v62, %v4521_v25 }
 0x202   :  { %v2520_v27 = vmax.f32 %v2488_v4, 0.0  ;;  %v2489_v19 = vadd.f32 %v4559_v14, %v2325_v11 }
 0x203   :  { %v2518_v38 = vmax.f32 %v2486_v8, 0.0  ;;  %v2487_v28 = vadd.f32 %v4559_v14, %v2317_v15  ;;  %v2180_v33 = vadd.f32 %v3218_v0, %v4527_v42 }
 0x204   :  { %2552 = vst [vmem:[%s4742_s3 + $0xb0] sm:$0xff] %v2520_v27  ;;  %v2521_v58 = vmax.f32 %v2489_v19, 0.0 }
 0x205   :  { %2550 = vst [vmem:[%s4742_s3 + $0xa0] sm:$0xff] %v2518_v38  ;;  %v2519_v23 = vmax.f32 %v2487_v28, 0.0  ;;  %v3219_v5 = vpop.f32.mrb[136].mxu1  ;;  %v3297_v25 = vpop.f32.mrb[136].mxu0 }
 0x206   :  { %2553 = vst [vmem:[%s4742_s3 + $0xb8] sm:$0xff] %v2521_v58  ;;  %v2338_v20 = vadd.f32 %v3297_v25, %v2177_v32  ;;  %v3220_v53 = vpop.f32.mrb[137].mxu1  ;;  %v2329_v46 = vpop.f32.mrb[137].mxu0 }
 0x207   :  { %2551 = vst [vmem:[%s4742_s3 + $0xa8] sm:$0xff] %v2519_v23  ;;  %v3221_v42 = vadd.f32 %v3220_v53, %v3219_v5  ;;  %v2330_v43 = vadd.f32 %v2329_v46, %v2169_v1  ;;  %v3222_v39 = vpop.f32.mrb[138].mxu1  ;;  %v3298_v10 = vpop.f32.mrb[138].mxu0 }
 0x208   :  { %v2492_v13 = vadd.f32 %v4559_v14, %v2338_v20  ;;  %v2341_v50 = vadd.f32 %v3298_v10, %v2180_v33  ;;  %v3223_v21 = vpop.f32.mrb[139].mxu1  ;;  %v2332_v40 = vpop.f32.mrb[139].mxu0 }
 0x209   :  { %v2490_v44 = vadd.f32 %v4559_v14, %v2330_v43  ;;  %v3224_v45 = vadd.f32 %v3223_v21, %v3222_v39  ;;  %v2333_v49 = vadd.f32 %v2332_v40, %v2172_v31  ;;  %v2185_v18 = vadd.f32 %v3221_v42, %v4533_v51 }
 0x20a   :  { %v2524_v16 = vmax.f32 %v2492_v13, 0.0  ;;  %v2493_v35 = vadd.f32 %v4559_v14, %v2341_v50 }
 0x20b   :  { %v2522_v60 = vmax.f32 %v2490_v44, 0.0  ;;  %v2491_v41 = vadd.f32 %v4559_v14, %v2333_v49  ;;  %v2188_v47 = vadd.f32 %v3224_v45, %v4539_v6 }
 0x20c   :  { %2556 = vst [vmem:[%s4742_s3 + $0xd0] sm:$0xff] %v2524_v16  ;;  %v2525_v2 = vmax.f32 %v2493_v35, 0.0 }
 0x20d   :  { %2554 = vst [vmem:[%s4742_s3 + $0xc0] sm:$0xff] %v2522_v60  ;;  %v2523_v34 = vmax.f32 %v2491_v41, 0.0  ;;  %v3225_v57 = vpop.f32.mrb[140].mxu1  ;;  %v3301_v51 = vpop.f32.mrb[140].mxu0 }
 0x20e   :  { %2557 = vst [vmem:[%s4742_s3 + $0xd8] sm:$0xff] %v2525_v2  ;;  %v3226_v9 = vpop.f32.mrb[141].mxu1  ;;  %v2345_v48 = vpop.f32.mrb[141].mxu0 }
 0x20f   :  { %2555 = vst [vmem:[%s4742_s3 + $0xc8] sm:$0xff] %v2523_v34  ;;  %v3227_v6 = vadd.f32 %v3226_v9, %v3225_v57  ;;  %v2346_v1 = vadd.f32 %v2345_v48, %v2185_v18  ;;  %v3228_v52 = vpop.f32.mrb[142].mxu1  ;;  %v3302_v17 = vpop.f32.mrb[142].mxu0 }
 0x210   :  { %v3229_v36 = vpop.f32.mrb[143].mxu1  ;;  %v2348_v30 = vpop.f32.mrb[143].mxu0 }
 0x211   :  { %v2193_v31 = vadd.f32 %v3227_v6, %v4545_v26  ;;  %v2494_v56 = vadd.f32 %v4559_v14, %v2346_v1  ;;  %v3230_v59 = vadd.f32 %v3229_v36, %v3228_v52  ;;  %v2349_v12 = vadd.f32 %v2348_v30, %v2188_v47 }
 0x213   :  { %v2354_v63 = vadd.f32 %v3301_v51, %v2193_v31  ;;  %v2526_v55 = vmax.f32 %v2494_v56, 0.0  ;;  %v2196_v61 = vadd.f32 %v3230_v59, %v4551_v24  ;;  %v2495_v29 = vadd.f32 %v4559_v14, %v2349_v12 }
 0x215   :  { %v2496_v62 = vadd.f32 %v4559_v14, %v2354_v63  ;;  %2558 = vst [vmem:[%s4742_s3 + $0xe0] sm:$0xff] %v2526_v55  ;;  %v2357_v7 = vadd.f32 %v3302_v17, %v2196_v61  ;;  %v2527_v22 = vmax.f32 %v2495_v29, 0.0 }
 0x217   :  { %v2528_v54 = vmax.f32 %v2496_v62, 0.0  ;;  %v2497_v26 = vadd.f32 %v4559_v14, %v2357_v7  ;;  %2559 = vst [vmem:[%s4742_s3 + $0xe8] sm:$0xff] %v2527_v22 }
 0x219   :  { %2560 = vst [vmem:[%s4742_s3 + $0xf0] sm:$0xff] %v2528_v54  ;;  %v2529_v24 = vmax.f32 %v2497_v26, 0.0 }
 0x21b   :  { %2561 = vst [vmem:[%s4742_s3 + $0xf8] sm:$0xff] %v2529_v24 }

// kernel: dsamnet_forward.20
= control target key start
LH: loop header
LB: loop body
LE: loop exit
PB: predicated region body
PF: predicated region fallthrough
CT: control target
= control target key end

     0   :  { %s1742_s18 = smov 0   ;;  %s2236_s0 = inlined_call_operand.vmem [shape: f32[4,64,64], index: 0, kind: input, shape index: {}]   ;;  %s2237_s1 = inlined_call_operand.vmem [shape: f32[2,64,8], index: 1, kind: input, shape index: {}]   ;;  %s2238_s2 = inlined_call_operand.vmem [shape: f32[2,8,64], index: 2, kind: input, shape index: {}]   ;;  %s2239_s3 = inlined_call_operand.vmem [shape: f32[2,64,64], index: 3, kind: input, shape index: {}]   ;;  %s2240_s4 = inlined_call_operand.vmem [shape: f32[2,64,64], index: 4, kind: input, shape index: {}]   ;;  %s2241_s5 = inlined_call_operand.vmem [shape: f32[4,64,64], index: 5, kind: output, shape index: {}]  }
   0x1 LB: > { %s1470_s19 = sadd.s32 4294967295, %s1706_s18   ;;  %p1474_p0 = scmp.ge.s32.totalorder %s1706_s18, 1  ;;  %s1706_s18 = sphi %s1742_s18, %s15_s18  }
   0x2   : > { %p228_p1 = scmp.lt.s32.totalorder %s1706_s18, 3 }
   0x4   : > { %p229_p2 = pnand %p1474_p0, %p228_p1 }
   0x5   : > { %p284_p3 = scmp.lt.s32.totalorder (!%p229_p2), %s1470_s19, 1  ;;  %s1475_s20 = sshll.u32 (!%p229_p2), %s1470_s19, 1  ;;  %v1708_v0 = vmov (!%p229_p2), 0.0|0.0   ;;  %vm1709_vm0 = vmmov (!%p229_p2), 0   ;;  %v1710_v1 = vmov (!%p229_p2), 0.0   ;;  %vm335_vm1 = vcmask (!%p229_p2), 523264  }
   0x6   : > { %232 = sbr.rel (%p229_p2) target bundleno = 1129 (0x469), region = 40  ;;  %1629 = vmatprep.subr.bf16.mxu0 (!%p229_p2), %v1708_v0  ;;  %1559 = vmatprep.mubr.msk.f32.mxu0 (!%p229_p2), %vm1709_vm0, %v1710_v1  ;;  %p278_p4 = scmp.lt.s32.totalorder (!%p229_p2), %s1475_s20, 3  ;;  %vm425_vm2 = vcmask (!%p229_p2), 1041409   ;;  %vm576_vm3 = vcmask (!%p229_p2), 64512   ;;  %vm933_vm4 = vcmask (!%p229_p2), 130112   ;;  %vm940_vm5 = vcmask (!%p229_p2), 195712  }
   0x7   : > { %1581 = vmatprep.subr.mxu1 (!%p229_p2), %v1710_v1  ;;  %1583 = vmatprep.mubr.msk.f32.mxu1 (!%p229_p2), %vm1709_vm0, %v1710_v1  ;;  %vm947_vm6 = vcmask (!%p229_p2), 261312   ;;  %vm954_vm7 = vcmask (!%p229_p2), 326912   ;;  %vm961_vm8 = vcmask (!%p229_p2), 392512   ;;  %vm968_vm9 = vcmask (!%p229_p2), 458112  }
   0x8   : > { %vm975_vm10 = vcmask (!%p229_p2), 523712  }
   0xd   : > { %s2243_s19 = smov (!%p284_p3, %s1470_s19), 1  ;;  %s2245_s20 = smov (!%p278_p4, %s1475_s20), 3 }
   0xe   : > { %s1761_s21 = sshll.u32 %s2243_s19, 6  ;;  %s1498_s25 = sshll.u32 %s2245_s20, 6 }
   0xf   : > { %s288_s24 = scalar_lea.vmem %s2237_s1, %s1761_s21  ;;  %s1775_s28 = scalar_lea.vmem %s2236_s0, %s1498_s25 }
  0x10   : > { %v326_v2 = vld [vmem:[%s288_s24] sm:$0xff]  ;;  %v327_v3 = vld [vmem:[%s288_s24 + $0x8] sm:$0xff]  ;;  %v328_v4 = vld [vmem:[%s288_s24 + $0x10] sm:$0xff]  ;;  %s1480_s29 = sshll.u32 %s2243_s19, 3  ;;  %s2023_s10 = scalar_lea.vmem %s2240_s4, %s1761_s21 }
  0x11   : > { %v1768_v5 = vpack.c.bf16 %v327_v3, %v326_v2  ;;  %v329_v6 = vld [vmem:[%s288_s24 + $0x18] sm:$0xff]  ;;  %v330_v7 = vld [vmem:[%s288_s24 + $0x20] sm:$0xff]  ;;  %v331_v8 = vld [vmem:[%s288_s24 + $0x28] sm:$0xff]  ;;  %s292_s7 = scalar_lea.vmem %s2238_s2, %s1480_s29  ;;  %s2104_s13 = scalar_lea.vmem %s2239_s3, %s1761_s21 }
  0x12   : > { %v332_v9 = vld [vmem:[%s288_s24 + $0x30] sm:$0xff]  ;;  %v333_v10 = vld [vmem:[%s288_s24 + $0x38] sm:$0xff]  ;;  %v1778_v11 = vld [vmem:[%s1775_s28] sm:$0xff]  ;;  %v1781_v12 = vpack.c.bf16 %v329_v6, %v328_v4  ;;  %v1795_v17 = vpack.c.bf16 %v331_v8, %v330_v7  ;;  %s2183_s16 = scalar_lea.vmem %s2241_s5, %s1498_s25 }
  0x13   : > { %1631 = vmatpush3.bf16.msra.mxu0 %v1768_v5  ;;  %v1784_v13 = vld [vmem:[%s1775_s28 + $0x8] sm:$0xff]  ;;  %v1787_v14 = vld [vmem:[%s1775_s28 + $0x10] sm:$0xff]  ;;  %v1790_v15 = vld [vmem:[%s1775_s28 + $0x18] sm:$0xff]  ;;  %v336_v16 = vsel %vm335_vm1, %v1778_v11, 0.0  ;;  %v381_v23 = vsel %vm335_vm1, %v1778_v11, -inf  ;;  %v1827_v31 = vpack.c.bf16 %v333_v10, %v332_v9 }
  0x14   : > { %1632 = vmatprep.subr.bf16.mxu0 %v1708_v0  ;;  %v1798_v18 = vld [vmem:[%s1775_s28 + $0x20] sm:$0xff]  ;;  %v1801_v19 = vld [vmem:[%s1775_s28 + $0x28] sm:$0xff]  ;;  %v1804_v20 = vld [vmem:[%s1775_s28 + $0x30] sm:$0xff]  ;;  %v337_v21 = vsel %vm335_vm1, %v1784_v13, 0.0  ;;  %v339_v22 = vsel %vm335_vm1, %v1787_v14, 0.0  ;;  %v341_v28 = vsel %vm335_vm1, %v1790_v15, 0.0 }
  0x15   : > { %v1813_v24 = vld [vmem:[%s1775_s28 + $0x38] sm:$0xff]  ;;  %v1816_v25 = vld [vmem:[%s1775_s28 + $0x40] sm:$0xff]  ;;  %v1819_v26 = vld [vmem:[%s1775_s28 + $0x48] sm:$0xff]  ;;  %v338_v27 = vadd.f32 %v337_v21, %v336_v16  ;;  %v343_v29 = vsel %vm335_vm1, %v1798_v18, 0.0  ;;  %v345_v30 = vsel %vm335_vm1, %v1801_v19, 0.0  ;;  %v347_v35 = vsel %vm335_vm1, %v1804_v20, 0.0 }
  0x16   : > { %v1830_v32 = vld [vmem:[%s1775_s28 + $0x50] sm:$0xff]  ;;  %v1833_v33 = vld [vmem:[%s1775_s28 + $0x58] sm:$0xff]  ;;  %v1836_v34 = vld [vmem:[%s1775_s28 + $0x60] sm:$0xff]  ;;  %v357_v36 = vsel %vm335_vm1, %v1816_v25, 0.0  ;;  %v358_v37 = vsel %vm335_vm1, %v1819_v26, 0.0  ;;  %v349_v41 = vsel %vm335_vm1, %v1813_v24, 0.0 }
  0x17   : > { %1634 = vmatpush3.bf16.msra.mxu0 %v1781_v12  ;;  %v1846_v38 = vld [vmem:[%s1775_s28 + $0x68] sm:$0xff]  ;;  %v1849_v39 = vld [vmem:[%s1775_s28 + $0x70] sm:$0xff]  ;;  %v340_v40 = vadd.f32 %v339_v22, %v338_v27  ;;  %v359_v42 = vadd.f32 %v358_v37, %v357_v36  ;;  %v360_v43 = vsel %vm335_vm1, %v1830_v32, 0.0  ;;  %v1857_v44 = vld [vmem:[%s1775_s28 + $0x78] sm:$0xff]  ;;  %v362_v45 = vsel %vm335_vm1, %v1833_v33, 0.0 }
  0x18   : > { %1635 = vmatprep.subr.bf16.mxu0 %v1708_v0  ;;  %v364_v46 = vsel %vm335_vm1, %v1836_v34, 0.0  ;;  %v366_v47 = vsel %vm335_vm1, %v1846_v38, 0.0  ;;  %v368_v48 = vsel %vm335_vm1, %v1849_v39, 0.0  ;;  %v382_v51 = vsel %vm335_vm1, %v1784_v13, -inf }
  0x19   : > { %v342_v49 = vadd.f32 %v341_v28, %v340_v40  ;;  %v361_v50 = vadd.f32 %v360_v43, %v359_v42  ;;  %v383_v52 = vsel %vm335_vm1, %v1787_v14, -inf  ;;  %v385_v54 = vsel %vm335_vm1, %v1790_v15, -inf }
  0x1a   : > { %v384_v53 = vmax.f32 %v381_v23, %v383_v52  ;;  %v387_v55 = vsel %vm335_vm1, %v1798_v18, -inf  ;;  %v389_v56 = vsel %vm335_vm1, %v1801_v19, -inf  ;;  %v370_v59 = vsel %vm335_vm1, %v1857_v44, 0.0 }
  0x1b   : > { %1637 = vmatpush3.bf16.msra.mxu0 %v1795_v17  ;;  %v344_v57 = vadd.f32 %v343_v29, %v342_v49  ;;  %v363_v58 = vadd.f32 %v362_v45, %v361_v50  ;;  %v386_v60 = vmax.f32 %v382_v51, %v385_v54  ;;  %v391_v62 = vsel %vm335_vm1, %v1804_v20, -inf }
  0x1c   : > { %1638 = vmatprep.subr.bf16.mxu0 %v1708_v0  ;;  %v388_v61 = vmax.f32 %v384_v53, %v387_v55  ;;  %v402_v63 = vsel %vm335_vm1, %v1816_v25, -inf  ;;  %v403_v2 = vsel %vm335_vm1, %v1819_v26, -inf  ;;  %v404_v7 = vsel %vm335_vm1, %v1830_v32, -inf }
  0x1d   : > { %v346_v3 = vadd.f32 %v345_v30, %v344_v57  ;;  %v365_v4 = vadd.f32 %v364_v46, %v363_v58  ;;  %v390_v6 = vmax.f32 %v386_v60, %v389_v56  ;;  %v393_v8 = vsel %vm335_vm1, %v1813_v24, -inf }
  0x1e   : > { %v405_v9 = vmax.f32 %v402_v63, %v404_v7  ;;  %v406_v10 = vsel %vm335_vm1, %v1833_v33, -inf  ;;  %v408_v16 = vsel %vm335_vm1, %v1836_v34, -inf  ;;  %v392_v23 = vmax.f32 %v388_v61, %v391_v62 }
  0x1f   : > { %1640 = vmatpush3.bf16.msra.mxu0 %v1827_v31  ;;  %v348_v21 = vadd.f32 %v347_v35, %v346_v3  ;;  %v367_v22 = vadd.f32 %v366_v47, %v365_v4  ;;  %v407_v27 = vmax.f32 %v403_v2, %v406_v10  ;;  %v410_v29 = vsel %vm335_vm1, %v1846_v38, -inf }
  0x20   : > { %1641 = vmatprep.subr.bf16.mxu0 %v1708_v0  ;;  %v409_v28 = vmax.f32 %v405_v9, %v408_v16  ;;  %v412_v30 = vsel %vm335_vm1, %v1849_v39, -inf  ;;  %v414_v36 = vsel %vm335_vm1, %v1857_v44, -inf  ;;  %v394_v42 = vmax.f32 %v390_v6, %v393_v8 }
  0x21   : > { %v350_v37 = vadd.f32 %v349_v41, %v348_v21  ;;  %v369_v40 = vadd.f32 %v368_v48, %v367_v22  ;;  %v411_v43 = vmax.f32 %v407_v27, %v410_v29 }
  0x22   : > { %v413_v35 = vmax.f32 %v409_v28, %v412_v30  ;;  %v395_v51 = vmax.f32 %v392_v23, %v394_v42 }
  0x23   : > { %v351_v45 = vrot.slane %v350_v37, 4  ;;  %v371_v46 = vadd.f32 %v370_v59, %v369_v40  ;;  %v415_v47 = vmax.f32 %v411_v43, %v414_v36 }
  0x24   : > { %v396_v57 = vrot.slane %v395_v51, 4 }
  0x25   : > { %v352_v49 = vadd.f32 %v351_v45, %v350_v37  ;;  %v372_v50 = vrot.slane %v371_v46, 4  ;;  %v416_v52 = vmax.f32 %v413_v35, %v415_v47 }
  0x26   : > { %v397_v62 = vmax.f32 %v395_v51, %v396_v57 }
  0x27   : > { %v353_v53 = vrot.slane %v352_v49, 2  ;;  %v373_v54 = vadd.f32 %v372_v50, %v371_v46  ;;  %v417_v58 = vrot.slane %v416_v52, 4  ;;  %v1711_v46 = vmov 1966171168  }
  0x28   : > { %v398_v4 = vrot.slane %v397_v62, 2  ;;  %v731_v47 = vunpack.c.l.s4 %v1711_v46 }
  0x29   : > { %v354_v55 = vadd.f32 %v353_v53, %v352_v49  ;;  %v374_v56 = vrot.slane %v373_v54, 2  ;;  %v418_v63 = vmax.f32 %v416_v52, %v417_v58  ;;  %v733_v49 = vlaneseq }
  0x2a   : > { %v399_v8 = vmax.f32 %v397_v62, %v398_v4  ;;  %v732_v50 = vunpack.c.0.s8 %v731_v47 }
  0x2b   : > { %v355_v60 = vrot.slane %v354_v55, 1  ;;  %v375_v61 = vadd.f32 %v374_v56, %v373_v54  ;;  %v419_v6 = vrot.slane %v418_v63, 2  ;;  %v1927_v51 = vshrl.u32 %v733_v49, 7 }
  0x2c   : > { %v400_v10 = vrot.slane %v399_v8, 1 }
  0x2d   : > { %v356_v41 = vadd.f32 %v355_v60, %v354_v55  ;;  %v376_v48 = vrot.slane %v375_v61, 1  ;;  %v420_v9 = vmax.f32 %v418_v63, %v419_v6  ;;  %v735_v52 = vsub.s32 %v732_v50, %v1927_v51 }
  0x2e   : > { %v401_v21 = vmax.f32 %v399_v8, %v400_v10  ;;  %v1931_v55 = vsub.s32 0, %v1927_v51 }
  0x2f   : > { %v377_v2 = vadd.f32 %v376_v48, %v375_v61  ;;  %v379_v3 = vmul.f32 0.015625, %v356_v41  ;;  %v421_v16 = vrot.slane %v420_v9, 1 }
  0x31   : > { %v380_v59 = vmul.f32 0.015625, %v377_v2  ;;  %v422_v22 = vmax.f32 %v420_v9, %v421_v16 }
  0x33   : > { %v426_v7 = vsel %vm425_vm2, %v380_v59, %v379_v3 }
  0x34   : > { %1560 = vmatmul.mubr.msk.f32.vlgmr.msra.gmra.mrb[0].mxu0 %vm335_vm1, %v426_v7 }
  0x35   : > { %1643 = vmatpush3.bf16.msra.mxu0 %v1768_v5  ;;  %1578 = vmatprep.mubr.msk.f32.mxu0 %vm1709_vm0, %v1710_v1  ;;  %v502_v5 = vsel %vm425_vm2, %v422_v22, %v401_v21 }
  0x36   : > { %1644 = vmatprep.subr.bf16.mxu0 %v1708_v0 }
  0x39   : > { %1646 = vmatpush3.bf16.msra.mxu0 %v1781_v12  ;;  %v334_v12 = vld [vmem:[%s292_s7] sm:$0xff] }
  0x3a   : > { %1647 = vmatprep.subr.bf16.mxu0 %v1708_v0  ;;  %1582 = vmatpush3.msra.mxu1 %v334_v12 }
  0x3b   : > { %1653 = vmatprep.subr.bf16.mxu1 %v1708_v0 }
  0x3d   : > { %1649 = vmatpush3.bf16.msra.mxu0 %v1795_v17 }
  0x3e   : > { %1650 = vmatprep.subr.bf16.mxu0 %v1708_v0 }
  0x41   : > { %1652 = vmatpush3.bf16.msra.mxu0 %v1827_v31 }
  0x42   : > { %1586 = vmatprep.subr.mxu0 %v1710_v1 }
  0x44   : > { %1579 = vmatmul.mubr.msk.f32.vlgmr.msra.gmra.mrb[2].mxu0 %vm335_vm1, %v502_v5 }
  0x45   : > { %1588 = vmatprep.mubr.msk.f32.mxu0 %vm1709_vm0, %v1710_v1  ;;  %1587 = vmatpush3.msra.mxu0 %v334_v12 }
 0x107   : > { %v495_v17 = vpop.f32.mrb[0].mxu0 }
 0x108   : > { %v499_v31 = vmax.f32 %v495_v17, 0.0  ;;  %v1561_v23 = vpop.f32.mrb[1].mxu0 }
 0x109   : > { %v898_v23 = vld [vmem:[%s2023_s10] sm:$0xff] }
 0x10a   : > { %1589 = vmatmul.mubr.msk.f32.vlgmr.msra.gmra.mrb[4].mxu0 %vm576_vm3, %v499_v31 }
 0x117   : > { %v571_v27 = vpop.f32.mrb[2].mxu0 }
 0x118   : > { %v575_v28 = vmax.f32 %v571_v27, 0.0  ;;  %v1580_v29 = vpop.f32.mrb[3].mxu0  ;;  %v899_v27 = vld [vmem:[%s2023_s10 + $0x8] sm:$0xff] }
 0x11a   : > { %1584 = vmatmul.mubr.msk.f32.vlgmr.msra.gmra.mrb[0].mxu1 %vm576_vm3, %v575_v28  ;;  %v1654_v28 = vpack.c.bf16 %v899_v27, %v898_v23 }
 0x11b   : > { %1607 = vmatprep.mubr.msk.f32.mxu1 %vm1709_vm0, %v1710_v1 }
 0x11c   : > { %1655 = vmatpush3.bf16.msra.mxu1 %v1654_v28 }
 0x11d   : > { %1656 = vmatprep.subr.bf16.mxu1 %v1708_v0 }
 0x1dd   : > { %v719_v30 = vpop.f32.mrb[4].mxu0 }
 0x1de   : > { %v1590_v36 = vpop.f32.mrb[5].mxu0 }
 0x1df   : > { %v900_v36 = vld [vmem:[%s2023_s10 + $0x10] sm:$0xff] }
 0x1ed   : > { %v646_v37 = vpop.f32.mrb[0].mxu1 }
 0x1ee   : > { %v720_v40 = vadd.f32 %v719_v30, %v646_v37  ;;  %v1585_v42 = vpop.f32.mrb[1].mxu1  ;;  %v901_v37 = vld [vmem:[%s2023_s10 + $0x18] sm:$0xff] }
 0x1f0   : > { %v1492_v43 = vmul.f32 -1.442695, %v720_v40  ;;  %v1657_v40 = vpack.c.bf16 %v901_v37, %v900_v36 }
 0x1f2   : > { %1692 = vpow2.f32 %v1492_v43  ;;  %1658 = vmatpush3.bf16.msra.mxu1 %v1657_v40 }
 0x1f3   : > { %1659 = vmatprep.subr.bf16.mxu1 %v1708_v0 }
 0x1fc   : > { %v1693_v35 = vpop.eup %1692 }
 0x1fd   : > { %v726_v45 = vadd.f32 1.0, %v1693_v35  ;;  %v902_v35 = vld [vmem:[%s2023_s10 + $0x20] sm:$0xff] }
 0x1ff   : > { %1694 = vrcp.f32 %v726_v45  ;;  %v903_v45 = vld [vmem:[%s2023_s10 + $0x28] sm:$0xff] }
 0x200   : > { %v1660_v46 = vpack.c.bf16 %v903_v45, %v902_v35 }
 0x202   : > { %1661 = vmatpush3.bf16.msra.mxu1 %v1660_v46 }
 0x203   : > { %1662 = vmatprep.subr.bf16.mxu1 %v1708_v0 }
 0x209   : > { %v1695_v53 = vpop.eup %1694 }
 0x20a   : > { %v736_v54 = vrot.slane %v1695_v53, %v735_v52  ;;  %v905_v53 = vld [vmem:[%s2023_s10 + $0x38] sm:$0xff] }
 0x20c   : > { %v737_v56 = vcombine.high %v736_v54, %v736_v54  ;;  %v744_v57 = vrot.slane %v736_v54, %v735_v52 }
 0x20e   : > { %v751_v58 = vrot.slane %v737_v56, %v735_v52  ;;  %v755_v60 = vrot.slane %v744_v57, %v1931_v55  ;;  %v904_v52 = vld [vmem:[%s2023_s10 + $0x30] sm:$0xff] }
 0x20f   : > { %v1663_v57 = vpack.c.bf16 %v905_v53, %v904_v52 }
 0x210   : > { %v759_v61 = vrot.slane %v751_v58, %v1931_v55  ;;  %v1936_v41 = vmul.f32 %v755_v60, %v1784_v13  ;;  %v1939_v48 = vmul.f32 %v755_v60, %v1778_v11  ;;  %v1953_v11 = vmul.f32 %v755_v60, %v1787_v14 }
 0x211   : > { %v1963_v6 = vmul.f32 %v755_v60, %v1790_v15  ;;  %v1973_v8 = vmul.f32 %v755_v60, %v1798_v18  ;;  %v1983_v10 = vmul.f32 %v755_v60, %v1801_v19  ;;  %v1993_v21 = vmul.f32 %v755_v60, %v1804_v20  ;;  %1664 = vmatpush3.bf16.msra.mxu1 %v1663_v57 }
 0x212   : > { %v781_v62 = vsel %vm335_vm1, %v1936_v41, 0.0  ;;  %v842_v63 = vsel %vm335_vm1, %v1939_v48, -inf  ;;  %v1946_v2 = vmul.f32 %v759_v61, %v1816_v25  ;;  %v845_v3 = vsel %vm335_vm1, %v1936_v41, -inf  ;;  %1665 = vmatprep.subr.bf16.mxu1 %v1708_v0 }
 0x213   : > { %782 = vadd.xlane.f32.xlu1 %v781_v62  ;;  %843 = vmax.xlane.f32.xlu0 %v842_v63  ;;  %v1956_v59 = vmul.f32 %v759_v61, %v1819_v26  ;;  %v848_v25 = vsel %vm335_vm1, %v1953_v11, -inf  ;;  %v1966_v7 = vmul.f32 %v759_v61, %v1830_v32  ;;  %v851_v14 = vsel %vm335_vm1, %v1963_v6, -inf }
 0x214   : > { %v866_v13 = vsel %vm335_vm1, %v1946_v2, -inf  ;;  %v1976_v9 = vmul.f32 %v759_v61, %v1833_v33  ;;  %v854_v15 = vsel %vm335_vm1, %v1973_v8, -inf  ;;  %v1986_v16 = vmul.f32 %v759_v61, %v1836_v34 }
 0x215   : > { %v869_v4 = vsel %vm335_vm1, %v1956_v59, -inf  ;;  %v872_v26 = vsel %vm335_vm1, %v1966_v7, -inf  ;;  %v857_v18 = vsel %vm335_vm1, %v1983_v10, -inf  ;;  %v1996_v22 = vmul.f32 %v759_v61, %v1846_v38 }
 0x216   : > { %v875_v32 = vsel %vm335_vm1, %v1976_v9, -inf  ;;  %v878_v33 = vsel %vm335_vm1, %v1986_v16, -inf  ;;  %v860_v19 = vsel %vm335_vm1, %v1993_v21, -inf  ;;  %v2003_v5 = vmul.f32 %v755_v60, %v1813_v24 }
 0x217   : > { %846 = vmax.xlane.f32.xlu0 %v845_v3  ;;  %867 = vmax.xlane.f32.xlu1 %v866_v13  ;;  %v881_v34 = vsel %vm335_vm1, %v1996_v22, -inf  ;;  %v2006_v12 = vmul.f32 %v759_v61, %v1849_v39  ;;  %v2013_v17 = vmul.f32 %v759_v61, %v1857_v44  ;;  %v778_v24 = vsel %vm335_vm1, %v1939_v48, 0.0 }
 0x218   : > { %v863_v20 = vsel %vm335_vm1, %v2003_v5, -inf  ;;  %v784_v44 = vsel %vm335_vm1, %v1953_v11, 0.0  ;;  %v805_v31 = vsel %vm335_vm1, %v1956_v59, 0.0  ;;  %v787_v29 = vsel %vm335_vm1, %v1963_v6, 0.0 }
 0x219   : > { %v884_v38 = vsel %vm335_vm1, %v2006_v12, -inf  ;;  %v887_v39 = vsel %vm335_vm1, %v2013_v17, -inf  ;;  %v808_v30 = vsel %vm335_vm1, %v1966_v7, 0.0  ;;  %v790_v42 = vsel %vm335_vm1, %v1973_v8, 0.0 }
 0x21a   : > { %v811_v43 = vsel %vm335_vm1, %v1976_v9, 0.0  ;;  %v793_v47 = vsel %vm335_vm1, %v1983_v10, 0.0  ;;  %v814_v50 = vsel %vm335_vm1, %v1986_v16, 0.0  ;;  %v817_v54 = vsel %vm335_vm1, %v1996_v22, 0.0 }
 0x21b   : > { %849 = vmax.xlane.f32.xlu0 %v848_v25  ;;  %870 = vmax.xlane.f32.xlu1 %v869_v4  ;;  %v802_v56 = vsel %vm335_vm1, %v1946_v2, 0.0  ;;  %v820_v58 = vsel %vm335_vm1, %v2006_v12, 0.0  ;;  %v796_v60 = vsel %vm335_vm1, %v1993_v21, 0.0  ;;  %v823_v61 = vsel %vm335_vm1, %v2013_v17, 0.0 }
 0x21c   : > { %v799_v62 = vsel %vm335_vm1, %v2003_v5, 0.0 }
 0x21f   : > { %852 = vmax.xlane.f32.xlu0 %v851_v14  ;;  %873 = vmax.xlane.f32.xlu1 %v872_v26 }
 0x223   : > { %855 = vmax.xlane.f32.xlu0 %v854_v15  ;;  %876 = vmax.xlane.f32.xlu1 %v875_v32  ;;  %v923_v32 = vand.u32 127, %v733_v49 }
 0x225   : > { %v963_v23 = vadd.s32 4294967248, %v923_v32  ;;  %v970_v27 = vadd.s32 4294967240, %v923_v32 }
 0x227   : > { %858 = vmax.xlane.f32.xlu0 %v857_v18  ;;  %879 = vmax.xlane.f32.xlu1 %v878_v33  ;;  %v2091_v46 = vsub.s32 %v963_v23, %v1927_v51 }
 0x22b   : > { %861 = vmax.xlane.f32.xlu0 %v860_v19  ;;  %882 = vmax.xlane.f32.xlu1 %v881_v34  ;;  %v935_v19 = vadd.s32 4294967280, %v923_v32  ;;  %v928_v34 = vadd.s32 4294967288, %v923_v32 }
 0x22d   : > { %v2072_v28 = vsub.s32 %v928_v34, %v1927_v51 }
 0x22f   : > { %864 = vmax.xlane.f32.xlu0 %v863_v20  ;;  %885 = vmax.xlane.f32.xlu1 %v884_v38  ;;  %v942_v20 = vadd.s32 4294967272, %v923_v32  ;;  %v949_v38 = vadd.s32 4294967264, %v923_v32 }
 0x231   : > { %v2078_v49 = vsub.s32 %v942_v20, %v1927_v51 }
 0x233   : > { %779 = vadd.xlane.f32.xlu0 %v778_v24  ;;  %888 = vmax.xlane.f32.xlu1 %v887_v39 }
 0x237   : > { %785 = vadd.xlane.f32.xlu0 %v784_v44  ;;  %806 = vadd.xlane.f32.xlu1 %v805_v31  ;;  %v956_v44 = vadd.s32 4294967256, %v923_v32  ;;  %v2069_v31 = vsub.s32 %v935_v19, %v1927_v51  ;;  %v891_v19 = vld [vmem:[%s2104_s13 + $0x8] sm:$0xff] }
 0x23b   : > { %788 = vadd.xlane.f32.xlu0 %v787_v29  ;;  %809 = vadd.xlane.f32.xlu1 %v808_v30  ;;  %v2075_v29 = vsub.s32 %v923_v32, %v1927_v51  ;;  %v2081_v30 = vsub.s32 %v949_v38, %v1927_v51 }
 0x23f   : > { %791 = vadd.xlane.f32.xlu0 %v790_v42  ;;  %812 = vadd.xlane.f32.xlu1 %v811_v43  ;;  %v2086_v43 = vsub.s32 %v956_v44, %v1927_v51 }
 0x243   : > { %794 = vadd.xlane.f32.xlu0 %v793_v47  ;;  %815 = vadd.xlane.f32.xlu1 %v814_v50  ;;  %v2094_v47 = vsub.s32 %v970_v27, %v1927_v51 }
 0x247   : > { %818 = vadd.xlane.f32.xlu1 %v817_v54  ;;  %803 = vadd.xlane.f32.xlu0 %v802_v56 }
 0x24b   : > { %821 = vadd.xlane.f32.xlu1 %v820_v58  ;;  %797 = vadd.xlane.f32.xlu0 %v796_v60 }
 0x24f   : > { %824 = vadd.xlane.f32.xlu1 %v823_v61  ;;  %800 = vadd.xlane.f32.xlu0 %v799_v62 }
 0x2a0   : > { %v2065_v63 = vpop.xlane.xlu1 %782  ;;  %v844_v3 = vpop.xlane.xlu0 %843 }
 0x2a1   : > { %v927_v50 = vrot.slane %v844_v3, %v2075_v29 }
 0x2a4   : > { %v847_v13 = vpop.xlane.xlu0 %846  ;;  %v868_v25 = vpop.xlane.xlu1 %867 }
 0x2a5   : > { %v932_v40 = vrot.slane %v847_v13, %v2072_v28  ;;  %v980_v52 = vrot.slane %v868_v25, %v2075_v29 }
 0x2a7   : > { %v934_v61 = vsel %vm933_vm4, %v932_v40, %v927_v50 }
 0x2a8   : > { %v850_v4 = vpop.xlane.xlu0 %849  ;;  %v871_v14 = vpop.xlane.xlu1 %870 }
 0x2a9   : > { %v984_v42 = vrot.slane %v871_v14, %v2072_v28  ;;  %v939_v35 = vrot.slane %v850_v4, %v2069_v31 }
 0x2ab   : > { %v985_v62 = vsel %vm933_vm4, %v984_v42, %v980_v52  ;;  %v941_v25 = vsel %vm940_vm5, %v939_v35, %v934_v61  ;;  %v892_v35 = vld [vmem:[%s2104_s13 + $0x10] sm:$0xff] }
 0x2ac   : > { %v853_v26 = vpop.xlane.xlu0 %852  ;;  %v874_v15 = vpop.xlane.xlu1 %873 }
 0x2ad   : > { %v989_v45 = vrot.slane %v874_v15, %v2069_v31  ;;  %v946_v53 = vrot.slane %v853_v26, %v2078_v49 }
 0x2af   : > { %v990_v4 = vsel %vm940_vm5, %v989_v45, %v985_v62  ;;  %v948_v15 = vsel %vm947_vm6, %v946_v53, %v941_v25  ;;  %v893_v45 = vld [vmem:[%s2104_s13 + $0x18] sm:$0xff]  ;;  %v896_v62 = vld [vmem:[%s2104_s13 + $0x30] sm:$0xff] }
 0x2b0   : > { %v856_v18 = vpop.xlane.xlu0 %855  ;;  %v877_v33 = vpop.xlane.xlu1 %876 }
 0x2b1   : > { %v994_v54 = vrot.slane %v877_v33, %v2078_v49  ;;  %v953_v56 = vrot.slane %v856_v18, %v2081_v30  ;;  %v890_v33 = vld [vmem:[%s2104_s13] sm:$0xff] }
 0x2b3   : > { %v995_v32 = vsel %vm947_vm6, %v994_v54, %v990_v4  ;;  %v955_v34 = vsel %vm954_vm7, %v953_v56, %v948_v15  ;;  %v1669_v54 = vpack.c.bf16 %v893_v45, %v892_v35  ;;  %v894_v56 = vld [vmem:[%s2104_s13 + $0x20] sm:$0xff] }
 0x2b4   : > { %v859_v24 = vpop.xlane.xlu0 %858  ;;  %v880_v39 = vpop.xlane.xlu1 %879 }
 0x2b5   : > { %v999_v57 = vrot.slane %v880_v39, %v2081_v30  ;;  %v960_v3 = vrot.slane %v859_v24, %v2086_v43 }
 0x2b7   : > { %v1000_v20 = vsel %vm954_vm7, %v999_v57, %v995_v32  ;;  %v962_v39 = vsel %vm961_vm8, %v960_v3, %v955_v34  ;;  %v895_v57 = vld [vmem:[%s2104_s13 + $0x28] sm:$0xff]  ;;  %v897_v3 = vld [vmem:[%s2104_s13 + $0x38] sm:$0xff]  ;;  %v827_v32 = vmul.f32 0.015625, %v2065_v63 }
 0x2b8   : > { %v862_v36 = vpop.xlane.xlu0 %861  ;;  %v883_v37 = vpop.xlane.xlu1 %882  ;;  %v1672_v61 = vpack.c.bf16 %v895_v57, %v894_v56  ;;  %v1675_v4 = vpack.c.bf16 %v897_v3, %v896_v62 }
 0x2b9   : > { %v1004_v13 = vrot.slane %v883_v37, %v2086_v43  ;;  %v967_v14 = vrot.slane %v862_v36, %v2091_v46  ;;  %v1666_v37 = vpack.c.bf16 %v891_v19, %v890_v33 }
 0x2bb   : > { %v1005_v44 = vsel %vm961_vm8, %v1004_v13, %v1000_v20  ;;  %v969_v27 = vsel %vm968_vm9, %v967_v14, %v962_v39 }
 0x2bc   : > { %v865_v58 = vpop.xlane.xlu0 %864  ;;  %v886_v60 = vpop.xlane.xlu1 %885 }
 0x2bd   : > { %v1009_v26 = vrot.slane %v886_v60, %v2091_v46  ;;  %v974_v18 = vrot.slane %v865_v58, %v2094_v47 }
 0x2bf   : > { %v1010_v36 = vsel %vm968_vm9, %v1009_v26, %v1005_v44  ;;  %v976_v40 = vsel %vm975_vm10, %v974_v18, %v969_v27 }
 0x2c0   : > { %v780_v38 = vpop.xlane.xlu0 %779  ;;  %v889_v24 = vpop.xlane.xlu1 %888 }
 0x2c1   : > { %v1014_v23 = vrot.slane %v889_v24, %v2094_v47  ;;  %v826_v26 = vmul.f32 0.015625, %v780_v38 }
 0x2c3   : > { %v1015_v42 = vsel %vm975_vm10, %v1014_v23, %v1010_v36  ;;  %v1108_v44 = vrot.slane %v826_v26, %v2075_v29 }
 0x2c4   : > { %v786_v50 = vpop.xlane.xlu0 %785  ;;  %v807_v52 = vpop.xlane.xlu1 %806  ;;  %v1016_v53 = vsel %vm425_vm2, %v1015_v42, %v976_v40  ;;  %v1112_v40 = vrot.slane %v827_v32, %v2072_v28 }
 0x2c5   : > { %1608 = vmatmul.mubr.msk.f32.vlgmr.msra.gmra.mrb[2].mxu1 %vm335_vm1, %v1016_v53  ;;  %v835_v15 = vmul.f32 0.015625, %v807_v52  ;;  %v828_v18 = vmul.f32 0.015625, %v786_v50 }
 0x2c6   : > { %1667 = vmatpush3.bf16.msra.mxu1 %v1666_v37  ;;  %1626 = vmatprep.mubr.msk.f32.mxu1 %vm1709_vm0, %v1710_v1 }
 0x2c7   : > { %1668 = vmatprep.subr.bf16.mxu1 %v1708_v0  ;;  %v1117_v63 = vrot.slane %v828_v18, %v2069_v31 }
 0x2c8   : > { %v789_v58 = vpop.xlane.xlu0 %788  ;;  %v810_v60 = vpop.xlane.xlu1 %809 }
 0x2c9   : > { %v829_v33 = vmul.f32 0.015625, %v789_v58  ;;  %v836_v19 = vmul.f32 0.015625, %v810_v60  ;;  %v1113_v58 = vsel %vm933_vm4, %v1112_v40, %v1108_v44 }
 0x2ca   : > { %1670 = vmatpush3.bf16.msra.mxu1 %v1669_v54 }
 0x2cb   : > { %1671 = vmatprep.subr.bf16.mxu1 %v1708_v0  ;;  %v1122_v42 = vrot.slane %v829_v33, %v2078_v49  ;;  %v1156_v35 = vrot.slane %v836_v19, %v2069_v31 }
 0x2cc   : > { %v792_v13 = vpop.xlane.xlu0 %791  ;;  %v813_v25 = vpop.xlane.xlu1 %812 }
 0x2cd   : > { %v837_v24 = vmul.f32 0.015625, %v813_v25  ;;  %v830_v23 = vmul.f32 0.015625, %v792_v13 }
 0x2ce   : > { %1673 = vmatpush3.bf16.msra.mxu1 %v1672_v61 }
 0x2cf   : > { %1674 = vmatprep.subr.bf16.mxu1 %v1708_v0  ;;  %v1151_v0 = vrot.slane %v835_v15, %v2072_v28  ;;  %v1161_v52 = vrot.slane %v837_v24, %v2078_v49  ;;  %v1127_v57 = vrot.slane %v830_v23, %v2081_v30  ;;  %v1118_v49 = vsel %vm940_vm5, %v1117_v63, %v1113_v58 }
 0x2d0   : > { %v795_v14 = vpop.xlane.xlu0 %794  ;;  %v816_v1 = vpop.xlane.xlu1 %815 }
 0x2d1   : > { %v838_v27 = vmul.f32 0.015625, %v816_v1  ;;  %v831_v36 = vmul.f32 0.015625, %v795_v14 }
 0x2d2   : > { %1676 = vmatpush3.bf16.msra.mxu1 %v1675_v4  ;;  %v1123_v4 = vsel %vm947_vm6, %v1122_v42, %v1118_v49 }
 0x2d3   : > { %v1132_v60 = vrot.slane %v831_v36, %v2086_v43  ;;  %v1299_v36 = vsub.s32 1, %v1927_v51 }
 0x2d4   : > { %v819_v34 = vpop.xlane.xlu1 %818  ;;  %v804_v20 = vpop.xlane.xlu0 %803 }
 0x2d5   : > { %v834_v39 = vmul.f32 0.015625, %v804_v20  ;;  %v839_v37 = vmul.f32 0.015625, %v819_v34 }
 0x2d7   : > { %v1147_v38 = vrot.slane %v834_v39, %v2075_v29  ;;  %v1166_v29 = vrot.slane %v838_v27, %v2081_v30  ;;  %v1171_v31 = vrot.slane %v839_v37, %v2086_v43  ;;  %v1128_v43 = vsel %vm954_vm7, %v1127_v57, %v1123_v4 }
 0x2d8   : > { %v822_v45 = vpop.xlane.xlu1 %821  ;;  %v798_v50 = vpop.xlane.xlu0 %797  ;;  %v1133_v15 = vsel %vm961_vm8, %v1132_v60, %v1128_v43 }
 0x2d9   : > { %v1152_v53 = vsel %vm933_vm4, %v1151_v0, %v1147_v38  ;;  %v840_v54 = vmul.f32 0.015625, %v822_v45  ;;  %v832_v56 = vmul.f32 0.015625, %v798_v50 }
 0x2da   : > { %v1157_v28 = vsel %vm940_vm5, %v1156_v35, %v1152_v53 }
 0x2db   : > { %v1162_v61 = vsel %vm947_vm6, %v1161_v52, %v1157_v28  ;;  %v1176_v3 = vrot.slane %v840_v54, %v2091_v46  ;;  %v1137_v13 = vrot.slane %v832_v56, %v2091_v46 }
 0x2dc   : > { %v1167_v62 = vsel %vm954_vm7, %v1166_v29, %v1162_v61  ;;  %v825_v25 = vpop.xlane.xlu1 %824  ;;  %v801_v30 = vpop.xlane.xlu0 %800 }
 0x2dd   : > { %v1172_v14 = vsel %vm961_vm8, %v1171_v31, %v1167_v62  ;;  %v841_v1 = vmul.f32 0.015625, %v825_v25  ;;  %v833_v26 = vmul.f32 0.015625, %v801_v30  ;;  %v1138_v46 = vsel %vm968_vm9, %v1137_v13, %v1133_v15 }
 0x2de   : > { %v1177_v33 = vsel %vm968_vm9, %v1176_v3, %v1172_v14 }
 0x2df   : > { %v1181_v32 = vrot.slane %v841_v1, %v2094_v47  ;;  %v1142_v18 = vrot.slane %v833_v26, %v2094_v47 }
 0x2e1   : > { %v1182_v19 = vsel %vm975_vm10, %v1181_v32, %v1177_v33  ;;  %v1143_v34 = vsel %vm975_vm10, %v1142_v18, %v1138_v46 }
 0x2e2   : > { %v1183_v20 = vsel %vm425_vm2, %v1182_v19, %v1143_v34 }
 0x2e3   : > { %1627 = vmatmul.mubr.msk.f32.vlgmr.msra.gmra.mrb[2].mxu1 %vm335_vm1, %v1183_v20 }
 0x3b6   : > { %v1252_v24 = vpop.f32.mrb[2].mxu1 }
 0x3b7   : > { %v1495_v39 = vmul.f32 -1.442695, %v1252_v24  ;;  %v1628_v44 = vpop.f32.mrb[3].mxu1 }
 0x3b9   : > { %1696 = vpow2.f32 %v1495_v39 }
 0x3c3   : > { %v1697_v23 = vpop.eup %1696 }
 0x3c4   : > { %v1259_v27 = vadd.f32 1.0, %v1697_v23 }
 0x3c6   : > { %1698 = vrcp.f32 %v1259_v27 }
 0x3d0   : > { %v1699_v47 = vpop.eup %1698 }
 0x3d1   : > { %v1265_v0 = vrot.slane %v1699_v47, %v1931_v55  ;;  %v1300_v37 = vrot.slane %v1699_v47, %v1299_v36 }
 0x3d3   : > { %1271 = vbcast.lane.b32.xlu1 %v1265_v0, 264  ;;  %1267 = vbcast.lane.b32.xlu0 %v1265_v0, 256 }
 0x3d7   : > { %1275 = vbcast.lane.b32.xlu1 %v1265_v0, 272  ;;  %1283 = vbcast.lane.b32.xlu0 %v1265_v0, 288 }
 0x3db   : > { %1279 = vbcast.lane.b32.xlu1 %v1265_v0, 280  ;;  %1291 = vbcast.lane.b32.xlu0 %v1265_v0, 304 }
 0x3df   : > { %1287 = vbcast.lane.b32.xlu1 %v1265_v0, 296  ;;  %1302 = vbcast.lane.b32.xlu0 %v1300_v37, 256 }
 0x3e3   : > { %1295 = vbcast.lane.b32.xlu1 %v1265_v0, 312  ;;  %1310 = vbcast.lane.b32.xlu0 %v1300_v37, 272 }
 0x3e7   : > { %1306 = vbcast.lane.b32.xlu1 %v1300_v37, 264  ;;  %1318 = vbcast.lane.b32.xlu0 %v1300_v37, 288 }
 0x3eb   : > { %1314 = vbcast.lane.b32.xlu1 %v1300_v37, 280  ;;  %1326 = vbcast.lane.b32.xlu0 %v1300_v37, 304 }
 0x3ef   : > { %1322 = vbcast.lane.b32.xlu1 %v1300_v37, 296 }
 0x3f3   : > { %1330 = vbcast.lane.b32.xlu1 %v1300_v37, 312 }
 0x445   : > { %v1272_v51 = vpop.permute.xlu1 %1271  ;;  %v1268_v55 = vpop.permute.xlu0 %1267 }
 0x446   : > { %v1333_v38 = vmul.f32 %v1272_v51, %v1936_v41  ;;  %v1332_v40 = vmul.f32 %v1268_v55, %v1939_v48 }
 0x448   : > { %1349 = vst.msk [vmem:[%s2183_s16 + $0x8] sm:$0xff] %vm335_vm1, %v1333_v38  ;;  %1348 = vst.msk [vmem:[%s2183_s16] sm:$0xff] %vm335_vm1, %v1332_v40 }
 0x449   : > { %v1276_v63 = vpop.permute.xlu1 %1275  ;;  %v1284_v42 = vpop.permute.xlu0 %1283 }
 0x44a   : > { %v1334_v35 = vmul.f32 %v1276_v63, %v1953_v11  ;;  %v1336_v45 = vmul.f32 %v1284_v42, %v1973_v8 }
 0x44c   : > { %1350 = vst.msk [vmem:[%s2183_s16 + $0x10] sm:$0xff] %vm335_vm1, %v1334_v35  ;;  %1352 = vst.msk [vmem:[%s2183_s16 + $0x20] sm:$0xff] %vm335_vm1, %v1336_v45 }
 0x44d   : > { %v1280_v50 = vpop.permute.xlu1 %1279  ;;  %v1292_v41 = vpop.permute.xlu0 %1291 }
 0x44e   : > { %v1335_v48 = vmul.f32 %v1280_v50, %v1963_v6  ;;  %v1338_v52 = vmul.f32 %v1292_v41, %v1993_v21 }
 0x450   : > { %1351 = vst.msk [vmem:[%s2183_s16 + $0x18] sm:$0xff] %vm335_vm1, %v1335_v48  ;;  %1354 = vst.msk [vmem:[%s2183_s16 + $0x30] sm:$0xff] %vm335_vm1, %v1338_v52 }
 0x451   : > { %v1288_v53 = vpop.permute.xlu1 %1287  ;;  %v1303_v11 = vpop.permute.xlu0 %1302 }
 0x452   : > { %v1337_v8 = vmul.f32 %v1288_v53, %v1983_v10  ;;  %v1340_v54 = vmul.f32 %v1303_v11, %v1946_v2 }
 0x454   : > { %1353 = vst.msk [vmem:[%s2183_s16 + $0x28] sm:$0xff] %vm335_vm1, %v1337_v8  ;;  %1356 = vst.msk [vmem:[%s2183_s16 + $0x40] sm:$0xff] %vm335_vm1, %v1340_v54 }
 0x455   : > { %v1296_v56 = vpop.permute.xlu1 %1295  ;;  %v1311_v6 = vpop.permute.xlu0 %1310 }
 0x456   : > { %v1339_v21 = vmul.f32 %v1296_v56, %v2003_v5  ;;  %v1342_v57 = vmul.f32 %v1311_v6, %v1966_v7 }
 0x458   : > { %1355 = vst.msk [vmem:[%s2183_s16 + $0x38] sm:$0xff] %vm335_vm1, %v1339_v21  ;;  %1358 = vst.msk [vmem:[%s2183_s16 + $0x50] sm:$0xff] %vm335_vm1, %v1342_v57 }
 0x459   : > { %v1307_v10 = vpop.permute.xlu1 %1306  ;;  %v1319_v29 = vpop.permute.xlu0 %1318 }
 0x45a   : > { %v1341_v2 = vmul.f32 %v1307_v10, %v1956_v59  ;;  %v1344_v28 = vmul.f32 %v1319_v29, %v1986_v16 }
 0x45c   : > { %1357 = vst.msk [vmem:[%s2183_s16 + $0x48] sm:$0xff] %vm335_vm1, %v1341_v2  ;;  %1360 = vst.msk [vmem:[%s2183_s16 + $0x60] sm:$0xff] %vm335_vm1, %v1344_v28 }
 0x45d   : > { %v1315_v58 = vpop.permute.xlu1 %1314  ;;  %v1327_v5 = vpop.permute.xlu0 %1326 }
 0x45e   : > { %v1343_v7 = vmul.f32 %v1315_v58, %v1976_v9  ;;  %v1346_v60 = vmul.f32 %v1327_v5, %v2006_v12 }
 0x460   : > { %1359 = vst.msk [vmem:[%s2183_s16 + $0x58] sm:$0xff] %vm335_vm1, %v1343_v7  ;;  %1362 = vst.msk [vmem:[%s2183_s16 + $0x70] sm:$0xff] %vm335_vm1, %v1346_v60 }
 0x461   : > { %v1323_v31 = vpop.permute.xlu1 %1322 }
 0x462   : > { %v1345_v61 = vmul.f32 %v1323_v31, %v1996_v22 }
 0x464   : > { %1361 = vst.msk [vmem:[%s2183_s16 + $0x68] sm:$0xff] %vm335_vm1, %v1345_v61 }
 0x465   : > { %v1331_v59 = vpop.permute.xlu1 %1330 }
 0x466   : > { %v1347_v16 = vmul.f32 %v1331_v59, %v2013_v17 }
 0x468   : > { %1363 = vst.msk [vmem:[%s2183_s16 + $0x78] sm:$0xff] %vm335_vm1, %v1347_v16 }
 0x469 PF: > { %s15_s18 = sadd.s32 1, %s1706_s18  }
 0x46a   : > { %p12_p5 = scmp.ge.s32.totalorder %s15_s18, 4  }
 0x46c   :  { %14 = sbr.rel (!%p12_p5) target bundleno = 1 (0x1), region = 82 }

// kernel: dsamnet_forward.21
= control target key start
LH: loop header
LB: loop body
LE: loop exit
PB: predicated region body
PF: predicated region fallthrough
CT: control target
= control target key end

     0   :  { %vm980_vm0 = vcmask 523264   ;;  %s976_s0 = inlined_call_operand.vmem [shape: f32[2,64,64], index: 0, kind: input, shape index: {}]   ;;  %s977_s1 = inlined_call_operand.vmem [shape: f32[2,64,64], index: 1, kind: input, shape index: {}]   ;;  %s978_s2 = inlined_call_operand.vmem [shape: f32[64,256], index: 2, kind: input, shape index: {}]   ;;  %s979_s3 = inlined_call_operand.vmem [shape: f32[2,256], index: 3, kind: output, shape index: {}]  }
   0x1   :  { %v22_v0 = vld [vmem:[%s976_s0 + $0x40] sm:$0xff]  ;;  %v23_v5 = vld [vmem:[%s976_s0 + $0x48] sm:$0xff]  ;;  %v24_v11 = vld [vmem:[%s976_s0 + $0x50] sm:$0xff] }
   0x2   :  { %v38_v1 = vld [vmem:[%s977_s1 + $0x40] sm:$0xff]  ;;  %v39_v6 = vld [vmem:[%s977_s1 + $0x48] sm:$0xff]  ;;  %v40_v14 = vld [vmem:[%s977_s1 + $0x50] sm:$0xff] }
   0x3   :  { %v14_v2 = vld [vmem:[%s976_s0] sm:$0xff]  ;;  %v54_v3 = vsub.f32 %v22_v0, %v38_v1  ;;  %v55_v8 = vsub.f32 %v23_v5, %v39_v6  ;;  %v15_v9 = vld [vmem:[%s976_s0 + $0x8] sm:$0xff]  ;;  %v16_v15 = vld [vmem:[%s976_s0 + $0x10] sm:$0xff]  ;;  %v56_v19 = vsub.f32 %v24_v11, %v40_v14 }
   0x4   :  { %v30_v4 = vld [vmem:[%s977_s1] sm:$0xff]  ;;  %v31_v10 = vld [vmem:[%s977_s1 + $0x8] sm:$0xff]  ;;  %v32_v16 = vld [vmem:[%s977_s1 + $0x10] sm:$0xff] }
   0x5   :  { %v46_v7 = vsub.f32 %v14_v2, %v30_v4  ;;  %v70_v12 = vadd.f32 1e-06, %v54_v3  ;;  %v47_v13 = vsub.f32 %v15_v9, %v31_v10  ;;  %v71_v18 = vadd.f32 1e-06, %v55_v8  ;;  %v25_v21 = vld [vmem:[%s976_s0 + $0x58] sm:$0xff]  ;;  %v26_v32 = vld [vmem:[%s976_s0 + $0x60] sm:$0xff] }
   0x6   :  { %v48_v20 = vsub.f32 %v16_v15, %v32_v16  ;;  %v41_v22 = vld [vmem:[%s977_s1 + $0x58] sm:$0xff]  ;;  %v72_v30 = vadd.f32 1e-06, %v56_v19  ;;  %v42_v33 = vld [vmem:[%s977_s1 + $0x60] sm:$0xff]  ;;  %v27_v48 = vld [vmem:[%s976_s0 + $0x68] sm:$0xff] }
   0x7   :  { %v62_v17 = vadd.f32 1e-06, %v46_v7  ;;  %v86_v23 = vmul.f32 %v70_v12, %v70_v12  ;;  %v63_v24 = vadd.f32 1e-06, %v47_v13  ;;  %v57_v25 = vsub.f32 %v25_v21, %v41_v22  ;;  %v17_v26 = vld [vmem:[%s976_s0 + $0x18] sm:$0xff]  ;;  %v18_v37 = vld [vmem:[%s976_s0 + $0x20] sm:$0xff] }
   0x8   :  { %v33_v27 = vld [vmem:[%s977_s1 + $0x18] sm:$0xff]  ;;  %v87_v29 = vmul.f32 %v71_v18, %v71_v18  ;;  %v64_v31 = vadd.f32 1e-06, %v48_v20  ;;  %v34_v38 = vld [vmem:[%s977_s1 + $0x20] sm:$0xff]  ;;  %v88_v41 = vmul.f32 %v72_v30, %v72_v30  ;;  %v58_v43 = vsub.f32 %v26_v32, %v42_v33  ;;  %v43_v49 = vld [vmem:[%s977_s1 + $0x68] sm:$0xff] }
   0x9   :  { %v78_v28 = vmul.f32 %v62_v17, %v62_v17  ;;  %v119_v34 = vsel %vm980_vm0, %v86_v23, 0.0  ;;  %v79_v35 = vmul.f32 %v63_v24, %v63_v24  ;;  %v49_v36 = vsub.f32 %v17_v26, %v33_v27  ;;  %v19_v50 = vld [vmem:[%s976_s0 + $0x28] sm:$0xff]  ;;  %v28_v60 = vld [vmem:[%s976_s0 + $0x70] sm:$0xff]  ;;  %v29_v8 = vld [vmem:[%s976_s0 + $0x78] sm:$0xff] }
   0xa   :  { %120 = vadd.xlane.f32.xlu1 %v119_v34  ;;  %v122_v40 = vsel %vm980_vm0, %v87_v29, 0.0  ;;  %v73_v42 = vadd.f32 1e-06, %v57_v25  ;;  %v80_v45 = vmul.f32 %v64_v31, %v64_v31  ;;  %v50_v47 = vsub.f32 %v18_v37, %v34_v38  ;;  %v35_v51 = vld [vmem:[%s977_s1 + $0x28] sm:$0xff]  ;;  %v44_v61 = vld [vmem:[%s977_s1 + $0x70] sm:$0xff]  ;;  %v45_v9 = vld [vmem:[%s977_s1 + $0x78] sm:$0xff] }
   0xb   :  { %v95_v39 = vsel %vm980_vm0, %v78_v28, 0.0  ;;  %v98_v44 = vsel %vm980_vm0, %v79_v35, 0.0  ;;  %v65_v46 = vadd.f32 1e-06, %v49_v36  ;;  %v125_v52 = vsel %vm980_vm0, %v88_v41, 0.0  ;;  %v20_v62 = vld [vmem:[%s976_s0 + $0x30] sm:$0xff] }
   0xc   :  { %96 = vadd.xlane.f32.xlu0 %v95_v39  ;;  %v89_v53 = vmul.f32 %v73_v42, %v73_v42  ;;  %v74_v54 = vadd.f32 1e-06, %v58_v43  ;;  %v59_v55 = vsub.f32 %v27_v48, %v43_v49  ;;  %v101_v56 = vsel %vm980_vm0, %v80_v45, 0.0  ;;  %v36_v63 = vld [vmem:[%s977_s1 + $0x30] sm:$0xff]  ;;  %v21_v10 = vld [vmem:[%s976_s0 + $0x38] sm:$0xff]  ;;  %v256_v32 = vld [vmem:[%s978_s2 + $0x8] sm:$0xff] }
   0xd   :  { %v81_v57 = vmul.f32 %v65_v46, %v65_v46  ;;  %v66_v58 = vadd.f32 1e-06, %v50_v47  ;;  %v51_v59 = vsub.f32 %v19_v50, %v35_v51  ;;  %v60_v3 = vsub.f32 %v28_v60, %v44_v61  ;;  %v37_v11 = vld [vmem:[%s977_s1 + $0x38] sm:$0xff]  ;;  %v255_v35 = vld [vmem:[%s978_s2] sm:$0xff]  ;;  %v257_v36 = vld [vmem:[%s978_s2 + $0x10] sm:$0xff] }
   0xe   :  { %123 = vadd.xlane.f32.xlu1 %v122_v40  ;;  %v128_v0 = vsel %vm980_vm0, %v89_v53, 0.0  ;;  %v90_v1 = vmul.f32 %v74_v54, %v74_v54  ;;  %v75_v2 = vadd.f32 1e-06, %v59_v55  ;;  %v52_v7 = vsub.f32 %v20_v62, %v36_v63  ;;  %v258_v33 = vld [vmem:[%s978_s2 + $0x18] sm:$0xff]  ;;  %v260_v38 = vld [vmem:[%s978_s2 + $0x28] sm:$0xff]  ;;  %v259_v41 = vld [vmem:[%s978_s2 + $0x20] sm:$0xff] }
   0xf   :  { %v104_v4 = vsel %vm980_vm0, %v81_v57, 0.0  ;;  %v82_v5 = vmul.f32 %v66_v58, %v66_v58  ;;  %v67_v6 = vadd.f32 1e-06, %v51_v59  ;;  %v76_v14 = vadd.f32 1e-06, %v60_v3  ;;  %v262_v39 = vld [vmem:[%s978_s2 + $0x38] sm:$0xff] }
  0x10   :  { %99 = vadd.xlane.f32.xlu0 %v98_v44  ;;  %v131_v12 = vsel %vm980_vm0, %v90_v1, 0.0  ;;  %v91_v13 = vmul.f32 %v75_v2, %v75_v2  ;;  %v61_v15 = vsub.f32 %v29_v8, %v45_v9  ;;  %v68_v18 = vadd.f32 1e-06, %v52_v7  ;;  %v261_v42 = vld [vmem:[%s978_s2 + $0x30] sm:$0xff]  ;;  %v264_v44 = vld [vmem:[%s978_s2 + $0x48] sm:$0xff]  ;;  %v266_v45 = vld [vmem:[%s978_s2 + $0x58] sm:$0xff] }
  0x11   :  { %v107_v16 = vsel %vm980_vm0, %v82_v5, 0.0  ;;  %v83_v17 = vmul.f32 %v67_v6, %v67_v6  ;;  %v53_v19 = vsub.f32 %v21_v10, %v37_v11  ;;  %v92_v21 = vmul.f32 %v76_v14, %v76_v14  ;;  %v263_v47 = vld [vmem:[%s978_s2 + $0x40] sm:$0xff]  ;;  %v265_v48 = vld [vmem:[%s978_s2 + $0x50] sm:$0xff]  ;;  %v268_v50 = vld [vmem:[%s978_s2 + $0x68] sm:$0xff] }
  0x12   :  { %126 = vadd.xlane.f32.xlu1 %v125_v52  ;;  %v134_v20 = vsel %vm980_vm0, %v91_v13, 0.0  ;;  %v77_v22 = vadd.f32 1e-06, %v61_v15  ;;  %v84_v24 = vmul.f32 %v68_v18, %v68_v18  ;;  %v474_v34 = vpack.c.bf16 %v258_v33, %v256_v32  ;;  %v270_v51 = vld [vmem:[%s978_s2 + $0x78] sm:$0xff]  ;;  %v267_v52 = vld [vmem:[%s978_s2 + $0x60] sm:$0xff]  ;;  %v269_v54 = vld [vmem:[%s978_s2 + $0x70] sm:$0xff] }
  0x13   :  { %v110_v23 = vsel %vm980_vm0, %v83_v17, 0.0  ;;  %v69_v25 = vadd.f32 1e-06, %v53_v19  ;;  %v137_v26 = vsel %vm980_vm0, %v92_v21, 0.0  ;;  %v476_v37 = vpack.c.bf16 %v257_v36, %v255_v35 }
  0x14   :  { %102 = vadd.xlane.f32.xlu0 %v101_v56  ;;  %v93_v27 = vmul.f32 %v77_v22, %v77_v22  ;;  %v113_v28 = vsel %vm980_vm0, %v84_v24, 0.0  ;;  %475 = vmatprep.subr.bf16.mxu0 %v474_v34  ;;  %v478_v40 = vpack.c.bf16 %v262_v39, %v260_v38  ;;  %v480_v43 = vpack.c.bf16 %v261_v42, %v259_v41 }
  0x15   :  { %v85_v29 = vmul.f32 %v69_v25, %v69_v25  ;;  %477 = vmatpush1.bf16.msra.mxu0 %v476_v37  ;;  %v482_v46 = vpack.c.bf16 %v266_v45, %v264_v44  ;;  %v484_v49 = vpack.c.bf16 %v265_v48, %v263_v47  ;;  %v486_v53 = vpack.c.bf16 %v270_v51, %v268_v50 }
  0x16   :  { %129 = vadd.xlane.f32.xlu1 %v128_v0  ;;  %v140_v30 = vsel %vm980_vm0, %v93_v27, 0.0  ;;  %479 = vmatprep.subr.bf16.mxu0 %v478_v40  ;;  %v523_v55 = vmov 0.0   ;;  %v488_v56 = vpack.c.bf16 %v269_v54, %v267_v52  ;;  %v287_v58 = vlaneseq }
  0x17   :  { %v116_v31 = vsel %vm980_vm0, %v85_v29, 0.0  ;;  %449 = vmatprep.mubr.f32.mxu0 %v523_v55  ;;  %vm333_vm0 = vcmask 458112  }
  0x18   :  { %105 = vadd.xlane.f32.xlu0 %v104_v4  ;;  %v288_v61 = vand.u32 127, %v287_v58  ;;  %v290_v63 = vshrl.u32 %v287_v58, 7 }
  0x19   :  { %481 = vmatpush1.bf16.msra.mxu0 %v480_v43 }
  0x1a   :  { %132 = vadd.xlane.f32.xlu1 %v131_v12  ;;  %483 = vmatprep.subr.bf16.mxu0 %v482_v46  ;;  %v293_v0 = vadd.s32 4294967288, %v288_v61  ;;  %v300_v1 = vadd.s32 4294967280, %v288_v61  ;;  %v307_v2 = vadd.s32 4294967272, %v288_v61  ;;  %v314_v4 = vadd.s32 4294967264, %v288_v61 }
  0x1b   :  { %v321_v5 = vadd.s32 4294967256, %v288_v61  ;;  %v328_v6 = vadd.s32 4294967248, %v288_v61  ;;  %v335_v7 = vadd.s32 4294967240, %v288_v61  ;;  %v722_v10 = vsub.s32 %v288_v61, %v290_v63 }
  0x1c   :  { %108 = vadd.xlane.f32.xlu0 %v107_v16  ;;  %v724_v11 = vsub.s32 %v293_v0, %v290_v63  ;;  %v726_v12 = vsub.s32 %v300_v1, %v290_v63  ;;  %v728_v13 = vsub.s32 %v307_v2, %v290_v63  ;;  %v732_v16 = vsub.s32 %v314_v4, %v290_v63 }
  0x1d   :  { %485 = vmatpush1.bf16.msra.mxu0 %v484_v49  ;;  %v734_v17 = vsub.s32 %v321_v5, %v290_v63  ;;  %v736_v18 = vsub.s32 %v328_v6, %v290_v63  ;;  %v738_v19 = vsub.s32 %v335_v7, %v290_v63 }
  0x1e   :  { %135 = vadd.xlane.f32.xlu1 %v134_v20  ;;  %487 = vmatprep.subr.bf16.mxu0 %v486_v53 }
  0x20   :  { %111 = vadd.xlane.f32.xlu0 %v110_v23 }
  0x21   :  { %489 = vmatpush1.bf16.msra.mxu0 %v488_v56 }
  0x22   :  { %138 = vadd.xlane.f32.xlu1 %v137_v26 }
  0x24   :  { %114 = vadd.xlane.f32.xlu0 %v113_v28 }
  0x26   :  { %141 = vadd.xlane.f32.xlu1 %v140_v30 }
  0x28   :  { %117 = vadd.xlane.f32.xlu0 %v116_v31 }
  0x97   :  { %v704_v57 = vpop.xlane.xlu1 %120 }
  0x98   :  { %491 = vrsqrt.f32 %v704_v57  ;;  %vm201_vm1 = vcmp.eq.f32.partialorder %v704_v57, inf  ;;  %vm203_vm2 = vcmp.eq.f32.partialorder %v704_v57, 0.0  ;;  %v204_v22 = vand.u32 2147483648, %v704_v57 }
  0x99   :  { %v707_v59 = vpop.xlane.xlu0 %96 }
  0x9a   :  { %493 = vrsqrt.f32 %v707_v59  ;;  %vm145_vm3 = vcmp.eq.f32.partialorder %v707_v59, inf  ;;  %vm147_vm4 = vcmp.eq.f32.partialorder %v707_v59, 0.0  ;;  %v148_v25 = vand.u32 2147483648, %v707_v59 }
  0x9b   :  { %v710_v60 = vpop.xlane.xlu1 %123 }
  0x9c   :  { %495 = vrsqrt.f32 %v710_v60  ;;  %vm208_vm5 = vcmp.eq.f32.partialorder %v710_v60, inf  ;;  %vm210_vm6 = vcmp.eq.f32.partialorder %v710_v60, 0.0  ;;  %v211_v28 = vand.u32 2147483648, %v710_v60 }
  0x9d   :  { %v713_v62 = vpop.xlane.xlu0 %99 }
  0x9e   :  { %497 = vrsqrt.f32 %v713_v62  ;;  %vm152_vm7 = vcmp.eq.f32.partialorder %v713_v62, inf  ;;  %vm154_vm8 = vcmp.eq.f32.partialorder %v713_v62, 0.0  ;;  %v155_v32 = vand.u32 2147483648, %v713_v62 }
  0x9f   :  { %v716_v3 = vpop.xlane.xlu1 %126 }
  0xa0   :  { %499 = vrsqrt.f32 %v716_v3  ;;  %vm215_vm9 = vcmp.eq.f32.partialorder %v716_v3, inf  ;;  %vm217_vm10 = vcmp.eq.f32.partialorder %v716_v3, 0.0  ;;  %v218_v36 = vand.u32 2147483648, %v716_v3 }
  0xa1   :  { %v719_v8 = vpop.xlane.xlu0 %102 }
  0xa2   :  { %501 = vrsqrt.f32 %v719_v8  ;;  %v492_v9 = vpop.eup %491  ;;  %vm159_vm11 = vcmp.eq.f32.partialorder %v719_v8, inf  ;;  %vm161_vm12 = vcmp.eq.f32.partialorder %v719_v8, 0.0  ;;  %v162_v37 = vand.u32 2147483648, %v719_v8 }
  0xa3   :  { %v730_v15 = vpop.xlane.xlu1 %129  ;;  %v200_v20 = vmul.f32 %v492_v9, %v704_v57 }
  0xa4   :  { %v494_v14 = vpop.eup %493  ;;  %503 = vrsqrt.f32 %v730_v15  ;;  %vm222_vm13 = vcmp.eq.f32.partialorder %v730_v15, inf  ;;  %vm224_vm14 = vcmp.eq.f32.partialorder %v730_v15, 0.0  ;;  %v225_v47 = vand.u32 2147483648, %v730_v15 }
  0xa5   :  { %v744_v21 = vpop.xlane.xlu0 %105  ;;  %v144_v23 = vmul.f32 %v494_v14, %v707_v59  ;;  %v202_v30 = vsel %vm201_vm1, %v704_v57, %v200_v20 }
  0xa6   :  { %505 = vrsqrt.f32 %v744_v21  ;;  %v496_v24 = vpop.eup %495  ;;  %v780_v39 = vsel %vm203_vm2, %v204_v22, %v202_v30  ;;  %vm166_vm15 = vcmp.eq.f32.partialorder %v744_v21, inf  ;;  %vm168_vm1 = vcmp.eq.f32.partialorder %v744_v21, 0.0 }
  0xa7   :  { %v207_v27 = vmul.f32 %v496_v24, %v710_v60  ;;  %v758_v29 = vpop.xlane.xlu1 %132  ;;  %v146_v34 = vsel %vm145_vm3, %v707_v59, %v144_v23  ;;  %v345_v49 = vrot.slane %v780_v39, %v722_v10  ;;  %v169_v51 = vand.u32 2147483648, %v744_v21 }
  0xa8   :  { %v498_v26 = vpop.eup %497  ;;  %507 = vrsqrt.f32 %v758_v29  ;;  %v791_v43 = vsel %vm147_vm4, %v148_v25, %v146_v34  ;;  %vm229_vm2 = vcmp.eq.f32.partialorder %v758_v29, inf  ;;  %vm231_vm3 = vcmp.eq.f32.partialorder %v758_v29, 0.0 }
  0xa9   :  { %v151_v31 = vmul.f32 %v498_v26, %v713_v62  ;;  %v766_v33 = vpop.xlane.xlu0 %108  ;;  %v209_v40 = vsel %vm208_vm5, %v710_v60, %v207_v27  ;;  %v292_v53 = vrot.slane %v791_v43, %v722_v10 }
  0xaa   :  { %509 = vrsqrt.f32 %v766_v33  ;;  %v500_v35 = vpop.eup %499  ;;  %v808_v50 = vsel %vm210_vm6, %v211_v28, %v209_v40  ;;  %vm173_vm4 = vcmp.eq.f32.partialorder %v766_v33, inf  ;;  %vm175_vm5 = vcmp.eq.f32.partialorder %v766_v33, 0.0 }
  0xab   :  { %v214_v41 = vmul.f32 %v500_v35, %v716_v3  ;;  %v787_v42 = vpop.xlane.xlu1 %135  ;;  %v153_v44 = vsel %vm152_vm7, %v713_v62, %v151_v31  ;;  %v349_v61 = vrot.slane %v808_v50, %v724_v11  ;;  %v232_v62 = vand.u32 2147483648, %v758_v29 }
  0xac   :  { %v502_v38 = vpop.eup %501  ;;  %511 = vrsqrt.f32 %v787_v42  ;;  %v816_v54 = vsel %vm154_vm8, %v155_v32, %v153_v44  ;;  %v176_v2 = vand.u32 2147483648, %v766_v33  ;;  %vm236_vm6 = vcmp.eq.f32.partialorder %v787_v42, inf }
  0xad   :  { %v158_v45 = vmul.f32 %v502_v38, %v719_v8  ;;  %v798_v46 = vpop.xlane.xlu0 %111  ;;  %v216_v55 = vsel %vm215_vm9, %v716_v3, %v214_v41  ;;  %v297_v0 = vrot.slane %v816_v54, %v724_v11  ;;  %vm238_vm7 = vcmp.eq.f32.partialorder %v787_v42, 0.0 }
  0xae   :  { %513 = vrsqrt.f32 %v798_v46  ;;  %v504_v48 = vpop.eup %503  ;;  %v842_v1 = vsel %vm217_vm10, %v218_v36, %v216_v55  ;;  %vm298_vm8 = vcmask 130112   ;;  %vm180_vm9 = vcmp.eq.f32.partialorder %v798_v46, inf }
  0xaf   :  { %v221_v56 = vmul.f32 %v504_v48, %v730_v15  ;;  %v822_v57 = vpop.xlane.xlu1 %138  ;;  %v160_v58 = vsel %vm159_vm11, %v719_v8, %v158_v45  ;;  %v239_v8 = vand.u32 2147483648, %v787_v42  ;;  %v354_v22 = vrot.slane %v842_v1, %v726_v12 }
  0xb0   :  { %v506_v52 = vpop.eup %505  ;;  %515 = vrsqrt.f32 %v822_v57  ;;  %v849_v5 = vsel %vm161_vm12, %v162_v37, %v160_v58  ;;  %vm182_vm10 = vcmp.eq.f32.partialorder %v798_v46, 0.0  ;;  %vm305_vm11 = vcmask 195712  }
  0xb1   :  { %v165_v59 = vmul.f32 %v506_v52, %v744_v21  ;;  %v830_v60 = vpop.xlane.xlu0 %114  ;;  %v223_v6 = vsel %vm222_vm13, %v730_v15, %v221_v56  ;;  %v304_v24 = vrot.slane %v849_v5, %v726_v12  ;;  %v183_v26 = vand.u32 2147483648, %v798_v46 }
  0xb2   :  { %517 = vrsqrt.f32 %v830_v60  ;;  %v508_v63 = vpop.eup %507  ;;  %v226_v25 = vsel %vm224_vm14, %v225_v47, %v223_v6  ;;  %vm243_vm12 = vcmp.eq.f32.partialorder %v822_v57, inf  ;;  %vm312_vm13 = vcmask 261312  }
  0xb3   :  { %v228_v7 = vmul.f32 %v508_v63, %v758_v29  ;;  %v856_v3 = vpop.xlane.xlu1 %141  ;;  %v167_v9 = vsel %vm166_vm15, %v744_v21, %v165_v59  ;;  %vm245_vm15 = vcmp.eq.f32.partialorder %v822_v57, 0.0  ;;  %v246_v32 = vand.u32 2147483648, %v822_v57 }
  0xb4   :  { %v510_v4 = vpop.eup %509  ;;  %519 = vrsqrt.f32 %v856_v3  ;;  %v170_v28 = vsel %vm168_vm1, %v169_v51, %v167_v9  ;;  %vm187_vm14 = vcmp.eq.f32.partialorder %v830_v60, inf  ;;  %v359_v21 = vrot.slane %v226_v25, %v728_v13 }
  0xb5   :  { %v172_v14 = vmul.f32 %v510_v4, %v766_v33  ;;  %v864_v20 = vpop.xlane.xlu0 %117  ;;  %v230_v30 = vsel %vm229_vm2, %v758_v29, %v228_v7  ;;  %vm189_vm2 = vcmp.eq.f32.partialorder %v830_v60, 0.0  ;;  %v190_v35 = vand.u32 2147483648, %v830_v60 }
  0xb6   :  { %521 = vrsqrt.f32 %v864_v20  ;;  %v512_v23 = vpop.eup %511  ;;  %v311_v37 = vrot.slane %v170_v28, %v728_v13  ;;  %v233_v38 = vsel %vm231_vm3, %v232_v62, %v230_v30  ;;  %vm340_vm1 = vcmask 523712  }
  0xb7   :  { %v235_v31 = vmul.f32 %v512_v23, %v787_v42  ;;  %v174_v12 = vsel %vm173_vm4, %v766_v33, %v172_v14  ;;  %vm250_vm4 = vcmp.eq.f32.partialorder %v856_v3, inf  ;;  %v253_v13 = vand.u32 2147483648, %v856_v3 }
  0xb8   :  { %v514_v27 = vpop.eup %513  ;;  %v177_v44 = vsel %vm175_vm5, %v176_v2, %v174_v12  ;;  %vm194_vm3 = vcmp.eq.f32.partialorder %v864_v20, inf  ;;  %v364_v48 = vrot.slane %v233_v38, %v732_v16  ;;  %v197_v52 = vand.u32 2147483648, %v864_v20 }
  0xb9   :  { %v179_v15 = vmul.f32 %v514_v27, %v798_v46  ;;  %v237_v34 = vsel %vm236_vm6, %v787_v42, %v235_v31  ;;  %vm252_vm6 = vcmp.eq.f32.partialorder %v856_v3, 0.0  ;;  %v318_v42 = vrot.slane %v177_v44, %v732_v16 }
  0xba   :  { %v516_v36 = vpop.eup %515  ;;  %v240_v29 = vsel %vm238_vm7, %v239_v8, %v237_v34  ;;  %vm981_vm5 = vcmask 326912  }
  0xbb   :  { %v181_v40 = vsel %vm180_vm9, %v798_v46, %v179_v15  ;;  %v242_v45 = vmul.f32 %v516_v36, %v822_v57  ;;  %vm196_vm9 = vcmp.eq.f32.partialorder %v864_v20, 0.0  ;;  %v299_v46 = vsel %vm298_vm8, %v297_v0, %v292_v53  ;;  %vm982_vm7 = vmmov %vm981_vm5 }
  0xbc   :  { %v518_v41 = vpop.eup %517  ;;  %v184_v33 = vsel %vm182_vm10, %v183_v26, %v181_v40  ;;  %v369_v43 = vrot.slane %v240_v29, %v734_v17  ;;  %v306_v10 = vsel %vm305_vm11, %v304_v24, %v299_v46 }
  0xbd   :  { %v186_v47 = vmul.f32 %v518_v41, %v830_v60  ;;  %v244_v51 = vsel %vm243_vm12, %v822_v57, %v242_v45  ;;  %v350_v57 = vsel %vm298_vm8, %v349_v61, %v345_v49  ;;  %v325_v53 = vrot.slane %v184_v33, %v734_v17 }
  0xbe   :  { %v520_v55 = vpop.eup %519  ;;  %v247_v58 = vsel %vm245_vm15, %v246_v32, %v244_v51  ;;  %v355_v63 = vsel %vm305_vm11, %v354_v22, %v350_v57  ;;  %v313_v50 = vsel %vm312_vm13, %v311_v37, %v306_v10  ;;  %vm983_vm8 = vcmask 392512  }
  0xbf   :  { %v188_v56 = vsel %vm187_vm14, %v830_v60, %v186_v47  ;;  %v249_v62 = vmul.f32 %v520_v55, %v856_v3  ;;  %v374_v0 = vrot.slane %v247_v58, %v736_v18  ;;  %v360_v39 = vsel %vm312_vm13, %v359_v21, %v355_v63  ;;  %vm984_vm10 = vmmov %vm983_vm8 }
  0xc0   :  { %v522_v59 = vpop.eup %521  ;;  %v191_v16 = vsel %vm189_vm2, %v190_v35, %v188_v56  ;;  %v365_v61 = vsel %vm981_vm5, %v364_v48, %v360_v39  ;;  %v320_v2 = vsel %vm982_vm7, %v318_v42, %v313_v50  ;;  %vm381_vm11 = vcmask 1041409  }
  0xc1   :  { %v193_v54 = vmul.f32 %v522_v59, %v864_v20  ;;  %v251_v60 = vsel %vm250_vm4, %v856_v3, %v249_v62  ;;  %v332_v11 = vrot.slane %v191_v16, %v736_v18  ;;  %v370_v18 = vsel %vm983_vm8, %v369_v43, %v365_v61 }
  0xc2   :  { %v254_v49 = vsel %vm252_vm6, %v253_v13, %v251_v60  ;;  %v327_v5 = vsel %vm984_vm10, %v325_v53, %v320_v2  ;;  %v375_v7 = vsel %vm333_vm0, %v374_v0, %v370_v18  ;;  %vm985_vm12 = vcmask 523264  }
  0xc3   :  { %v195_v17 = vsel %vm194_vm3, %v864_v20, %v193_v54  ;;  %v379_v4 = vrot.slane %v254_v49, %v738_v19  ;;  %v334_v3 = vsel %vm333_vm0, %v332_v11, %v327_v5 }
  0xc4   :  { %v198_v1 = vsel %vm196_vm9, %v197_v52, %v195_v17 }
  0xc5   :  { %v339_v6 = vrot.slane %v198_v1, %v738_v19  ;;  %v380_v9 = vsel %vm340_vm1, %v379_v4, %v375_v7 }
  0xc7   :  { %v341_v14 = vsel %vm340_vm1, %v339_v6, %v334_v3 }
  0xc8   :  { %v382_v8 = vsel %vm381_vm11, %v380_v9, %v341_v14 }
  0xc9   :  { %472 = vmatmul.mubr.msk.f32.vlgmr.msra.gmra.mrb[0].mxu0 %vm985_vm12, %v382_v8 }
 0x19c   :  { %v451_v20 = vpop.f32.mrb[0].mxu0 }
 0x19d   :  { %v453_v22 = vpop.f32.mrb[1].mxu0 }
 0x19e   :  { %v458_v23 = vcombine.low %v451_v20, %v453_v22 }
 0x1a0   :  { %473 = vst.sshfl [vmem:[%s979_s3] sm:$0x33 pattern:$0x76325410] %v458_v23 }

</bundles_post_ra>
